<compile_context>
chip_gen: v7x
topology: tpu7x:2x2x1
jax: 0.10.0
libtpu: 0.0.40
codegen_flags: <defaults>
</compile_context>

<pallas_src>
import numpy as np

import jax
import jax.numpy as jnp
from jax.experimental import pallas as pl
from jax.experimental.pallas import tpu as pltpu


EPS = 1e-5          # BatchNorm2d default
NEG_SLOPE = 0.01    # LeakyReLU default


# -----------------------------------------------------------------------------
# Fused kernel:  conv1 -> LReLU -> BN -> conv2 -> LReLU -> BN
#                      -> conv3 -> LReLU -> BN -> conv4
# Activations live as (NH, W*C) f32 blocks (NH = N*H rows, lane index w*C + c).
# -----------------------------------------------------------------------------
def decoder_kernel(x_ref, s_ref,
                   w1_ref, b1_ref, g1_ref, be1_ref,
                   w2_ref, b2_ref, g2_ref, be2_ref,
                   w3_ref, b3_ref, g3_ref, be3_ref,
                   w4_ref, b4_ref,
                   r_ref, rt_ref,
                   o_ref):
    nh = x_ref.shape[0]

    def conv3x3(a_f32, w_ref, b_ref):
        """3x3 conv, padding=1, as 3 MXU matmuls with K = W*Cin.

        s_ref[kh] @ a   : vertical tap (rows shifted by kh-1; zero rows at the
                          image top/bottom, batch boundaries respected).
        ...  @ w_ref[kh]: banded (W*Cin, W*Cout) weight — horizontal taps (kw)
                          folded into K, horizontal zero-padding in the band.
        """
        a_bf = a_f32.astype(jnp.bfloat16)
        wcout = w_ref.shape[-1]
        acc = jnp.zeros((nh, wcout), jnp.float32) + b_ref[...]
        for kh in range(3):
            shifted = jnp.dot(s_ref[kh], a_bf,
                              preferred_element_type=jnp.float32)
            acc = acc + jnp.dot(shifted.astype(jnp.bfloat16), w_ref[kh],
                                preferred_element_type=jnp.float32)
        return acc

    def lrelu_bn(y, g_ref, be_ref):
        """LeakyReLU(0.01) + training-mode BatchNorm2d (global batch stats)."""
        y = jnp.where(y >= 0.0, y, NEG_SLOPE * y)
        row_mean = jnp.mean(y, axis=0, keepdims=True)            # (1, W*C)
        row_msq = jnp.mean(y * y, axis=0, keepdims=True)         # (1, W*C)
        # Fold the W spatial copies of each channel (r_ref carries the 1/W),
        # then broadcast the per-channel stats back to the (w, c) lane layout.
        mean_c = jnp.dot(row_mean, r_ref[...],
                         preferred_element_type=jnp.float32)     # (1, C)
        msq_c = jnp.dot(row_msq, r_ref[...],
                        preferred_element_type=jnp.float32)      # (1, C)
        var_c = msq_c - mean_c * mean_c                          # biased var
        mean_wc = jnp.dot(mean_c, rt_ref[...],
                          preferred_element_type=jnp.float32)    # (1, W*C)
        var_wc = jnp.dot(var_c, rt_ref[...],
                         preferred_element_type=jnp.float32)     # (1, W*C)
        inv = jax.lax.rsqrt(var_wc + EPS)
        return (y - mean_wc) * inv * g_ref[...] + be_ref[...]

    a = x_ref[...]                                               # (NH, W*3) f32
    a = lrelu_bn(conv3x3(a, w1_ref, b1_ref), g1_ref, be1_ref)
    a = lrelu_bn(conv3x3(a, w2_ref, b2_ref), g2_ref, be2_ref)
    a = lrelu_bn(conv3x3(a, w3_ref, b3_ref), g3_ref, be3_ref)
    o_ref[...] = conv3x3(a, w4_ref, b4_ref).astype(o_ref.dtype)


# -----------------------------------------------------------------------------
# Parameter construction / one-time kernel-operand preparation.
# -----------------------------------------------------------------------------
def init_basic_decoder_params(key, data_depth, hidden_size):
    """Deterministic synthetic params: 4 convs (HWIO layout) + 3 batch-norms."""
    chans = [(3, hidden_size), (hidden_size, hidden_size),
             (hidden_size, hidden_size), (hidden_size, data_depth)]
    params = []
    for i, (cin, cout) in enumerate(chans):
        key, kw, kb, kg, kbe = jax.random.split(key, 5)
        w = 0.05 * jax.random.normal(kw, (3, 3, cin, cout), jnp.float32)
        b = 0.05 * jax.random.normal(kb, (cout,), jnp.float32)
        if i < len(chans) - 1:
            gamma = 1.0 + 0.1 * jax.random.normal(kg, (cout,), jnp.float32)
            beta = 0.1 * jax.random.normal(kbe, (cout,), jnp.float32)
        else:
            gamma, beta = None, None
        params.append((w, b, gamma, beta))
    return params


def _banded_weight(w_conv, width):
    """(3, 3, Cin, Cout) -> (3, W*Cin, W*Cout) bf16 with kw folded into K."""
    w_np = np.asarray(w_conv, np.float32)
    _, _, cin, cout = w_np.shape
    big = np.zeros((3, width, cin, width, cout), np.float32)
    for kh in range(3):
        for w_out in range(width):
            for kw in range(3):
                w_in = w_out + kw - 1
                if 0 <= w_in < width:
                    big[kh, w_in, :, w_out, :] = w_np[kh, kw]
    return jnp.asarray(big.reshape(3, width * cin, width * cout), jnp.bfloat16)


def _shift_matrices(n, h):
    """(3, N*H, N*H): row shift by dh=-1,0,+1, zero rows at image edges."""
    nh = n * h
    s = np.zeros((3, nh, nh), np.float32)
    for k, dh in enumerate((-1, 0, 1)):
        for r in range(nh):
            if 0 <= (r % h) + dh < h:
                s[k, r, r + dh] = 1.0
    return jnp.asarray(s, jnp.bfloat16)


def _channel_row(v, width):
    """(C,) -> (1, W*C), laid out as lane index w*C + c."""
    return jnp.tile(jnp.asarray(v, jnp.float32), width)[None, :]


def _bn_reduce_mats(width, c):
    """R: (W*C, C) averages the W copies of each channel; RT broadcasts back."""
    eye = np.eye(c, dtype=np.float32)
    r = np.tile(eye, (width, 1)) / float(width)
    rt = np.tile(eye, (1, width))
    return jnp.asarray(r, jnp.float32), jnp.asarray(rt, jnp.float32)


def prepare_decoder(params, n, h, w):
    """One-time conversion of conv/BN params into kernel-ready operands."""
    (w1, b1, g1, be1), (w2, b2, g2, be2), (w3, b3, g3, be3), (w4, b4, _, _) = params
    hidden = w1.shape[-1]
    r, rt = _bn_reduce_mats(w, hidden)
    return dict(
        s=_shift_matrices(n, h),
        w1=_banded_weight(w1, w), b1=_channel_row(b1, w),
        g1=_channel_row(g1, w), be1=_channel_row(be1, w),
        w2=_banded_weight(w2, w), b2=_channel_row(b2, w),
        g2=_channel_row(g2, w), be2=_channel_row(be2, w),
        w3=_banded_weight(w3, w), b3=_channel_row(b3, w),
        g3=_channel_row(g3, w), be3=_channel_row(be3, w),
        w4=_banded_weight(w4, w), b4=_channel_row(b4, w),
        r=r, rt=rt,
    )


# -----------------------------------------------------------------------------
# Forward wrapper (NCHW in / NCHW out, matching the PyTorch module).
# -----------------------------------------------------------------------------
@jax.jit
def basic_decoder_forward(x_nchw, kp):
    n, cin, h, w = x_nchw.shape
    nh = n * h
    wdd = kp['w4'].shape[-1]
    dd = wdd // w

    x2 = jnp.transpose(x_nchw, (0, 2, 3, 1)).reshape(nh, w * cin)
    x2 = x2.astype(jnp.float32)

    vmem = pl.BlockSpec(memory_space=pltpu.MemorySpace.VMEM)
    out2 = pl.pallas_call(
        decoder_kernel,
        out_shape=jax.ShapeDtypeStruct((nh, wdd), jnp.float32),
        in_specs=[vmem] * 18,
        out_specs=vmem,
    )(x2, kp['s'],
      kp['w1'], kp['b1'], kp['g1'], kp['be1'],
      kp['w2'], kp['b2'], kp['g2'], kp['be2'],
      kp['w3'], kp['b3'], kp['g3'], kp['be3'],
      kp['w4'], kp['b4'],
      kp['r'], kp['rt'])

    return jnp.transpose(out2.reshape(n, h, w, dd), (0, 3, 1, 2))


def reference_forward(x_nchw, params):
    """Pure-JAX f32 reference of the PyTorch module (training-mode BN)."""
    x = jnp.transpose(x_nchw, (0, 2, 3, 1)).astype(jnp.float32)
    for i, (w, b, g, be) in enumerate(params):
        y = jax.lax.conv_general_dilated(
            x, w, window_strides=(1, 1), padding=((1, 1), (1, 1)),
            dimension_numbers=('NHWC', 'HWIO', 'NHWC')) + b
        if i < len(params) - 1:
            y = jnp.where(y >= 0.0, y, NEG_SLOPE * y)
            mean = jnp.mean(y, axis=(0, 1, 2), keepdims=True)
            var = jnp.mean(jnp.square(y - mean), axis=(0, 1, 2), keepdims=True)
            y = (y - mean) * jax.lax.rsqrt(var + EPS) * g + be
        x = y
    return jnp.transpose(x, (0, 3, 1, 2))


if __name__ == "__main__":
    data_depth = 4
    hidden_size = 32
    N, H, W = 2, 16, 16

    key = jax.random.PRNGKey(0)
    key, kx = jax.random.split(key)
    x = jax.random.normal(kx, (N, 3, H, W), jnp.float32)   # NCHW like PyTorch

    params = init_basic_decoder_params(key, data_depth, hidden_size)
    kp = prepare_decoder(params, N, H, W)

    out = basic_decoder_forward(x, kp)
    out = jax.block_until_ready(out)
    assert out.shape == (N, data_depth, H, W), out.shape

    # Sanity check against a pure-JAX f32 reference (loose bf16-MXU tolerance).
    ref = jax.block_until_ready(reference_forward(x, params))
    max_err = float(jnp.max(jnp.abs(out - ref)))
    assert max_err < 0.2, max_err

    print("KERNEL_OK")
</pallas_src>

<mosaic_0001>
module attributes {stable_mosaic.version = 11 : i64} {
  func.func @decoder_kernel(%arg0: memref<32x48xf32, #tpu.memory_space<vmem>>, %arg1: memref<3x32x32xbf16, #tpu.memory_space<vmem>>, %arg2: memref<3x48x512xbf16, #tpu.memory_space<vmem>>, %arg3: memref<1x512xf32, #tpu.memory_space<vmem>>, %arg4: memref<1x512xf32, #tpu.memory_space<vmem>>, %arg5: memref<1x512xf32, #tpu.memory_space<vmem>>, %arg6: memref<3x512x512xbf16, #tpu.memory_space<vmem>>, %arg7: memref<1x512xf32, #tpu.memory_space<vmem>>, %arg8: memref<1x512xf32, #tpu.memory_space<vmem>>, %arg9: memref<1x512xf32, #tpu.memory_space<vmem>>, %arg10: memref<3x512x512xbf16, #tpu.memory_space<vmem>>, %arg11: memref<1x512xf32, #tpu.memory_space<vmem>>, %arg12: memref<1x512xf32, #tpu.memory_space<vmem>>, %arg13: memref<1x512xf32, #tpu.memory_space<vmem>>, %arg14: memref<3x512x64xbf16, #tpu.memory_space<vmem>>, %arg15: memref<1x64xf32, #tpu.memory_space<vmem>>, %arg16: memref<512x32xf32, #tpu.memory_space<vmem>>, %arg17: memref<32x512xf32, #tpu.memory_space<vmem>>, %arg18: memref<32x64xf32, #tpu.memory_space<vmem>>) attributes {dimension_semantics = [], scalar_prefetch = 0 : i64, scratch_operands = 0 : i64, tpu.core_type = #tpu.core_type<tc>} {
    %c0 = arith.constant 0 : index
    %c0_0 = arith.constant 0 : index
    %0 = vector.load %arg0[%c0, %c0_0] : memref<32x48xf32, #tpu.memory_space<vmem>>, vector<32x48xf32>
    %1 = arith.truncf %0 : vector<32x48xf32> to vector<32x48xbf16>
    %cst = arith.constant 0.000000e+00 : f32
    %2 = vector.broadcast %cst : f32 to vector<32x512xf32>
    %c0_1 = arith.constant 0 : index
    %c0_2 = arith.constant 0 : index
    %3 = vector.load %arg3[%c0_1, %c0_2] : memref<1x512xf32, #tpu.memory_space<vmem>>, vector<1x512xf32>
    %4 = vector.broadcast %3 : vector<1x512xf32> to vector<32x512xf32>
    %5 = arith.addf %2, %4 : vector<32x512xf32>
    %c0_3 = arith.constant 0 : index
    %c0_4 = arith.constant 0 : index
    %c0_5 = arith.constant 0 : index
    %6 = vector.load %arg1[%c0_3, %c0_4, %c0_5] : memref<3x32x32xbf16, #tpu.memory_space<vmem>>, vector<1x32x32xbf16>
    %7 = vector.shape_cast %6 : vector<1x32x32xbf16> to vector<32x32xbf16>
    %cst_6 = arith.constant dense<0.000000e+00> : vector<32x48xf32>
    %8 = tpu.matmul %7, %1, %cst_6 {dimension_numbers = #tpu.dot_dimension_numbers<[1], [0], [0], [1], [0, 0, 1, 1], [], []>} : vector<32x32xbf16>, vector<32x48xbf16>, vector<32x48xf32> -> vector<32x48xf32>
    %9 = arith.truncf %8 : vector<32x48xf32> to vector<32x48xbf16>
    %c0_7 = arith.constant 0 : index
    %c0_8 = arith.constant 0 : index
    %c0_9 = arith.constant 0 : index
    %10 = vector.load %arg2[%c0_7, %c0_8, %c0_9] : memref<3x48x512xbf16, #tpu.memory_space<vmem>>, vector<1x48x512xbf16>
    %11 = vector.shape_cast %10 : vector<1x48x512xbf16> to vector<48x512xbf16>
    %cst_10 = arith.constant dense<0.000000e+00> : vector<32x512xf32>
    %12 = tpu.matmul %9, %11, %cst_10 {dimension_numbers = #tpu.dot_dimension_numbers<[1], [0], [0], [1], [0, 0, 1, 1], [], []>} : vector<32x48xbf16>, vector<48x512xbf16>, vector<32x512xf32> -> vector<32x512xf32>
    %13 = arith.addf %5, %12 : vector<32x512xf32>
    %c1 = arith.constant 1 : index
    %c0_11 = arith.constant 0 : index
    %c0_12 = arith.constant 0 : index
    %14 = vector.load %arg1[%c1, %c0_11, %c0_12] : memref<3x32x32xbf16, #tpu.memory_space<vmem>>, vector<1x32x32xbf16>
    %15 = vector.shape_cast %14 : vector<1x32x32xbf16> to vector<32x32xbf16>
    %cst_13 = arith.constant dense<0.000000e+00> : vector<32x48xf32>
    %16 = tpu.matmul %15, %1, %cst_13 {dimension_numbers = #tpu.dot_dimension_numbers<[1], [0], [0], [1], [0, 0, 1, 1], [], []>} : vector<32x32xbf16>, vector<32x48xbf16>, vector<32x48xf32> -> vector<32x48xf32>
    %17 = arith.truncf %16 : vector<32x48xf32> to vector<32x48xbf16>
    %c1_14 = arith.constant 1 : index
    %c0_15 = arith.constant 0 : index
    %c0_16 = arith.constant 0 : index
    %18 = vector.load %arg2[%c1_14, %c0_15, %c0_16] : memref<3x48x512xbf16, #tpu.memory_space<vmem>>, vector<1x48x512xbf16>
    %19 = vector.shape_cast %18 : vector<1x48x512xbf16> to vector<48x512xbf16>
    %cst_17 = arith.constant dense<0.000000e+00> : vector<32x512xf32>
    %20 = tpu.matmul %17, %19, %cst_17 {dimension_numbers = #tpu.dot_dimension_numbers<[1], [0], [0], [1], [0, 0, 1, 1], [], []>} : vector<32x48xbf16>, vector<48x512xbf16>, vector<32x512xf32> -> vector<32x512xf32>
    %21 = arith.addf %13, %20 : vector<32x512xf32>
    %c2 = arith.constant 2 : index
    %c0_18 = arith.constant 0 : index
    %c0_19 = arith.constant 0 : index
    %22 = vector.load %arg1[%c2, %c0_18, %c0_19] : memref<3x32x32xbf16, #tpu.memory_space<vmem>>, vector<1x32x32xbf16>
    %23 = vector.shape_cast %22 : vector<1x32x32xbf16> to vector<32x32xbf16>
    %cst_20 = arith.constant dense<0.000000e+00> : vector<32x48xf32>
    %24 = tpu.matmul %23, %1, %cst_20 {dimension_numbers = #tpu.dot_dimension_numbers<[1], [0], [0], [1], [0, 0, 1, 1], [], []>} : vector<32x32xbf16>, vector<32x48xbf16>, vector<32x48xf32> -> vector<32x48xf32>
    %25 = arith.truncf %24 : vector<32x48xf32> to vector<32x48xbf16>
    %c2_21 = arith.constant 2 : index
    %c0_22 = arith.constant 0 : index
    %c0_23 = arith.constant 0 : index
    %26 = vector.load %arg2[%c2_21, %c0_22, %c0_23] : memref<3x48x512xbf16, #tpu.memory_space<vmem>>, vector<1x48x512xbf16>
    %27 = vector.shape_cast %26 : vector<1x48x512xbf16> to vector<48x512xbf16>
    %cst_24 = arith.constant dense<0.000000e+00> : vector<32x512xf32>
    %28 = tpu.matmul %25, %27, %cst_24 {dimension_numbers = #tpu.dot_dimension_numbers<[1], [0], [0], [1], [0, 0, 1, 1], [], []>} : vector<32x48xbf16>, vector<48x512xbf16>, vector<32x512xf32> -> vector<32x512xf32>
    %29 = arith.addf %21, %28 : vector<32x512xf32>
    %cst_25 = arith.constant 0.000000e+00 : f32
    %30 = vector.broadcast %cst_25 : f32 to vector<32x512xf32>
    %31 = arith.cmpf oge, %29, %30 : vector<32x512xf32>
    %cst_26 = arith.constant 0.00999999977 : f32
    %32 = vector.broadcast %cst_26 : f32 to vector<32x512xf32>
    %33 = arith.mulf %32, %29 : vector<32x512xf32>
    %34 = arith.select %31, %29, %33 : vector<32x512xi1>, vector<32x512xf32>
    %cst_27 = arith.constant dense<0.000000e+00> : vector<512xf32>
    %35 = vector.multi_reduction <add>, %34, %cst_27 [0] : vector<32x512xf32> to vector<512xf32>
    %36 = vector.shape_cast %35 : vector<512xf32> to vector<1x512xf32>
    %cst_28 = arith.constant 3.200000e+01 : f32
    %37 = vector.broadcast %cst_28 : f32 to vector<1x512xf32>
    %38 = arith.divf %36, %37 : vector<1x512xf32>
    %39 = arith.mulf %34, %34 : vector<32x512xf32>
    %cst_29 = arith.constant dense<0.000000e+00> : vector<512xf32>
    %40 = vector.multi_reduction <add>, %39, %cst_29 [0] : vector<32x512xf32> to vector<512xf32>
    %41 = vector.shape_cast %40 : vector<512xf32> to vector<1x512xf32>
    %cst_30 = arith.constant 3.200000e+01 : f32
    %42 = vector.broadcast %cst_30 : f32 to vector<1x512xf32>
    %43 = arith.divf %41, %42 : vector<1x512xf32>
    %c0_31 = arith.constant 0 : index
    %c0_32 = arith.constant 0 : index
    %44 = vector.load %arg16[%c0_31, %c0_32] : memref<512x32xf32, #tpu.memory_space<vmem>>, vector<512x32xf32>
    %cst_33 = arith.constant dense<0.000000e+00> : vector<1x32xf32>
    %45 = tpu.matmul %38, %44, %cst_33 {dimension_numbers = #tpu.dot_dimension_numbers<[1], [0], [0], [1], [0, 0, 1, 1], [], []>} : vector<1x512xf32>, vector<512x32xf32>, vector<1x32xf32> -> vector<1x32xf32>
    %c0_34 = arith.constant 0 : index
    %c0_35 = arith.constant 0 : index
    %46 = vector.load %arg16[%c0_34, %c0_35] : memref<512x32xf32, #tpu.memory_space<vmem>>, vector<512x32xf32>
    %cst_36 = arith.constant dense<0.000000e+00> : vector<1x32xf32>
    %47 = tpu.matmul %43, %46, %cst_36 {dimension_numbers = #tpu.dot_dimension_numbers<[1], [0], [0], [1], [0, 0, 1, 1], [], []>} : vector<1x512xf32>, vector<512x32xf32>, vector<1x32xf32> -> vector<1x32xf32>
    %48 = arith.mulf %45, %45 : vector<1x32xf32>
    %49 = arith.subf %47, %48 : vector<1x32xf32>
    %c0_37 = arith.constant 0 : index
    %c0_38 = arith.constant 0 : index
    %50 = vector.load %arg17[%c0_37, %c0_38] : memref<32x512xf32, #tpu.memory_space<vmem>>, vector<32x512xf32>
    %cst_39 = arith.constant dense<0.000000e+00> : vector<1x512xf32>
    %51 = tpu.matmul %45, %50, %cst_39 {dimension_numbers = #tpu.dot_dimension_numbers<[1], [0], [0], [1], [0, 0, 1, 1], [], []>} : vector<1x32xf32>, vector<32x512xf32>, vector<1x512xf32> -> vector<1x512xf32>
    %c0_40 = arith.constant 0 : index
    %c0_41 = arith.constant 0 : index
    %52 = vector.load %arg17[%c0_40, %c0_41] : memref<32x512xf32, #tpu.memory_space<vmem>>, vector<32x512xf32>
    %cst_42 = arith.constant dense<0.000000e+00> : vector<1x512xf32>
    %53 = tpu.matmul %49, %52, %cst_42 {dimension_numbers = #tpu.dot_dimension_numbers<[1], [0], [0], [1], [0, 0, 1, 1], [], []>} : vector<1x32xf32>, vector<32x512xf32>, vector<1x512xf32> -> vector<1x512xf32>
    %cst_43 = arith.constant 9.99999974E-6 : f32
    %54 = vector.broadcast %cst_43 : f32 to vector<1x512xf32>
    %55 = arith.addf %53, %54 : vector<1x512xf32>
    %56 = math.rsqrt %55 : vector<1x512xf32>
    %57 = vector.broadcast %51 : vector<1x512xf32> to vector<32x512xf32>
    %58 = arith.subf %34, %57 : vector<32x512xf32>
    %59 = vector.broadcast %56 : vector<1x512xf32> to vector<32x512xf32>
    %60 = arith.mulf %58, %59 : vector<32x512xf32>
    %c0_44 = arith.constant 0 : index
    %c0_45 = arith.constant 0 : index
    %61 = vector.load %arg4[%c0_44, %c0_45] : memref<1x512xf32, #tpu.memory_space<vmem>>, vector<1x512xf32>
    %62 = vector.broadcast %61 : vector<1x512xf32> to vector<32x512xf32>
    %63 = arith.mulf %60, %62 : vector<32x512xf32>
    %c0_46 = arith.constant 0 : index
    %c0_47 = arith.constant 0 : index
    %64 = vector.load %arg5[%c0_46, %c0_47] : memref<1x512xf32, #tpu.memory_space<vmem>>, vector<1x512xf32>
    %65 = vector.broadcast %64 : vector<1x512xf32> to vector<32x512xf32>
    %66 = arith.addf %63, %65 : vector<32x512xf32>
    %67 = arith.truncf %66 : vector<32x512xf32> to vector<32x512xbf16>
    %cst_48 = arith.constant 0.000000e+00 : f32
    %68 = vector.broadcast %cst_48 : f32 to vector<32x512xf32>
    %c0_49 = arith.constant 0 : index
    %c0_50 = arith.constant 0 : index
    %69 = vector.load %arg7[%c0_49, %c0_50] : memref<1x512xf32, #tpu.memory_space<vmem>>, vector<1x512xf32>
    %70 = vector.broadcast %69 : vector<1x512xf32> to vector<32x512xf32>
    %71 = arith.addf %68, %70 : vector<32x512xf32>
    %c0_51 = arith.constant 0 : index
    %c0_52 = arith.constant 0 : index
    %c0_53 = arith.constant 0 : index
    %72 = vector.load %arg1[%c0_51, %c0_52, %c0_53] : memref<3x32x32xbf16, #tpu.memory_space<vmem>>, vector<1x32x32xbf16>
    %73 = vector.shape_cast %72 : vector<1x32x32xbf16> to vector<32x32xbf16>
    %cst_54 = arith.constant dense<0.000000e+00> : vector<32x512xf32>
    %74 = tpu.matmul %73, %67, %cst_54 {dimension_numbers = #tpu.dot_dimension_numbers<[1], [0], [0], [1], [0, 0, 1, 1], [], []>} : vector<32x32xbf16>, vector<32x512xbf16>, vector<32x512xf32> -> vector<32x512xf32>
    %75 = arith.truncf %74 : vector<32x512xf32> to vector<32x512xbf16>
    %c0_55 = arith.constant 0 : index
    %c0_56 = arith.constant 0 : index
    %c0_57 = arith.constant 0 : index
    %76 = vector.load %arg6[%c0_55, %c0_56, %c0_57] : memref<3x512x512xbf16, #tpu.memory_space<vmem>>, vector<1x512x512xbf16>
    %77 = vector.shape_cast %76 : vector<1x512x512xbf16> to vector<512x512xbf16>
    %cst_58 = arith.constant dense<0.000000e+00> : vector<32x512xf32>
    %78 = tpu.matmul %75, %77, %cst_58 {dimension_numbers = #tpu.dot_dimension_numbers<[1], [0], [0], [1], [0, 0, 1, 1], [], []>} : vector<32x512xbf16>, vector<512x512xbf16>, vector<32x512xf32> -> vector<32x512xf32>
    %79 = arith.addf %71, %78 : vector<32x512xf32>
    %c1_59 = arith.constant 1 : index
    %c0_60 = arith.constant 0 : index
    %c0_61 = arith.constant 0 : index
    %80 = vector.load %arg1[%c1_59, %c0_60, %c0_61] : memref<3x32x32xbf16, #tpu.memory_space<vmem>>, vector<1x32x32xbf16>
    %81 = vector.shape_cast %80 : vector<1x32x32xbf16> to vector<32x32xbf16>
    %cst_62 = arith.constant dense<0.000000e+00> : vector<32x512xf32>
    %82 = tpu.matmul %81, %67, %cst_62 {dimension_numbers = #tpu.dot_dimension_numbers<[1], [0], [0], [1], [0, 0, 1, 1], [], []>} : vector<32x32xbf16>, vector<32x512xbf16>, vector<32x512xf32> -> vector<32x512xf32>
    %83 = arith.truncf %82 : vector<32x512xf32> to vector<32x512xbf16>
    %c1_63 = arith.constant 1 : index
    %c0_64 = arith.constant 0 : index
    %c0_65 = arith.constant 0 : index
    %84 = vector.load %arg6[%c1_63, %c0_64, %c0_65] : memref<3x512x512xbf16, #tpu.memory_space<vmem>>, vector<1x512x512xbf16>
    %85 = vector.shape_cast %84 : vector<1x512x512xbf16> to vector<512x512xbf16>
    %cst_66 = arith.constant dense<0.000000e+00> : vector<32x512xf32>
    %86 = tpu.matmul %83, %85, %cst_66 {dimension_numbers = #tpu.dot_dimension_numbers<[1], [0], [0], [1], [0, 0, 1, 1], [], []>} : vector<32x512xbf16>, vector<512x512xbf16>, vector<32x512xf32> -> vector<32x512xf32>
    %87 = arith.addf %79, %86 : vector<32x512xf32>
    %c2_67 = arith.constant 2 : index
    %c0_68 = arith.constant 0 : index
    %c0_69 = arith.constant 0 : index
    %88 = vector.load %arg1[%c2_67, %c0_68, %c0_69] : memref<3x32x32xbf16, #tpu.memory_space<vmem>>, vector<1x32x32xbf16>
    %89 = vector.shape_cast %88 : vector<1x32x32xbf16> to vector<32x32xbf16>
    %cst_70 = arith.constant dense<0.000000e+00> : vector<32x512xf32>
    %90 = tpu.matmul %89, %67, %cst_70 {dimension_numbers = #tpu.dot_dimension_numbers<[1], [0], [0], [1], [0, 0, 1, 1], [], []>} : vector<32x32xbf16>, vector<32x512xbf16>, vector<32x512xf32> -> vector<32x512xf32>
    %91 = arith.truncf %90 : vector<32x512xf32> to vector<32x512xbf16>
    %c2_71 = arith.constant 2 : index
    %c0_72 = arith.constant 0 : index
    %c0_73 = arith.constant 0 : index
    %92 = vector.load %arg6[%c2_71, %c0_72, %c0_73] : memref<3x512x512xbf16, #tpu.memory_space<vmem>>, vector<1x512x512xbf16>
    %93 = vector.shape_cast %92 : vector<1x512x512xbf16> to vector<512x512xbf16>
    %cst_74 = arith.constant dense<0.000000e+00> : vector<32x512xf32>
    %94 = tpu.matmul %91, %93, %cst_74 {dimension_numbers = #tpu.dot_dimension_numbers<[1], [0], [0], [1], [0, 0, 1, 1], [], []>} : vector<32x512xbf16>, vector<512x512xbf16>, vector<32x512xf32> -> vector<32x512xf32>
    %95 = arith.addf %87, %94 : vector<32x512xf32>
    %cst_75 = arith.constant 0.000000e+00 : f32
    %96 = vector.broadcast %cst_75 : f32 to vector<32x512xf32>
    %97 = arith.cmpf oge, %95, %96 : vector<32x512xf32>
    %cst_76 = arith.constant 0.00999999977 : f32
    %98 = vector.broadcast %cst_76 : f32 to vector<32x512xf32>
    %99 = arith.mulf %98, %95 : vector<32x512xf32>
    %100 = arith.select %97, %95, %99 : vector<32x512xi1>, vector<32x512xf32>
    %cst_77 = arith.constant dense<0.000000e+00> : vector<512xf32>
    %101 = vector.multi_reduction <add>, %100, %cst_77 [0] : vector<32x512xf32> to vector<512xf32>
    %102 = vector.shape_cast %101 : vector<512xf32> to vector<1x512xf32>
    %cst_78 = arith.constant 3.200000e+01 : f32
    %103 = vector.broadcast %cst_78 : f32 to vector<1x512xf32>
    %104 = arith.divf %102, %103 : vector<1x512xf32>
    %105 = arith.mulf %100, %100 : vector<32x512xf32>
    %cst_79 = arith.constant dense<0.000000e+00> : vector<512xf32>
    %106 = vector.multi_reduction <add>, %105, %cst_79 [0] : vector<32x512xf32> to vector<512xf32>
    %107 = vector.shape_cast %106 : vector<512xf32> to vector<1x512xf32>
    %cst_80 = arith.constant 3.200000e+01 : f32
    %108 = vector.broadcast %cst_80 : f32 to vector<1x512xf32>
    %109 = arith.divf %107, %108 : vector<1x512xf32>
    %c0_81 = arith.constant 0 : index
    %c0_82 = arith.constant 0 : index
    %110 = vector.load %arg16[%c0_81, %c0_82] : memref<512x32xf32, #tpu.memory_space<vmem>>, vector<512x32xf32>
    %cst_83 = arith.constant dense<0.000000e+00> : vector<1x32xf32>
    %111 = tpu.matmul %104, %110, %cst_83 {dimension_numbers = #tpu.dot_dimension_numbers<[1], [0], [0], [1], [0, 0, 1, 1], [], []>} : vector<1x512xf32>, vector<512x32xf32>, vector<1x32xf32> -> vector<1x32xf32>
    %c0_84 = arith.constant 0 : index
    %c0_85 = arith.constant 0 : index
    %112 = vector.load %arg16[%c0_84, %c0_85] : memref<512x32xf32, #tpu.memory_space<vmem>>, vector<512x32xf32>
    %cst_86 = arith.constant dense<0.000000e+00> : vector<1x32xf32>
    %113 = tpu.matmul %109, %112, %cst_86 {dimension_numbers = #tpu.dot_dimension_numbers<[1], [0], [0], [1], [0, 0, 1, 1], [], []>} : vector<1x512xf32>, vector<512x32xf32>, vector<1x32xf32> -> vector<1x32xf32>
    %114 = arith.mulf %111, %111 : vector<1x32xf32>
    %115 = arith.subf %113, %114 : vector<1x32xf32>
    %c0_87 = arith.constant 0 : index
    %c0_88 = arith.constant 0 : index
    %116 = vector.load %arg17[%c0_87, %c0_88] : memref<32x512xf32, #tpu.memory_space<vmem>>, vector<32x512xf32>
    %cst_89 = arith.constant dense<0.000000e+00> : vector<1x512xf32>
    %117 = tpu.matmul %111, %116, %cst_89 {dimension_numbers = #tpu.dot_dimension_numbers<[1], [0], [0], [1], [0, 0, 1, 1], [], []>} : vector<1x32xf32>, vector<32x512xf32>, vector<1x512xf32> -> vector<1x512xf32>
    %c0_90 = arith.constant 0 : index
    %c0_91 = arith.constant 0 : index
    %118 = vector.load %arg17[%c0_90, %c0_91] : memref<32x512xf32, #tpu.memory_space<vmem>>, vector<32x512xf32>
    %cst_92 = arith.constant dense<0.000000e+00> : vector<1x512xf32>
    %119 = tpu.matmul %115, %118, %cst_92 {dimension_numbers = #tpu.dot_dimension_numbers<[1], [0], [0], [1], [0, 0, 1, 1], [], []>} : vector<1x32xf32>, vector<32x512xf32>, vector<1x512xf32> -> vector<1x512xf32>
    %cst_93 = arith.constant 9.99999974E-6 : f32
    %120 = vector.broadcast %cst_93 : f32 to vector<1x512xf32>
    %121 = arith.addf %119, %120 : vector<1x512xf32>
    %122 = math.rsqrt %121 : vector<1x512xf32>
    %123 = vector.broadcast %117 : vector<1x512xf32> to vector<32x512xf32>
    %124 = arith.subf %100, %123 : vector<32x512xf32>
    %125 = vector.broadcast %122 : vector<1x512xf32> to vector<32x512xf32>
    %126 = arith.mulf %124, %125 : vector<32x512xf32>
    %c0_94 = arith.constant 0 : index
    %c0_95 = arith.constant 0 : index
    %127 = vector.load %arg8[%c0_94, %c0_95] : memref<1x512xf32, #tpu.memory_space<vmem>>, vector<1x512xf32>
    %128 = vector.broadcast %127 : vector<1x512xf32> to vector<32x512xf32>
    %129 = arith.mulf %126, %128 : vector<32x512xf32>
    %c0_96 = arith.constant 0 : index
    %c0_97 = arith.constant 0 : index
    %130 = vector.load %arg9[%c0_96, %c0_97] : memref<1x512xf32, #tpu.memory_space<vmem>>, vector<1x512xf32>
    %131 = vector.broadcast %130 : vector<1x512xf32> to vector<32x512xf32>
    %132 = arith.addf %129, %131 : vector<32x512xf32>
    %133 = arith.truncf %132 : vector<32x512xf32> to vector<32x512xbf16>
    %cst_98 = arith.constant 0.000000e+00 : f32
    %134 = vector.broadcast %cst_98 : f32 to vector<32x512xf32>
    %c0_99 = arith.constant 0 : index
    %c0_100 = arith.constant 0 : index
    %135 = vector.load %arg11[%c0_99, %c0_100] : memref<1x512xf32, #tpu.memory_space<vmem>>, vector<1x512xf32>
    %136 = vector.broadcast %135 : vector<1x512xf32> to vector<32x512xf32>
    %137 = arith.addf %134, %136 : vector<32x512xf32>
    %c0_101 = arith.constant 0 : index
    %c0_102 = arith.constant 0 : index
    %c0_103 = arith.constant 0 : index
    %138 = vector.load %arg1[%c0_101, %c0_102, %c0_103] : memref<3x32x32xbf16, #tpu.memory_space<vmem>>, vector<1x32x32xbf16>
    %139 = vector.shape_cast %138 : vector<1x32x32xbf16> to vector<32x32xbf16>
    %cst_104 = arith.constant dense<0.000000e+00> : vector<32x512xf32>
    %140 = tpu.matmul %139, %133, %cst_104 {dimension_numbers = #tpu.dot_dimension_numbers<[1], [0], [0], [1], [0, 0, 1, 1], [], []>} : vector<32x32xbf16>, vector<32x512xbf16>, vector<32x512xf32> -> vector<32x512xf32>
    %141 = arith.truncf %140 : vector<32x512xf32> to vector<32x512xbf16>
    %c0_105 = arith.constant 0 : index
    %c0_106 = arith.constant 0 : index
    %c0_107 = arith.constant 0 : index
    %142 = vector.load %arg10[%c0_105, %c0_106, %c0_107] : memref<3x512x512xbf16, #tpu.memory_space<vmem>>, vector<1x512x512xbf16>
    %143 = vector.shape_cast %142 : vector<1x512x512xbf16> to vector<512x512xbf16>
    %cst_108 = arith.constant dense<0.000000e+00> : vector<32x512xf32>
    %144 = tpu.matmul %141, %143, %cst_108 {dimension_numbers = #tpu.dot_dimension_numbers<[1], [0], [0], [1], [0, 0, 1, 1], [], []>} : vector<32x512xbf16>, vector<512x512xbf16>, vector<32x512xf32> -> vector<32x512xf32>
    %145 = arith.addf %137, %144 : vector<32x512xf32>
    %c1_109 = arith.constant 1 : index
    %c0_110 = arith.constant 0 : index
    %c0_111 = arith.constant 0 : index
    %146 = vector.load %arg1[%c1_109, %c0_110, %c0_111] : memref<3x32x32xbf16, #tpu.memory_space<vmem>>, vector<1x32x32xbf16>
    %147 = vector.shape_cast %146 : vector<1x32x32xbf16> to vector<32x32xbf16>
    %cst_112 = arith.constant dense<0.000000e+00> : vector<32x512xf32>
    %148 = tpu.matmul %147, %133, %cst_112 {dimension_numbers = #tpu.dot_dimension_numbers<[1], [0], [0], [1], [0, 0, 1, 1], [], []>} : vector<32x32xbf16>, vector<32x512xbf16>, vector<32x512xf32> -> vector<32x512xf32>
    %149 = arith.truncf %148 : vector<32x512xf32> to vector<32x512xbf16>
    %c1_113 = arith.constant 1 : index
    %c0_114 = arith.constant 0 : index
    %c0_115 = arith.constant 0 : index
    %150 = vector.load %arg10[%c1_113, %c0_114, %c0_115] : memref<3x512x512xbf16, #tpu.memory_space<vmem>>, vector<1x512x512xbf16>
    %151 = vector.shape_cast %150 : vector<1x512x512xbf16> to vector<512x512xbf16>
    %cst_116 = arith.constant dense<0.000000e+00> : vector<32x512xf32>
    %152 = tpu.matmul %149, %151, %cst_116 {dimension_numbers = #tpu.dot_dimension_numbers<[1], [0], [0], [1], [0, 0, 1, 1], [], []>} : vector<32x512xbf16>, vector<512x512xbf16>, vector<32x512xf32> -> vector<32x512xf32>
    %153 = arith.addf %145, %152 : vector<32x512xf32>
    %c2_117 = arith.constant 2 : index
    %c0_118 = arith.constant 0 : index
    %c0_119 = arith.constant 0 : index
    %154 = vector.load %arg1[%c2_117, %c0_118, %c0_119] : memref<3x32x32xbf16, #tpu.memory_space<vmem>>, vector<1x32x32xbf16>
    %155 = vector.shape_cast %154 : vector<1x32x32xbf16> to vector<32x32xbf16>
    %cst_120 = arith.constant dense<0.000000e+00> : vector<32x512xf32>
    %156 = tpu.matmul %155, %133, %cst_120 {dimension_numbers = #tpu.dot_dimension_numbers<[1], [0], [0], [1], [0, 0, 1, 1], [], []>} : vector<32x32xbf16>, vector<32x512xbf16>, vector<32x512xf32> -> vector<32x512xf32>
    %157 = arith.truncf %156 : vector<32x512xf32> to vector<32x512xbf16>
    %c2_121 = arith.constant 2 : index
    %c0_122 = arith.constant 0 : index
    %c0_123 = arith.constant 0 : index
    %158 = vector.load %arg10[%c2_121, %c0_122, %c0_123] : memref<3x512x512xbf16, #tpu.memory_space<vmem>>, vector<1x512x512xbf16>
    %159 = vector.shape_cast %158 : vector<1x512x512xbf16> to vector<512x512xbf16>
    %cst_124 = arith.constant dense<0.000000e+00> : vector<32x512xf32>
    %160 = tpu.matmul %157, %159, %cst_124 {dimension_numbers = #tpu.dot_dimension_numbers<[1], [0], [0], [1], [0, 0, 1, 1], [], []>} : vector<32x512xbf16>, vector<512x512xbf16>, vector<32x512xf32> -> vector<32x512xf32>
    %161 = arith.addf %153, %160 : vector<32x512xf32>
    %cst_125 = arith.constant 0.000000e+00 : f32
    %162 = vector.broadcast %cst_125 : f32 to vector<32x512xf32>
    %163 = arith.cmpf oge, %161, %162 : vector<32x512xf32>
    %cst_126 = arith.constant 0.00999999977 : f32
    %164 = vector.broadcast %cst_126 : f32 to vector<32x512xf32>
    %165 = arith.mulf %164, %161 : vector<32x512xf32>
    %166 = arith.select %163, %161, %165 : vector<32x512xi1>, vector<32x512xf32>
    %cst_127 = arith.constant dense<0.000000e+00> : vector<512xf32>
    %167 = vector.multi_reduction <add>, %166, %cst_127 [0] : vector<32x512xf32> to vector<512xf32>
    %168 = vector.shape_cast %167 : vector<512xf32> to vector<1x512xf32>
    %cst_128 = arith.constant 3.200000e+01 : f32
    %169 = vector.broadcast %cst_128 : f32 to vector<1x512xf32>
    %170 = arith.divf %168, %169 : vector<1x512xf32>
    %171 = arith.mulf %166, %166 : vector<32x512xf32>
    %cst_129 = arith.constant dense<0.000000e+00> : vector<512xf32>
    %172 = vector.multi_reduction <add>, %171, %cst_129 [0] : vector<32x512xf32> to vector<512xf32>
    %173 = vector.shape_cast %172 : vector<512xf32> to vector<1x512xf32>
    %cst_130 = arith.constant 3.200000e+01 : f32
    %174 = vector.broadcast %cst_130 : f32 to vector<1x512xf32>
    %175 = arith.divf %173, %174 : vector<1x512xf32>
    %c0_131 = arith.constant 0 : index
    %c0_132 = arith.constant 0 : index
    %176 = vector.load %arg16[%c0_131, %c0_132] : memref<512x32xf32, #tpu.memory_space<vmem>>, vector<512x32xf32>
    %cst_133 = arith.constant dense<0.000000e+00> : vector<1x32xf32>
    %177 = tpu.matmul %170, %176, %cst_133 {dimension_numbers = #tpu.dot_dimension_numbers<[1], [0], [0], [1], [0, 0, 1, 1], [], []>} : vector<1x512xf32>, vector<512x32xf32>, vector<1x32xf32> -> vector<1x32xf32>
    %c0_134 = arith.constant 0 : index
    %c0_135 = arith.constant 0 : index
    %178 = vector.load %arg16[%c0_134, %c0_135] : memref<512x32xf32, #tpu.memory_space<vmem>>, vector<512x32xf32>
    %cst_136 = arith.constant dense<0.000000e+00> : vector<1x32xf32>
    %179 = tpu.matmul %175, %178, %cst_136 {dimension_numbers = #tpu.dot_dimension_numbers<[1], [0], [0], [1], [0, 0, 1, 1], [], []>} : vector<1x512xf32>, vector<512x32xf32>, vector<1x32xf32> -> vector<1x32xf32>
    %180 = arith.mulf %177, %177 : vector<1x32xf32>
    %181 = arith.subf %179, %180 : vector<1x32xf32>
    %c0_137 = arith.constant 0 : index
    %c0_138 = arith.constant 0 : index
    %182 = vector.load %arg17[%c0_137, %c0_138] : memref<32x512xf32, #tpu.memory_space<vmem>>, vector<32x512xf32>
    %cst_139 = arith.constant dense<0.000000e+00> : vector<1x512xf32>
    %183 = tpu.matmul %177, %182, %cst_139 {dimension_numbers = #tpu.dot_dimension_numbers<[1], [0], [0], [1], [0, 0, 1, 1], [], []>} : vector<1x32xf32>, vector<32x512xf32>, vector<1x512xf32> -> vector<1x512xf32>
    %c0_140 = arith.constant 0 : index
    %c0_141 = arith.constant 0 : index
    %184 = vector.load %arg17[%c0_140, %c0_141] : memref<32x512xf32, #tpu.memory_space<vmem>>, vector<32x512xf32>
    %cst_142 = arith.constant dense<0.000000e+00> : vector<1x512xf32>
    %185 = tpu.matmul %181, %184, %cst_142 {dimension_numbers = #tpu.dot_dimension_numbers<[1], [0], [0], [1], [0, 0, 1, 1], [], []>} : vector<1x32xf32>, vector<32x512xf32>, vector<1x512xf32> -> vector<1x512xf32>
    %cst_143 = arith.constant 9.99999974E-6 : f32
    %186 = vector.broadcast %cst_143 : f32 to vector<1x512xf32>
    %187 = arith.addf %185, %186 : vector<1x512xf32>
    %188 = math.rsqrt %187 : vector<1x512xf32>
    %189 = vector.broadcast %183 : vector<1x512xf32> to vector<32x512xf32>
    %190 = arith.subf %166, %189 : vector<32x512xf32>
    %191 = vector.broadcast %188 : vector<1x512xf32> to vector<32x512xf32>
    %192 = arith.mulf %190, %191 : vector<32x512xf32>
    %c0_144 = arith.constant 0 : index
    %c0_145 = arith.constant 0 : index
    %193 = vector.load %arg12[%c0_144, %c0_145] : memref<1x512xf32, #tpu.memory_space<vmem>>, vector<1x512xf32>
    %194 = vector.broadcast %193 : vector<1x512xf32> to vector<32x512xf32>
    %195 = arith.mulf %192, %194 : vector<32x512xf32>
    %c0_146 = arith.constant 0 : index
    %c0_147 = arith.constant 0 : index
    %196 = vector.load %arg13[%c0_146, %c0_147] : memref<1x512xf32, #tpu.memory_space<vmem>>, vector<1x512xf32>
    %197 = vector.broadcast %196 : vector<1x512xf32> to vector<32x512xf32>
    %198 = arith.addf %195, %197 : vector<32x512xf32>
    %199 = arith.truncf %198 : vector<32x512xf32> to vector<32x512xbf16>
    %cst_148 = arith.constant 0.000000e+00 : f32
    %200 = vector.broadcast %cst_148 : f32 to vector<32x64xf32>
    %c0_149 = arith.constant 0 : index
    %c0_150 = arith.constant 0 : index
    %201 = vector.load %arg15[%c0_149, %c0_150] : memref<1x64xf32, #tpu.memory_space<vmem>>, vector<1x64xf32>
    %202 = vector.broadcast %201 : vector<1x64xf32> to vector<32x64xf32>
    %203 = arith.addf %200, %202 : vector<32x64xf32>
    %c0_151 = arith.constant 0 : index
    %c0_152 = arith.constant 0 : index
    %c0_153 = arith.constant 0 : index
    %204 = vector.load %arg1[%c0_151, %c0_152, %c0_153] : memref<3x32x32xbf16, #tpu.memory_space<vmem>>, vector<1x32x32xbf16>
    %205 = vector.shape_cast %204 : vector<1x32x32xbf16> to vector<32x32xbf16>
    %cst_154 = arith.constant dense<0.000000e+00> : vector<32x512xf32>
    %206 = tpu.matmul %205, %199, %cst_154 {dimension_numbers = #tpu.dot_dimension_numbers<[1], [0], [0], [1], [0, 0, 1, 1], [], []>} : vector<32x32xbf16>, vector<32x512xbf16>, vector<32x512xf32> -> vector<32x512xf32>
    %207 = arith.truncf %206 : vector<32x512xf32> to vector<32x512xbf16>
    %c0_155 = arith.constant 0 : index
    %c0_156 = arith.constant 0 : index
    %c0_157 = arith.constant 0 : index
    %208 = vector.load %arg14[%c0_155, %c0_156, %c0_157] : memref<3x512x64xbf16, #tpu.memory_space<vmem>>, vector<1x512x64xbf16>
    %209 = vector.shape_cast %208 : vector<1x512x64xbf16> to vector<512x64xbf16>
    %cst_158 = arith.constant dense<0.000000e+00> : vector<32x64xf32>
    %210 = tpu.matmul %207, %209, %cst_158 {dimension_numbers = #tpu.dot_dimension_numbers<[1], [0], [0], [1], [0, 0, 1, 1], [], []>} : vector<32x512xbf16>, vector<512x64xbf16>, vector<32x64xf32> -> vector<32x64xf32>
    %211 = arith.addf %203, %210 : vector<32x64xf32>
    %c1_159 = arith.constant 1 : index
    %c0_160 = arith.constant 0 : index
    %c0_161 = arith.constant 0 : index
    %212 = vector.load %arg1[%c1_159, %c0_160, %c0_161] : memref<3x32x32xbf16, #tpu.memory_space<vmem>>, vector<1x32x32xbf16>
    %213 = vector.shape_cast %212 : vector<1x32x32xbf16> to vector<32x32xbf16>
    %cst_162 = arith.constant dense<0.000000e+00> : vector<32x512xf32>
    %214 = tpu.matmul %213, %199, %cst_162 {dimension_numbers = #tpu.dot_dimension_numbers<[1], [0], [0], [1], [0, 0, 1, 1], [], []>} : vector<32x32xbf16>, vector<32x512xbf16>, vector<32x512xf32> -> vector<32x512xf32>
    %215 = arith.truncf %214 : vector<32x512xf32> to vector<32x512xbf16>
    %c1_163 = arith.constant 1 : index
    %c0_164 = arith.constant 0 : index
    %c0_165 = arith.constant 0 : index
    %216 = vector.load %arg14[%c1_163, %c0_164, %c0_165] : memref<3x512x64xbf16, #tpu.memory_space<vmem>>, vector<1x512x64xbf16>
    %217 = vector.shape_cast %216 : vector<1x512x64xbf16> to vector<512x64xbf16>
    %cst_166 = arith.constant dense<0.000000e+00> : vector<32x64xf32>
    %218 = tpu.matmul %215, %217, %cst_166 {dimension_numbers = #tpu.dot_dimension_numbers<[1], [0], [0], [1], [0, 0, 1, 1], [], []>} : vector<32x512xbf16>, vector<512x64xbf16>, vector<32x64xf32> -> vector<32x64xf32>
    %219 = arith.addf %211, %218 : vector<32x64xf32>
    %c2_167 = arith.constant 2 : index
    %c0_168 = arith.constant 0 : index
    %c0_169 = arith.constant 0 : index
    %220 = vector.load %arg1[%c2_167, %c0_168, %c0_169] : memref<3x32x32xbf16, #tpu.memory_space<vmem>>, vector<1x32x32xbf16>
    %221 = vector.shape_cast %220 : vector<1x32x32xbf16> to vector<32x32xbf16>
    %cst_170 = arith.constant dense<0.000000e+00> : vector<32x512xf32>
    %222 = tpu.matmul %221, %199, %cst_170 {dimension_numbers = #tpu.dot_dimension_numbers<[1], [0], [0], [1], [0, 0, 1, 1], [], []>} : vector<32x32xbf16>, vector<32x512xbf16>, vector<32x512xf32> -> vector<32x512xf32>
    %223 = arith.truncf %222 : vector<32x512xf32> to vector<32x512xbf16>
    %c2_171 = arith.constant 2 : index
    %c0_172 = arith.constant 0 : index
    %c0_173 = arith.constant 0 : index
    %224 = vector.load %arg14[%c2_171, %c0_172, %c0_173] : memref<3x512x64xbf16, #tpu.memory_space<vmem>>, vector<1x512x64xbf16>
    %225 = vector.shape_cast %224 : vector<1x512x64xbf16> to vector<512x64xbf16>
    %cst_174 = arith.constant dense<0.000000e+00> : vector<32x64xf32>
    %226 = tpu.matmul %223, %225, %cst_174 {dimension_numbers = #tpu.dot_dimension_numbers<[1], [0], [0], [1], [0, 0, 1, 1], [], []>} : vector<32x512xbf16>, vector<512x64xbf16>, vector<32x64xf32> -> vector<32x64xf32>
    %227 = arith.addf %219, %226 : vector<32x64xf32>
    %c0_175 = arith.constant 0 : index
    %c0_176 = arith.constant 0 : index
    %228 = vector.load %arg18[%c0_175, %c0_176] : memref<32x64xf32, #tpu.memory_space<vmem>>, vector<32x64xf32>
    tpu.vector_store %arg18[%c0_175, %c0_176], %227 {strides = array<i32>} : memref<32x64xf32, #tpu.memory_space<vmem>>, vector<32x64xf32>,
    return
  }
}

</mosaic_0001>

<bundles_post_ra>
// kernel: basic_decoder_forward.1
= control target key start
LH: loop header
LB: loop body
LE: loop exit
PB: predicated region body
PF: predicated region fallthrough
CT: control target
= control target key end

     0   :  { %s18248_s0 = inlined_call_operand.vmem [shape: f32[32,48], index: 0, kind: input, shape index: {}]   ;;  %s18249_s1 = inlined_call_operand.hbm [shape: bf16[3,32,32], index: 1, kind: input, shape index: {}]   ;;  %s18250_s2 = inlined_call_operand.hbm [shape: bf16[3,48,512], index: 2, kind: input, shape index: {}]   ;;  %s18251_s3 = inlined_call_operand.hbm [shape: f32[1,512], index: 3, kind: input, shape index: {}]   ;;  %s18252_s4 = inlined_call_operand.hbm [shape: f32[1,512], index: 4, kind: input, shape index: {}]   ;;  %s18253_s5 = inlined_call_operand.hbm [shape: f32[1,512], index: 5, kind: input, shape index: {}]   ;;  %s18254_s6 = inlined_call_operand.hbm [shape: bf16[3,512,512], index: 6, kind: input, shape index: {}]   ;;  %s18255_s7 = inlined_call_operand.hbm [shape: f32[1,512], index: 7, kind: input, shape index: {}]   ;;  %s18256_s8 = inlined_call_operand.hbm [shape: f32[1,512], index: 8, kind: input, shape index: {}]   ;;  %s18257_s9 = inlined_call_operand.hbm [shape: f32[1,512], index: 9, kind: input, shape index: {}]   ;;  %s18258_s10 = inlined_call_operand.hbm [shape: bf16[3,512,512], index: 10, kind: input, shape index: {}]   ;;  %s18259_s11 = inlined_call_operand.hbm [shape: f32[1,512], index: 11, kind: input, shape index: {}]   ;;  %s18260_s12 = inlined_call_operand.hbm [shape: f32[1,512], index: 12, kind: input, shape index: {}]   ;;  %s18261_s13 = inlined_call_operand.hbm [shape: f32[1,512], index: 13, kind: input, shape index: {}]   ;;  %s18262_s14 = inlined_call_operand.vmem [shape: bf16[3,512,64], index: 14, kind: input, shape index: {}]   ;;  %s18263_s15 = inlined_call_operand.hbm [shape: f32[1,64], index: 15, kind: input, shape index: {}]   ;;  %s18264_s16 = inlined_call_operand.vmem [shape: f32[512,32], index: 16, kind: input, shape index: {}]   ;;  %s18265_s17 = inlined_call_operand.hbm [shape: f32[32,512], index: 17, kind: input, shape index: {}]   ;;  %s18266_s18 = inlined_call_operand.vmem [shape: f32[32,64], index: 18, kind: output, shape index: {}]  }
   0x1   :  { %18400 = sst [smem:[#allocation73_spill]] %s18248_s0 }
   0x2   :  { %18401 = sst [smem:[#allocation74_spill]] %s18249_s1 }
   0x3   :  { %18402 = sst [smem:[#allocation75_spill]] %s18250_s2 }
   0x4   :  { %18403 = sst [smem:[#allocation76_spill]] %s18262_s14 }
   0x5   :  { %18404 = sst [smem:[#allocation77_spill]] %s18266_s18 }
   0x6   :  { %23 = vsyncpa [#allocation3], 0 }
   0x7   :  { %24 = vsyncpa [#allocation5], 0 }
   0x8   :  { %25 = vsyncpa [#allocation8], 0 }
   0x9   :  { %26 = vsyncpa [#allocation11], 0 }
   0xa   :  { %27 = vsyncpa [#allocation14], 0 }
   0xb   :  { %28 = vsyncpa [#allocation17], 0 }
   0xc   :  { %29 = vsyncpa [#allocation20], 0 }
   0xd   :  { %30 = vsyncpa [#allocation23], 0  ;;  %s16102_s27 = smov [#allocation4]   ;;  %s18405_s0 = sld [smem:[#allocation75_spill]] }
   0xe   :  { %s50_s28 = sshll.u32 %s16102_s27, 4  ;;  %s51_s28 = int_to_ptr.vmem [resolvable:$true] %s50_s28 }
  0x13   :  { %s15756_s19 = scalar_lea.hbm %s18405_s0, 4608 }
  0x14   :  { %p15757_p0 = scmp.ne.s32.totalorder %s18405_s0, %s15756_s19  ;;  %p15760_p1 = scmp.lt.u32.totalorder %s15756_s19, %s18405_s0 }
  0x16   :  { %p15762_p2 = pnand %p15760_p1, %p15757_p0 }
  0x18   :  { %15765 = shalt.err (!%p15762_p2)
}
  0x19   :  { %s15766_s2 = scalar_lea.vmem %s51_s28, 4608  ;;  %p15771_p4 = scmp.lt.s32.totalorder %s51_s28, %s51_s28 }
  0x1a   :  { %p15767_p3 = scmp.ne.s32.totalorder %s51_s28, %s15766_s2  ;;  %p15772_p5 = scmp.lt.s32.totalorder %s15766_s2, %s15766_s2 }
  0x1c   :  { %p15773_p6 = por %p15772_p5, %p15771_p4 }
  0x1e   :  { %p15774_p7 = pnand %p15773_p6, %p15767_p3 }
  0x20   :  { %15777 = shalt.err (!%p15774_p7)
}
  0x21   :  { %s16103_s23 = smov 256   ;;  %s16104_s24 = smov 16  }
  0x22   :  { %56 = dma.hbm_to_vmem [thread:$0]  %s18405_s0, 4608, %s51_s28, [#allocation5], %s16103_s23, %s16103_s23, %s16104_s24  }
  0x23   :  { %s16105_s27 = smov [#allocation7]   ;;  %s16106_s30 = smov [#allocation10]  }
  0x24   :  { %s73_s29 = sshll.u32 %s16105_s27, 4  ;;  %s92_s19 = sshll.u32 %s16106_s30, 4  ;;  %s74_s29 = int_to_ptr.vmem [resolvable:$true] %s73_s29  ;;  %s93_s19 = int_to_ptr.vmem [resolvable:$true] %s92_s19 }
  0x25   :  { %s15778_s21 = scalar_lea.hbm %s18252_s4, 64 }
  0x26   :  { %p15779_p8 = scmp.ne.s32.totalorder %s18252_s4, %s15778_s21  ;;  %p15782_p9 = scmp.lt.u32.totalorder %s15778_s21, %s18252_s4 }
  0x28   :  { %p15784_p10 = pnand %p15782_p9, %p15779_p8 }
  0x2a   :  { %15787 = shalt.err (!%p15784_p10)
}
  0x2b   :  { %s15788_s28 = scalar_lea.vmem %s74_s29, 64  ;;  %p15793_p12 = scmp.lt.s32.totalorder %s74_s29, %s74_s29 }
  0x2c   :  { %p15789_p11 = scmp.ne.s32.totalorder %s74_s29, %s15788_s28  ;;  %p15794_p13 = scmp.lt.s32.totalorder %s15788_s28, %s15788_s28 }
  0x2e   :  { %p15795_p0 = por %p15794_p13, %p15793_p12 }
  0x30   :  { %p15796_p1 = pnand %p15795_p0, %p15789_p11 }
  0x32   :  { %15799 = shalt.err (!%p15796_p1)
}
  0x33   :  { %76 = dma.hbm_to_vmem [thread:$0]  %s18252_s4, 64, %s74_s29, [#allocation8]  }
  0x34   :  { %s15800_s30 = scalar_lea.hbm %s18254_s6, 49152 }
  0x35   :  { %p15801_p2 = scmp.ne.s32.totalorder %s18254_s6, %s15800_s30  ;;  %p15804_p3 = scmp.lt.u32.totalorder %s15800_s30, %s18254_s6 }
  0x37   :  { %p15806_p4 = pnand %p15804_p3, %p15801_p2 }
  0x39   :  { %15809 = shalt.err (!%p15806_p4)
}
  0x3a   :  { %s15810_s21 = scalar_lea.vmem %s93_s19, 49152  ;;  %p15815_p6 = scmp.lt.s32.totalorder %s93_s19, %s93_s19 }
  0x3b   :  { %p15811_p5 = scmp.ne.s32.totalorder %s93_s19, %s15810_s21  ;;  %p15816_p7 = scmp.lt.s32.totalorder %s15810_s21, %s15810_s21 }
  0x3d   :  { %p15817_p8 = por %p15816_p7, %p15815_p6 }
  0x3f   :  { %p15818_p9 = pnand %p15817_p8, %p15811_p5 }
  0x41   :  { %15821 = shalt.err (!%p15818_p9)
}
  0x42   :  { %98 = dma.hbm_to_vmem [thread:$0]  %s18254_s6, 49152, %s93_s19, [#allocation11], %s16103_s23, %s16103_s23, %s16104_s24  }
  0x43   :  { %s16107_s22 = smov [#allocation13]   ;;  %s16108_s28 = smov [#allocation16]  }
  0x44   :  { %s115_s2 = sshll.u32 %s16107_s22, 4  ;;  %s134_s0 = sshll.u32 %s16108_s28, 4  ;;  %s116_s2 = int_to_ptr.vmem [resolvable:$true] %s115_s2  ;;  %s135_s0 = int_to_ptr.vmem [resolvable:$true] %s134_s0 }
  0x45   :  { %s15822_s27 = scalar_lea.hbm %s18256_s8, 64 }
  0x46   :  { %p15823_p10 = scmp.ne.s32.totalorder %s18256_s8, %s15822_s27  ;;  %p15826_p11 = scmp.lt.u32.totalorder %s15822_s27, %s18256_s8 }
  0x48   :  { %p15828_p12 = pnand %p15826_p11, %p15823_p10 }
  0x4a   :  { %15831 = shalt.err (!%p15828_p12)
}
  0x4b   :  { %s15832_s6 = scalar_lea.vmem %s116_s2, 64  ;;  %p15837_p0 = scmp.lt.s32.totalorder %s116_s2, %s116_s2 }
  0x4c   :  { %p15833_p13 = scmp.ne.s32.totalorder %s116_s2, %s15832_s6  ;;  %p15838_p1 = scmp.lt.s32.totalorder %s15832_s6, %s15832_s6 }
  0x4e   :  { %p15839_p2 = por %p15838_p1, %p15837_p0 }
  0x50   :  { %p15840_p3 = pnand %p15839_p2, %p15833_p13 }
  0x52   :  { %15843 = shalt.err (!%p15840_p3)
}
  0x53   :  { %118 = dma.hbm_to_vmem [thread:$0]  %s18256_s8, 64, %s116_s2, [#allocation14]  }
  0x54   :  { %s15844_s29 = scalar_lea.hbm %s18258_s10, 49152 }
  0x55   :  { %p15845_p4 = scmp.ne.s32.totalorder %s18258_s10, %s15844_s29  ;;  %p15848_p5 = scmp.lt.u32.totalorder %s15844_s29, %s18258_s10 }
  0x57   :  { %p15850_p6 = pnand %p15848_p5, %p15845_p4 }
  0x59   :  { %15853 = shalt.err (!%p15850_p6)
}
  0x5a   :  { %s15854_s27 = scalar_lea.vmem %s135_s0, 49152  ;;  %p15859_p8 = scmp.lt.s32.totalorder %s135_s0, %s135_s0 }
  0x5b   :  { %p15855_p7 = scmp.ne.s32.totalorder %s135_s0, %s15854_s27  ;;  %p15860_p9 = scmp.lt.s32.totalorder %s15854_s27, %s15854_s27 }
  0x5d   :  { %p15861_p10 = por %p15860_p9, %p15859_p8 }
  0x5f   :  { %p15862_p11 = pnand %p15861_p10, %p15855_p7 }
  0x61   :  { %15865 = shalt.err (!%p15862_p11)
}
  0x62   :  { %140 = dma.hbm_to_vmem [thread:$0]  %s18258_s10, 49152, %s135_s0, [#allocation17], %s16103_s23, %s16103_s23, %s16104_s24  }
  0x63   :  { %s16109_s30 = smov [#allocation19]   ;;  %s16110_s18 = smov [#allocation22]  }
  0x64   :  { %s157_s14 = sshll.u32 %s16109_s30, 4  ;;  %s179_s1 = sshll.u32 %s16110_s18, 4  ;;  %s158_s14 = int_to_ptr.vmem [resolvable:$true] %s157_s14  ;;  %s180_s1 = int_to_ptr.vmem [resolvable:$true] %s179_s1 }
  0x65   :  { %s15866_s20 = scalar_lea.hbm %s18260_s12, 64 }
  0x66   :  { %p15867_p12 = scmp.ne.s32.totalorder %s18260_s12, %s15866_s20  ;;  %p15870_p13 = scmp.lt.u32.totalorder %s15866_s20, %s18260_s12 }
  0x68   :  { %p15872_p0 = pnand %p15870_p13, %p15867_p12 }
  0x6a   :  { %15875 = shalt.err (!%p15872_p0)
}
  0x6b   :  { %s15876_s10 = scalar_lea.vmem %s158_s14, 64  ;;  %p15881_p2 = scmp.lt.s32.totalorder %s158_s14, %s158_s14 }
  0x6c   :  { %p15877_p1 = scmp.ne.s32.totalorder %s158_s14, %s15876_s10  ;;  %p15882_p3 = scmp.lt.s32.totalorder %s15876_s10, %s15876_s10 }
  0x6e   :  { %p15883_p4 = por %p15882_p3, %p15881_p2 }
  0x70   :  { %p15884_p5 = pnand %p15883_p4, %p15877_p1 }
  0x72   :  { %15887 = shalt.err (!%p15884_p5)
}
  0x73   :  { %160 = dma.hbm_to_vmem [thread:$0]  %s18260_s12, 64, %s158_s14, [#allocation20]  }
  0x74   :  { %s15888_s25 = scalar_lea.hbm %s18263_s15, 16 }
  0x75   :  { %p15889_p6 = scmp.ne.s32.totalorder %s18263_s15, %s15888_s25  ;;  %p15892_p7 = scmp.lt.u32.totalorder %s15888_s25, %s18263_s15 }
  0x77   :  { %p15894_p8 = pnand %p15892_p7, %p15889_p6 }
  0x79   :  { %15897 = shalt.err (!%p15894_p8)
}
  0x7a   :  { %s15898_s30 = scalar_lea.vmem %s180_s1, 16  ;;  %s15902_s18 = scalar_lea.vmem %s180_s1, 32 }
  0x7b   :  { %p15899_p9 = scmp.ne.s32.totalorder %s180_s1, %s15898_s30  ;;  %p15903_p10 = scmp.lt.s32.totalorder %s180_s1, %s180_s1 }
  0x7c   :  { %p15904_p11 = scmp.lt.s32.totalorder %s15902_s18, %s15898_s30 }
  0x7e   :  { %p15905_p12 = por %p15904_p11, %p15903_p10 }
  0x80   :  { %p15906_p13 = pnand %p15905_p12, %p15899_p9 }
  0x82   :  { %15909 = shalt.err (!%p15906_p13)
}
  0x83   :  { %182 = dma.hbm_to_vmem [thread:$0]  %s18263_s15, 16, %s180_s1, [#allocation23]  }
  0x84   :  { %s16111_s6 = smov [#allocation2]   ;;  %s18406_s4 = sld [smem:[#allocation74_spill]] }
  0x85   :  { %s38_s19 = sshll.u32 %s16111_s6, 4  ;;  %s39_s19 = int_to_ptr.vmem [resolvable:$true] %s38_s19 }
  0x8a   :  { %s15910_s29 = scalar_lea.hbm %s18406_s4, 768 }
  0x8b   :  { %p15911_p0 = scmp.ne.s32.totalorder %s18406_s4, %s15910_s29  ;;  %p15914_p1 = scmp.lt.u32.totalorder %s15910_s29, %s18406_s4 }
  0x8d   :  { %p15916_p2 = pnand %p15914_p1, %p15911_p0 }
  0x8f   :  { %15919 = shalt.err (!%p15916_p2)
}
  0x90   :  { %s15920_s0 = scalar_lea.vmem %s39_s19, 768  ;;  %p15925_p4 = scmp.lt.s32.totalorder %s39_s19, %s39_s19 }
  0x91   :  { %p15921_p3 = scmp.ne.s32.totalorder %s39_s19, %s15920_s0  ;;  %p15926_p5 = scmp.lt.s32.totalorder %s15920_s0, %s15920_s0 }
  0x93   :  { %p15927_p6 = por %p15926_p5, %p15925_p4 }
  0x95   :  { %p15928_p7 = pnand %p15927_p6, %p15921_p3 }
  0x97   :  { %15931 = shalt.err (!%p15928_p7)
}
  0x98   :  { %s16112_s15 = smov 64   ;;  %s16113_s1 = smov 4  }
  0x99   :  { %44 = dma.hbm_to_vmem [thread:$0]  %s18406_s4, 768, %s39_s19, [#allocation3], %s16112_s15, %s16112_s15, %s16113_s1  }
  0x9a   :  { %s16114_s26 = smov [#allocation6]   ;;  %s16115_s8 = smov [#allocation9]  }
  0x9b   :  { %s63_s27 = sshll.u32 %s16114_s26, 4  ;;  %s83_s2 = sshll.u32 %s16115_s8, 4  ;;  %s64_s27 = int_to_ptr.vmem [resolvable:$true] %s63_s27  ;;  %s84_s2 = int_to_ptr.vmem [resolvable:$true] %s83_s2 }
  0x9c   :  { %s15932_s12 = scalar_lea.hbm %s18251_s3, 64 }
  0x9d   :  { %p15933_p8 = scmp.ne.s32.totalorder %s18251_s3, %s15932_s12  ;;  %p15936_p9 = scmp.lt.u32.totalorder %s15932_s12, %s18251_s3 }
  0x9f   :  { %p15938_p10 = pnand %p15936_p9, %p15933_p8 }
  0xa1   :  { %15941 = shalt.err (!%p15938_p10)
}
  0xa2   :  { %s15942_s19 = scalar_lea.vmem %s64_s27, 64  ;;  %p15947_p12 = scmp.lt.s32.totalorder %s64_s27, %s64_s27 }
  0xa3   :  { %p15943_p11 = scmp.ne.s32.totalorder %s64_s27, %s15942_s19  ;;  %p15948_p13 = scmp.lt.s32.totalorder %s15942_s19, %s15942_s19 }
  0xa5   :  { %p15949_p0 = por %p15948_p13, %p15947_p12 }
  0xa7   :  { %p15950_p1 = pnand %p15949_p0, %p15943_p11 }
  0xa9   :  { %15953 = shalt.err (!%p15950_p1)
}
  0xaa   :  { %66 = dma.hbm_to_vmem [thread:$0]  %s18251_s3, 64, %s64_s27, [#allocation5]  }
  0xab   :  { %s15954_s23 = scalar_lea.hbm %s18253_s5, 64 }
  0xac   :  { %p15955_p2 = scmp.ne.s32.totalorder %s18253_s5, %s15954_s23  ;;  %p15958_p3 = scmp.lt.u32.totalorder %s15954_s23, %s18253_s5 }
  0xae   :  { %p15960_p4 = pnand %p15958_p3, %p15955_p2 }
  0xb0   :  { %15963 = shalt.err (!%p15960_p4)
}
  0xb1   :  { %s15964_s28 = scalar_lea.vmem %s84_s2, 64  ;;  %p15969_p6 = scmp.lt.s32.totalorder %s84_s2, %s84_s2 }
  0xb2   :  { %p15965_p5 = scmp.ne.s32.totalorder %s84_s2, %s15964_s28  ;;  %p15970_p7 = scmp.lt.s32.totalorder %s15964_s28, %s15964_s28 }
  0xb4   :  { %p15971_p8 = por %p15970_p7, %p15969_p6 }
  0xb6   :  { %p15972_p9 = pnand %p15971_p8, %p15965_p5 }
  0xb8   :  { %15975 = shalt.err (!%p15972_p9)
}
  0xb9   :  { %86 = dma.hbm_to_vmem [thread:$0]  %s18253_s5, 64, %s84_s2, [#allocation8]  }
  0xba   :  { %s16116_s26 = smov [#allocation12]   ;;  %s16117_s8 = smov [#allocation15]  }
  0xbb   :  { %s105_s27 = sshll.u32 %s16116_s26, 4  ;;  %s125_s30 = sshll.u32 %s16117_s8, 4  ;;  %s106_s27 = int_to_ptr.vmem [resolvable:$true] %s105_s27  ;;  %s126_s30 = int_to_ptr.vmem [resolvable:$true] %s125_s30 }
  0xbc   :  { %s15976_s14 = scalar_lea.hbm %s18255_s7, 64 }
  0xbd   :  { %p15977_p10 = scmp.ne.s32.totalorder %s18255_s7, %s15976_s14  ;;  %p15980_p11 = scmp.lt.u32.totalorder %s15976_s14, %s18255_s7 }
  0xbf   :  { %p15982_p12 = pnand %p15980_p11, %p15977_p10 }
  0xc1   :  { %15985 = shalt.err (!%p15982_p12)
}
  0xc2   :  { %s15986_s5 = scalar_lea.vmem %s106_s27, 64  ;;  %p15991_p0 = scmp.lt.s32.totalorder %s106_s27, %s106_s27 }
  0xc3   :  { %p15987_p13 = scmp.ne.s32.totalorder %s106_s27, %s15986_s5  ;;  %p15992_p1 = scmp.lt.s32.totalorder %s15986_s5, %s15986_s5 }
  0xc5   :  { %p15993_p2 = por %p15992_p1, %p15991_p0 }
  0xc7   :  { %p15994_p3 = pnand %p15993_p2, %p15987_p13 }
  0xc9   :  { %15997 = shalt.err (!%p15994_p3)
}
  0xca   :  { %108 = dma.hbm_to_vmem [thread:$0]  %s18255_s7, 64, %s106_s27, [#allocation11]  }
  0xcb   :  { %s15998_s10 = scalar_lea.hbm %s18257_s9, 64 }
  0xcc   :  { %p15999_p4 = scmp.ne.s32.totalorder %s18257_s9, %s15998_s10  ;;  %p16002_p5 = scmp.lt.u32.totalorder %s15998_s10, %s18257_s9 }
  0xce   :  { %p16004_p6 = pnand %p16002_p5, %p15999_p4 }
  0xd0   :  { %16007 = shalt.err (!%p16004_p6)
}
  0xd1   :  { %s16008_s1 = scalar_lea.vmem %s126_s30, 64  ;;  %p16013_p8 = scmp.lt.s32.totalorder %s126_s30, %s126_s30 }
  0xd2   :  { %p16009_p7 = scmp.ne.s32.totalorder %s126_s30, %s16008_s1  ;;  %p16014_p9 = scmp.lt.s32.totalorder %s16008_s1, %s16008_s1 }
  0xd4   :  { %p16015_p10 = por %p16014_p9, %p16013_p8 }
  0xd6   :  { %p16016_p11 = pnand %p16015_p10, %p16009_p7 }
  0xd8   :  { %16019 = shalt.err (!%p16016_p11)
}
  0xd9   :  { %128 = dma.hbm_to_vmem [thread:$0]  %s18257_s9, 64, %s126_s30, [#allocation14]  }
  0xda   :  { %s16118_s3 = smov [#allocation18]   ;;  %s16119_s26 = smov [#allocation21]  }
  0xdb   :  { %s147_s25 = sshll.u32 %s16118_s3, 4  ;;  %s167_s27 = sshll.u32 %s16119_s26, 4  ;;  %s148_s25 = int_to_ptr.vmem [resolvable:$true] %s147_s25  ;;  %s168_s27 = int_to_ptr.vmem [resolvable:$true] %s167_s27 }
  0xdc   :  { %s16020_s12 = scalar_lea.hbm %s18259_s11, 64 }
  0xdd   :  { %p16021_p12 = scmp.ne.s32.totalorder %s18259_s11, %s16020_s12  ;;  %p16024_p13 = scmp.lt.u32.totalorder %s16020_s12, %s18259_s11 }
  0xdf   :  { %p16026_p0 = pnand %p16024_p13, %p16021_p12 }
  0xe1   :  { %16029 = shalt.err (!%p16026_p0)
}
  0xe2   :  { %s16030_s9 = scalar_lea.vmem %s148_s25, 64  ;;  %p16035_p2 = scmp.lt.s32.totalorder %s148_s25, %s148_s25 }
  0xe3   :  { %p16031_p1 = scmp.ne.s32.totalorder %s148_s25, %s16030_s9  ;;  %p16036_p3 = scmp.lt.s32.totalorder %s16030_s9, %s16030_s9 }
  0xe5   :  { %p16037_p4 = por %p16036_p3, %p16035_p2 }
  0xe7   :  { %p16038_p5 = pnand %p16037_p4, %p16031_p1 }
  0xe9   :  { %16041 = shalt.err (!%p16038_p5)
}
  0xea   :  { %150 = dma.hbm_to_vmem [thread:$0]  %s18259_s11, 64, %s148_s25, [#allocation17]  }
  0xeb   :  { %s16042_s4 = scalar_lea.hbm %s18261_s13, 64 }
  0xec   :  { %p16043_p6 = scmp.ne.s32.totalorder %s18261_s13, %s16042_s4  ;;  %p16046_p7 = scmp.lt.u32.totalorder %s16042_s4, %s18261_s13 }
  0xee   :  { %p16048_p8 = pnand %p16046_p7, %p16043_p6 }
  0xf0   :  { %16051 = shalt.err (!%p16048_p8)
}
  0xf1   :  { %s16052_s24 = scalar_lea.vmem %s168_s27, 64  ;;  %p16057_p10 = scmp.lt.s32.totalorder %s168_s27, %s168_s27 }
  0xf2   :  { %p16053_p9 = scmp.ne.s32.totalorder %s168_s27, %s16052_s24  ;;  %p16058_p11 = scmp.lt.s32.totalorder %s16052_s24, %s16052_s24 }
  0xf4   :  { %p16059_p12 = por %p16058_p11, %p16057_p10 }
  0xf6   :  { %p16060_p13 = pnand %p16059_p12, %p16053_p9 }
  0xf8   :  { %16063 = shalt.err (!%p16060_p13)
}
  0xf9   :  { %170 = dma.hbm_to_vmem [thread:$0]  %s18261_s13, 64, %s168_s27, [#allocation20]  }
  0xfa   :  { %s16120_s15 = smov [#allocation24]   ;;  %s16064_s3 = scalar_lea.hbm %s18265_s17, 2048 }
  0xfb   :  { %s190_s1 = sshll.u32 %s16120_s15, 4  ;;  %p16065_p0 = scmp.ne.s32.totalorder %s18265_s17, %s16064_s3  ;;  %s191_s1 = int_to_ptr.vmem [resolvable:$true] %s190_s1 }
  0xfc   :  { %p16068_p1 = scmp.lt.u32.totalorder %s16064_s3, %s18265_s17 }
  0xfe   :  { %p16070_p2 = pnand %p16068_p1, %p16065_p0 }
 0x100   :  { %16073 = shalt.err (!%p16070_p2)
}
 0x101   :  { %s16074_s12 = scalar_lea.vmem %s191_s1, 2048  ;;  %p16079_p4 = scmp.lt.s32.totalorder %s191_s1, %s191_s1 }
 0x102   :  { %p16075_p3 = scmp.ne.s32.totalorder %s191_s1, %s16074_s12  ;;  %p16080_p5 = scmp.lt.s32.totalorder %s16074_s12, %s16074_s12 }
 0x104   :  { %p16081_p6 = por %p16080_p5, %p16079_p4 }
 0x106   :  { %p16082_p7 = pnand %p16081_p6, %p16075_p3 }
 0x108   :  { %16085 = shalt.err (!%p16082_p7)
}
 0x109   :  { %s16121_s13 = smov 512   ;;  %s16122_s27 = smov 32  }
 0x10a   :  { %196 = dma.hbm_to_vmem [thread:$0]  %s18265_s17, 2048, %s191_s1, [#allocation23], %s16121_s13, %s16121_s13, %s16122_s27  }
 0x10b   :  { %16086 = dma.done.wait [#allocation3], 768  }
 0x10c   :  { %16087 = vsyncadd [#allocation3], 4294966528 }
 0x10d   :  { %16088 = dma.done.wait [#allocation5], 4672  }
 0x10e   :  { %16089 = vsyncadd [#allocation5], 4294962624 }
 0x10f   :  { %16090 = dma.done.wait [#allocation8], 128  }
 0x110   :  { %16091 = vsyncadd [#allocation8], 4294967168 }
 0x111   :  { %16092 = dma.done.wait [#allocation11], 49216  }
 0x112   :  { %16093 = vsyncadd [#allocation11], 4294918080 }
 0x113   :  { %16094 = dma.done.wait [#allocation14], 128  }
 0x114   :  { %16095 = vsyncadd [#allocation14], 4294967168 }
 0x115   :  { %16096 = dma.done.wait [#allocation17], 49216  }
 0x116   :  { %16097 = vsyncadd [#allocation17], 4294918080 }
 0x117   :  { %16098 = dma.done.wait [#allocation20], 128  }
 0x118   :  { %16099 = vsyncadd [#allocation20], 4294967168 }
 0x119   :  { %16100 = dma.done.wait [#allocation23], 2064  }
 0x11a   :  { %16101 = vsyncadd [#allocation23], 4294965232  ;;  %s18407_s9 = sld [smem:[#allocation73_spill]]  ;;  %vm289_vm0 = vcmask 261120   ;;  %v14406_v6 = vld [vmem:[#allocation2] sm:$0xff]   ;;  %v14407_v8 = vld [vmem:[#allocation2 + $0x8] sm:$0xff]  }
 0x11b   :  { %13643 = vmatprep.mubr.msk.bf16.mxu0 %vm289_vm0, %v14406_v6  ;;  %v14408_v7 = vld [vmem:[#allocation4 + $0x4] ss:$16 sps:$4 sm:$0xff]   ;;  %v14412_v9 = vld [vmem:[#allocation4 + $0xc] ss:$16 sps:$4 sm:$0xff]   ;;  %v14413_v10 = vld [vmem:[#allocation4] ss:$16 sps:$4 sm:$0xff]  }
 0x11c   :  { %426 = vmatprep.subr.bf16.mxu1 %v14408_v7  ;;  %v14414_v11 = vld [vmem:[#allocation4 + $0x24] ss:$16 sps:$4 sm:$0xff]   ;;  %v14410_v12 = vld [vmem:[#allocation4 + $0x8] ss:$16 sps:$4 sm:$0xff]   ;;  %v14418_v13 = vld [vmem:[#allocation4 + $0x2c] ss:$16 sps:$4 sm:$0xff]  }
 0x11d   :  { %427 = vmatpush1.bf16.msra.mxu1 %v14413_v10  ;;  %v14419_v14 = vld [vmem:[#allocation4 + $0x20] ss:$16 sps:$4 sm:$0xff]   ;;  %v14416_v15 = vld [vmem:[#allocation4 + $0x28] ss:$16 sps:$4 sm:$0xff]   ;;  %v14420_v16 = vld [vmem:[#allocation4 + $0x44] ss:$16 sps:$4 sm:$0xff]  }
 0x11e   :  { %428 = vmatprep.subr.bf16.mxu1 %v14414_v11  ;;  %v14424_v17 = vld [vmem:[#allocation4 + $0x4c] ss:$16 sps:$4 sm:$0xff]   ;;  %v14422_v18 = vld [vmem:[#allocation4 + $0x48] ss:$16 sps:$4 sm:$0xff]   ;;  %v14425_v19 = vld [vmem:[#allocation4 + $0x40] ss:$16 sps:$4 sm:$0xff]  }
 0x11f   :  { %v18272_v20 = vmov 0   ;;  %v14430_v21 = vld [vmem:[#allocation4 + $0x6c] ss:$16 sps:$4 sm:$0xff]   ;;  %vm419_vm1 = vcmask 392192   ;;  %v14428_v27 = vld [vmem:[#allocation4 + $0x68] ss:$16 sps:$4 sm:$0xff]  }
 0x120   :  { %v243_v0 = vld [vmem:[%s18407_s9] sm:$0xff]  ;;  %v244_v1 = vld [vmem:[%s18407_s9 + $0x8] sm:$0xff]  ;;  %v245_v2 = vld [vmem:[%s18407_s9 + $0x10] sm:$0xff]  ;;  %458 = vmatprep.mubr.bf16.mxu1 %v18272_v20  ;;  %s18596_s7 = sld [smem:[#allocation76_spill]]  ;;  %s18597_s20 = sld [smem:[#allocation77_spill]] }
 0x121   :  { %v16418_v3 = vpack.c.bf16 %v244_v1, %v243_v0  ;;  %v246_v4 = vld [vmem:[%s18407_s9 + $0x18] sm:$0xff]  ;;  %429 = vmatpush1.bf16.msra.mxu1 %v14419_v14  ;;  %v14433_v30 = vld [vmem:[#allocation4 + $0x64] ss:$16 sps:$4 sm:$0xff]   ;;  %v14431_v34 = vld [vmem:[#allocation4 + $0x60] ss:$16 sps:$4 sm:$0xff]  }
 0x122   :  { %v16423_v5 = vpack.c.bf16 %v246_v4, %v245_v2  ;;  %430 = vmatprep.subr.bf16.mxu1 %v14420_v16  ;;  %v14436_v29 = vld [vmem:[#allocation4 + $0x8c] ss:$16 sps:$4 sm:$0xff]   ;;  %v14434_v31 = vld [vmem:[#allocation4 + $0x88] ss:$16 sps:$4 sm:$0xff]   ;;  %v14426_v32 = vld [vmem:[#allocation2 + $0x10] sm:$0xff]  }
 0x123   :  { %13639 = vmatprep.subr.bf16.mxu0 %v16418_v3  ;;  %v14427_v33 = vld [vmem:[#allocation2 + $0x18] sm:$0xff]   ;;  %v14439_v35 = vld [vmem:[#allocation4 + $0x84] ss:$16 sps:$4 sm:$0xff]   ;;  %v14437_v36 = vld [vmem:[#allocation4 + $0x80] ss:$16 sps:$4 sm:$0xff]  }
 0x124   :  { %13640 = vmatpush3.bf16.msra.mxu0 %v16418_v3  ;;  %v14442_v37 = vld [vmem:[#allocation4 + $0xac] ss:$16 sps:$4 sm:$0xff]   ;;  %v14445_v38 = vld [vmem:[#allocation4 + $0xa4] ss:$16 sps:$4 sm:$0xff]   ;;  %v14440_v39 = vld [vmem:[#allocation4 + $0xa8] ss:$16 sps:$4 sm:$0xff]  }
 0x125   :  { %13641 = vmatprep.subr.bf16.mxu0 %v16423_v5  ;;  %431 = vmatpush1.bf16.msra.mxu1 %v14425_v19  ;;  %v14443_v40 = vld [vmem:[#allocation4 + $0xa0] ss:$16 sps:$4 sm:$0xff]   ;;  %v14450_v41 = vld [vmem:[#allocation4 + $0xc4] ss:$16 sps:$4 sm:$0xff]   ;;  %v14453_v50 = vld [vmem:[#allocation4 + $0xcc] ss:$16 sps:$4 sm:$0xff]  }
 0x126   :  { %13647 = vmatprep.subr.bf16.mxu1 %v16418_v3  ;;  %v14448_v48 = vld [vmem:[#allocation4 + $0xc0] ss:$16 sps:$4 sm:$0xff]   ;;  %v14456_v49 = vld [vmem:[#allocation4 + $0xe4] ss:$16 sps:$4 sm:$0xff]   ;;  %v14447_v53 = vld [vmem:[#allocation2 + $0x28] sm:$0xff]  }
 0x127   :  { %v14454_v51 = vld [vmem:[#allocation4 + $0xe0] ss:$16 sps:$4 sm:$0xff]   ;;  %v14451_v54 = vld [vmem:[#allocation4 + $0xc8] ss:$16 sps:$4 sm:$0xff]   ;;  %v14459_v55 = vld [vmem:[#allocation4 + $0xec] ss:$16 sps:$4 sm:$0xff]  }
 0x128   :  { %13642 = vmatpush3.bf16.msra.mxu0 %v16423_v5  ;;  %v14446_v52 = vld [vmem:[#allocation2 + $0x20] sm:$0xff]   ;;  %v14457_v56 = vld [vmem:[#allocation4 + $0xe8] ss:$16 sps:$4 sm:$0xff]   ;;  %v14465_v58 = vld [vmem:[#allocation4 + $0x10c] ss:$16 sps:$4 sm:$0xff]  }
 0x129   :  { %479 = vmatprep.subr.bf16.mxu0 %v14412_v9  ;;  %v14462_v57 = vld [vmem:[#allocation4 + $0x104] ss:$16 sps:$4 sm:$0xff]   ;;  %v14460_v59 = vld [vmem:[#allocation4 + $0x100] ss:$16 sps:$4 sm:$0xff]   ;;  %v14463_v60 = vld [vmem:[#allocation4 + $0x108] ss:$16 sps:$4 sm:$0xff]  }
 0x12a   :  { %v1256_v4 = vld [vmem:[%s18264_s16 + $0x88] sm:$0xff]  ;;  %v1239_v9 = vld [vmem:[%s18264_s16] sm:$0xff]  ;;  %v1258_v16 = vld [vmem:[%s18264_s16 + $0x98] sm:$0xff] }
 0x12b   :  { %13644 = vmatmul.mubr.msk.bf16.vlgmr.msra.gmra.mrb[0].mxu0 %vm289_vm0, %v14407_v8  ;;  %v1288_v7 = vld [vmem:[%s18264_s16 + $0x188] sm:$0xff]  ;;  %v1271_v11 = vld [vmem:[%s18264_s16 + $0x100] sm:$0xff]  ;;  %v1290_v19 = vld [vmem:[%s18264_s16 + $0x198] sm:$0xff] }
 0x12c   :  { %480 = vmatpush1.bf16.msra.mxu0 %v14410_v12  ;;  %511 = vmatprep.mubr.bf16.mxu0 %v18272_v20  ;;  %v1240_v10 = vld [vmem:[%s18264_s16 + $0x8] sm:$0xff] }
 0x12d   :  { %481 = vmatprep.subr.bf16.mxu0 %v14418_v13  ;;  %v16494_v12 = vpack.c.bf16 %v1240_v10, %v1239_v9  ;;  %v1272_v13 = vld [vmem:[%s18264_s16 + $0x108] sm:$0xff] }
 0x12e   :  { %v16499_v14 = vpack.c.bf16 %v1272_v13, %v1271_v11  ;;  %v1281_v11 = vld [vmem:[%s18264_s16 + $0x150] sm:$0xff]  ;;  %v1282_v13 = vld [vmem:[%s18264_s16 + $0x158] sm:$0xff] }
 0x130   :  { %482 = vmatpush1.bf16.msra.mxu0 %v14416_v15  ;;  %v1257_v15 = vld [vmem:[%s18264_s16 + $0x90] sm:$0xff] }
 0x131   :  { %483 = vmatprep.subr.bf16.mxu0 %v14424_v17  ;;  %v1289_v17 = vld [vmem:[%s18264_s16 + $0x190] sm:$0xff] }
 0x134   :  { %484 = vmatpush1.bf16.msra.mxu0 %v14422_v18  ;;  %v16512_v18 = vpack.c.bf16 %v1258_v16, %v1257_v15  ;;  %v16678_v15 = vpack.c.bf16 %v1282_v13, %v1281_v11  ;;  %v1267_v16 = vld [vmem:[%s18264_s16 + $0xe0] sm:$0xff] }
 0x135   :  { %752 = vmatprep.subr.bf16.mxu0 %v14430_v21  ;;  %v1241_v21 = vld [vmem:[%s18264_s16 + $0x10] sm:$0xff] }
 0x136   :  { %18413 = vst [vmem:[#allocation38_spill] sm:$0xff] %v16678_v15 }
 0x1fe   :  { %v13645_v22 = vpop.f32.mrb[0].mxu0 }
 0x1ff   :  { %v330_v23 = vpop.f32.mrb[1].mxu0 }
 0x200   :  { %v13646_v24 = vpop.f32.mrb[2].mxu0 }
 0x201   :  { %v346_v25 = vpack.c.bf16 %v13646_v24, %v13645_v22  ;;  %v333_v26 = vpop.f32.mrb[3].mxu0  ;;  %v1242_v22 = vld [vmem:[%s18264_s16 + $0x18] sm:$0xff] }
 0x202   :  { %v345_v28 = vpack.c.bf16 %v333_v26, %v330_v23  ;;  %v16523_v23 = vpack.c.bf16 %v1290_v19, %v1289_v17  ;;  %v16525_v24 = vpack.c.bf16 %v1242_v22, %v1241_v21  ;;  %v1274_v26 = vld [vmem:[%s18264_s16 + $0x118] sm:$0xff]  ;;  %v1268_v17 = vld [vmem:[%s18264_s16 + $0xe8] sm:$0xff]  ;;  %v1299_v19 = vld [vmem:[%s18264_s16 + $0x1e0] sm:$0xff] }
 0x203   :  { %v16692_v21 = vpack.c.bf16 %v1268_v17, %v1267_v16  ;;  %v1300_v22 = vld [vmem:[%s18264_s16 + $0x1e8] sm:$0xff] }
 0x204   :  { %11954 = vmatmul.mubr.msk.bf16.vlgmr.msra.gmra.mrb[0].mxu1 %vm419_vm1, %v345_v28  ;;  %11956 = vmatmul.mubr.msk.bf16.vlgmr.msra.gmra.mrb[4].mxu0 %vm419_vm1, %v345_v28  ;;  %v1259_v28 = vld [vmem:[%s18264_s16 + $0xa0] sm:$0xff] }
 0x205   :  { %13648 = vmatpush3.bf16.msra.mxu1 %v16418_v3  ;;  %468 = vmatprep.mubr.bf16.mxu1 %v18272_v20  ;;  %18414 = vst [vmem:[#allocation39_spill] sm:$0xff] %v16692_v21 }
 0x206   :  { %521 = vmatprep.mubr.bf16.mxu0 %v18272_v20  ;;  %13649 = vmatprep.subr.bf16.mxu1 %v16423_v5 }
 0x207   :  { %753 = vmatpush1.bf16.msra.mxu0 %v14428_v27 }
 0x208   :  { %754 = vmatprep.subr.bf16.mxu0 %v14436_v29  ;;  %v1260_v29 = vld [vmem:[%s18264_s16 + $0xa8] sm:$0xff] }
 0x209   :  { %13650 = vmatpush3.bf16.msra.mxu1 %v16423_v5 }
 0x20a   :  { %699 = vmatprep.subr.bf16.mxu1 %v14433_v30  ;;  %v1291_v30 = vld [vmem:[%s18264_s16 + $0x1a0] sm:$0xff] }
 0x20b   :  { %755 = vmatpush1.bf16.msra.mxu0 %v14434_v31  ;;  %v16548_v31 = vpack.c.bf16 %v1260_v29, %v1259_v28  ;;  %v16703_v28 = vpack.c.bf16 %v1300_v22, %v1299_v19 }
 0x20c   :  { %11955 = vmatmul.mubr.msk.bf16.gmra.mrb[4].mxu1 %vm419_vm1, %v346_v25  ;;  %11957 = vmatmul.mubr.msk.bf16.gmra.mrb[8].mxu0 %vm419_vm1, %v346_v25  ;;  %v1273_v25 = vld [vmem:[%s18264_s16 + $0x110] sm:$0xff] }
 0x20d   :  { %13651 = vmatprep.mubr.msk.bf16.mxu1 %vm289_vm0, %v14426_v32  ;;  %784 = vmatprep.mubr.bf16.mxu0 %v18272_v20  ;;  %v16534_v27 = vpack.c.bf16 %v1274_v26, %v1273_v25  ;;  %v1292_v32 = vld [vmem:[%s18264_s16 + $0x1a8] sm:$0xff]  ;;  %v1251_v25 = vld [vmem:[%s18264_s16 + $0x60] sm:$0xff]  ;;  %18415 = vst [vmem:[#allocation40_spill] sm:$0xff] %v16703_v28 }
 0x20e   :  { %756 = vmatprep.subr.bf16.mxu0 %v14442_v37  ;;  %v1252_v26 = vld [vmem:[%s18264_s16 + $0x68] sm:$0xff] }
 0x20f   :  { %757 = vmatpush1.bf16.msra.mxu0 %v14440_v39  ;;  %v16705_v29 = vpack.c.bf16 %v1252_v26, %v1251_v25 }
 0x210   :  { %13655 = vmatprep.subr.bf16.mxu0 %v16418_v3 }
 0x211   :  { %18416 = vst [vmem:[#allocation41_spill] sm:$0xff] %v16705_v29 }
 0x214   :  { %13652 = vmatmul.mubr.msk.bf16.vlgmr.msra.gmra.mrb[8].mxu1 %vm289_vm0, %v14427_v33  ;;  %v16553_v33 = vpack.c.bf16 %v1292_v32, %v1291_v30  ;;  %v1283_v30 = vld [vmem:[%s18264_s16 + $0x160] sm:$0xff]  ;;  %v1284_v32 = vld [vmem:[%s18264_s16 + $0x168] sm:$0xff] }
 0x215   :  { %700 = vmatpush1.bf16.msra.mxu1 %v14431_v34  ;;  %731 = vmatprep.mubr.bf16.mxu1 %v18272_v20  ;;  %v1243_v34 = vld [vmem:[%s18264_s16 + $0x20] sm:$0xff] }
 0x216   :  { %701 = vmatprep.subr.bf16.mxu1 %v14439_v35  ;;  %v1244_v35 = vld [vmem:[%s18264_s16 + $0x28] sm:$0xff] }
 0x217   :  { %v16566_v37 = vpack.c.bf16 %v1244_v35, %v1243_v34  ;;  %v1269_v34 = vld [vmem:[%s18264_s16 + $0xf0] sm:$0xff]  ;;  %v16717_v35 = vpack.c.bf16 %v1284_v32, %v1283_v30 }
 0x219   :  { %702 = vmatpush1.bf16.msra.mxu1 %v14437_v36  ;;  %v1275_v36 = vld [vmem:[%s18264_s16 + $0x120] sm:$0xff]  ;;  %18417 = vst [vmem:[#allocation42_spill] sm:$0xff] %v16717_v35 }
 0x21a   :  { %703 = vmatprep.subr.bf16.mxu1 %v14445_v38  ;;  %v1276_v38 = vld [vmem:[%s18264_s16 + $0x128] sm:$0xff] }
 0x21b   :  { %v16571_v39 = vpack.c.bf16 %v1276_v38, %v1275_v36  ;;  %v1270_v36 = vld [vmem:[%s18264_s16 + $0xf8] sm:$0xff]  ;;  %v1301_v38 = vld [vmem:[%s18264_s16 + $0x1f0] sm:$0xff] }
 0x21d   :  { %704 = vmatpush1.bf16.msra.mxu1 %v14443_v40  ;;  %v1261_v40 = vld [vmem:[%s18264_s16 + $0xb0] sm:$0xff] }
 0x21e   :  { %972 = vmatprep.subr.bf16.mxu1 %v14450_v41  ;;  %v1262_v41 = vld [vmem:[%s18264_s16 + $0xb8] sm:$0xff] }
 0x2e7   :  { %v13653_v42 = vpop.f32.mrb[8].mxu1 }
 0x2e8   :  { %v603_v43 = vpop.f32.mrb[9].mxu1 }
 0x2e9   :  { %v13654_v44 = vpop.f32.mrb[10].mxu1 }
 0x2ea   :  { %v619_v45 = vpack.c.bf16 %v13654_v44, %v13653_v42  ;;  %v606_v46 = vpop.f32.mrb[11].mxu1  ;;  %v1293_v42 = vld [vmem:[%s18264_s16 + $0x1b0] sm:$0xff]  ;;  %v1294_v44 = vld [vmem:[%s18264_s16 + $0x1b8] sm:$0xff] }
 0x2eb   :  { %v618_v47 = vpack.c.bf16 %v606_v46, %v603_v43  ;;  %v16584_v43 = vpack.c.bf16 %v1262_v41, %v1261_v40  ;;  %v1246_v46 = vld [vmem:[%s18264_s16 + $0x38] sm:$0xff]  ;;  %v16730_v41 = vpack.c.bf16 %v1270_v36, %v1269_v34 }
 0x2ec   :  { %v1302_v40 = vld [vmem:[%s18264_s16 + $0x1f8] sm:$0xff] }
 0x2ed   :  { %11974 = vmatmul.mubr.msk.bf16.vlgmr.msra.gmra.mrb[0].mxu1 %vm419_vm1, %v618_v47  ;;  %11976 = vmatmul.mubr.msk.bf16.vlgmr.msra.gmra.mrb[4].mxu0 %vm419_vm1, %v618_v47  ;;  %v16595_v47 = vpack.c.bf16 %v1294_v44, %v1293_v42  ;;  %18418 = vst [vmem:[#allocation43_spill] sm:$0xff] %v16730_v41  ;;  %v16732_v42 = vpack.c.bf16 %v1302_v40, %v1301_v38  ;;  %v1253_v44 = vld [vmem:[%s18264_s16 + $0x70] sm:$0xff] }
 0x2ee   :  { %13656 = vmatpush3.bf16.msra.mxu0 %v16418_v3  ;;  %741 = vmatprep.mubr.bf16.mxu1 %v18272_v20  ;;  %v1255_v3 = vld [vmem:[%s18264_s16 + $0x80] sm:$0xff] }
 0x2ef   :  { %794 = vmatprep.mubr.bf16.mxu0 %v18272_v20  ;;  %13657 = vmatprep.subr.bf16.mxu0 %v16423_v5  ;;  %v16476_v6 = vpack.c.bf16 %v1256_v4, %v1255_v3  ;;  %v1298_v4 = vld [vmem:[%s18264_s16 + $0x1d8] sm:$0xff]  ;;  %18419 = vst [vmem:[#allocation44_spill] sm:$0xff] %v16732_v42 }
 0x2f0   :  { %973 = vmatpush1.bf16.msra.mxu1 %v14448_v48 }
 0x2f1   :  { %974 = vmatprep.subr.bf16.mxu1 %v14456_v49  ;;  %18408 = vst [vmem:[#allocation33_spill] sm:$0xff] %v16476_v6  ;;  %v1277_v49 = vld [vmem:[%s18264_s16 + $0x130] sm:$0xff] }
 0x2f2   :  { %13658 = vmatpush3.bf16.msra.mxu0 %v16423_v5  ;;  %v1287_v5 = vld [vmem:[%s18264_s16 + $0x180] sm:$0xff] }
 0x2f3   :  { %1025 = vmatprep.subr.bf16.mxu0 %v14453_v50  ;;  %v16481_v8 = vpack.c.bf16 %v1288_v7, %v1287_v5  ;;  %v1278_v50 = vld [vmem:[%s18264_s16 + $0x138] sm:$0xff]  ;;  %v1249_v5 = vld [vmem:[%s18264_s16 + $0x50] sm:$0xff] }
 0x2f4   :  { %975 = vmatpush1.bf16.msra.mxu1 %v14454_v51  ;;  %v16606_v51 = vpack.c.bf16 %v1278_v50, %v1277_v49  ;;  %v1250_v7 = vld [vmem:[%s18264_s16 + $0x58] sm:$0xff] }
 0x2f5   :  { %11975 = vmatmul.mubr.msk.bf16.gmra.mrb[4].mxu1 %vm419_vm1, %v619_v45  ;;  %11977 = vmatmul.mubr.msk.bf16.gmra.mrb[8].mxu0 %vm419_vm1, %v619_v45  ;;  %18409 = vst [vmem:[#allocation34_spill] sm:$0xff] %v16481_v8  ;;  %v1245_v45 = vld [vmem:[%s18264_s16 + $0x30] sm:$0xff]  ;;  %v16669_v10 = vpack.c.bf16 %v1250_v7, %v1249_v5  ;;  %v1286_v50 = vld [vmem:[%s18264_s16 + $0x178] sm:$0xff] }
 0x2f6   :  { %13659 = vmatprep.mubr.msk.bf16.mxu0 %vm289_vm0, %v14446_v52  ;;  %1004 = vmatprep.mubr.bf16.mxu1 %v18272_v20  ;;  %v16597_v48 = vpack.c.bf16 %v1246_v46, %v1245_v45  ;;  %v1263_v52 = vld [vmem:[%s18264_s16 + $0xc0] sm:$0xff]  ;;  %v1254_v45 = vld [vmem:[%s18264_s16 + $0x78] sm:$0xff]  ;;  %v1285_v46 = vld [vmem:[%s18264_s16 + $0x170] sm:$0xff] }
 0x2f7   :  { %976 = vmatprep.subr.bf16.mxu1 %v14462_v57  ;;  %v1247_v57 = vld [vmem:[%s18264_s16 + $0x40] sm:$0xff]  ;;  %18412 = vst [vmem:[#allocation37_spill] sm:$0xff] %v16669_v10  ;;  %v16744_v49 = vpack.c.bf16 %v1254_v45, %v1253_v44 }
 0x2f8   :  { %977 = vmatpush1.bf16.msra.mxu1 %v14460_v59 }
 0x2f9   :  { %13664 = vmatprep.subr.bf16.mxu1 %v16476_v6  ;;  %18420 = vst [vmem:[#allocation45_spill] sm:$0xff] %v16744_v49 }
 0x2fd   :  { %13660 = vmatmul.mubr.msk.bf16.vlgmr.msra.gmra.mrb[12].mxu0 %vm289_vm0, %v14447_v53  ;;  %v1264_v53 = vld [vmem:[%s18264_s16 + $0xc8] sm:$0xff] }
 0x2fe   :  { %1026 = vmatpush1.bf16.msra.mxu0 %v14451_v54  ;;  %1057 = vmatprep.mubr.bf16.mxu0 %v18272_v20  ;;  %v1295_v54 = vld [vmem:[%s18264_s16 + $0x1c0] sm:$0xff] }
 0x2ff   :  { %1027 = vmatprep.subr.bf16.mxu0 %v14459_v55  ;;  %v16620_v55 = vpack.c.bf16 %v1264_v53, %v1263_v52  ;;  %v16751_v52 = vpack.c.bf16 %v1286_v50, %v1285_v46  ;;  %v251_v53 = vlaneseq }
 0x301   :  { %18421 = vst [vmem:[#allocation46_spill] sm:$0xff] %v16751_v52 }
 0x302   :  { %1028 = vmatpush1.bf16.msra.mxu0 %v14457_v56  ;;  %v1296_v56 = vld [vmem:[%s18264_s16 + $0x1c8] sm:$0xff] }
 0x303   :  { %1029 = vmatprep.subr.bf16.mxu0 %v14465_v58  ;;  %v1248_v58 = vld [vmem:[%s18264_s16 + $0x48] sm:$0xff]  ;;  %v16631_v59 = vpack.c.bf16 %v1296_v56, %v1295_v54  ;;  %v252_v54 = vshrl.u32 %v251_v53, 7 }
 0x305   :  { %v16757_v56 = vsub.s32 0, %v252_v54 }
 0x306   :  { %1030 = vmatpush1.bf16.msra.mxu0 %v14463_v60  ;;  %v16633_v60 = vpack.c.bf16 %v1248_v58, %v1247_v57  ;;  %v249_v57 = vld [vmem:[#allocation6] sm:$0xf]  ;;  %v16759_v58 = vsub.s32 1, %v252_v54 }
 0x307   :  { %13696 = vmatprep.subr.bf16.mxu0 %v16481_v8  ;;  %18422 = vst [vmem:[#allocation47_spill] sm:$0xff] %v16757_v56 }
 0x308   :  { %18423 = vst [vmem:[#allocation48_spill] sm:$0xff] %v16759_v58 }
 0x3d0   :  { %v13661_v61 = vpop.f32.mrb[12].mxu0 }
 0x3d1   :  { %v876_v62 = vpop.f32.mrb[13].mxu0 }
 0x3d2   :  { %v13662_v63 = vpop.f32.mrb[14].mxu0 }
 0x3d3   :  { %v892_v0 = vpack.c.bf16 %v13662_v63, %v13661_v61  ;;  %v879_v1 = vpop.f32.mrb[15].mxu0  ;;  %v1279_v61 = vld [vmem:[%s18264_s16 + $0x140] sm:$0xff] }
 0x3d4   :  { %v891_v2 = vpack.c.bf16 %v879_v1, %v876_v62  ;;  %v1280_v62 = vld [vmem:[%s18264_s16 + $0x148] sm:$0xff]  ;;  %v1266_v1 = vld [vmem:[%s18264_s16 + $0xd8] sm:$0xff] }
 0x3d5   :  { %v16642_v63 = vpack.c.bf16 %v1280_v62, %v1279_v61  ;;  %v16761_v61 = vsub.s32 3, %v252_v54  ;;  %v16764_v62 = vrot.slane %v249_v57, %v16757_v56 }
 0x3d6   :  { %11994 = vmatmul.mubr.msk.bf16.vlgmr.msra.gmra.mrb[0].mxu1 %vm419_vm1, %v891_v2  ;;  %11996 = vmatmul.mubr.msk.bf16.vlgmr.msra.gmra.mrb[4].mxu0 %vm419_vm1, %v891_v2  ;;  %v1297_v2 = vld [vmem:[%s18264_s16 + $0x1d0] sm:$0xff] }
 0x3d7   :  { %1014 = vmatprep.mubr.bf16.mxu1 %v18272_v20  ;;  %1067 = vmatprep.mubr.bf16.mxu0 %v18272_v20  ;;  %v16667_v9 = vpack.c.bf16 %v1298_v4, %v1297_v2  ;;  %18424 = vst [vmem:[#allocation49_spill] sm:$0xff] %v16761_v61  ;;  %v16772_v2 = vrot.slane %v249_v57, %v16761_v61 }
 0x3d8   :  { %13666 = vmatpush3.bf16.msra.mxu1 %v16494_v12  ;;  %13698 = vmatpush3.bf16.msra.mxu0 %v16499_v14 }
 0x3d9   :  { %13668 = vmatprep.subr.bf16.mxu1 %v16512_v18  ;;  %13700 = vmatprep.subr.bf16.mxu0 %v16523_v23  ;;  %18411 = vst [vmem:[#allocation36_spill] sm:$0xff] %v16667_v9 }
 0x3dc   :  { %13670 = vmatpush3.bf16.msra.mxu1 %v16525_v24  ;;  %13702 = vmatpush3.bf16.msra.mxu0 %v16534_v27 }
 0x3dd   :  { %13672 = vmatprep.subr.bf16.mxu1 %v16548_v31  ;;  %13704 = vmatprep.subr.bf16.mxu0 %v16553_v33 }
 0x3de   :  { %11995 = vmatmul.mubr.msk.bf16.gmra.mrb[4].mxu1 %vm419_vm1, %v892_v0  ;;  %11997 = vmatmul.mubr.msk.bf16.gmra.mrb[8].mxu0 %vm419_vm1, %v892_v0  ;;  %v1265_v0 = vld [vmem:[%s18264_s16 + $0xd0] sm:$0xff] }
 0x3df   :  { %v16656_v3 = vpack.c.bf16 %v1266_v1, %v1265_v0  ;;  %v16766_v0 = vsub.s32 2, %v252_v54  ;;  %v16769_v1 = vrot.slane %v249_v57, %v16759_v58 }
 0x3e0   :  { %13674 = vmatpush3.bf16.msra.mxu1 %v16566_v37  ;;  %13706 = vmatpush3.bf16.msra.mxu0 %v16571_v39 }
 0x3e1   :  { %13676 = vmatprep.subr.bf16.mxu1 %v16584_v43  ;;  %13708 = vmatprep.subr.bf16.mxu0 %v16595_v47  ;;  %18410 = vst [vmem:[#allocation35_spill] sm:$0xff] %v16656_v3  ;;  %18425 = vst [vmem:[#allocation50_spill] sm:$0xff] %v16766_v0  ;;  %v16776_v16 = vrot.slane %v249_v57, %v16766_v0 }
 0x3e4   :  { %13678 = vmatpush3.bf16.msra.mxu1 %v16597_v48  ;;  %13710 = vmatpush3.bf16.msra.mxu0 %v16606_v51 }
 0x3e5   :  { %13680 = vmatprep.subr.bf16.mxu1 %v16620_v55  ;;  %13712 = vmatprep.subr.bf16.mxu0 %v16631_v59 }
 0x3e8   :  { %13682 = vmatpush3.bf16.msra.mxu1 %v16633_v60  ;;  %13714 = vmatpush3.bf16.msra.mxu0 %v16642_v63 }
 0x3e9   :  { %13684 = vmatprep.subr.bf16.mxu1 %v16656_v3  ;;  %13716 = vmatprep.subr.bf16.mxu0 %v16667_v9 }
 0x3ec   :  { %13686 = vmatpush3.bf16.msra.mxu1 %v16669_v10  ;;  %13718 = vmatpush3.bf16.msra.mxu0 %v16678_v15 }
 0x3ed   :  { %13688 = vmatprep.subr.bf16.mxu1 %v16692_v21  ;;  %13720 = vmatprep.subr.bf16.mxu0 %v16703_v28 }
 0x3f0   :  { %13690 = vmatpush3.bf16.msra.mxu1 %v16705_v29  ;;  %13722 = vmatpush3.bf16.msra.mxu0 %v16717_v35 }
 0x3f1   :  { %13692 = vmatprep.subr.bf16.mxu1 %v16730_v41  ;;  %13724 = vmatprep.subr.bf16.mxu0 %v16732_v42 }
 0x3f4   :  { %13694 = vmatpush3.bf16.msra.mxu1 %v16744_v49  ;;  %13726 = vmatpush3.bf16.msra.mxu0 %v16751_v52 }
 0x3f5   :  { %13728 = vmatprep.subr.bf16.mxu1 %v16476_v6  ;;  %13760 = vmatprep.subr.bf16.mxu0 %v16481_v8 }
 0x4a9   :  { %v1006_v4 = vpop.f32.mrb[0].mxu1  ;;  %v1059_v5 = vpop.f32.mrb[4].mxu0 }
 0x4aa   :  { %v1008_v7 = vpop.f32.mrb[1].mxu1  ;;  %v1061_v11 = vpop.f32.mrb[5].mxu0  ;;  %v14143_v13 = vadd.f32 %v1006_v4, %v16764_v62  ;;  %v14151_v38 = vadd.f32 %v1059_v5, %v16776_v16 }
 0x4ab   :  { %v1010_v17 = vpop.f32.mrb[2].mxu1  ;;  %v1063_v19 = vpop.f32.mrb[6].mxu0  ;;  %v14144_v22 = vadd.f32 %v1008_v7, %v16769_v1  ;;  %v14152_v25 = vadd.f32 %v1061_v11, %v16772_v2 }
 0x4ac   :  { %v14145_v26 = vadd.f32 %v1010_v17, %v16764_v62  ;;  %v14153_v30 = vadd.f32 %v1063_v19, %v16776_v16  ;;  %v1012_v32 = vpop.f32.mrb[3].mxu1  ;;  %v1065_v34 = vpop.f32.mrb[7].mxu0  ;;  %vm1094_vm2 = vcmp.ge.f32.partialorder %v14143_v13, 0.0  ;;  %v1110_v36 = vmul.f32 0.01, %v14143_v13 }
 0x4ad   :  { %vm1095_vm3 = vcmp.ge.f32.partialorder %v14144_v22, 0.0  ;;  %v1111_v40 = vmul.f32 0.01, %v14144_v22  ;;  %vm1097_vm4 = vcmp.ge.f32.partialorder %v14152_v25, 0.0  ;;  %v1113_v44 = vmul.f32 0.01, %v14152_v25 }
 0x4ae   :  { %v1114_v45 = vmul.f32 0.01, %v14145_v26  ;;  %v1116_v46 = vmul.f32 0.01, %v14153_v30  ;;  %v14146_v50 = vadd.f32 %v1012_v32, %v16769_v1  ;;  %v14154_v53 = vadd.f32 %v1065_v34, %v16772_v2 }
 0x4af   :  { %vm1098_vm5 = vcmp.ge.f32.partialorder %v14145_v26, 0.0  ;;  %vm1100_vm6 = vcmp.ge.f32.partialorder %v14153_v30, 0.0  ;;  %vm1096_vm7 = vcmp.ge.f32.partialorder %v14151_v38, 0.0  ;;  %v1112_v17 = vmul.f32 0.01, %v14151_v38 }
 0x4b0   :  { %vm1099_vm8 = vcmp.ge.f32.partialorder %v14146_v50, 0.0  ;;  %v16788_v8 = vsel %vm1095_vm3, %v14144_v22, %v1111_v40  ;;  %v16791_v32 = vsel %vm1097_vm4, %v14152_v25, %v1113_v44  ;;  %v1115_v34 = vmul.f32 0.01, %v14146_v50 }
 0x4b1   :  { %v1016_v54 = vpop.f32.mrb[4].mxu1  ;;  %v1069_v57 = vpop.f32.mrb[8].mxu0  ;;  %18426 = vst [vmem:[#allocation51_spill] sm:$0xff] %v16788_v8  ;;  %18427 = vst [vmem:[#allocation52_spill] sm:$0xff] %v16791_v32  ;;  %vm1101_vm9 = vcmp.ge.f32.partialorder %v14154_v53, 0.0  ;;  %v16802_v40 = vsel %vm1094_vm2, %v14143_v13, %v1110_v36  ;;  %v16805_v25 = vsel %vm1096_vm7, %v14151_v38, %v1112_v17 }
 0x4b2   :  { %v14147_v4 = vadd.f32 %v1016_v54, %v16764_v62  ;;  %v14155_v7 = vadd.f32 %v1069_v57, %v16776_v16  ;;  %v1018_v11 = vpop.f32.mrb[5].mxu1  ;;  %v1071_v5 = vpop.f32.mrb[9].mxu0  ;;  %v16794_v54 = vsel %vm1098_vm5, %v14145_v26, %v1114_v45  ;;  %v16797_v57 = vsel %vm1100_vm6, %v14153_v30, %v1116_v46  ;;  %18431 = vst [vmem:[#allocation56_spill] sm:$0xff] %v16802_v40 }
 0x4b3   :  { %v1020_v19 = vpop.f32.mrb[6].mxu1  ;;  %v1073_v20 = vpop.f32.mrb[10].mxu0  ;;  %18428 = vst [vmem:[#allocation53_spill] sm:$0xff] %v16794_v54  ;;  %18429 = vst [vmem:[#allocation54_spill] sm:$0xff] %v16797_v57  ;;  %v1117_v0 = vmul.f32 0.01, %v14154_v53  ;;  %v16799_v56 = vsel %vm1099_vm8, %v14146_v50, %v1115_v34  ;;  %v1184_v26 = vmul.f32 %v16788_v8, %v16788_v8  ;;  %v1186_v30 = vmul.f32 %v16791_v32, %v16791_v32 }
 0x4b4   :  { %v1022_v6 = vpop.f32.mrb[7].mxu1  ;;  %v1075_v61 = vpop.f32.mrb[11].mxu0  ;;  %v1118_v58 = vmul.f32 0.01, %v14147_v4  ;;  %18430 = vst [vmem:[#allocation55_spill] sm:$0xff] %v16799_v56  ;;  %vm1102_vm10 = vcmp.ge.f32.partialorder %v14147_v4, 0.0  ;;  %v1142_v45 = vadd.f32 %v16794_v54, %v16802_v40  ;;  %v1160_v46 = vadd.f32 %v16797_v57, %v16805_v25 }
 0x4b5   :  { %v1120_v22 = vmul.f32 0.01, %v14155_v7  ;;  %18432 = vst [vmem:[#allocation57_spill] sm:$0xff] %v16805_v25  ;;  %v16807_v44 = vsel %vm1101_vm9, %v14154_v53, %v1117_v0  ;;  %vm1104_vm11 = vcmp.ge.f32.partialorder %v14155_v7, 0.0  ;;  %v1188_v13 = vmul.f32 %v16799_v56, %v16799_v56 }
 0x4b6   :  { %18433 = vst [vmem:[#allocation58_spill] sm:$0xff] %v16807_v44  ;;  %v16819_v36 = vsel %vm1102_vm10, %v14147_v4, %v1118_v58  ;;  %v14148_v0 = vadd.f32 %v1018_v11, %v16769_v1  ;;  %v14156_v38 = vadd.f32 %v1071_v5, %v16772_v2  ;;  %v1151_v50 = vadd.f32 %v16799_v56, %v16788_v8 }
 0x4b7   :  { %18434 = vst [vmem:[#allocation59_spill] sm:$0xff] %v16819_v36  ;;  %v1169_v53 = vadd.f32 %v16807_v44, %v16791_v32  ;;  %v1190_v17 = vmul.f32 %v16807_v44, %v16807_v44  ;;  %v16829_v34 = vsel %vm1104_vm11, %v14155_v7, %v1120_v22  ;;  %v1143_v4 = vadd.f32 %v1142_v45, %v16819_v36 }
 0x4b8   :  { %18435 = vst [vmem:[#allocation60_spill] sm:$0xff] %v16829_v34  ;;  %vm1103_vm12 = vcmp.ge.f32.partialorder %v14148_v0, 0.0  ;;  %v1119_v52 = vmul.f32 0.01, %v14148_v0  ;;  %vm1105_vm13 = vcmp.ge.f32.partialorder %v14156_v38, 0.0  ;;  %v14149_v11 = vadd.f32 %v1020_v19, %v16764_v62 }
 0x4b9   :  { %v1121_v58 = vmul.f32 0.01, %v14156_v38  ;;  %v14157_v5 = vadd.f32 %v1073_v20, %v16776_v16  ;;  %v14150_v56 = vadd.f32 %v1022_v6, %v16769_v1  ;;  %v1208_v8 = vadd.f32 %v1188_v13, %v1184_v26 }
 0x4ba   :  { %v16835_v49 = vsel %vm1103_vm12, %v14148_v0, %v1119_v52  ;;  %v14158_v7 = vadd.f32 %v1075_v61, %v16772_v2  ;;  %v1226_v22 = vadd.f32 %v1190_v17, %v1186_v30  ;;  %v1161_v44 = vadd.f32 %v1160_v46, %v16829_v34 }
 0x4bb   :  { %18436 = vst [vmem:[#allocation61_spill] sm:$0xff] %v16835_v49  ;;  %v16837_v32 = vsel %vm1105_vm13, %v14156_v38, %v1121_v58  ;;  %v1192_v42 = vmul.f32 %v16835_v49, %v16835_v49  ;;  %vm1106_vm14 = vcmp.ge.f32.partialorder %v14149_v11, 0.0  ;;  %v1122_v20 = vmul.f32 0.01, %v14149_v11 }
 0x4bc   :  { %18437 = vst [vmem:[#allocation62_spill] sm:$0xff] %v16837_v32  ;;  %v1194_v62 = vmul.f32 %v16837_v32, %v16837_v32  ;;  %vm1108_vm15 = vcmp.ge.f32.partialorder %v14157_v5, 0.0  ;;  %v1124_v6 = vmul.f32 0.01, %v14157_v5  ;;  %v1152_v52 = vadd.f32 %v1151_v50, %v16835_v49 }
 0x4bd   :  { %v1170_v1 = vadd.f32 %v1169_v53, %v16837_v32  ;;  %vm1107_vm1 = vcmp.ge.f32.partialorder %v14150_v56, 0.0  ;;  %v1123_v16 = vmul.f32 0.01, %v14150_v56  ;;  %v16847_v61 = vsel %vm1106_vm14, %v14149_v11, %v1122_v20 }
 0x4be   :  { %v16849_v2 = vsel %vm1108_vm15, %v14157_v5, %v1124_v6  ;;  %vm1109_vm2 = vcmp.ge.f32.partialorder %v14158_v7, 0.0  ;;  %v1125_v19 = vmul.f32 0.01, %v14158_v7  ;;  %v1144_v26 = vadd.f32 %v1143_v4, %v16847_v61 }
 0x4bf   :  { %v1162_v30 = vadd.f32 %v1161_v44, %v16849_v2  ;;  %v1209_v45 = vadd.f32 %v1208_v8, %v1192_v42  ;;  %v1227_v46 = vadd.f32 %v1226_v22, %v1194_v62  ;;  %v16853_v13 = vsel %vm1107_vm1, %v14150_v56, %v1123_v16 }
 0x4c0   :  { %18438 = vst [vmem:[#allocation63_spill] sm:$0xff] %v16853_v13  ;;  %v16855_v0 = vsel %vm1109_vm2, %v14158_v7, %v1125_v19  ;;  %v1145_v38 = vrot.slane %v1144_v26, 4  ;;  %v1153_v53 = vadd.f32 %v1152_v52, %v16853_v13  ;;  %v1196_v17 = vmul.f32 %v16853_v13, %v16853_v13 }
 0x4c1   :  { %18439 = vst [vmem:[#allocation64_spill] sm:$0xff] %v16855_v0  ;;  %v1163_v50 = vrot.slane %v1162_v30, 4  ;;  %v1171_v58 = vadd.f32 %v1170_v1, %v16855_v0  ;;  %v1198_v4 = vmul.f32 %v16855_v0, %v16855_v0 }
 0x4c2   :  { %v1146_v11 = vadd.f32 %v1145_v38, %v1144_v26  ;;  %v1154_v8 = vrot.slane %v1153_v53, 4  ;;  %v1210_v42 = vadd.f32 %v1209_v45, %v1196_v17  ;;  %v1187_v26 = vmul.f32 %v16794_v54, %v16794_v54 }
 0x4c3   :  { %v1164_v44 = vadd.f32 %v1163_v50, %v1162_v30  ;;  %v1172_v56 = vrot.slane %v1171_v58, 4  ;;  %v1228_v5 = vadd.f32 %v1227_v46, %v1198_v4  ;;  %v1189_v30 = vmul.f32 %v16797_v57, %v16797_v57 }
 0x4c4   :  { %v1147_v7 = vrot.slane %v1146_v11, 2  ;;  %v1155_v62 = vadd.f32 %v1154_v8, %v1153_v53  ;;  %v1211_v6 = vrot.slane %v1210_v42, 4  ;;  %v1185_v4 = vmul.f32 %v16805_v25, %v16805_v25 }
 0x4c5   :  { %v1165_v22 = vrot.slane %v1164_v44, 2  ;;  %v1173_v20 = vadd.f32 %v1172_v56, %v1171_v58  ;;  %v1229_v52 = vrot.slane %v1228_v5, 4  ;;  %v1183_v58 = vmul.f32 %v16802_v40, %v16802_v40 }
 0x4c6   :  { %v1148_v16 = vadd.f32 %v1147_v7, %v1146_v11  ;;  %v1156_v32 = vrot.slane %v1155_v62, 2  ;;  %v1212_v1 = vadd.f32 %v1211_v6, %v1210_v42  ;;  %v1191_v11 = vmul.f32 %v16819_v36, %v16819_v36 }
 0x4c7   :  { %v1166_v19 = vadd.f32 %v1165_v22, %v1164_v44  ;;  %v1174_v13 = vrot.slane %v1173_v20, 2  ;;  %v1230_v49 = vadd.f32 %v1229_v52, %v1228_v5  ;;  %v1193_v44 = vmul.f32 %v16829_v34, %v16829_v34 }
 0x4c8   :  { %v1149_v45 = vrot.slane %v1148_v16, 1  ;;  %v1157_v38 = vadd.f32 %v1156_v32, %v1155_v62  ;;  %v1213_v53 = vrot.slane %v1212_v1, 2  ;;  %v1199_v32 = vadd.f32 %v1187_v26, %v1183_v58  ;;  %v1588_v58 = vld [vmem:[#allocation24 + $0x18] sm:$0xff] }
 0x4c9   :  { %v1167_v46 = vrot.slane %v1166_v19, 1  ;;  %v1175_v50 = vadd.f32 %v1174_v13, %v1173_v20  ;;  %v1231_v17 = vrot.slane %v1230_v49, 2  ;;  %v1217_v13 = vadd.f32 %v1189_v30, %v1185_v4  ;;  %v1592_v4 = vld [vmem:[#allocation24 + $0x38] sm:$0xff] }
 0x4ca   :  { %v1158_v8 = vrot.slane %v1157_v38, 1  ;;  %v1214_v56 = vadd.f32 %v1213_v53, %v1212_v1  ;;  %v1150_v7 = vadd.f32 %v1149_v45, %v1148_v16  ;;  %v1200_v0 = vadd.f32 %v1199_v32, %v1191_v11  ;;  %v1586_v53 = vld [vmem:[#allocation24 + $0x8] sm:$0xff]  ;;  %v1589_v32 = vld [vmem:[#allocation24 + $0x20] sm:$0xff] }
 0x4cb   :  { %v1176_v42 = vrot.slane %v1175_v50, 1  ;;  %v1232_v5 = vadd.f32 %v1231_v17, %v1230_v49  ;;  %v1168_v22 = vadd.f32 %v1167_v46, %v1166_v19  ;;  %v1218_v57 = vadd.f32 %v1217_v13, %v1193_v44  ;;  %v1590_v17 = vld [vmem:[#allocation24 + $0x28] sm:$0xff]  ;;  %v1585_v44 = vld [vmem:[#allocation24] sm:$0xff]  ;;  %v1587_v13 = vld [vmem:[#allocation24 + $0x10] sm:$0xff] }
 0x4cc   :  { %v1159_v62 = vadd.f32 %v1158_v8, %v1157_v38  ;;  %v1215_v6 = vrot.slane %v1214_v56, 1  ;;  %v1195_v34 = vmul.f32 %v16847_v61, %v16847_v61  ;;  %v1197_v49 = vmul.f32 %v16849_v2, %v16849_v2  ;;  %v18441_v8 = vld [vmem:[#allocation44_spill] sm:$0xff] }
 0x4cd   :  { %v1177_v20 = vadd.f32 %v1176_v42, %v1175_v50  ;;  %v1233_v52 = vrot.slane %v1232_v5, 1  ;;  %v1179_v1 = vmul.f32 0.03125, %v1150_v7  ;;  %v1181_v26 = vmul.f32 0.03125, %v1168_v22  ;;  %v1591_v7 = vld [vmem:[#allocation24 + $0x30] sm:$0xff]  ;;  %v18443_v22 = vld [vmem:[#allocation45_spill] sm:$0xff] }
 0x4ce   :  { %v1180_v25 = vmul.f32 0.03125, %v1159_v62  ;;  %v1216_v36 = vadd.f32 %v1215_v6, %v1214_v56  ;;  %v1201_v30 = vadd.f32 %v1200_v0, %v1195_v34  ;;  %v1219_v45 = vadd.f32 %v1218_v57, %v1197_v49  ;;  %v18444_v62 = vld [vmem:[#allocation46_spill] sm:$0xff] }
 0x4cf   :  { %v1182_v54 = vmul.f32 0.03125, %v1177_v20  ;;  %v1234_v40 = vadd.f32 %v1233_v52, %v1232_v5  ;;  %v16905_v11 = vpack.c.bf16 %v1590_v17, %v1586_v53  ;;  %v16909_v5 = vpack.c.bf16 %v1592_v4, %v1588_v58 }
 0x4d0   :  { %1367 = vmatprep.mubr.f32.mxu1 %v1180_v25  ;;  %v1236_v16 = vmul.f32 0.03125, %v1216_v36  ;;  %v16913_v20 = vpack.c.bf16 %v1589_v32, %v1585_v44  ;;  %v16915_v6 = vpack.c.bf16 %v1591_v7, %v1587_v13 }
 0x4d1   :  { %1437 = vmatprep.mubr.f32.mxu0 %v1182_v54  ;;  %v1238_v19 = vmul.f32 0.03125, %v1234_v40  ;;  %1368 = vmatmul.mubr.f32.vlgmr.msra.gmra.mrb[12].mxu1 %v1179_v1  ;;  %v1202_v54 = vrot.slane %v1201_v30, 4  ;;  %v1220_v40 = vrot.slane %v1219_v45, 4  ;;  %18440 = vst [vmem:[#allocation65_spill] sm:$0xff] %v16905_v11  ;;  %18442 = vst [vmem:[#allocation66_spill] sm:$0xff] %v16909_v5  ;;  %v1594_v1 = vld [vmem:[#allocation24 + $0x48] sm:$0xff] }
 0x4d2   :  { %1438 = vmatmul.mubr.f32.vlgmr.msra.gmra.mrb[16].mxu0 %v1181_v26  ;;  %13730 = vmatpush3.bf16.msra.mxu1 %v16494_v12  ;;  %18445 = vst [vmem:[#allocation67_spill] sm:$0xff] %v16913_v20  ;;  %18446 = vst [vmem:[#allocation68_spill] sm:$0xff] %v16915_v6  ;;  %v1598_v26 = vld [vmem:[#allocation24 + $0x68] sm:$0xff] }
 0x4d3   :  { %13762 = vmatpush3.bf16.msra.mxu0 %v16499_v14  ;;  %1507 = vmatprep.mubr.f32.mxu1 %v1236_v16  ;;  %v1203_v57 = vadd.f32 %v1202_v54, %v1201_v30  ;;  %v1221_v25 = vadd.f32 %v1220_v40, %v1219_v45  ;;  %v1596_v16 = vld [vmem:[#allocation24 + $0x58] sm:$0xff]  ;;  %v1593_v45 = vld [vmem:[#allocation24 + $0x40] sm:$0xff] }
 0x4d4   :  { %1577 = vmatprep.mubr.f32.mxu0 %v1238_v19  ;;  %13732 = vmatprep.subr.bf16.mxu1 %v16512_v18  ;;  %v16921_v19 = vpack.c.bf16 %v1598_v26, %v1594_v1  ;;  %v1600_v30 = vld [vmem:[#allocation24 + $0x78] sm:$0xff]  ;;  %v1597_v54 = vld [vmem:[#allocation24 + $0x60] sm:$0xff]  ;;  %v18451_v26 = vmov 0  }
 0x4d5   :  { %13764 = vmatprep.subr.bf16.mxu0 %v16523_v23  ;;  %v1204_v36 = vrot.slane %v1203_v57, 2  ;;  %v1222_v34 = vrot.slane %v1221_v25, 2  ;;  %v16923_v40 = vpack.c.bf16 %v1600_v30, %v1596_v16 }
 0x4d6   :  { %13734 = vmatpush3.bf16.msra.mxu1 %v16525_v24  ;;  %18447 = vst [vmem:[#allocation69_spill] sm:$0xff] %v16921_v19 }
 0x4d7   :  { %13766 = vmatpush3.bf16.msra.mxu0 %v16534_v27  ;;  %13736 = vmatprep.subr.bf16.mxu1 %v16548_v31  ;;  %v1205_v0 = vadd.f32 %v1204_v36, %v1203_v57  ;;  %v1223_v46 = vadd.f32 %v1222_v34, %v1221_v25  ;;  %18448 = vst [vmem:[#allocation70_spill] sm:$0xff] %v16923_v40  ;;  %v1595_v25 = vld [vmem:[#allocation24 + $0x50] sm:$0xff] }
 0x4d8   :  { %13768 = vmatprep.subr.bf16.mxu0 %v16553_v33  ;;  %v16925_v57 = vpack.c.bf16 %v1597_v54, %v1593_v45  ;;  %v1599_v36 = vld [vmem:[#allocation24 + $0x70] sm:$0xff] }
 0x4d9   :  { %v1206_v38 = vrot.slane %v1205_v0, 1  ;;  %v1224_v50 = vrot.slane %v1223_v46, 1  ;;  %v16928_v34 = vpack.c.bf16 %v1599_v36, %v1595_v25 }
 0x4da   :  { %13738 = vmatpush3.bf16.msra.mxu1 %v16566_v37  ;;  %18449 = vst [vmem:[#allocation71_spill] sm:$0xff] %v16925_v57 }
 0x4db   :  { %13770 = vmatpush3.bf16.msra.mxu0 %v16571_v39  ;;  %13740 = vmatprep.subr.bf16.mxu1 %v16584_v43  ;;  %v1207_v42 = vadd.f32 %v1206_v38, %v1205_v0  ;;  %v1225_v56 = vadd.f32 %v1224_v50, %v1223_v46  ;;  %18450 = vst [vmem:[#allocation72_spill] sm:$0xff] %v16928_v34  ;;  %v18306_v0 = vmov 0.0  }
 0x4dc   :  { %13772 = vmatprep.subr.bf16.mxu0 %v16595_v47 }
 0x4dd   :  { %v1235_v52 = vmul.f32 0.03125, %v1207_v42  ;;  %v1237_v49 = vmul.f32 0.03125, %v1225_v56 }
 0x4de   :  { %13742 = vmatpush3.bf16.msra.mxu1 %v16597_v48 }
 0x4df   :  { %13774 = vmatpush3.bf16.msra.mxu0 %v16606_v51  ;;  %13744 = vmatprep.subr.bf16.mxu1 %v16620_v55 }
 0x4e0   :  { %13776 = vmatprep.subr.bf16.mxu0 %v16631_v59 }
 0x4e2   :  { %13746 = vmatpush3.bf16.msra.mxu1 %v16633_v60 }
 0x4e3   :  { %13778 = vmatpush3.bf16.msra.mxu0 %v16642_v63  ;;  %13748 = vmatprep.subr.bf16.mxu1 %v16656_v3 }
 0x4e4   :  { %13780 = vmatprep.subr.bf16.mxu0 %v16667_v9 }
 0x4e6   :  { %13750 = vmatpush3.bf16.msra.mxu1 %v16669_v10 }
 0x4e7   :  { %13782 = vmatpush3.bf16.msra.mxu0 %v16678_v15  ;;  %13752 = vmatprep.subr.bf16.mxu1 %v16692_v21 }
 0x4e8   :  { %13784 = vmatprep.subr.bf16.mxu0 %v16703_v28 }
 0x4ea   :  { %13754 = vmatpush3.bf16.msra.mxu1 %v16705_v29 }
 0x4eb   :  { %13786 = vmatpush3.bf16.msra.mxu0 %v16717_v35  ;;  %13756 = vmatprep.subr.bf16.mxu1 %v16730_v41 }
 0x4ec   :  { %13788 = vmatprep.subr.bf16.mxu0 %v18441_v8 }
 0x4ee   :  { %13758 = vmatpush3.bf16.msra.mxu1 %v18443_v22 }
 0x4ef   :  { %13790 = vmatpush3.bf16.msra.mxu0 %v18444_v62  ;;  %13792 = vmatprep.subr.bf16.mxu1 %v16905_v11 }
 0x4f0   :  { %13800 = vmatprep.subr.bf16.mxu0 %v16909_v5 }
 0x4f1   :  { %1508 = vmatmul.mubr.f32.vlgmr.msra.gmra.mrb[14].mxu1 %v1235_v52 }
 0x4f2   :  { %1578 = vmatmul.mubr.f32.vlgmr.msra.gmra.mrb[18].mxu0 %v1237_v49  ;;  %13794 = vmatpush1.bf16.msra.mxu1 %v16913_v20 }
 0x4f3   :  { %13802 = vmatpush1.bf16.msra.mxu0 %v16915_v6  ;;  %13796 = vmatprep.subr.bf16.mxu1 %v16921_v19 }
 0x4f4   :  { %13804 = vmatprep.subr.bf16.mxu0 %v16923_v40  ;;  %1668 = vmatprep.mubr.f32.mxu1 %v18306_v0 }
 0x4f5   :  { %1739 = vmatprep.mubr.f32.mxu0 %v18306_v0 }
 0x4f6   :  { %13798 = vmatpush1.bf16.msra.mxu1 %v16925_v57 }
 0x4f7   :  { %13806 = vmatpush1.bf16.msra.mxu0 %v16928_v34  ;;  %13808 = vmatprep.subr.bf16.mxu1 %v16905_v11 }
 0x4f8   :  { %13816 = vmatprep.subr.bf16.mxu0 %v16909_v5  ;;  %v18467_v5 = vld [vmem:[#allocation58_spill] sm:$0xff] }
 0x5a4   :  { %v13083_v46 = vpop.f32.mrb[12].mxu1 }
 0x5a5   :  { %v13118_v38 = vpop.f32.mrb[16].mxu0  ;;  %v13084_v50 = vpop.f32.mrb[13].mxu1 }
 0x5a6   :  { %v13119_v53 = vpop.f32.mrb[17].mxu0  ;;  %v13085_v17 = vadd.f32 %v13084_v50, %v13083_v46 }
 0x5a7   :  { %v13120_v58 = vadd.f32 %v13119_v53, %v13118_v38 }
 0x5a9   :  { %v1440_v4 = vadd.f32 %v13120_v58, %v13085_v17 }
 0x5ab   :  { %11998 = vmatmul.mubr.msk.f32.vlgmr.msra.gmra.mrb[16].mxu1 %vm289_vm0, %v1440_v4  ;;  %11999 = vmatmul.mubr.msk.f32.vlgmr.msra.gmra.mrb[20].mxu0 %vm289_vm0, %v1440_v4  ;;  %v1583_v49 = vmul.f32 %v1440_v4, %v1440_v4  ;;  %v1959_v4 = vld [vmem:[#allocation7] sm:$0xf] }
 0x5ac   :  { %13810 = vmatpush1.bf16.msra.mxu1 %v16913_v20  ;;  %13818 = vmatpush1.bf16.msra.mxu0 %v16915_v6 }
 0x5ad   :  { %13812 = vmatprep.subr.bf16.mxu1 %v16921_v19  ;;  %13820 = vmatprep.subr.bf16.mxu0 %v16923_v40  ;;  %v18460_v19 = vld [vmem:[#allocation54_spill] sm:$0xff] }
 0x5ae   :  { %1813 = vmatprep.mubr.f32.mxu1 %v18306_v0  ;;  %1884 = vmatprep.mubr.f32.mxu0 %v18306_v0 }
 0x5b0   :  { %13814 = vmatpush1.bf16.msra.mxu1 %v16925_v57  ;;  %13822 = vmatpush1.bf16.msra.mxu0 %v16928_v34 }
 0x5c4   :  { %v13153_v44 = vpop.f32.mrb[14].mxu1 }
 0x5c5   :  { %v13188_v42 = vpop.f32.mrb[18].mxu0  ;;  %v13154_v56 = vpop.f32.mrb[15].mxu1 }
 0x5c6   :  { %v13189_v32 = vpop.f32.mrb[19].mxu0  ;;  %v13155_v13 = vadd.f32 %v13154_v56, %v13153_v44  ;;  %v18452_v44 = vld [vmem:[#allocation47_spill] sm:$0xff]  ;;  %v1997_v56 = vld [vmem:[#allocation9] sm:$0xf] }
 0x5c7   :  { %v13190_v7 = vadd.f32 %v13189_v32, %v13188_v42 }
 0x5c9   :  { %v1580_v52 = vadd.f32 %v13190_v7, %v13155_v13  ;;  %v18453_v7 = vld [vmem:[#allocation48_spill] sm:$0xff] }
 0x5cb   :  { %v1584_v1 = vsub.f32 %v1580_v52, %v1583_v49  ;;  %v16959_v52 = vrot.slane %v1959_v4, %v18453_v7  ;;  %v16962_v49 = vrot.slane %v1959_v4, %v18452_v44 }
 0x5cd   :  { %12000 = vmatmul.mubr.msk.f32.vlgmr.msra.gmra.mrb[18].mxu1 %vm289_vm0, %v1584_v1  ;;  %12001 = vmatmul.mubr.msk.f32.vlgmr.msra.gmra.mrb[22].mxu0 %vm289_vm0, %v1584_v1  ;;  %v18454_v1 = vld [vmem:[#allocation50_spill] sm:$0xff] }
 0x5ce   :  { %2101 = vmatprep.mubr.bf16.mxu1 %v18451_v26  ;;  %2154 = vmatprep.mubr.bf16.mxu0 %v18451_v26  ;;  %v16985_v0 = vrot.slane %v1997_v56, %v18454_v1 }
 0x67e   :  { %v1670_v16 = vpop.f32.mrb[16].mxu1  ;;  %v1741_v30 = vpop.f32.mrb[20].mxu0 }
 0x67f   :  { %v1672_v45 = vpop.f32.mrb[17].mxu1  ;;  %v1743_v54 = vpop.f32.mrb[21].mxu0  ;;  %v1898_v42 = vrot.slane %v1670_v16, %v18452_v44  ;;  %v16953_v32 = vrot.slane %v1741_v30, %v18452_v44  ;;  %v16971_v16 = vrot.slane %v1997_v56, %v18453_v7  ;;  %v18455_v30 = vld [vmem:[#allocation49_spill] sm:$0xff]  ;;  %v18466_v7 = vld [vmem:[#allocation52_spill] sm:$0xff] }
 0x680   :  { %v16956_v13 = vrot.slane %v1672_v45, %v18452_v44  ;;  %v16977_v45 = vrot.slane %v1997_v56, %v18452_v44 }
 0x681   :  { %v1923_v57 = vsub.f32 %v16847_v61, %v1898_v42  ;;  %v1917_v6 = vsub.f32 %v18460_v19, %v16953_v32 }
 0x6a0   :  { %v1815_v25 = vpop.f32.mrb[18].mxu1  ;;  %v1886_v36 = vpop.f32.mrb[22].mxu0 }
 0x6a1   :  { %v1816_v46 = vadd.f32 1e-05, %v1815_v25  ;;  %v1887_v38 = vadd.f32 1e-05, %v1886_v36  ;;  %v1817_v50 = vpop.f32.mrb[19].mxu1  ;;  %v1888_v53 = vpop.f32.mrb[23].mxu0  ;;  %v16965_v25 = vrot.slane %v1959_v4, %v18454_v1  ;;  %v16968_v36 = vrot.slane %v1743_v54, %v18452_v44 }
 0x6a2   :  { %v1818_v17 = vadd.f32 1e-05, %v1817_v50  ;;  %v1889_v58 = vadd.f32 1e-05, %v1888_v53  ;;  %v18457_v53 = vld [vmem:[#allocation53_spill] sm:$0xff]  ;;  %v18458_v54 = vld [vmem:[#allocation59_spill] sm:$0xff] }
 0x6a3   :  { %15714 = vrsqrt.f32 %v1816_v46  ;;  %v16974_v46 = vrot.slane %v1959_v4, %v18455_v30  ;;  %v1919_v34 = vsub.f32 %v18458_v54, %v1898_v42  ;;  %v18459_v4 = vld [vmem:[#allocation57_spill] sm:$0xff]  ;;  %v18463_v54 = vld [vmem:[#allocation55_spill] sm:$0xff]  ;;  %v1914_v62 = vsub.f32 %v18466_v7, %v16968_v36 }
 0x6a4   :  { %15716 = vrsqrt.f32 %v1887_v38  ;;  %v18456_v38 = vld [vmem:[#allocation56_spill] sm:$0xff]  ;;  %v1913_v40 = vsub.f32 %v18459_v4, %v16953_v32  ;;  %v1916_v1 = vsub.f32 %v18463_v54, %v16956_v13  ;;  %v1918_v8 = vsub.f32 %v18467_v5, %v16968_v36 }
 0x6a5   :  { %15718 = vrsqrt.f32 %v1818_v17  ;;  %v1911_v50 = vsub.f32 %v18456_v38, %v1898_v42  ;;  %v1915_v17 = vsub.f32 %v18457_v53, %v1898_v42  ;;  %v18461_v38 = vld [vmem:[#allocation60_spill] sm:$0xff]  ;;  %v18464_v42 = vld [vmem:[#allocation61_spill] sm:$0xff] }
 0x6a6   :  { %15720 = vrsqrt.f32 %v1889_v58  ;;  %v16982_v58 = vrot.slane %v1997_v56, %v18455_v30  ;;  %v1921_v53 = vsub.f32 %v18461_v38, %v16953_v32  ;;  %v18462_v56 = vld [vmem:[#allocation51_spill] sm:$0xff]  ;;  %v1920_v4 = vsub.f32 %v18464_v42, %v16956_v13  ;;  %v18469_v54 = vld [vmem:[#allocation64_spill] sm:$0xff] }
 0x6a7   :  { %v1912_v11 = vsub.f32 %v18462_v56, %v16956_v13  ;;  %v18465_v30 = vld [vmem:[#allocation63_spill] sm:$0xff]  ;;  %v18468_v56 = vld [vmem:[#allocation62_spill] sm:$0xff]  ;;  %v1926_v35 = vsub.f32 %v18469_v54, %v16968_v36 }
 0x6a8   :  { %v1924_v19 = vsub.f32 %v18465_v30, %v16956_v13  ;;  %v1922_v41 = vsub.f32 %v18468_v56, %v16968_v36 }
 0x6ad   :  { %v15715_v20 = vpop.eup %15714 }
 0x6ae   :  { %v15717_v61 = vpop.eup %15716  ;;  %v1930_v38 = vrot.slane %v15715_v20, %v18452_v44 }
 0x6af   :  { %v15719_v22 = vpop.eup %15718  ;;  %v1938_v42 = vrot.slane %v15717_v61, %v18452_v44 }
 0x6b0   :  { %v15721_v29 = vpop.eup %15720  ;;  %v1934_v13 = vrot.slane %v15719_v22, %v18452_v44  ;;  %v1943_v30 = vmul.f32 %v1930_v38, %v1911_v50  ;;  %v1947_v28 = vmul.f32 %v1930_v38, %v1915_v17  ;;  %v1951_v7 = vmul.f32 %v1930_v38, %v1919_v34 }
 0x6b1   :  { %v1942_v20 = vrot.slane %v15721_v29, %v18452_v44  ;;  %v1945_v21 = vmul.f32 %v1938_v42, %v1913_v40  ;;  %v1949_v15 = vmul.f32 %v1938_v42, %v1917_v6  ;;  %v1955_v10 = vmul.f32 %v1930_v38, %v1923_v57 }
 0x6b2   :  { %v1944_v5 = vmul.f32 %v1934_v13, %v1912_v11  ;;  %v1948_v9 = vmul.f32 %v1934_v13, %v1916_v1  ;;  %v1981_v56 = vmul.f32 %v16962_v49, %v1943_v30  ;;  %v1985_v3 = vmul.f32 %v16962_v49, %v1947_v28 }
 0x6b3   :  { %v1946_v36 = vmul.f32 %v1942_v20, %v1914_v62  ;;  %v1950_v54 = vmul.f32 %v1942_v20, %v1918_v8  ;;  %v1983_v61 = vmul.f32 %v16965_v25, %v1945_v21  ;;  %v1987_v22 = vmul.f32 %v16965_v25, %v1949_v15 }
 0x6b4   :  { %v1982_v50 = vmul.f32 %v16959_v52, %v1944_v5  ;;  %v1986_v34 = vmul.f32 %v16959_v52, %v1948_v9  ;;  %v2019_v29 = vadd.f32 %v16977_v45, %v1981_v56  ;;  %v2023_v6 = vadd.f32 %v16977_v45, %v1985_v3 }
 0x6b5   :  { %v1984_v11 = vmul.f32 %v16974_v46, %v1946_v36  ;;  %v1988_v40 = vmul.f32 %v16974_v46, %v1950_v54  ;;  %v2021_v28 = vadd.f32 %v16985_v0, %v1983_v61  ;;  %v2025_v8 = vadd.f32 %v16985_v0, %v1987_v22 }
 0x6b6   :  { %v2020_v21 = vadd.f32 %v16971_v16, %v1982_v50  ;;  %v2024_v15 = vadd.f32 %v16971_v16, %v1986_v34  ;;  %v17031_v62 = vpack.c.bf16 %v2023_v6, %v2019_v29  ;;  %v1952_v57 = vmul.f32 %v1934_v13, %v1920_v4 }
 0x6b7   :  { %v2022_v9 = vadd.f32 %v16982_v58, %v1984_v11  ;;  %v2026_v1 = vadd.f32 %v16982_v58, %v1988_v40  ;;  %v17035_v3 = vpack.c.bf16 %v2025_v8, %v2021_v28  ;;  %v1956_v17 = vmul.f32 %v1934_v13, %v1924_v19  ;;  %v14474_v11 = vld [vmem:[#allocation10 + $0x24] ss:$16 sps:$4 sm:$0xff]   ;;  %v14472_v28 = vld [vmem:[#allocation10 + $0x20] ss:$16 sps:$4 sm:$0xff]   ;;  %v14477_v8 = vld [vmem:[#allocation10 + $0x2c] ss:$16 sps:$4 sm:$0xff]  }
 0x6b8   :  { %v17037_v38 = vpack.c.bf16 %v2024_v15, %v2020_v21  ;;  %v1990_v30 = vmul.f32 %v16959_v52, %v1952_v57  ;;  %v1954_v5 = vmul.f32 %v1942_v20, %v1922_v41  ;;  %v1958_v56 = vmul.f32 %v1942_v20, %v1926_v35  ;;  %v15738_v40 = vld [vmem:[#allocation2] sm:$0xff]   ;;  %v14478_v15 = vld [vmem:[#allocation10 + $0x40] ss:$16 sps:$4 sm:$0xff]   ;;  %v14483_v57 = vld [vmem:[#allocation10 + $0x4c] ss:$16 sps:$4 sm:$0xff]  }
 0x6b9   :  { %v17040_v36 = vpack.c.bf16 %v2026_v1, %v2022_v9  ;;  %v1994_v54 = vmul.f32 %v16959_v52, %v1956_v17  ;;  %v1989_v61 = vmul.f32 %v16962_v49, %v1951_v7  ;;  %v1993_v4 = vmul.f32 %v16962_v49, %v1955_v10  ;;  %v14475_v21 = vld [vmem:[#allocation10 + $0x28] ss:$16 sps:$4 sm:$0xff]   ;;  %v14486_v9 = vld [vmem:[#allocation10 + $0x64] ss:$16 sps:$4 sm:$0xff]   ;;  %v15739_v1 = vld [vmem:[#allocation2 + $0x8] sm:$0xff]  }
 0x6ba   :  { %2069 = vmatprep.subr.bf16.mxu1 %v17037_v38  ;;  %v2028_v22 = vadd.f32 %v16971_v16, %v1990_v30  ;;  %v1992_v19 = vmul.f32 %v16974_v46, %v1954_v5  ;;  %v1996_v13 = vmul.f32 %v16974_v46, %v1958_v56  ;;  %v1953_v50 = vmul.f32 %v1938_v42, %v1921_v53  ;;  %v14481_v17 = vld [vmem:[#allocation10 + $0x48] ss:$16 sps:$4 sm:$0xff]   ;;  %v14484_v30 = vld [vmem:[#allocation10 + $0x60] ss:$16 sps:$4 sm:$0xff]   ;;  %v14489_v5 = vld [vmem:[#allocation10 + $0x6c] ss:$16 sps:$4 sm:$0xff]  }
 0x6bb   :  { %2122 = vmatprep.subr.bf16.mxu0 %v17040_v36  ;;  %2070 = vmatpush1.bf16.msra.mxu1 %v17031_v62  ;;  %v2032_v35 = vadd.f32 %v16971_v16, %v1994_v54  ;;  %v2027_v41 = vadd.f32 %v16977_v45, %v1989_v61  ;;  %v2031_v52 = vadd.f32 %v16977_v45, %v1993_v4  ;;  %v14468_v16 = vld [vmem:[#allocation10 + $0x4] ss:$16 sps:$4 sm:$0xff]   ;;  %v14487_v54 = vld [vmem:[#allocation10 + $0x68] ss:$16 sps:$4 sm:$0xff]   ;;  %v14490_v61 = vld [vmem:[#allocation10 + $0x80] ss:$16 sps:$4 sm:$0xff]  }
 0x6bc   :  { %2123 = vmatpush1.bf16.msra.mxu0 %v17035_v3  ;;  %v2030_v10 = vadd.f32 %v16982_v58, %v1992_v19  ;;  %v2034_v49 = vadd.f32 %v16982_v58, %v1996_v13  ;;  %v18470_v46 = vsub.f32 %v16849_v2, %v16953_v32  ;;  %v1991_v7 = vmul.f32 %v16965_v25, %v1953_v50  ;;  %v14466_v32 = vld [vmem:[#allocation10] ss:$16 sps:$4 sm:$0xff]   ;;  %v14471_v58 = vld [vmem:[#allocation10 + $0xc] ss:$16 sps:$4 sm:$0xff]   ;;  %v14492_v56 = vld [vmem:[#allocation10 + $0x84] ss:$16 sps:$4 sm:$0xff]  }
 0x6bd   :  { %v17061_v20 = vpack.c.bf16 %v2032_v35, %v2028_v22  ;;  %v17063_v34 = vpack.c.bf16 %v2031_v52, %v2027_v41  ;;  %v14495_v4 = vld [vmem:[#allocation10 + $0x8c] ss:$16 sps:$4 sm:$0xff]   ;;  %v14498_v22 = vld [vmem:[#allocation10 + $0xa4] ss:$16 sps:$4 sm:$0xff]   ;;  %v14493_v19 = vld [vmem:[#allocation10 + $0x88] ss:$16 sps:$4 sm:$0xff]  }
 0x6be   :  { %v1957_v53 = vmul.f32 %v1938_v42, %v18470_v46  ;;  %v17065_v29 = vpack.c.bf16 %v2034_v49, %v2030_v10  ;;  %v2029_v6 = vadd.f32 %v16985_v0, %v1991_v7  ;;  %v14496_v13 = vld [vmem:[#allocation10 + $0xa0] ss:$16 sps:$4 sm:$0xff]   ;;  %v14501_v50 = vld [vmem:[#allocation10 + $0xac] ss:$16 sps:$4 sm:$0xff]   ;;  %v14504_v35 = vld [vmem:[#allocation10 + $0xc4] ss:$16 sps:$4 sm:$0xff]  }
 0x6bf   :  { %2071 = vmatprep.subr.bf16.mxu1 %v17061_v20  ;;  %v14499_v41 = vld [vmem:[#allocation10 + $0xa8] ss:$16 sps:$4 sm:$0xff]   ;;  %v14502_v52 = vld [vmem:[#allocation10 + $0xc0] ss:$16 sps:$4 sm:$0xff]   ;;  %v14507_v10 = vld [vmem:[#allocation10 + $0xcc] ss:$16 sps:$4 sm:$0xff]  }
 0x6c0   :  { %v1995_v45 = vmul.f32 %v16965_v25, %v1957_v53  ;;  %2124 = vmatprep.subr.bf16.mxu0 %v17065_v29  ;;  %2072 = vmatpush1.bf16.msra.mxu1 %v17063_v34  ;;  %v14469_v25 = vld [vmem:[#allocation10 + $0x8] ss:$16 sps:$4 sm:$0xff]   ;;  %v14510_v49 = vld [vmem:[#allocation10 + $0xe4] ss:$16 sps:$4 sm:$0xff]   ;;  %v14508_v53 = vld [vmem:[#allocation10 + $0xe0] ss:$16 sps:$4 sm:$0xff]  }
 0x6c1   :  { %2951 = vmatprep.subr.bf16.mxu1 %v14468_v16  ;;  %v14505_v46 = vld [vmem:[#allocation10 + $0xc8] ss:$16 sps:$4 sm:$0xff]   ;;  %v14513_v7 = vld [vmem:[#allocation10 + $0xec] ss:$16 sps:$4 sm:$0xff]   ;;  %v14516_v16 = vld [vmem:[#allocation10 + $0x104] ss:$16 sps:$4 sm:$0xff]  }
 0x6c2   :  { %v2033_v2 = vadd.f32 %v16985_v0, %v1995_v45  ;;  %v14480_v0 = vld [vmem:[#allocation10 + $0x44] ss:$16 sps:$4 sm:$0xff]   ;;  %v14511_v45 = vld [vmem:[#allocation10 + $0xe8] ss:$16 sps:$4 sm:$0xff]  }
 0x6c3   :  { %12002 = vmatmul.mubr.msk.bf16.vlgmr.msra.gmra.mrb[20].mxu1 %vm289_vm0, %v15738_v40 }
 0x6c4   :  { %v17073_v42 = vpack.c.bf16 %v2033_v2, %v2029_v6  ;;  %2111 = vmatprep.mubr.bf16.mxu1 %v18451_v26  ;;  %2952 = vmatpush1.bf16.msra.mxu1 %v14466_v32  ;;  %v14514_v6 = vld [vmem:[#allocation10 + $0x100] ss:$16 sps:$4 sm:$0xff]   ;;  %v14519_v2 = vld [vmem:[#allocation10 + $0x10c] ss:$16 sps:$4 sm:$0xff]   ;;  %v14522_v32 = vld [vmem:[#allocation10 + $0x124] ss:$16 sps:$4 sm:$0xff]  }
 0x6c5   :  { %2953 = vmatprep.subr.bf16.mxu1 %v14474_v11  ;;  %v14520_v11 = vld [vmem:[#allocation10 + $0x120] ss:$16 sps:$4 sm:$0xff]  }
 0x6c6   :  { %2125 = vmatpush1.bf16.msra.mxu0 %v17073_v42 }
 0x6c7   :  { %3057 = vmatprep.subr.bf16.mxu0 %v14471_v58  ;;  %v14517_v58 = vld [vmem:[#allocation10 + $0x108] ss:$16 sps:$4 sm:$0xff]  }
 0x6c8   :  { %2954 = vmatpush1.bf16.msra.mxu1 %v14472_v28  ;;  %v14523_v28 = vld [vmem:[#allocation10 + $0x128] ss:$16 sps:$4 sm:$0xff]  }
 0x6c9   :  { %12004 = vmatmul.mubr.msk.bf16.vlgmr.msra.gmra.mrb[24].mxu0 %vm289_vm0, %v15738_v40  ;;  %2955 = vmatprep.subr.bf16.mxu1 %v14480_v0  ;;  %v14525_v40 = vld [vmem:[#allocation10 + $0x12c] ss:$16 sps:$4 sm:$0xff]  }
 0x6ca   :  { %2164 = vmatprep.mubr.bf16.mxu0 %v18451_v26  ;;  %3058 = vmatpush1.bf16.msra.mxu0 %v14469_v25  ;;  %v14528_v25 = vld [vmem:[#allocation10 + $0x144] ss:$16 sps:$4 sm:$0xff]   ;;  %v14531_v0 = vld [vmem:[#allocation10 + $0x14c] ss:$16 sps:$4 sm:$0xff]  }
 0x6cb   :  { %3059 = vmatprep.subr.bf16.mxu0 %v14477_v8  ;;  %12003 = vmatmul.mubr.msk.bf16.gmra.mrb[24].mxu1 %vm289_vm0, %v15739_v1  ;;  %v14526_v8 = vld [vmem:[#allocation10 + $0x140] ss:$16 sps:$4 sm:$0xff]  }
 0x6cc   :  { %2956 = vmatpush1.bf16.msra.mxu1 %v14478_v15  ;;  %v14529_v15 = vld [vmem:[#allocation10 + $0x148] ss:$16 sps:$4 sm:$0xff]  }
 0x6cd   :  { %2957 = vmatprep.subr.bf16.mxu1 %v14486_v9  ;;  %v14537_v9 = vld [vmem:[#allocation10 + $0x16c] ss:$16 sps:$4 sm:$0xff]  }
 0x6ce   :  { %3060 = vmatpush1.bf16.msra.mxu0 %v14475_v21  ;;  %v14534_v21 = vld [vmem:[#allocation10 + $0x164] ss:$16 sps:$4 sm:$0xff]  }
 0x6cf   :  { %3061 = vmatprep.subr.bf16.mxu0 %v14483_v57  ;;  %v14532_v57 = vld [vmem:[#allocation10 + $0x160] ss:$16 sps:$4 sm:$0xff]  }
 0x6d0   :  { %2958 = vmatpush1.bf16.msra.mxu1 %v14484_v30  ;;  %v14538_v30 = vld [vmem:[#allocation10 + $0x180] ss:$16 sps:$4 sm:$0xff]  }
 0x6d1   :  { %12005 = vmatmul.mubr.msk.bf16.gmra.mrb[28].mxu0 %vm289_vm0, %v15739_v1  ;;  %2959 = vmatprep.subr.bf16.mxu1 %v14492_v56  ;;  %v14540_v1 = vld [vmem:[#allocation10 + $0x184] ss:$16 sps:$4 sm:$0xff]  }
 0x6d2   :  { %3062 = vmatpush1.bf16.msra.mxu0 %v14481_v17  ;;  %v14535_v17 = vld [vmem:[#allocation10 + $0x168] ss:$16 sps:$4 sm:$0xff]   ;;  %v14546_v56 = vld [vmem:[#allocation10 + $0x1a4] ss:$16 sps:$4 sm:$0xff]  }
 0x6d3   :  { %3063 = vmatprep.subr.bf16.mxu0 %v14489_v5  ;;  %v14543_v5 = vld [vmem:[#allocation10 + $0x18c] ss:$16 sps:$4 sm:$0xff]  }
 0x6d4   :  { %2960 = vmatpush1.bf16.msra.mxu1 %v14490_v61  ;;  %v14544_v61 = vld [vmem:[#allocation10 + $0x1a0] ss:$16 sps:$4 sm:$0xff]  }
 0x6d5   :  { %2961 = vmatprep.subr.bf16.mxu1 %v14498_v22  ;;  %v14552_v22 = vld [vmem:[#allocation10 + $0x1c4] ss:$16 sps:$4 sm:$0xff]  }
 0x6d6   :  { %3064 = vmatpush1.bf16.msra.mxu0 %v14487_v54  ;;  %v14541_v54 = vld [vmem:[#allocation10 + $0x188] ss:$16 sps:$4 sm:$0xff]  }
 0x6d7   :  { %3065 = vmatprep.subr.bf16.mxu0 %v14495_v4  ;;  %v14549_v4 = vld [vmem:[#allocation10 + $0x1ac] ss:$16 sps:$4 sm:$0xff]  }
 0x6d8   :  { %2962 = vmatpush1.bf16.msra.mxu1 %v14496_v13  ;;  %v14550_v13 = vld [vmem:[#allocation10 + $0x1c0] ss:$16 sps:$4 sm:$0xff]  }
 0x6d9   :  { %2963 = vmatprep.subr.bf16.mxu1 %v14504_v35  ;;  %v14553_v35 = vld [vmem:[#allocation10 + $0x1c8] ss:$16 sps:$4 sm:$0xff]  }
 0x6da   :  { %3066 = vmatpush1.bf16.msra.mxu0 %v14493_v19  ;;  %v14547_v19 = vld [vmem:[#allocation10 + $0x1a8] ss:$16 sps:$4 sm:$0xff]  }
 0x6db   :  { %3067 = vmatprep.subr.bf16.mxu0 %v14501_v50  ;;  %v14555_v50 = vld [vmem:[#allocation10 + $0x1cc] ss:$16 sps:$4 sm:$0xff]  }
 0x6dc   :  { %2964 = vmatpush1.bf16.msra.mxu1 %v14502_v52  ;;  %v14558_v52 = vld [vmem:[#allocation10 + $0x1e4] ss:$16 sps:$4 sm:$0xff]  }
 0x6dd   :  { %2965 = vmatprep.subr.bf16.mxu1 %v14510_v49  ;;  %v14561_v49 = vld [vmem:[#allocation10 + $0x1ec] ss:$16 sps:$4 sm:$0xff]  }
 0x6de   :  { %3068 = vmatpush1.bf16.msra.mxu0 %v14499_v41  ;;  %v14556_v41 = vld [vmem:[#allocation10 + $0x1e0] ss:$16 sps:$4 sm:$0xff]  }
 0x6df   :  { %3069 = vmatprep.subr.bf16.mxu0 %v14507_v10  ;;  %v14559_v10 = vld [vmem:[#allocation10 + $0x1e8] ss:$16 sps:$4 sm:$0xff]  }
 0x6e0   :  { %2966 = vmatpush1.bf16.msra.mxu1 %v14508_v53  ;;  %v14567_v53 = vld [vmem:[#allocation10 + $0x20c] ss:$16 sps:$4 sm:$0xff]  }
 0x6e1   :  { %2967 = vmatprep.subr.bf16.mxu1 %v14516_v16 }
 0x6e2   :  { %3070 = vmatpush1.bf16.msra.mxu0 %v14505_v46  ;;  %v14564_v46 = vld [vmem:[#allocation10 + $0x204] ss:$16 sps:$4 sm:$0xff]  }
 0x6e3   :  { %3071 = vmatprep.subr.bf16.mxu0 %v14513_v7 }
 0x6e4   :  { %2968 = vmatpush1.bf16.msra.mxu1 %v14514_v6 }
 0x6e5   :  { %2969 = vmatprep.subr.bf16.mxu1 %v14522_v32 }
 0x6e6   :  { %3072 = vmatpush1.bf16.msra.mxu0 %v14511_v45 }
 0x6e7   :  { %3073 = vmatprep.subr.bf16.mxu0 %v14519_v2 }
 0x6e8   :  { %2970 = vmatpush1.bf16.msra.mxu1 %v14520_v11  ;;  %v14565_v11 = vld [vmem:[#allocation10 + $0x208] ss:$16 sps:$4 sm:$0xff]  }
 0x6e9   :  { %2971 = vmatprep.subr.bf16.mxu1 %v14528_v25  ;;  %v14570_v25 = vld [vmem:[#allocation10 + $0x224] ss:$16 sps:$4 sm:$0xff]  }
 0x6ea   :  { %3074 = vmatpush1.bf16.msra.mxu0 %v14517_v58  ;;  %v14562_v58 = vld [vmem:[#allocation10 + $0x200] ss:$16 sps:$4 sm:$0xff]  }
 0x6eb   :  { %3075 = vmatprep.subr.bf16.mxu0 %v14525_v40 }
 0x6ec   :  { %2972 = vmatpush1.bf16.msra.mxu1 %v14526_v8 }
 0x6ed   :  { %2973 = vmatprep.subr.bf16.mxu1 %v14534_v21 }
 0x6ee   :  { %3076 = vmatpush1.bf16.msra.mxu0 %v14523_v28  ;;  %v14573_v28 = vld [vmem:[#allocation10 + $0x22c] ss:$16 sps:$4 sm:$0xff]  }
 0x6ef   :  { %3077 = vmatprep.subr.bf16.mxu0 %v14531_v0 }
 0x6f0   :  { %2974 = vmatpush1.bf16.msra.mxu1 %v14532_v57  ;;  %v14568_v57 = vld [vmem:[#allocation10 + $0x220] ss:$16 sps:$4 sm:$0xff]  }
 0x6f1   :  { %2975 = vmatprep.subr.bf16.mxu1 %v14540_v1 }
 0x6f2   :  { %3078 = vmatpush1.bf16.msra.mxu0 %v14529_v15 }
 0x6f3   :  { %3079 = vmatprep.subr.bf16.mxu0 %v14537_v9  ;;  %v14571_v9 = vld [vmem:[#allocation10 + $0x228] ss:$16 sps:$4 sm:$0xff]  }
 0x6f4   :  { %2976 = vmatpush1.bf16.msra.mxu1 %v14538_v30  ;;  %v14576_v30 = vld [vmem:[#allocation10 + $0x244] ss:$16 sps:$4 sm:$0xff]  }
 0x6f5   :  { %2977 = vmatprep.subr.bf16.mxu1 %v14546_v56 }
 0x6f6   :  { %3080 = vmatpush1.bf16.msra.mxu0 %v14535_v17 }
 0x6f7   :  { %3081 = vmatprep.subr.bf16.mxu0 %v14543_v5  ;;  %v14579_v5 = vld [vmem:[#allocation10 + $0x24c] ss:$16 sps:$4 sm:$0xff]  }
 0x6f8   :  { %2978 = vmatpush1.bf16.msra.mxu1 %v14544_v61 }
 0x6f9   :  { %2979 = vmatprep.subr.bf16.mxu1 %v14552_v22  ;;  %v14574_v22 = vld [vmem:[#allocation10 + $0x240] ss:$16 sps:$4 sm:$0xff]  }
 0x6fa   :  { %3082 = vmatpush1.bf16.msra.mxu0 %v14541_v54 }
 0x6fb   :  { %3083 = vmatprep.subr.bf16.mxu0 %v14549_v4 }
 0x6fc   :  { %2980 = vmatpush1.bf16.msra.mxu1 %v14550_v13 }
 0x6fd   :  { %2981 = vmatprep.subr.bf16.mxu1 %v14558_v52 }
 0x6fe   :  { %3084 = vmatpush1.bf16.msra.mxu0 %v14547_v19  ;;  %v14577_v19 = vld [vmem:[#allocation10 + $0x248] ss:$16 sps:$4 sm:$0xff]  }
 0x6ff   :  { %3085 = vmatprep.subr.bf16.mxu0 %v14555_v50 }
 0x700   :  { %2982 = vmatpush1.bf16.msra.mxu1 %v14556_v41  ;;  %v14585_v41 = vld [vmem:[#allocation10 + $0x26c] ss:$16 sps:$4 sm:$0xff]  }
 0x701   :  { %3004 = vmatprep.subr.bf16.mxu1 %v14564_v46 }
 0x702   :  { %3086 = vmatpush1.bf16.msra.mxu0 %v14553_v35  ;;  %v14582_v35 = vld [vmem:[#allocation10 + $0x264] ss:$16 sps:$4 sm:$0xff]  }
 0x703   :  { %3087 = vmatprep.subr.bf16.mxu0 %v14561_v49 }
 0x706   :  { %3088 = vmatpush1.bf16.msra.mxu0 %v14559_v10 }
 0x707   :  { %3110 = vmatprep.subr.bf16.mxu0 %v14567_v53  ;;  %v14580_v53 = vld [vmem:[#allocation10 + $0x260] ss:$16 sps:$4 sm:$0xff]  }
 0x796   :  { %v2103_v7 = vpop.f32.mrb[20].mxu1 }
 0x797   :  { %v2105_v16 = vpop.f32.mrb[21].mxu1 }
 0x798   :  { %v2107_v45 = vpop.f32.mrb[22].mxu1 }
 0x799   :  { %v2175_v6 = vpack.c.bf16 %v2107_v45, %v2103_v7  ;;  %v2109_v2 = vpop.f32.mrb[23].mxu1  ;;  %v14583_v7 = vld [vmem:[#allocation10 + $0x268] ss:$16 sps:$4 sm:$0xff]   ;;  %v14588_v45 = vld [vmem:[#allocation10 + $0x284] ss:$16 sps:$4 sm:$0xff]  }
 0x79a   :  { %v2176_v32 = vpack.c.bf16 %v2109_v2, %v2105_v16  ;;  %v14586_v2 = vld [vmem:[#allocation10 + $0x280] ss:$16 sps:$4 sm:$0xff]  }
 0x79c   :  { %v2156_v40 = vpop.f32.mrb[24].mxu0  ;;  %2983 = vmatprep.mubr.bf16.mxu1 %v2176_v32  ;;  %3089 = vmatprep.mubr.bf16.mxu0 %v2176_v32  ;;  %v14589_v32 = vld [vmem:[#allocation10 + $0x288] ss:$16 sps:$4 sm:$0xff]  }
 0x79d   :  { %v2158_v8 = vpop.f32.mrb[25].mxu0  ;;  %2984 = vmatmul.mubr.bf16.vlgmr.msra.gmra.mrb[28].mxu1 %v2175_v6  ;;  %3090 = vmatmul.mubr.bf16.vlgmr.msra.gmra.mrb[32].mxu0 %v2175_v6  ;;  %v14591_v6 = vld [vmem:[#allocation10 + $0x28c] ss:$16 sps:$4 sm:$0xff]  }
 0x79e   :  { %v2160_v0 = vpop.f32.mrb[26].mxu0  ;;  %3005 = vmatpush1.bf16.msra.mxu1 %v14562_v58  ;;  %3111 = vmatpush1.bf16.msra.mxu0 %v14565_v11  ;;  %v2113_v1 = vpop.f32.mrb[24].mxu1  ;;  %v14594_v58 = vld [vmem:[#allocation10 + $0x2a4] ss:$16 sps:$4 sm:$0xff]   ;;  %v14597_v11 = vld [vmem:[#allocation10 + $0x2ac] ss:$16 sps:$4 sm:$0xff]  }
 0x79f   :  { %v17082_v21 = vpack.c.bf16 %v2160_v0, %v2156_v40  ;;  %v2162_v15 = vpop.f32.mrb[27].mxu0  ;;  %3006 = vmatprep.subr.bf16.mxu1 %v14570_v25  ;;  %3112 = vmatprep.subr.bf16.mxu0 %v14573_v28  ;;  %v2115_v56 = vpop.f32.mrb[25].mxu1  ;;  %v14592_v40 = vld [vmem:[#allocation10 + $0x2a0] ss:$16 sps:$4 sm:$0xff]   ;;  %v14595_v25 = vld [vmem:[#allocation10 + $0x2a8] ss:$16 sps:$4 sm:$0xff]  }
 0x7a0   :  { %v2178_v17 = vpack.c.bf16 %v2162_v15, %v2158_v8  ;;  %v2117_v54 = vpop.f32.mrb[26].mxu1  ;;  %v14600_v28 = vld [vmem:[#allocation10 + $0x2c4] ss:$16 sps:$4 sm:$0xff]   ;;  %v14603_v8 = vld [vmem:[#allocation10 + $0x2cc] ss:$16 sps:$4 sm:$0xff]  }
 0x7a1   :  { %v2179_v61 = vpack.c.bf16 %v2117_v54, %v2113_v1  ;;  %v2119_v4 = vpop.f32.mrb[27].mxu1  ;;  %v14598_v0 = vld [vmem:[#allocation10 + $0x2c0] ss:$16 sps:$4 sm:$0xff]   ;;  %v14601_v15 = vld [vmem:[#allocation10 + $0x2c8] ss:$16 sps:$4 sm:$0xff]  }
 0x7a2   :  { %3007 = vmatpush1.bf16.msra.mxu1 %v14568_v57  ;;  %3113 = vmatpush1.bf16.msra.mxu0 %v14571_v9  ;;  %v2180_v13 = vpack.c.bf16 %v2119_v4, %v2115_v56  ;;  %v14606_v57 = vld [vmem:[#allocation10 + $0x2e4] ss:$16 sps:$4 sm:$0xff]   ;;  %v14609_v9 = vld [vmem:[#allocation10 + $0x2ec] ss:$16 sps:$4 sm:$0xff]   ;;  %v14604_v1 = vld [vmem:[#allocation10 + $0x2e0] ss:$16 sps:$4 sm:$0xff]  }
 0x7a3   :  { %3008 = vmatprep.subr.bf16.mxu1 %v14576_v30  ;;  %3114 = vmatprep.subr.bf16.mxu0 %v14579_v5  ;;  %v14612_v30 = vld [vmem:[#allocation10 + $0x304] ss:$16 sps:$4 sm:$0xff]   ;;  %v14615_v5 = vld [vmem:[#allocation10 + $0x30c] ss:$16 sps:$4 sm:$0xff]   ;;  %v14610_v56 = vld [vmem:[#allocation10 + $0x300] ss:$16 sps:$4 sm:$0xff]  }
 0x7a4   :  { %v2166_v50 = vpop.f32.mrb[28].mxu0  ;;  %2993 = vmatprep.mubr.bf16.mxu1 %v2180_v13  ;;  %3099 = vmatprep.mubr.bf16.mxu0 %v2180_v13  ;;  %v14613_v54 = vld [vmem:[#allocation10 + $0x308] ss:$16 sps:$4 sm:$0xff]   ;;  %v14621_v4 = vld [vmem:[#allocation10 + $0x32c] ss:$16 sps:$4 sm:$0xff]  }
 0x7a5   :  { %v2168_v52 = vpop.f32.mrb[29].mxu0  ;;  %2994 = vmatmul.mubr.bf16.gmra.mrb[32].mxu1 %v2179_v61  ;;  %3100 = vmatmul.mubr.bf16.gmra.mrb[36].mxu0 %v2179_v61  ;;  %v14618_v61 = vld [vmem:[#allocation10 + $0x324] ss:$16 sps:$4 sm:$0xff]  }
 0x7a6   :  { %v2170_v10 = vpop.f32.mrb[30].mxu0  ;;  %3009 = vmatpush1.bf16.msra.mxu1 %v14574_v22  ;;  %3115 = vmatpush1.bf16.msra.mxu0 %v14577_v19  ;;  %v14616_v22 = vld [vmem:[#allocation10 + $0x320] ss:$16 sps:$4 sm:$0xff]   ;;  %v14619_v19 = vld [vmem:[#allocation10 + $0x328] ss:$16 sps:$4 sm:$0xff]  }
 0x7a7   :  { %v17084_v49 = vpack.c.bf16 %v2170_v10, %v2166_v50  ;;  %v2172_v46 = vpop.f32.mrb[31].mxu0  ;;  %3010 = vmatprep.subr.bf16.mxu1 %v14582_v35  ;;  %3116 = vmatprep.subr.bf16.mxu0 %v14585_v41  ;;  %v14624_v13 = vld [vmem:[#allocation10 + $0x344] ss:$16 sps:$4 sm:$0xff]   ;;  %v14627_v50 = vld [vmem:[#allocation10 + $0x34c] ss:$16 sps:$4 sm:$0xff]  }
 0x7a8   :  { %v17086_v16 = vpack.c.bf16 %v2172_v46, %v2168_v52  ;;  %3036 = vmatprep.mubr.bf16.mxu1 %v2178_v17  ;;  %3142 = vmatprep.mubr.bf16.mxu0 %v2178_v17  ;;  %v14607_v17 = vld [vmem:[#allocation10 + $0x2e8] ss:$16 sps:$4 sm:$0xff]   ;;  %v14622_v35 = vld [vmem:[#allocation10 + $0x340] ss:$16 sps:$4 sm:$0xff]   ;;  %v14630_v52 = vld [vmem:[#allocation10 + $0x364] ss:$16 sps:$4 sm:$0xff]  }
 0x7a9   :  { %v14625_v41 = vld [vmem:[#allocation10 + $0x348] ss:$16 sps:$4 sm:$0xff]   ;;  %v14633_v10 = vld [vmem:[#allocation10 + $0x36c] ss:$16 sps:$4 sm:$0xff]   ;;  %v14628_v46 = vld [vmem:[#allocation10 + $0x360] ss:$16 sps:$4 sm:$0xff]  }
 0x7aa   :  { %3011 = vmatpush1.bf16.msra.mxu1 %v14580_v53  ;;  %3117 = vmatpush1.bf16.msra.mxu0 %v14583_v7  ;;  %v14631_v53 = vld [vmem:[#allocation10 + $0x368] ss:$16 sps:$4 sm:$0xff]   ;;  %v14636_v7 = vld [vmem:[#allocation10 + $0x384] ss:$16 sps:$4 sm:$0xff]  }
 0x7ab   :  { %3012 = vmatprep.subr.bf16.mxu1 %v14588_v45  ;;  %3118 = vmatprep.subr.bf16.mxu0 %v14591_v6  ;;  %v14639_v45 = vld [vmem:[#allocation10 + $0x38c] ss:$16 sps:$4 sm:$0xff]   ;;  %v14634_v6 = vld [vmem:[#allocation10 + $0x380] ss:$16 sps:$4 sm:$0xff]  }
 0x7ae   :  { %3013 = vmatpush1.bf16.msra.mxu1 %v14586_v2  ;;  %3119 = vmatpush1.bf16.msra.mxu0 %v14589_v32  ;;  %v14637_v2 = vld [vmem:[#allocation10 + $0x388] ss:$16 sps:$4 sm:$0xff]   ;;  %v14642_v32 = vld [vmem:[#allocation10 + $0x3a4] ss:$16 sps:$4 sm:$0xff]  }
 0x7af   :  { %3014 = vmatprep.subr.bf16.mxu1 %v14594_v58  ;;  %3120 = vmatprep.subr.bf16.mxu0 %v14597_v11  ;;  %v14645_v58 = vld [vmem:[#allocation10 + $0x3ac] ss:$16 sps:$4 sm:$0xff]   ;;  %v14640_v11 = vld [vmem:[#allocation10 + $0x3a0] ss:$16 sps:$4 sm:$0xff]  }
 0x7b2   :  { %3015 = vmatpush1.bf16.msra.mxu1 %v14592_v40  ;;  %3121 = vmatpush1.bf16.msra.mxu0 %v14595_v25  ;;  %v14643_v40 = vld [vmem:[#allocation10 + $0x3a8] ss:$16 sps:$4 sm:$0xff]   ;;  %v14648_v25 = vld [vmem:[#allocation10 + $0x3c4] ss:$16 sps:$4 sm:$0xff]  }
 0x7b3   :  { %3016 = vmatprep.subr.bf16.mxu1 %v14600_v28  ;;  %3122 = vmatprep.subr.bf16.mxu0 %v14603_v8  ;;  %v14651_v28 = vld [vmem:[#allocation10 + $0x3cc] ss:$16 sps:$4 sm:$0xff]   ;;  %v14646_v8 = vld [vmem:[#allocation10 + $0x3c0] ss:$16 sps:$4 sm:$0xff]  }
 0x7b6   :  { %3017 = vmatpush1.bf16.msra.mxu1 %v14598_v0  ;;  %3123 = vmatpush1.bf16.msra.mxu0 %v14601_v15  ;;  %v14649_v0 = vld [vmem:[#allocation10 + $0x3c8] ss:$16 sps:$4 sm:$0xff]   ;;  %v14654_v15 = vld [vmem:[#allocation10 + $0x3e4] ss:$16 sps:$4 sm:$0xff]  }
 0x7b7   :  { %3018 = vmatprep.subr.bf16.mxu1 %v14606_v57  ;;  %3124 = vmatprep.subr.bf16.mxu0 %v14609_v9  ;;  %v14657_v57 = vld [vmem:[#allocation10 + $0x3ec] ss:$16 sps:$4 sm:$0xff]   ;;  %v14652_v9 = vld [vmem:[#allocation10 + $0x3e0] ss:$16 sps:$4 sm:$0xff]  }
 0x7ba   :  { %3019 = vmatpush1.bf16.msra.mxu1 %v14604_v1  ;;  %3125 = vmatpush1.bf16.msra.mxu0 %v14607_v17  ;;  %v14655_v1 = vld [vmem:[#allocation10 + $0x3e8] ss:$16 sps:$4 sm:$0xff]   ;;  %v14660_v17 = vld [vmem:[#allocation10 + $0x404] ss:$16 sps:$4 sm:$0xff]  }
 0x7bb   :  { %3020 = vmatprep.subr.bf16.mxu1 %v14612_v30  ;;  %3126 = vmatprep.subr.bf16.mxu0 %v14615_v5  ;;  %v14663_v30 = vld [vmem:[#allocation10 + $0x40c] ss:$16 sps:$4 sm:$0xff]   ;;  %v14661_v5 = vld [vmem:[#allocation10 + $0x408] ss:$16 sps:$4 sm:$0xff]  }
 0x7be   :  { %3021 = vmatpush1.bf16.msra.mxu1 %v14610_v56  ;;  %3127 = vmatpush1.bf16.msra.mxu0 %v14613_v54  ;;  %v14666_v56 = vld [vmem:[#allocation10 + $0x424] ss:$16 sps:$4 sm:$0xff]   ;;  %v14669_v54 = vld [vmem:[#allocation10 + $0x42c] ss:$16 sps:$4 sm:$0xff]  }
 0x7bf   :  { %3022 = vmatprep.subr.bf16.mxu1 %v14618_v61  ;;  %3128 = vmatprep.subr.bf16.mxu0 %v14621_v4  ;;  %v15740_v61 = vld [vmem:[#allocation2 + $0x10] sm:$0xff]  }
 0x7c0   :  { %v14672_v4 = vld [vmem:[#allocation10 + $0x444] ss:$16 sps:$4 sm:$0xff]  }
 0x7c2   :  { %3023 = vmatpush1.bf16.msra.mxu1 %v14616_v22  ;;  %3129 = vmatpush1.bf16.msra.mxu0 %v14619_v19  ;;  %v14675_v22 = vld [vmem:[#allocation10 + $0x44c] ss:$16 sps:$4 sm:$0xff]   ;;  %v14670_v19 = vld [vmem:[#allocation10 + $0x440] ss:$16 sps:$4 sm:$0xff]  }
 0x7c3   :  { %3024 = vmatprep.subr.bf16.mxu1 %v14624_v13  ;;  %3130 = vmatprep.subr.bf16.mxu0 %v14627_v50  ;;  %v14673_v13 = vld [vmem:[#allocation10 + $0x448] ss:$16 sps:$4 sm:$0xff]   ;;  %v14678_v50 = vld [vmem:[#allocation10 + $0x464] ss:$16 sps:$4 sm:$0xff]  }
 0x7c6   :  { %3025 = vmatpush1.bf16.msra.mxu1 %v14622_v35  ;;  %3131 = vmatpush1.bf16.msra.mxu0 %v14625_v41  ;;  %v14681_v35 = vld [vmem:[#allocation10 + $0x46c] ss:$16 sps:$4 sm:$0xff]  }
 0x7c7   :  { %3026 = vmatprep.subr.bf16.mxu1 %v14630_v52  ;;  %3132 = vmatprep.subr.bf16.mxu0 %v14633_v10  ;;  %v15741_v41 = vld [vmem:[#allocation2 + $0x18] sm:$0xff]   ;;  %v14679_v10 = vld [vmem:[#allocation10 + $0x468] ss:$16 sps:$4 sm:$0xff]  }
 0x7c8   :  { %v14676_v52 = vld [vmem:[#allocation10 + $0x460] ss:$16 sps:$4 sm:$0xff]  }
 0x7ca   :  { %3027 = vmatpush1.bf16.msra.mxu1 %v14628_v46  ;;  %3133 = vmatpush1.bf16.msra.mxu0 %v14631_v53  ;;  %v14684_v46 = vld [vmem:[#allocation10 + $0x484] ss:$16 sps:$4 sm:$0xff]   ;;  %v14687_v53 = vld [vmem:[#allocation10 + $0x48c] ss:$16 sps:$4 sm:$0xff]  }
 0x7cb   :  { %3028 = vmatprep.subr.bf16.mxu1 %v14636_v7  ;;  %3134 = vmatprep.subr.bf16.mxu0 %v14639_v45  ;;  %v14682_v7 = vld [vmem:[#allocation10 + $0x480] ss:$16 sps:$4 sm:$0xff]   ;;  %v14685_v45 = vld [vmem:[#allocation10 + $0x488] ss:$16 sps:$4 sm:$0xff]  }
 0x7ce   :  { %3029 = vmatpush1.bf16.msra.mxu1 %v14634_v6  ;;  %3135 = vmatpush1.bf16.msra.mxu0 %v14637_v2  ;;  %v14690_v6 = vld [vmem:[#allocation10 + $0x4a4] ss:$16 sps:$4 sm:$0xff]   ;;  %v14693_v2 = vld [vmem:[#allocation10 + $0x4ac] ss:$16 sps:$4 sm:$0xff]  }
 0x7cf   :  { %3030 = vmatprep.subr.bf16.mxu1 %v14642_v32  ;;  %3136 = vmatprep.subr.bf16.mxu0 %v14645_v58  ;;  %v14688_v32 = vld [vmem:[#allocation10 + $0x4a0] ss:$16 sps:$4 sm:$0xff]   ;;  %v14691_v58 = vld [vmem:[#allocation10 + $0x4a8] ss:$16 sps:$4 sm:$0xff]  }
 0x7d2   :  { %3031 = vmatpush1.bf16.msra.mxu1 %v14640_v11  ;;  %3137 = vmatpush1.bf16.msra.mxu0 %v14643_v40  ;;  %v14696_v11 = vld [vmem:[#allocation10 + $0x4c4] ss:$16 sps:$4 sm:$0xff]   ;;  %v14699_v40 = vld [vmem:[#allocation10 + $0x4cc] ss:$16 sps:$4 sm:$0xff]  }
 0x7d3   :  { %3032 = vmatprep.subr.bf16.mxu1 %v14648_v25  ;;  %3138 = vmatprep.subr.bf16.mxu0 %v14651_v28  ;;  %v14694_v25 = vld [vmem:[#allocation10 + $0x4c0] ss:$16 sps:$4 sm:$0xff]   ;;  %v14697_v28 = vld [vmem:[#allocation10 + $0x4c8] ss:$16 sps:$4 sm:$0xff]  }
 0x7d6   :  { %3033 = vmatpush1.bf16.msra.mxu1 %v14646_v8  ;;  %3139 = vmatpush1.bf16.msra.mxu0 %v14649_v0  ;;  %v14702_v8 = vld [vmem:[#allocation10 + $0x4e4] ss:$16 sps:$4 sm:$0xff]   ;;  %v14705_v0 = vld [vmem:[#allocation10 + $0x4ec] ss:$16 sps:$4 sm:$0xff]  }
 0x7d7   :  { %3034 = vmatprep.subr.bf16.mxu1 %v14654_v15  ;;  %3140 = vmatprep.subr.bf16.mxu0 %v14657_v57  ;;  %v14700_v15 = vld [vmem:[#allocation10 + $0x4e0] ss:$16 sps:$4 sm:$0xff]   ;;  %v14703_v57 = vld [vmem:[#allocation10 + $0x4e8] ss:$16 sps:$4 sm:$0xff]  }
 0x7da   :  { %3035 = vmatpush1.bf16.msra.mxu1 %v14652_v9  ;;  %3141 = vmatpush1.bf16.msra.mxu0 %v14655_v1  ;;  %v14708_v9 = vld [vmem:[#allocation10 + $0x504] ss:$16 sps:$4 sm:$0xff]   ;;  %v14711_v1 = vld [vmem:[#allocation10 + $0x50c] ss:$16 sps:$4 sm:$0xff]  }
 0x7db   :  { %3179 = vmatprep.subr.bf16.mxu1 %v17037_v38  ;;  %3232 = vmatprep.subr.bf16.mxu0 %v17040_v36 }
 0x7dd   :  { %3037 = vmatmul.mubr.bf16.vlgmr.msra.gmra.mrb[28].mxu1 %v17082_v21  ;;  %3143 = vmatmul.mubr.bf16.vlgmr.msra.gmra.mrb[32].mxu0 %v17082_v21  ;;  %v14658_v21 = vld [vmem:[#allocation10 + $0x400] ss:$16 sps:$4 sm:$0xff]  }
 0x7de   :  { %3180 = vmatpush1.bf16.msra.mxu1 %v17031_v62  ;;  %3233 = vmatpush1.bf16.msra.mxu0 %v17035_v3 }
 0x7df   :  { %3181 = vmatprep.subr.bf16.mxu1 %v17061_v20  ;;  %3234 = vmatprep.subr.bf16.mxu0 %v17065_v29 }
 0x7e0   :  { %3046 = vmatprep.mubr.bf16.mxu1 %v17086_v16  ;;  %3152 = vmatprep.mubr.bf16.mxu0 %v17086_v16  ;;  %v14667_v16 = vld [vmem:[#allocation10 + $0x428] ss:$16 sps:$4 sm:$0xff]  }
 0x7e2   :  { %3182 = vmatpush1.bf16.msra.mxu1 %v17063_v34  ;;  %3235 = vmatpush1.bf16.msra.mxu0 %v17073_v42 }
 0x7e3   :  { %4062 = vmatprep.subr.bf16.mxu1 %v14660_v17  ;;  %4168 = vmatprep.subr.bf16.mxu0 %v14663_v30  ;;  %v14706_v17 = vld [vmem:[#allocation10 + $0x500] ss:$16 sps:$4 sm:$0xff]   ;;  %v14709_v30 = vld [vmem:[#allocation10 + $0x508] ss:$16 sps:$4 sm:$0xff]  }
 0x7e5   :  { %3047 = vmatmul.mubr.bf16.gmra.mrb[32].mxu1 %v17084_v49  ;;  %3153 = vmatmul.mubr.bf16.gmra.mrb[36].mxu0 %v17084_v49  ;;  %v14664_v49 = vld [vmem:[#allocation10 + $0x420] ss:$16 sps:$4 sm:$0xff]  }
 0x7e6   :  { %3211 = vmatprep.mubr.bf16.mxu1 %v18451_v26  ;;  %3264 = vmatprep.mubr.bf16.mxu0 %v18451_v26 }
 0x7ed   :  { %12134 = vmatmul.mubr.msk.bf16.vlgmr.msra.gmra.mrb[36].mxu1 %vm289_vm0, %v15740_v61  ;;  %12136 = vmatmul.mubr.msk.bf16.vlgmr.msra.gmra.mrb[40].mxu0 %vm289_vm0, %v15740_v61  ;;  %v14720_v61 = vld [vmem:[#allocation10 + $0x544] ss:$16 sps:$4 sm:$0xff]  }
 0x7ee   :  { %3221 = vmatprep.mubr.bf16.mxu1 %v18451_v26  ;;  %3274 = vmatprep.mubr.bf16.mxu0 %v18451_v26 }
 0x7ef   :  { %4063 = vmatpush1.bf16.msra.mxu1 %v14658_v21  ;;  %4169 = vmatpush1.bf16.msra.mxu0 %v14661_v5  ;;  %v14714_v21 = vld [vmem:[#allocation10 + $0x524] ss:$16 sps:$4 sm:$0xff]   ;;  %v14717_v5 = vld [vmem:[#allocation10 + $0x52c] ss:$16 sps:$4 sm:$0xff]  }
 0x7f0   :  { %4064 = vmatprep.subr.bf16.mxu1 %v14666_v56  ;;  %4170 = vmatprep.subr.bf16.mxu0 %v14669_v54  ;;  %v14712_v56 = vld [vmem:[#allocation10 + $0x520] ss:$16 sps:$4 sm:$0xff]   ;;  %v14715_v54 = vld [vmem:[#allocation10 + $0x528] ss:$16 sps:$4 sm:$0xff]  }
 0x7f3   :  { %4065 = vmatpush1.bf16.msra.mxu1 %v14664_v49  ;;  %4171 = vmatpush1.bf16.msra.mxu0 %v14667_v16  ;;  %v14723_v49 = vld [vmem:[#allocation10 + $0x54c] ss:$16 sps:$4 sm:$0xff]   ;;  %v14718_v16 = vld [vmem:[#allocation10 + $0x540] ss:$16 sps:$4 sm:$0xff]  }
 0x7f4   :  { %4066 = vmatprep.subr.bf16.mxu1 %v14672_v4  ;;  %4172 = vmatprep.subr.bf16.mxu0 %v14675_v22  ;;  %v14721_v4 = vld [vmem:[#allocation10 + $0x548] ss:$16 sps:$4 sm:$0xff]   ;;  %v14726_v22 = vld [vmem:[#allocation10 + $0x564] ss:$16 sps:$4 sm:$0xff]  }
 0x7f5   :  { %12135 = vmatmul.mubr.msk.bf16.gmra.mrb[40].mxu1 %vm289_vm0, %v15741_v41  ;;  %12137 = vmatmul.mubr.msk.bf16.gmra.mrb[44].mxu0 %vm289_vm0, %v15741_v41  ;;  %v14735_v41 = vld [vmem:[#allocation10 + $0x58c] ss:$16 sps:$4 sm:$0xff]  }
 0x7f7   :  { %4067 = vmatpush1.bf16.msra.mxu1 %v14670_v19  ;;  %4173 = vmatpush1.bf16.msra.mxu0 %v14673_v13  ;;  %v14729_v19 = vld [vmem:[#allocation10 + $0x56c] ss:$16 sps:$4 sm:$0xff]   ;;  %v14724_v13 = vld [vmem:[#allocation10 + $0x560] ss:$16 sps:$4 sm:$0xff]  }
 0x7f8   :  { %4068 = vmatprep.subr.bf16.mxu1 %v14678_v50  ;;  %4174 = vmatprep.subr.bf16.mxu0 %v14681_v35  ;;  %v14727_v50 = vld [vmem:[#allocation10 + $0x568] ss:$16 sps:$4 sm:$0xff]   ;;  %v14732_v35 = vld [vmem:[#allocation10 + $0x584] ss:$16 sps:$4 sm:$0xff]  }
 0x7fb   :  { %4069 = vmatpush1.bf16.msra.mxu1 %v14676_v52  ;;  %4175 = vmatpush1.bf16.msra.mxu0 %v14679_v10  ;;  %v14730_v52 = vld [vmem:[#allocation10 + $0x580] ss:$16 sps:$4 sm:$0xff]   ;;  %v14733_v10 = vld [vmem:[#allocation10 + $0x588] ss:$16 sps:$4 sm:$0xff]  }
 0x7fc   :  { %4070 = vmatprep.subr.bf16.mxu1 %v14684_v46  ;;  %4176 = vmatprep.subr.bf16.mxu0 %v14687_v53  ;;  %v14738_v46 = vld [vmem:[#allocation10 + $0x5a4] ss:$16 sps:$4 sm:$0xff]   ;;  %v14741_v53 = vld [vmem:[#allocation10 + $0x5ac] ss:$16 sps:$4 sm:$0xff]  }
 0x7ff   :  { %4071 = vmatpush1.bf16.msra.mxu1 %v14682_v7  ;;  %4177 = vmatpush1.bf16.msra.mxu0 %v14685_v45  ;;  %v14736_v7 = vld [vmem:[#allocation10 + $0x5a0] ss:$16 sps:$4 sm:$0xff]   ;;  %v14739_v45 = vld [vmem:[#allocation10 + $0x5a8] ss:$16 sps:$4 sm:$0xff]  }
 0x800   :  { %4072 = vmatprep.subr.bf16.mxu1 %v14690_v6  ;;  %4178 = vmatprep.subr.bf16.mxu0 %v14693_v2  ;;  %v14744_v6 = vld [vmem:[#allocation10 + $0x5c4] ss:$16 sps:$4 sm:$0xff]   ;;  %v14747_v2 = vld [vmem:[#allocation10 + $0x5cc] ss:$16 sps:$4 sm:$0xff]  }
 0x803   :  { %4073 = vmatpush1.bf16.msra.mxu1 %v14688_v32  ;;  %4179 = vmatpush1.bf16.msra.mxu0 %v14691_v58  ;;  %v14742_v32 = vld [vmem:[#allocation10 + $0x5c0] ss:$16 sps:$4 sm:$0xff]   ;;  %v14745_v58 = vld [vmem:[#allocation10 + $0x5c8] ss:$16 sps:$4 sm:$0xff]  }
 0x804   :  { %4074 = vmatprep.subr.bf16.mxu1 %v14696_v11  ;;  %4180 = vmatprep.subr.bf16.mxu0 %v14699_v40  ;;  %v14748_v11 = vld [vmem:[#allocation10 + $0x5e0] ss:$16 sps:$4 sm:$0xff]   ;;  %v14750_v40 = vld [vmem:[#allocation10 + $0x5e4] ss:$16 sps:$4 sm:$0xff]  }
 0x807   :  { %4075 = vmatpush1.bf16.msra.mxu1 %v14694_v25  ;;  %4181 = vmatpush1.bf16.msra.mxu0 %v14697_v28  ;;  %v14751_v25 = vld [vmem:[#allocation10 + $0x5e8] ss:$16 sps:$4 sm:$0xff]   ;;  %v14753_v28 = vld [vmem:[#allocation10 + $0x5ec] ss:$16 sps:$4 sm:$0xff]  }
 0x808   :  { %4076 = vmatprep.subr.bf16.mxu1 %v14702_v8  ;;  %4182 = vmatprep.subr.bf16.mxu0 %v14705_v0  ;;  %v14756_v8 = vld [vmem:[#allocation10 + $0x604] ss:$16 sps:$4 sm:$0xff]   ;;  %v14759_v0 = vld [vmem:[#allocation10 + $0x60c] ss:$16 sps:$4 sm:$0xff]  }
 0x80b   :  { %4077 = vmatpush1.bf16.msra.mxu1 %v14700_v15  ;;  %4183 = vmatpush1.bf16.msra.mxu0 %v14703_v57 }
 0x80c   :  { %4078 = vmatprep.subr.bf16.mxu1 %v14708_v9  ;;  %4184 = vmatprep.subr.bf16.mxu0 %v14711_v1 }
 0x80f   :  { %4079 = vmatpush1.bf16.msra.mxu1 %v14706_v17  ;;  %4185 = vmatpush1.bf16.msra.mxu0 %v14709_v30 }
 0x810   :  { %4080 = vmatprep.subr.bf16.mxu1 %v14714_v21  ;;  %4186 = vmatprep.subr.bf16.mxu0 %v14717_v5 }
 0x813   :  { %4081 = vmatpush1.bf16.msra.mxu1 %v14712_v56  ;;  %4187 = vmatpush1.bf16.msra.mxu0 %v14715_v54 }
 0x814   :  { %4082 = vmatprep.subr.bf16.mxu1 %v14720_v61  ;;  %4188 = vmatprep.subr.bf16.mxu0 %v14723_v49  ;;  %v14754_v49 = vld [vmem:[#allocation10 + $0x600] ss:$16 sps:$4 sm:$0xff]  }
 0x817   :  { %4083 = vmatpush1.bf16.msra.mxu1 %v14718_v16  ;;  %4189 = vmatpush1.bf16.msra.mxu0 %v14721_v4  ;;  %v14757_v16 = vld [vmem:[#allocation10 + $0x608] ss:$16 sps:$4 sm:$0xff]  }
 0x818   :  { %4084 = vmatprep.subr.bf16.mxu1 %v14726_v22  ;;  %4190 = vmatprep.subr.bf16.mxu0 %v14729_v19  ;;  %v14762_v22 = vld [vmem:[#allocation10 + $0x624] ss:$16 sps:$4 sm:$0xff]   ;;  %v14765_v19 = vld [vmem:[#allocation10 + $0x62c] ss:$16 sps:$4 sm:$0xff]  }
 0x81b   :  { %4085 = vmatpush1.bf16.msra.mxu1 %v14724_v13  ;;  %4191 = vmatpush1.bf16.msra.mxu0 %v14727_v50  ;;  %v14760_v13 = vld [vmem:[#allocation10 + $0x620] ss:$16 sps:$4 sm:$0xff]   ;;  %v14763_v50 = vld [vmem:[#allocation10 + $0x628] ss:$16 sps:$4 sm:$0xff]  }
 0x81c   :  { %4086 = vmatprep.subr.bf16.mxu1 %v14732_v35  ;;  %4192 = vmatprep.subr.bf16.mxu0 %v14735_v41 }
 0x81f   :  { %4087 = vmatpush1.bf16.msra.mxu1 %v14730_v52  ;;  %4193 = vmatpush1.bf16.msra.mxu0 %v14733_v10  ;;  %v14768_v52 = vld [vmem:[#allocation10 + $0x644] ss:$16 sps:$4 sm:$0xff]   ;;  %v14771_v10 = vld [vmem:[#allocation10 + $0x64c] ss:$16 sps:$4 sm:$0xff]  }
 0x820   :  { %4088 = vmatprep.subr.bf16.mxu1 %v14738_v46  ;;  %4194 = vmatprep.subr.bf16.mxu0 %v14741_v53 }
 0x823   :  { %4089 = vmatpush1.bf16.msra.mxu1 %v14736_v7  ;;  %4195 = vmatpush1.bf16.msra.mxu0 %v14739_v45 }
 0x824   :  { %4090 = vmatprep.subr.bf16.mxu1 %v14744_v6  ;;  %4196 = vmatprep.subr.bf16.mxu0 %v14747_v2 }
 0x827   :  { %4091 = vmatpush1.bf16.msra.mxu1 %v14742_v32  ;;  %4197 = vmatpush1.bf16.msra.mxu0 %v14745_v58 }
 0x828   :  { %4092 = vmatprep.subr.bf16.mxu1 %v14750_v40  ;;  %4198 = vmatprep.subr.bf16.mxu0 %v14753_v28  ;;  %v14769_v40 = vld [vmem:[#allocation10 + $0x648] ss:$16 sps:$4 sm:$0xff]  }
 0x82b   :  { %4093 = vmatpush1.bf16.msra.mxu1 %v14748_v11  ;;  %4199 = vmatpush1.bf16.msra.mxu0 %v14751_v25  ;;  %v14766_v11 = vld [vmem:[#allocation10 + $0x640] ss:$16 sps:$4 sm:$0xff]  }
 0x82c   :  { %4115 = vmatprep.subr.bf16.mxu1 %v14756_v8  ;;  %4221 = vmatprep.subr.bf16.mxu0 %v14759_v0  ;;  %v14774_v8 = vld [vmem:[#allocation10 + $0x664] ss:$16 sps:$4 sm:$0xff]   ;;  %v14777_v0 = vld [vmem:[#allocation10 + $0x66c] ss:$16 sps:$4 sm:$0xff]  }
 0x8c0   :  { %v3213_v15 = vpop.f32.mrb[36].mxu1  ;;  %v3266_v57 = vpop.f32.mrb[40].mxu0 }
 0x8c1   :  { %v3215_v9 = vpop.f32.mrb[37].mxu1  ;;  %v3268_v1 = vpop.f32.mrb[41].mxu0 }
 0x8c2   :  { %v3217_v17 = vpop.f32.mrb[38].mxu1  ;;  %v3270_v30 = vpop.f32.mrb[42].mxu0 }
 0x8c3   :  { %v3285_v21 = vpack.c.bf16 %v3217_v17, %v3213_v15  ;;  %v3219_v5 = vpop.f32.mrb[39].mxu1  ;;  %v17110_v56 = vpack.c.bf16 %v3270_v30, %v3266_v57  ;;  %v3272_v54 = vpop.f32.mrb[43].mxu0  ;;  %v14772_v15 = vld [vmem:[#allocation10 + $0x660] ss:$16 sps:$4 sm:$0xff]   ;;  %v14775_v57 = vld [vmem:[#allocation10 + $0x668] ss:$16 sps:$4 sm:$0xff]  }
 0x8c4   :  { %v3286_v61 = vpack.c.bf16 %v3219_v5, %v3215_v9  ;;  %v3288_v4 = vpack.c.bf16 %v3272_v54, %v3268_v1  ;;  %v14780_v9 = vld [vmem:[#allocation10 + $0x684] ss:$16 sps:$4 sm:$0xff]   ;;  %v14783_v1 = vld [vmem:[#allocation10 + $0x68c] ss:$16 sps:$4 sm:$0xff]   ;;  %v14778_v17 = vld [vmem:[#allocation10 + $0x680] ss:$16 sps:$4 sm:$0xff]  }
 0x8c5   :  { %v14781_v30 = vld [vmem:[#allocation10 + $0x688] ss:$16 sps:$4 sm:$0xff]   ;;  %v14789_v5 = vld [vmem:[#allocation10 + $0x6ac] ss:$16 sps:$4 sm:$0xff]   ;;  %v14784_v54 = vld [vmem:[#allocation10 + $0x6a0] ss:$16 sps:$4 sm:$0xff]  }
 0x8c6   :  { %4094 = vmatprep.mubr.bf16.mxu1 %v3286_v61  ;;  %4200 = vmatprep.mubr.bf16.mxu0 %v3286_v61  ;;  %v14787_v61 = vld [vmem:[#allocation10 + $0x6a8] ss:$16 sps:$4 sm:$0xff]  }
 0x8c7   :  { %4095 = vmatmul.mubr.bf16.vlgmr.msra.gmra.mrb[28].mxu1 %v3285_v21  ;;  %4201 = vmatmul.mubr.bf16.vlgmr.msra.gmra.mrb[32].mxu0 %v3285_v21  ;;  %v14786_v21 = vld [vmem:[#allocation10 + $0x6a4] ss:$16 sps:$4 sm:$0xff]  }
 0x8c8   :  { %4116 = vmatpush1.bf16.msra.mxu1 %v14754_v49  ;;  %4222 = vmatpush1.bf16.msra.mxu0 %v14757_v16  ;;  %v3223_v35 = vpop.f32.mrb[40].mxu1  ;;  %v3276_v41 = vpop.f32.mrb[44].mxu0  ;;  %v14792_v49 = vld [vmem:[#allocation10 + $0x6c4] ss:$16 sps:$4 sm:$0xff]   ;;  %v14795_v16 = vld [vmem:[#allocation10 + $0x6cc] ss:$16 sps:$4 sm:$0xff]  }
 0x8c9   :  { %4117 = vmatprep.subr.bf16.mxu1 %v14762_v22  ;;  %4223 = vmatprep.subr.bf16.mxu0 %v14765_v19  ;;  %v3225_v46 = vpop.f32.mrb[41].mxu1  ;;  %v3278_v53 = vpop.f32.mrb[45].mxu0  ;;  %v14790_v22 = vld [vmem:[#allocation10 + $0x6c0] ss:$16 sps:$4 sm:$0xff]   ;;  %v14798_v19 = vld [vmem:[#allocation10 + $0x6e4] ss:$16 sps:$4 sm:$0xff]  }
 0x8ca   :  { %v3227_v7 = vpop.f32.mrb[42].mxu1  ;;  %v3280_v45 = vpop.f32.mrb[46].mxu0 }
 0x8cb   :  { %v3289_v6 = vpack.c.bf16 %v3227_v7, %v3223_v35  ;;  %v3229_v2 = vpop.f32.mrb[43].mxu1  ;;  %v17112_v32 = vpack.c.bf16 %v3280_v45, %v3276_v41  ;;  %v3282_v58 = vpop.f32.mrb[47].mxu0  ;;  %v14799_v35 = vld [vmem:[#allocation10 + $0x6e8] ss:$16 sps:$4 sm:$0xff]   ;;  %v14804_v41 = vld [vmem:[#allocation10 + $0x704] ss:$16 sps:$4 sm:$0xff]  }
 0x8cc   :  { %4118 = vmatpush1.bf16.msra.mxu1 %v14760_v13  ;;  %4224 = vmatpush1.bf16.msra.mxu0 %v14763_v50  ;;  %v3290_v25 = vpack.c.bf16 %v3229_v2, %v3225_v46  ;;  %v17114_v28 = vpack.c.bf16 %v3282_v58, %v3278_v53  ;;  %v14801_v13 = vld [vmem:[#allocation10 + $0x6ec] ss:$16 sps:$4 sm:$0xff]   ;;  %v14796_v50 = vld [vmem:[#allocation10 + $0x6e0] ss:$16 sps:$4 sm:$0xff]   ;;  %v14805_v46 = vld [vmem:[#allocation10 + $0x708] ss:$16 sps:$4 sm:$0xff]  }
 0x8cd   :  { %4119 = vmatprep.subr.bf16.mxu1 %v14768_v52  ;;  %4225 = vmatprep.subr.bf16.mxu0 %v14771_v10  ;;  %v14807_v52 = vld [vmem:[#allocation10 + $0x70c] ss:$16 sps:$4 sm:$0xff]   ;;  %v14802_v10 = vld [vmem:[#allocation10 + $0x700] ss:$16 sps:$4 sm:$0xff]   ;;  %v14810_v53 = vld [vmem:[#allocation10 + $0x724] ss:$16 sps:$4 sm:$0xff]  }
 0x8ce   :  { %4104 = vmatprep.mubr.bf16.mxu1 %v3290_v25  ;;  %4210 = vmatprep.mubr.bf16.mxu0 %v3290_v25  ;;  %v14813_v7 = vld [vmem:[#allocation10 + $0x72c] ss:$16 sps:$4 sm:$0xff]   ;;  %v14808_v45 = vld [vmem:[#allocation10 + $0x720] ss:$16 sps:$4 sm:$0xff]   ;;  %v14816_v2 = vld [vmem:[#allocation10 + $0x744] ss:$16 sps:$4 sm:$0xff]  }
 0x8cf   :  { %4105 = vmatmul.mubr.bf16.gmra.mrb[32].mxu1 %v3289_v6  ;;  %4211 = vmatmul.mubr.bf16.gmra.mrb[36].mxu0 %v3289_v6  ;;  %v14811_v6 = vld [vmem:[#allocation10 + $0x728] ss:$16 sps:$4 sm:$0xff]   ;;  %v14819_v58 = vld [vmem:[#allocation10 + $0x74c] ss:$16 sps:$4 sm:$0xff]   ;;  %v14822_v25 = vld [vmem:[#allocation10 + $0x764] ss:$16 sps:$4 sm:$0xff]  }
 0x8d0   :  { %4120 = vmatpush1.bf16.msra.mxu1 %v14766_v11  ;;  %4226 = vmatpush1.bf16.msra.mxu0 %v14769_v40  ;;  %v14814_v11 = vld [vmem:[#allocation10 + $0x740] ss:$16 sps:$4 sm:$0xff]   ;;  %v14817_v40 = vld [vmem:[#allocation10 + $0x748] ss:$16 sps:$4 sm:$0xff]  }
 0x8d1   :  { %4121 = vmatprep.subr.bf16.mxu1 %v14774_v8  ;;  %4227 = vmatprep.subr.bf16.mxu0 %v14777_v0  ;;  %v14825_v8 = vld [vmem:[#allocation10 + $0x76c] ss:$16 sps:$4 sm:$0xff]   ;;  %v14820_v0 = vld [vmem:[#allocation10 + $0x760] ss:$16 sps:$4 sm:$0xff]  }
 0x8d2   :  { %4147 = vmatprep.mubr.bf16.mxu1 %v3288_v4  ;;  %4253 = vmatprep.mubr.bf16.mxu0 %v3288_v4  ;;  %v14793_v4 = vld [vmem:[#allocation10 + $0x6c8] ss:$16 sps:$4 sm:$0xff]  }
 0x8d4   :  { %4122 = vmatpush1.bf16.msra.mxu1 %v14772_v15  ;;  %4228 = vmatpush1.bf16.msra.mxu0 %v14775_v57  ;;  %v14823_v15 = vld [vmem:[#allocation10 + $0x768] ss:$16 sps:$4 sm:$0xff]   ;;  %v14828_v57 = vld [vmem:[#allocation10 + $0x784] ss:$16 sps:$4 sm:$0xff]  }
 0x8d5   :  { %4123 = vmatprep.subr.bf16.mxu1 %v14780_v9  ;;  %4229 = vmatprep.subr.bf16.mxu0 %v14783_v1  ;;  %v14831_v9 = vld [vmem:[#allocation10 + $0x78c] ss:$16 sps:$4 sm:$0xff]   ;;  %v14826_v1 = vld [vmem:[#allocation10 + $0x780] ss:$16 sps:$4 sm:$0xff]  }
 0x8d8   :  { %4124 = vmatpush1.bf16.msra.mxu1 %v14778_v17  ;;  %4230 = vmatpush1.bf16.msra.mxu0 %v14781_v30  ;;  %v14829_v17 = vld [vmem:[#allocation10 + $0x788] ss:$16 sps:$4 sm:$0xff]   ;;  %v14834_v30 = vld [vmem:[#allocation10 + $0x7a4] ss:$16 sps:$4 sm:$0xff]  }
 0x8d9   :  { %4125 = vmatprep.subr.bf16.mxu1 %v14786_v21  ;;  %4231 = vmatprep.subr.bf16.mxu0 %v14789_v5  ;;  %v14837_v21 = vld [vmem:[#allocation10 + $0x7ac] ss:$16 sps:$4 sm:$0xff]   ;;  %v14832_v5 = vld [vmem:[#allocation10 + $0x7a0] ss:$16 sps:$4 sm:$0xff]  }
 0x8dc   :  { %4126 = vmatpush1.bf16.msra.mxu1 %v14784_v54  ;;  %4232 = vmatpush1.bf16.msra.mxu0 %v14787_v61  ;;  %v14835_v54 = vld [vmem:[#allocation10 + $0x7a8] ss:$16 sps:$4 sm:$0xff]   ;;  %v14840_v61 = vld [vmem:[#allocation10 + $0x7c4] ss:$16 sps:$4 sm:$0xff]  }
 0x8dd   :  { %4127 = vmatprep.subr.bf16.mxu1 %v14792_v49  ;;  %4233 = vmatprep.subr.bf16.mxu0 %v14795_v16  ;;  %v14843_v49 = vld [vmem:[#allocation10 + $0x7cc] ss:$16 sps:$4 sm:$0xff]   ;;  %v14838_v16 = vld [vmem:[#allocation10 + $0x7c0] ss:$16 sps:$4 sm:$0xff]  }
 0x8e0   :  { %4128 = vmatpush1.bf16.msra.mxu1 %v14790_v22  ;;  %4234 = vmatpush1.bf16.msra.mxu0 %v14793_v4  ;;  %v14841_v22 = vld [vmem:[#allocation10 + $0x7c8] ss:$16 sps:$4 sm:$0xff]   ;;  %v14846_v4 = vld [vmem:[#allocation10 + $0x7e4] ss:$16 sps:$4 sm:$0xff]  }
 0x8e1   :  { %4129 = vmatprep.subr.bf16.mxu1 %v14798_v19  ;;  %4235 = vmatprep.subr.bf16.mxu0 %v14801_v13  ;;  %v14849_v19 = vld [vmem:[#allocation10 + $0x7ec] ss:$16 sps:$4 sm:$0xff]   ;;  %v14844_v13 = vld [vmem:[#allocation10 + $0x7e0] ss:$16 sps:$4 sm:$0xff]  }
 0x8e4   :  { %4130 = vmatpush1.bf16.msra.mxu1 %v14796_v50  ;;  %4236 = vmatpush1.bf16.msra.mxu0 %v14799_v35  ;;  %v14847_v50 = vld [vmem:[#allocation10 + $0x7e8] ss:$16 sps:$4 sm:$0xff]   ;;  %v14852_v35 = vld [vmem:[#allocation10 + $0x804] ss:$16 sps:$4 sm:$0xff]  }
 0x8e5   :  { %4131 = vmatprep.subr.bf16.mxu1 %v14804_v41  ;;  %4237 = vmatprep.subr.bf16.mxu0 %v14807_v52  ;;  %v14855_v41 = vld [vmem:[#allocation10 + $0x80c] ss:$16 sps:$4 sm:$0xff]   ;;  %v14870_v52 = vld [vmem:[#allocation10 + $0x864] ss:$16 sps:$4 sm:$0xff]  }
 0x8e8   :  { %4132 = vmatpush1.bf16.msra.mxu1 %v14802_v10  ;;  %4238 = vmatpush1.bf16.msra.mxu0 %v14805_v46  ;;  %v14873_v10 = vld [vmem:[#allocation10 + $0x86c] ss:$16 sps:$4 sm:$0xff]  }
 0x8e9   :  { %4133 = vmatprep.subr.bf16.mxu1 %v14810_v53  ;;  %4239 = vmatprep.subr.bf16.mxu0 %v14813_v7  ;;  %v15743_v46 = vld [vmem:[#allocation2 + $0x28] sm:$0xff]   ;;  %v14871_v7 = vld [vmem:[#allocation10 + $0x868] ss:$16 sps:$4 sm:$0xff]  }
 0x8ea   :  { %v14868_v53 = vld [vmem:[#allocation10 + $0x860] ss:$16 sps:$4 sm:$0xff]  }
 0x8ec   :  { %4134 = vmatpush1.bf16.msra.mxu1 %v14808_v45  ;;  %4240 = vmatpush1.bf16.msra.mxu0 %v14811_v6  ;;  %v14876_v45 = vld [vmem:[#allocation10 + $0x884] ss:$16 sps:$4 sm:$0xff]   ;;  %v14879_v6 = vld [vmem:[#allocation10 + $0x88c] ss:$16 sps:$4 sm:$0xff]  }
 0x8ed   :  { %4135 = vmatprep.subr.bf16.mxu1 %v14816_v2  ;;  %4241 = vmatprep.subr.bf16.mxu0 %v14819_v58  ;;  %v14874_v2 = vld [vmem:[#allocation10 + $0x880] ss:$16 sps:$4 sm:$0xff]   ;;  %v14877_v58 = vld [vmem:[#allocation10 + $0x888] ss:$16 sps:$4 sm:$0xff]  }
 0x8f0   :  { %4136 = vmatpush1.bf16.msra.mxu1 %v14814_v11  ;;  %4242 = vmatpush1.bf16.msra.mxu0 %v14817_v40  ;;  %v14882_v11 = vld [vmem:[#allocation10 + $0x8a4] ss:$16 sps:$4 sm:$0xff]   ;;  %v14885_v40 = vld [vmem:[#allocation10 + $0x8ac] ss:$16 sps:$4 sm:$0xff]  }
 0x8f1   :  { %4137 = vmatprep.subr.bf16.mxu1 %v14822_v25  ;;  %4243 = vmatprep.subr.bf16.mxu0 %v14825_v8  ;;  %v14880_v25 = vld [vmem:[#allocation10 + $0x8a0] ss:$16 sps:$4 sm:$0xff]   ;;  %v14883_v8 = vld [vmem:[#allocation10 + $0x8a8] ss:$16 sps:$4 sm:$0xff]  }
 0x8f4   :  { %4138 = vmatpush1.bf16.msra.mxu1 %v14820_v0  ;;  %4244 = vmatpush1.bf16.msra.mxu0 %v14823_v15  ;;  %v14888_v0 = vld [vmem:[#allocation10 + $0x8c4] ss:$16 sps:$4 sm:$0xff]   ;;  %v14891_v15 = vld [vmem:[#allocation10 + $0x8cc] ss:$16 sps:$4 sm:$0xff]  }
 0x8f5   :  { %4139 = vmatprep.subr.bf16.mxu1 %v14828_v57  ;;  %4245 = vmatprep.subr.bf16.mxu0 %v14831_v9  ;;  %v14886_v57 = vld [vmem:[#allocation10 + $0x8c0] ss:$16 sps:$4 sm:$0xff]   ;;  %v14889_v9 = vld [vmem:[#allocation10 + $0x8c8] ss:$16 sps:$4 sm:$0xff]  }
 0x8f8   :  { %4140 = vmatpush1.bf16.msra.mxu1 %v14826_v1  ;;  %4246 = vmatpush1.bf16.msra.mxu0 %v14829_v17  ;;  %v14894_v1 = vld [vmem:[#allocation10 + $0x8e4] ss:$16 sps:$4 sm:$0xff]   ;;  %v14897_v17 = vld [vmem:[#allocation10 + $0x8ec] ss:$16 sps:$4 sm:$0xff]  }
 0x8f9   :  { %4141 = vmatprep.subr.bf16.mxu1 %v14834_v30  ;;  %4247 = vmatprep.subr.bf16.mxu0 %v14837_v21  ;;  %v14892_v30 = vld [vmem:[#allocation10 + $0x8e0] ss:$16 sps:$4 sm:$0xff]   ;;  %v14895_v21 = vld [vmem:[#allocation10 + $0x8e8] ss:$16 sps:$4 sm:$0xff]  }
 0x8fc   :  { %4142 = vmatpush1.bf16.msra.mxu1 %v14832_v5  ;;  %4248 = vmatpush1.bf16.msra.mxu0 %v14835_v54  ;;  %v14900_v5 = vld [vmem:[#allocation10 + $0x904] ss:$16 sps:$4 sm:$0xff]   ;;  %v14903_v54 = vld [vmem:[#allocation10 + $0x90c] ss:$16 sps:$4 sm:$0xff]  }
 0x8fd   :  { %4143 = vmatprep.subr.bf16.mxu1 %v14840_v61  ;;  %4249 = vmatprep.subr.bf16.mxu0 %v14843_v49  ;;  %v14898_v61 = vld [vmem:[#allocation10 + $0x900] ss:$16 sps:$4 sm:$0xff]   ;;  %v14901_v49 = vld [vmem:[#allocation10 + $0x908] ss:$16 sps:$4 sm:$0xff]  }
 0x900   :  { %4144 = vmatpush1.bf16.msra.mxu1 %v14838_v16  ;;  %4250 = vmatpush1.bf16.msra.mxu0 %v14841_v22  ;;  %v14906_v16 = vld [vmem:[#allocation10 + $0x924] ss:$16 sps:$4 sm:$0xff]   ;;  %v14909_v22 = vld [vmem:[#allocation10 + $0x92c] ss:$16 sps:$4 sm:$0xff]  }
 0x901   :  { %4145 = vmatprep.subr.bf16.mxu1 %v14846_v4  ;;  %4251 = vmatprep.subr.bf16.mxu0 %v14849_v19  ;;  %v14904_v4 = vld [vmem:[#allocation10 + $0x920] ss:$16 sps:$4 sm:$0xff]   ;;  %v14907_v19 = vld [vmem:[#allocation10 + $0x928] ss:$16 sps:$4 sm:$0xff]  }
 0x904   :  { %4146 = vmatpush1.bf16.msra.mxu1 %v14844_v13  ;;  %4252 = vmatpush1.bf16.msra.mxu0 %v14847_v50  ;;  %v14912_v13 = vld [vmem:[#allocation10 + $0x944] ss:$16 sps:$4 sm:$0xff]   ;;  %v14915_v50 = vld [vmem:[#allocation10 + $0x94c] ss:$16 sps:$4 sm:$0xff]  }
 0x905   :  { %4290 = vmatprep.subr.bf16.mxu1 %v17037_v38  ;;  %4343 = vmatprep.subr.bf16.mxu0 %v17040_v36  ;;  %v14858_v38 = vld [vmem:[#allocation10 + $0x824] ss:$16 sps:$4 sm:$0xff]   ;;  %v14861_v36 = vld [vmem:[#allocation10 + $0x82c] ss:$16 sps:$4 sm:$0xff]  }
 0x907   :  { %4148 = vmatmul.mubr.bf16.vlgmr.msra.gmra.mrb[28].mxu1 %v17110_v56  ;;  %4254 = vmatmul.mubr.bf16.vlgmr.msra.gmra.mrb[32].mxu0 %v17110_v56  ;;  %v14867_v56 = vld [vmem:[#allocation10 + $0x84c] ss:$16 sps:$4 sm:$0xff]  }
 0x908   :  { %4291 = vmatpush1.bf16.msra.mxu1 %v17031_v62  ;;  %4344 = vmatpush1.bf16.msra.mxu0 %v17035_v3  ;;  %v14850_v62 = vld [vmem:[#allocation10 + $0x800] ss:$16 sps:$4 sm:$0xff]   ;;  %v14853_v3 = vld [vmem:[#allocation10 + $0x808] ss:$16 sps:$4 sm:$0xff]  }
 0x909   :  { %4292 = vmatprep.subr.bf16.mxu1 %v17061_v20  ;;  %4345 = vmatprep.subr.bf16.mxu0 %v17065_v29  ;;  %v15742_v20 = vld [vmem:[#allocation2 + $0x20] sm:$0xff]  }
 0x90a   :  { %4157 = vmatprep.mubr.bf16.mxu1 %v17114_v28  ;;  %4263 = vmatprep.mubr.bf16.mxu0 %v17114_v28  ;;  %v14859_v29 = vld [vmem:[#allocation10 + $0x828] ss:$16 sps:$4 sm:$0xff]  }
 0x90b   :  { %v14865_v28 = vld [vmem:[#allocation10 + $0x848] ss:$16 sps:$4 sm:$0xff]  }
 0x90c   :  { %4293 = vmatpush1.bf16.msra.mxu1 %v17063_v34  ;;  %4346 = vmatpush1.bf16.msra.mxu0 %v17073_v42  ;;  %v14856_v34 = vld [vmem:[#allocation10 + $0x820] ss:$16 sps:$4 sm:$0xff]   ;;  %v14864_v42 = vld [vmem:[#allocation10 + $0x844] ss:$16 sps:$4 sm:$0xff]  }
 0x90d   :  { %5173 = vmatprep.subr.bf16.mxu1 %v14852_v35  ;;  %5279 = vmatprep.subr.bf16.mxu0 %v14855_v41  ;;  %v14910_v35 = vld [vmem:[#allocation10 + $0x940] ss:$16 sps:$4 sm:$0xff]   ;;  %v14913_v41 = vld [vmem:[#allocation10 + $0x948] ss:$16 sps:$4 sm:$0xff]  }
 0x90f   :  { %4158 = vmatmul.mubr.bf16.gmra.mrb[32].mxu1 %v17112_v32  ;;  %4264 = vmatmul.mubr.bf16.gmra.mrb[36].mxu0 %v17112_v32  ;;  %v14862_v32 = vld [vmem:[#allocation10 + $0x840] ss:$16 sps:$4 sm:$0xff]  }
 0x910   :  { %4322 = vmatprep.mubr.bf16.mxu1 %v18451_v26  ;;  %4375 = vmatprep.mubr.bf16.mxu0 %v18451_v26 }
 0x917   :  { %12266 = vmatmul.mubr.msk.bf16.vlgmr.msra.gmra.mrb[44].mxu1 %vm289_vm0, %v15742_v20  ;;  %12268 = vmatmul.mubr.msk.bf16.vlgmr.msra.gmra.mrb[48].mxu0 %vm289_vm0, %v15742_v20  ;;  %v14924_v20 = vld [vmem:[#allocation10 + $0x984] ss:$16 sps:$4 sm:$0xff]  }
 0x918   :  { %4332 = vmatprep.mubr.bf16.mxu1 %v18451_v26  ;;  %4385 = vmatprep.mubr.bf16.mxu0 %v18451_v26 }
 0x919   :  { %5174 = vmatpush1.bf16.msra.mxu1 %v14850_v62  ;;  %5280 = vmatpush1.bf16.msra.mxu0 %v14853_v3  ;;  %v14918_v62 = vld [vmem:[#allocation10 + $0x964] ss:$16 sps:$4 sm:$0xff]   ;;  %v14921_v3 = vld [vmem:[#allocation10 + $0x96c] ss:$16 sps:$4 sm:$0xff]  }
 0x91a   :  { %5175 = vmatprep.subr.bf16.mxu1 %v14858_v38  ;;  %5281 = vmatprep.subr.bf16.mxu0 %v14861_v36  ;;  %v14916_v38 = vld [vmem:[#allocation10 + $0x960] ss:$16 sps:$4 sm:$0xff]   ;;  %v14919_v36 = vld [vmem:[#allocation10 + $0x968] ss:$16 sps:$4 sm:$0xff]  }
 0x91d   :  { %5176 = vmatpush1.bf16.msra.mxu1 %v14856_v34  ;;  %5282 = vmatpush1.bf16.msra.mxu0 %v14859_v29  ;;  %v14927_v34 = vld [vmem:[#allocation10 + $0x98c] ss:$16 sps:$4 sm:$0xff]   ;;  %v14922_v29 = vld [vmem:[#allocation10 + $0x980] ss:$16 sps:$4 sm:$0xff]  }
 0x91e   :  { %5177 = vmatprep.subr.bf16.mxu1 %v14864_v42  ;;  %5283 = vmatprep.subr.bf16.mxu0 %v14867_v56  ;;  %v14925_v42 = vld [vmem:[#allocation10 + $0x988] ss:$16 sps:$4 sm:$0xff]   ;;  %v14930_v56 = vld [vmem:[#allocation10 + $0x9a4] ss:$16 sps:$4 sm:$0xff]  }
 0x91f   :  { %12267 = vmatmul.mubr.msk.bf16.gmra.mrb[48].mxu1 %vm289_vm0, %v15743_v46  ;;  %12269 = vmatmul.mubr.msk.bf16.gmra.mrb[52].mxu0 %vm289_vm0, %v15743_v46  ;;  %v14939_v46 = vld [vmem:[#allocation10 + $0x9cc] ss:$16 sps:$4 sm:$0xff]  }
 0x921   :  { %5178 = vmatpush1.bf16.msra.mxu1 %v14862_v32  ;;  %5284 = vmatpush1.bf16.msra.mxu0 %v14865_v28  ;;  %v14933_v32 = vld [vmem:[#allocation10 + $0x9ac] ss:$16 sps:$4 sm:$0xff]   ;;  %v14928_v28 = vld [vmem:[#allocation10 + $0x9a0] ss:$16 sps:$4 sm:$0xff]  }
 0x922   :  { %5179 = vmatprep.subr.bf16.mxu1 %v14870_v52  ;;  %5285 = vmatprep.subr.bf16.mxu0 %v14873_v10  ;;  %v14931_v52 = vld [vmem:[#allocation10 + $0x9a8] ss:$16 sps:$4 sm:$0xff]   ;;  %v14936_v10 = vld [vmem:[#allocation10 + $0x9c4] ss:$16 sps:$4 sm:$0xff]  }
 0x925   :  { %5180 = vmatpush1.bf16.msra.mxu1 %v14868_v53  ;;  %5286 = vmatpush1.bf16.msra.mxu0 %v14871_v7  ;;  %v14934_v53 = vld [vmem:[#allocation10 + $0x9c0] ss:$16 sps:$4 sm:$0xff]   ;;  %v14937_v7 = vld [vmem:[#allocation10 + $0x9c8] ss:$16 sps:$4 sm:$0xff]  }
 0x926   :  { %5181 = vmatprep.subr.bf16.mxu1 %v14876_v45  ;;  %5287 = vmatprep.subr.bf16.mxu0 %v14879_v6  ;;  %v14940_v45 = vld [vmem:[#allocation10 + $0x9e0] ss:$16 sps:$4 sm:$0xff]   ;;  %v14942_v6 = vld [vmem:[#allocation10 + $0x9e4] ss:$16 sps:$4 sm:$0xff]  }
 0x929   :  { %5182 = vmatpush1.bf16.msra.mxu1 %v14874_v2  ;;  %5288 = vmatpush1.bf16.msra.mxu0 %v14877_v58  ;;  %v14943_v2 = vld [vmem:[#allocation10 + $0x9e8] ss:$16 sps:$4 sm:$0xff]   ;;  %v14945_v58 = vld [vmem:[#allocation10 + $0x9ec] ss:$16 sps:$4 sm:$0xff]  }
 0x92a   :  { %5183 = vmatprep.subr.bf16.mxu1 %v14882_v11  ;;  %5289 = vmatprep.subr.bf16.mxu0 %v14885_v40  ;;  %v14948_v11 = vld [vmem:[#allocation10 + $0xa04] ss:$16 sps:$4 sm:$0xff]   ;;  %v14951_v40 = vld [vmem:[#allocation10 + $0xa0c] ss:$16 sps:$4 sm:$0xff]  }
 0x92d   :  { %5184 = vmatpush1.bf16.msra.mxu1 %v14880_v25  ;;  %5290 = vmatpush1.bf16.msra.mxu0 %v14883_v8 }
 0x92e   :  { %5185 = vmatprep.subr.bf16.mxu1 %v14888_v0  ;;  %5291 = vmatprep.subr.bf16.mxu0 %v14891_v15 }
 0x931   :  { %5186 = vmatpush1.bf16.msra.mxu1 %v14886_v57  ;;  %5292 = vmatpush1.bf16.msra.mxu0 %v14889_v9 }
 0x932   :  { %5187 = vmatprep.subr.bf16.mxu1 %v14894_v1  ;;  %5293 = vmatprep.subr.bf16.mxu0 %v14897_v17 }
 0x935   :  { %5188 = vmatpush1.bf16.msra.mxu1 %v14892_v30  ;;  %5294 = vmatpush1.bf16.msra.mxu0 %v14895_v21 }
 0x936   :  { %5189 = vmatprep.subr.bf16.mxu1 %v14900_v5  ;;  %5295 = vmatprep.subr.bf16.mxu0 %v14903_v54  ;;  %v14946_v54 = vld [vmem:[#allocation10 + $0xa00] ss:$16 sps:$4 sm:$0xff]  }
 0x939   :  { %5190 = vmatpush1.bf16.msra.mxu1 %v14898_v61  ;;  %5296 = vmatpush1.bf16.msra.mxu0 %v14901_v49  ;;  %v14949_v61 = vld [vmem:[#allocation10 + $0xa08] ss:$16 sps:$4 sm:$0xff]  }
 0x93a   :  { %5191 = vmatprep.subr.bf16.mxu1 %v14906_v16  ;;  %5297 = vmatprep.subr.bf16.mxu0 %v14909_v22  ;;  %v14954_v16 = vld [vmem:[#allocation10 + $0xa24] ss:$16 sps:$4 sm:$0xff]   ;;  %v14957_v22 = vld [vmem:[#allocation10 + $0xa2c] ss:$16 sps:$4 sm:$0xff]  }
 0x93d   :  { %5192 = vmatpush1.bf16.msra.mxu1 %v14904_v4  ;;  %5298 = vmatpush1.bf16.msra.mxu0 %v14907_v19  ;;  %v14952_v4 = vld [vmem:[#allocation10 + $0xa20] ss:$16 sps:$4 sm:$0xff]   ;;  %v14955_v19 = vld [vmem:[#allocation10 + $0xa28] ss:$16 sps:$4 sm:$0xff]  }
 0x93e   :  { %5193 = vmatprep.subr.bf16.mxu1 %v14912_v13  ;;  %5299 = vmatprep.subr.bf16.mxu0 %v14915_v50 }
 0x941   :  { %5194 = vmatpush1.bf16.msra.mxu1 %v14910_v35  ;;  %5300 = vmatpush1.bf16.msra.mxu0 %v14913_v41  ;;  %v14960_v35 = vld [vmem:[#allocation10 + $0xa44] ss:$16 sps:$4 sm:$0xff]   ;;  %v14963_v41 = vld [vmem:[#allocation10 + $0xa4c] ss:$16 sps:$4 sm:$0xff]  }
 0x942   :  { %5195 = vmatprep.subr.bf16.mxu1 %v14918_v62  ;;  %5301 = vmatprep.subr.bf16.mxu0 %v14921_v3 }
 0x945   :  { %5196 = vmatpush1.bf16.msra.mxu1 %v14916_v38  ;;  %5302 = vmatpush1.bf16.msra.mxu0 %v14919_v36 }
 0x946   :  { %5197 = vmatprep.subr.bf16.mxu1 %v14924_v20  ;;  %5303 = vmatprep.subr.bf16.mxu0 %v14927_v34 }
 0x949   :  { %5198 = vmatpush1.bf16.msra.mxu1 %v14922_v29  ;;  %5304 = vmatpush1.bf16.msra.mxu0 %v14925_v42 }
 0x94a   :  { %5199 = vmatprep.subr.bf16.mxu1 %v14930_v56  ;;  %5305 = vmatprep.subr.bf16.mxu0 %v14933_v32  ;;  %v14958_v56 = vld [vmem:[#allocation10 + $0xa40] ss:$16 sps:$4 sm:$0xff]   ;;  %v14961_v32 = vld [vmem:[#allocation10 + $0xa48] ss:$16 sps:$4 sm:$0xff]  }
 0x94d   :  { %5200 = vmatpush1.bf16.msra.mxu1 %v14928_v28  ;;  %5306 = vmatpush1.bf16.msra.mxu0 %v14931_v52 }
 0x94e   :  { %5201 = vmatprep.subr.bf16.mxu1 %v14936_v10  ;;  %5307 = vmatprep.subr.bf16.mxu0 %v14939_v46  ;;  %v14966_v10 = vld [vmem:[#allocation10 + $0xa64] ss:$16 sps:$4 sm:$0xff]   ;;  %v14969_v46 = vld [vmem:[#allocation10 + $0xa6c] ss:$16 sps:$4 sm:$0xff]  }
 0x951   :  { %5202 = vmatpush1.bf16.msra.mxu1 %v14934_v53  ;;  %5308 = vmatpush1.bf16.msra.mxu0 %v14937_v7  ;;  %v14964_v53 = vld [vmem:[#allocation10 + $0xa60] ss:$16 sps:$4 sm:$0xff]   ;;  %v14967_v7 = vld [vmem:[#allocation10 + $0xa68] ss:$16 sps:$4 sm:$0xff]  }
 0x952   :  { %5203 = vmatprep.subr.bf16.mxu1 %v14942_v6  ;;  %5309 = vmatprep.subr.bf16.mxu0 %v14945_v58  ;;  %v14975_v6 = vld [vmem:[#allocation10 + $0xa8c] ss:$16 sps:$4 sm:$0xff]   ;;  %v14973_v58 = vld [vmem:[#allocation10 + $0xa88] ss:$16 sps:$4 sm:$0xff]  }
 0x955   :  { %5204 = vmatpush1.bf16.msra.mxu1 %v14940_v45  ;;  %5310 = vmatpush1.bf16.msra.mxu0 %v14943_v2  ;;  %v14972_v45 = vld [vmem:[#allocation10 + $0xa84] ss:$16 sps:$4 sm:$0xff]   ;;  %v14970_v2 = vld [vmem:[#allocation10 + $0xa80] ss:$16 sps:$4 sm:$0xff]  }
 0x956   :  { %5226 = vmatprep.subr.bf16.mxu1 %v14948_v11  ;;  %5332 = vmatprep.subr.bf16.mxu0 %v14951_v40  ;;  %v14978_v11 = vld [vmem:[#allocation10 + $0xaa4] ss:$16 sps:$4 sm:$0xff]   ;;  %v14981_v40 = vld [vmem:[#allocation10 + $0xaac] ss:$16 sps:$4 sm:$0xff]  }
 0x9ea   :  { %v4324_v25 = vpop.f32.mrb[44].mxu1  ;;  %v4377_v8 = vpop.f32.mrb[48].mxu0 }
 0x9eb   :  { %v4326_v0 = vpop.f32.mrb[45].mxu1  ;;  %v4379_v15 = vpop.f32.mrb[49].mxu0 }
 0x9ec   :  { %v4328_v57 = vpop.f32.mrb[46].mxu1  ;;  %v4381_v9 = vpop.f32.mrb[50].mxu0 }
 0x9ed   :  { %v4396_v1 = vpack.c.bf16 %v4328_v57, %v4324_v25  ;;  %v4330_v17 = vpop.f32.mrb[47].mxu1  ;;  %v17138_v30 = vpack.c.bf16 %v4381_v9, %v4377_v8  ;;  %v4383_v21 = vpop.f32.mrb[51].mxu0  ;;  %v14976_v25 = vld [vmem:[#allocation10 + $0xaa0] ss:$16 sps:$4 sm:$0xff]   ;;  %v14979_v8 = vld [vmem:[#allocation10 + $0xaa8] ss:$16 sps:$4 sm:$0xff]  }
 0x9ee   :  { %v4397_v5 = vpack.c.bf16 %v4330_v17, %v4326_v0  ;;  %v4399_v49 = vpack.c.bf16 %v4383_v21, %v4379_v15  ;;  %v14984_v0 = vld [vmem:[#allocation10 + $0xac4] ss:$16 sps:$4 sm:$0xff]   ;;  %v14987_v15 = vld [vmem:[#allocation10 + $0xacc] ss:$16 sps:$4 sm:$0xff]   ;;  %v14982_v57 = vld [vmem:[#allocation10 + $0xac0] ss:$16 sps:$4 sm:$0xff]  }
 0x9ef   :  { %v14985_v9 = vld [vmem:[#allocation10 + $0xac8] ss:$16 sps:$4 sm:$0xff]   ;;  %v14993_v17 = vld [vmem:[#allocation10 + $0xaec] ss:$16 sps:$4 sm:$0xff]   ;;  %v14988_v21 = vld [vmem:[#allocation10 + $0xae0] ss:$16 sps:$4 sm:$0xff]  }
 0x9f0   :  { %5205 = vmatprep.mubr.bf16.mxu1 %v4397_v5  ;;  %5311 = vmatprep.mubr.bf16.mxu0 %v4397_v5  ;;  %v14991_v5 = vld [vmem:[#allocation10 + $0xae8] ss:$16 sps:$4 sm:$0xff]  }
 0x9f1   :  { %5206 = vmatmul.mubr.bf16.vlgmr.msra.gmra.mrb[28].mxu1 %v4396_v1  ;;  %5312 = vmatmul.mubr.bf16.vlgmr.msra.gmra.mrb[32].mxu0 %v4396_v1  ;;  %v14990_v1 = vld [vmem:[#allocation10 + $0xae4] ss:$16 sps:$4 sm:$0xff]  }
 0x9f2   :  { %5227 = vmatpush1.bf16.msra.mxu1 %v14946_v54  ;;  %5333 = vmatpush1.bf16.msra.mxu0 %v14949_v61  ;;  %v4334_v13 = vpop.f32.mrb[48].mxu1  ;;  %v4387_v50 = vpop.f32.mrb[52].mxu0  ;;  %v14996_v54 = vld [vmem:[#allocation10 + $0xb04] ss:$16 sps:$4 sm:$0xff]   ;;  %v14999_v61 = vld [vmem:[#allocation10 + $0xb0c] ss:$16 sps:$4 sm:$0xff]  }
 0x9f3   :  { %5228 = vmatprep.subr.bf16.mxu1 %v14954_v16  ;;  %5334 = vmatprep.subr.bf16.mxu0 %v14957_v22  ;;  %v4336_v62 = vpop.f32.mrb[49].mxu1  ;;  %v4389_v3 = vpop.f32.mrb[53].mxu0  ;;  %v14997_v16 = vld [vmem:[#allocation10 + $0xb08] ss:$16 sps:$4 sm:$0xff]   ;;  %v15002_v22 = vld [vmem:[#allocation10 + $0xb24] ss:$16 sps:$4 sm:$0xff]  }
 0x9f4   :  { %v4338_v38 = vpop.f32.mrb[50].mxu1  ;;  %v4391_v36 = vpop.f32.mrb[54].mxu0 }
 0x9f5   :  { %v4400_v20 = vpack.c.bf16 %v4338_v38, %v4334_v13  ;;  %v4340_v34 = vpop.f32.mrb[51].mxu1  ;;  %v17140_v29 = vpack.c.bf16 %v4391_v36, %v4387_v50  ;;  %v4393_v42 = vpop.f32.mrb[55].mxu0  ;;  %v15003_v13 = vld [vmem:[#allocation10 + $0xb28] ss:$16 sps:$4 sm:$0xff]   ;;  %v15008_v50 = vld [vmem:[#allocation10 + $0xb44] ss:$16 sps:$4 sm:$0xff]  }
 0x9f6   :  { %5229 = vmatpush1.bf16.msra.mxu1 %v14952_v4  ;;  %5335 = vmatpush1.bf16.msra.mxu0 %v14955_v19  ;;  %v4401_v28 = vpack.c.bf16 %v4340_v34, %v4336_v62  ;;  %v17142_v52 = vpack.c.bf16 %v4393_v42, %v4389_v3  ;;  %v15005_v4 = vld [vmem:[#allocation10 + $0xb2c] ss:$16 sps:$4 sm:$0xff]   ;;  %v15000_v19 = vld [vmem:[#allocation10 + $0xb20] ss:$16 sps:$4 sm:$0xff]   ;;  %v15009_v62 = vld [vmem:[#allocation10 + $0xb48] ss:$16 sps:$4 sm:$0xff]  }
 0x9f7   :  { %5230 = vmatprep.subr.bf16.mxu1 %v14960_v35  ;;  %5336 = vmatprep.subr.bf16.mxu0 %v14963_v41  ;;  %v15011_v35 = vld [vmem:[#allocation10 + $0xb4c] ss:$16 sps:$4 sm:$0xff]   ;;  %v15006_v41 = vld [vmem:[#allocation10 + $0xb40] ss:$16 sps:$4 sm:$0xff]   ;;  %v15014_v3 = vld [vmem:[#allocation10 + $0xb64] ss:$16 sps:$4 sm:$0xff]  }
 0x9f8   :  { %5215 = vmatprep.mubr.bf16.mxu1 %v4401_v28  ;;  %5321 = vmatprep.mubr.bf16.mxu0 %v4401_v28  ;;  %v15017_v38 = vld [vmem:[#allocation10 + $0xb6c] ss:$16 sps:$4 sm:$0xff]   ;;  %v15012_v36 = vld [vmem:[#allocation10 + $0xb60] ss:$16 sps:$4 sm:$0xff]   ;;  %v15020_v34 = vld [vmem:[#allocation10 + $0xb84] ss:$16 sps:$4 sm:$0xff]  }
 0x9f9   :  { %5216 = vmatmul.mubr.bf16.gmra.mrb[32].mxu1 %v4400_v20  ;;  %5322 = vmatmul.mubr.bf16.gmra.mrb[36].mxu0 %v4400_v20  ;;  %v15015_v20 = vld [vmem:[#allocation10 + $0xb68] ss:$16 sps:$4 sm:$0xff]   ;;  %v15023_v42 = vld [vmem:[#allocation10 + $0xb8c] ss:$16 sps:$4 sm:$0xff]   ;;  %v15026_v28 = vld [vmem:[#allocation10 + $0xba4] ss:$16 sps:$4 sm:$0xff]  }
 0x9fa   :  { %5231 = vmatpush1.bf16.msra.mxu1 %v14958_v56  ;;  %5337 = vmatpush1.bf16.msra.mxu0 %v14961_v32  ;;  %v15018_v56 = vld [vmem:[#allocation10 + $0xb80] ss:$16 sps:$4 sm:$0xff]   ;;  %v15021_v32 = vld [vmem:[#allocation10 + $0xb88] ss:$16 sps:$4 sm:$0xff]  }
 0x9fb   :  { %5232 = vmatprep.subr.bf16.mxu1 %v14966_v10  ;;  %5338 = vmatprep.subr.bf16.mxu0 %v14969_v46  ;;  %v15029_v10 = vld [vmem:[#allocation10 + $0xbac] ss:$16 sps:$4 sm:$0xff]   ;;  %v15024_v46 = vld [vmem:[#allocation10 + $0xba0] ss:$16 sps:$4 sm:$0xff]  }
 0x9fc   :  { %5258 = vmatprep.mubr.bf16.mxu1 %v4399_v49  ;;  %5364 = vmatprep.mubr.bf16.mxu0 %v4399_v49  ;;  %v14994_v49 = vld [vmem:[#allocation10 + $0xb00] ss:$16 sps:$4 sm:$0xff]  }
 0x9fe   :  { %5233 = vmatpush1.bf16.msra.mxu1 %v14964_v53  ;;  %5339 = vmatpush1.bf16.msra.mxu0 %v14967_v7  ;;  %v15027_v53 = vld [vmem:[#allocation10 + $0xba8] ss:$16 sps:$4 sm:$0xff]   ;;  %v15032_v7 = vld [vmem:[#allocation10 + $0xbc4] ss:$16 sps:$4 sm:$0xff]  }
 0x9ff   :  { %5234 = vmatprep.subr.bf16.mxu1 %v14972_v45  ;;  %5340 = vmatprep.subr.bf16.mxu0 %v14975_v6  ;;  %v15035_v45 = vld [vmem:[#allocation10 + $0xbcc] ss:$16 sps:$4 sm:$0xff]   ;;  %v15030_v6 = vld [vmem:[#allocation10 + $0xbc0] ss:$16 sps:$4 sm:$0xff]  }
 0xa02   :  { %5235 = vmatpush1.bf16.msra.mxu1 %v14970_v2  ;;  %5341 = vmatpush1.bf16.msra.mxu0 %v14973_v58  ;;  %v15033_v2 = vld [vmem:[#allocation10 + $0xbc8] ss:$16 sps:$4 sm:$0xff]   ;;  %v15038_v58 = vld [vmem:[#allocation10 + $0xbe4] ss:$16 sps:$4 sm:$0xff]  }
 0xa03   :  { %5236 = vmatprep.subr.bf16.mxu1 %v14978_v11  ;;  %5342 = vmatprep.subr.bf16.mxu0 %v14981_v40  ;;  %v15041_v11 = vld [vmem:[#allocation10 + $0xbec] ss:$16 sps:$4 sm:$0xff]   ;;  %v15036_v40 = vld [vmem:[#allocation10 + $0xbe0] ss:$16 sps:$4 sm:$0xff]  }
 0xa06   :  { %5237 = vmatpush1.bf16.msra.mxu1 %v14976_v25  ;;  %5343 = vmatpush1.bf16.msra.mxu0 %v14979_v8  ;;  %v15039_v25 = vld [vmem:[#allocation10 + $0xbe8] ss:$16 sps:$4 sm:$0xff]  }
 0xa07   :  { %5238 = vmatprep.subr.bf16.mxu1 %v14984_v0  ;;  %5344 = vmatprep.subr.bf16.mxu0 %v14987_v15  ;;  %v18471_v8 = vld [vmem:[#allocation33_spill] sm:$0xff]  ;;  %v18472_v0 = vld [vmem:[#allocation34_spill] sm:$0xff] }
 0xa08   :  { %v18476_v15 = vld [vmem:[#allocation38_spill] sm:$0xff] }
 0xa0a   :  { %5239 = vmatpush1.bf16.msra.mxu1 %v14982_v57  ;;  %5345 = vmatpush1.bf16.msra.mxu0 %v14985_v9  ;;  %v18477_v57 = vld [vmem:[#allocation39_spill] sm:$0xff]  ;;  %v18478_v9 = vld [vmem:[#allocation40_spill] sm:$0xff] }
 0xa0b   :  { %5240 = vmatprep.subr.bf16.mxu1 %v14990_v1  ;;  %5346 = vmatprep.subr.bf16.mxu0 %v14993_v17  ;;  %v18479_v1 = vld [vmem:[#allocation41_spill] sm:$0xff]  ;;  %v18480_v17 = vld [vmem:[#allocation42_spill] sm:$0xff] }
 0xa0e   :  { %5241 = vmatpush1.bf16.msra.mxu1 %v14988_v21  ;;  %5347 = vmatpush1.bf16.msra.mxu0 %v14991_v5  ;;  %v18481_v21 = vld [vmem:[#allocation43_spill] sm:$0xff]  ;;  %v18482_v5 = vld [vmem:[#allocation44_spill] sm:$0xff] }
 0xa0f   :  { %5242 = vmatprep.subr.bf16.mxu1 %v14996_v54  ;;  %5348 = vmatprep.subr.bf16.mxu0 %v14999_v61  ;;  %v18483_v54 = vld [vmem:[#allocation45_spill] sm:$0xff]  ;;  %v18484_v61 = vld [vmem:[#allocation46_spill] sm:$0xff] }
 0xa12   :  { %5243 = vmatpush1.bf16.msra.mxu1 %v14994_v49  ;;  %5349 = vmatpush1.bf16.msra.mxu0 %v14997_v16  ;;  %v2043_v49 = vld [vmem:[#allocation12] sm:$0xf] }
 0xa13   :  { %5244 = vmatprep.subr.bf16.mxu1 %v15002_v22  ;;  %5350 = vmatprep.subr.bf16.mxu0 %v15005_v4  ;;  %v17185_v16 = vrot.slane %v2043_v49, %v18452_v44  ;;  %v18485_v22 = vld [vmem:[#allocation48_spill] sm:$0xff] }
 0xa14   :  { %v17188_v4 = vrot.slane %v2043_v49, %v18485_v22 }
 0xa16   :  { %5245 = vmatpush1.bf16.msra.mxu1 %v15000_v19  ;;  %5351 = vmatpush1.bf16.msra.mxu0 %v15003_v13  ;;  %v18486_v19 = vld [vmem:[#allocation49_spill] sm:$0xff] }
 0xa17   :  { %5246 = vmatprep.subr.bf16.mxu1 %v15008_v50  ;;  %5352 = vmatprep.subr.bf16.mxu0 %v15011_v35  ;;  %v17191_v13 = vrot.slane %v2043_v49, %v18486_v19 }
 0xa1a   :  { %5247 = vmatpush1.bf16.msra.mxu1 %v15006_v41  ;;  %5353 = vmatpush1.bf16.msra.mxu0 %v15009_v62 }
 0xa1b   :  { %5248 = vmatprep.subr.bf16.mxu1 %v15014_v3  ;;  %5354 = vmatprep.subr.bf16.mxu0 %v15017_v38  ;;  %v18487_v38 = vld [vmem:[#allocation50_spill] sm:$0xff] }
 0xa1e   :  { %5249 = vmatpush1.bf16.msra.mxu1 %v15012_v36  ;;  %5355 = vmatpush1.bf16.msra.mxu0 %v15015_v20  ;;  %v17195_v36 = vrot.slane %v2043_v49, %v18487_v38 }
 0xa1f   :  { %5250 = vmatprep.subr.bf16.mxu1 %v15020_v34  ;;  %5356 = vmatprep.subr.bf16.mxu0 %v15023_v42 }
 0xa22   :  { %5251 = vmatpush1.bf16.msra.mxu1 %v15018_v56  ;;  %5357 = vmatpush1.bf16.msra.mxu0 %v15021_v32 }
 0xa23   :  { %5252 = vmatprep.subr.bf16.mxu1 %v15026_v28  ;;  %5358 = vmatprep.subr.bf16.mxu0 %v15029_v10 }
 0xa26   :  { %5253 = vmatpush1.bf16.msra.mxu1 %v15024_v46  ;;  %5359 = vmatpush1.bf16.msra.mxu0 %v15027_v53 }
 0xa27   :  { %5254 = vmatprep.subr.bf16.mxu1 %v15032_v7  ;;  %5360 = vmatprep.subr.bf16.mxu0 %v15035_v45 }
 0xa2a   :  { %5255 = vmatpush1.bf16.msra.mxu1 %v15030_v6  ;;  %5361 = vmatpush1.bf16.msra.mxu0 %v15033_v2 }
 0xa2b   :  { %5256 = vmatprep.subr.bf16.mxu1 %v15038_v58  ;;  %5362 = vmatprep.subr.bf16.mxu0 %v15041_v11 }
 0xa2e   :  { %5257 = vmatpush1.bf16.msra.mxu1 %v15036_v40  ;;  %5363 = vmatpush1.bf16.msra.mxu0 %v15039_v25 }
 0xa2f   :  { %13824 = vmatprep.subr.bf16.mxu1 %v18471_v8  ;;  %13856 = vmatprep.subr.bf16.mxu0 %v18472_v0 }
 0xa31   :  { %5259 = vmatmul.mubr.bf16.vlgmr.msra.gmra.mrb[28].mxu1 %v17138_v30  ;;  %5365 = vmatmul.mubr.bf16.vlgmr.msra.gmra.mrb[32].mxu0 %v17138_v30  ;;  %v18473_v30 = vld [vmem:[#allocation35_spill] sm:$0xff] }
 0xa32   :  { %5268 = vmatprep.mubr.bf16.mxu1 %v17142_v52  ;;  %5374 = vmatprep.mubr.bf16.mxu0 %v17142_v52  ;;  %v18475_v52 = vld [vmem:[#allocation37_spill] sm:$0xff] }
 0xa33   :  { %13826 = vmatpush3.bf16.msra.mxu1 %v16494_v12  ;;  %13858 = vmatpush3.bf16.msra.mxu0 %v16499_v14 }
 0xa34   :  { %13828 = vmatprep.subr.bf16.mxu1 %v16512_v18  ;;  %13860 = vmatprep.subr.bf16.mxu0 %v16523_v23 }
 0xa37   :  { %13830 = vmatpush3.bf16.msra.mxu1 %v16525_v24  ;;  %13862 = vmatpush3.bf16.msra.mxu0 %v16534_v27 }
 0xa38   :  { %13832 = vmatprep.subr.bf16.mxu1 %v16548_v31  ;;  %13864 = vmatprep.subr.bf16.mxu0 %v16553_v33 }
 0xa39   :  { %5269 = vmatmul.mubr.bf16.gmra.mrb[32].mxu1 %v17140_v29  ;;  %5375 = vmatmul.mubr.bf16.gmra.mrb[36].mxu0 %v17140_v29  ;;  %v18474_v29 = vld [vmem:[#allocation36_spill] sm:$0xff] }
 0xa3b   :  { %13834 = vmatpush3.bf16.msra.mxu1 %v16566_v37  ;;  %13866 = vmatpush3.bf16.msra.mxu0 %v16571_v39 }
 0xa3c   :  { %13836 = vmatprep.subr.bf16.mxu1 %v16584_v43  ;;  %13868 = vmatprep.subr.bf16.mxu0 %v16595_v47 }
 0xa3f   :  { %13838 = vmatpush3.bf16.msra.mxu1 %v16597_v48  ;;  %13870 = vmatpush3.bf16.msra.mxu0 %v16606_v51 }
 0xa40   :  { %13840 = vmatprep.subr.bf16.mxu1 %v16620_v55  ;;  %13872 = vmatprep.subr.bf16.mxu0 %v16631_v59 }
 0xa43   :  { %13842 = vmatpush3.bf16.msra.mxu1 %v16633_v60  ;;  %13874 = vmatpush3.bf16.msra.mxu0 %v16642_v63 }
 0xa44   :  { %13844 = vmatprep.subr.bf16.mxu1 %v18473_v30  ;;  %13876 = vmatprep.subr.bf16.mxu0 %v18474_v29 }
 0xa47   :  { %13846 = vmatpush3.bf16.msra.mxu1 %v18475_v52  ;;  %13878 = vmatpush3.bf16.msra.mxu0 %v18476_v15 }
 0xa48   :  { %13848 = vmatprep.subr.bf16.mxu1 %v18477_v57  ;;  %13880 = vmatprep.subr.bf16.mxu0 %v18478_v9 }
 0xa4b   :  { %13850 = vmatpush3.bf16.msra.mxu1 %v18479_v1  ;;  %13882 = vmatpush3.bf16.msra.mxu0 %v18480_v17 }
 0xa4c   :  { %13852 = vmatprep.subr.bf16.mxu1 %v18481_v21  ;;  %13884 = vmatprep.subr.bf16.mxu0 %v18482_v5 }
 0xa4f   :  { %13854 = vmatpush3.bf16.msra.mxu1 %v18483_v54  ;;  %13886 = vmatpush3.bf16.msra.mxu0 %v18484_v61 }
 0xa50   :  { %13888 = vmatprep.subr.bf16.mxu1 %v18471_v8  ;;  %13920 = vmatprep.subr.bf16.mxu0 %v18472_v0 }
 0xb04   :  { %v5260_v50 = vpop.f32.mrb[28].mxu1  ;;  %v5366_v35 = vpop.f32.mrb[32].mxu0 }
 0xb05   :  { %v5262_v41 = vpop.f32.mrb[29].mxu1  ;;  %v5368_v62 = vpop.f32.mrb[33].mxu0  ;;  %v14159_v3 = vadd.f32 %v5260_v50, %v17185_v16  ;;  %v14167_v7 = vadd.f32 %v5366_v35, %v17195_v36 }
 0xb06   :  { %v5264_v20 = vpop.f32.mrb[30].mxu1  ;;  %v5370_v34 = vpop.f32.mrb[34].mxu0  ;;  %v14160_v42 = vadd.f32 %v5262_v41, %v17188_v4  ;;  %v14168_v56 = vadd.f32 %v5368_v62, %v17191_v13 }
 0xb07   :  { %v14161_v32 = vadd.f32 %v5264_v20, %v17185_v16  ;;  %v14169_v28 = vadd.f32 %v5370_v34, %v17195_v36  ;;  %v5266_v10 = vpop.f32.mrb[31].mxu1  ;;  %v5372_v46 = vpop.f32.mrb[35].mxu0  ;;  %vm5401_vm3 = vcmp.ge.f32.partialorder %v14159_v3, 0.0  ;;  %v5417_v53 = vmul.f32 0.01, %v14159_v3 }
 0xb08   :  { %vm5402_vm4 = vcmp.ge.f32.partialorder %v14160_v42, 0.0  ;;  %v5418_v45 = vmul.f32 0.01, %v14160_v42  ;;  %vm5404_vm5 = vcmp.ge.f32.partialorder %v14168_v56, 0.0  ;;  %v5420_v6 = vmul.f32 0.01, %v14168_v56 }
 0xb09   :  { %v5421_v2 = vmul.f32 0.01, %v14161_v32  ;;  %v5423_v58 = vmul.f32 0.01, %v14169_v28  ;;  %v14162_v11 = vadd.f32 %v5266_v10, %v17188_v4  ;;  %v14170_v40 = vadd.f32 %v5372_v46, %v17191_v13 }
 0xb0a   :  { %vm5405_vm6 = vcmp.ge.f32.partialorder %v14161_v32, 0.0  ;;  %vm5407_vm7 = vcmp.ge.f32.partialorder %v14169_v28, 0.0  ;;  %vm5403_vm8 = vcmp.ge.f32.partialorder %v14167_v7, 0.0  ;;  %v5419_v20 = vmul.f32 0.01, %v14167_v7 }
 0xb0b   :  { %vm5406_vm9 = vcmp.ge.f32.partialorder %v14162_v11, 0.0  ;;  %v17207_v8 = vsel %vm5402_vm4, %v14160_v42, %v5418_v45  ;;  %v17210_v10 = vsel %vm5404_vm5, %v14168_v56, %v5420_v6  ;;  %v5422_v46 = vmul.f32 0.01, %v14162_v11 }
 0xb0c   :  { %v5270_v25 = vpop.f32.mrb[32].mxu1  ;;  %v5376_v49 = vpop.f32.mrb[36].mxu0  ;;  %18488 = vst [vmem:[#allocation56_spill] sm:$0xff] %v17207_v8  ;;  %18489 = vst [vmem:[#allocation53_spill] sm:$0xff] %v17210_v10  ;;  %vm5408_vm10 = vcmp.ge.f32.partialorder %v14170_v40, 0.0  ;;  %v17221_v45 = vsel %vm5401_vm3, %v14159_v3, %v5417_v53  ;;  %v17224_v56 = vsel %vm5403_vm8, %v14167_v7, %v5419_v20 }
 0xb0d   :  { %v14163_v50 = vadd.f32 %v5270_v25, %v17185_v16  ;;  %v14171_v41 = vadd.f32 %v5376_v49, %v17195_v36  ;;  %v5272_v62 = vpop.f32.mrb[33].mxu1  ;;  %v5378_v35 = vpop.f32.mrb[37].mxu0  ;;  %v17213_v25 = vsel %vm5405_vm6, %v14161_v32, %v5421_v2  ;;  %v17216_v49 = vsel %vm5407_vm7, %v14169_v28, %v5423_v58  ;;  %18493 = vst [vmem:[#allocation60_spill] sm:$0xff] %v17221_v45 }
 0xb0e   :  { %v5274_v34 = vpop.f32.mrb[34].mxu1  ;;  %v5380_v0 = vpop.f32.mrb[38].mxu0  ;;  %18490 = vst [vmem:[#allocation59_spill] sm:$0xff] %v17213_v25  ;;  %18491 = vst [vmem:[#allocation57_spill] sm:$0xff] %v17216_v49  ;;  %v5424_v22 = vmul.f32 0.01, %v14170_v40  ;;  %v17218_v26 = vsel %vm5406_vm9, %v14162_v11, %v5422_v46  ;;  %v5490_v32 = vmul.f32 %v17207_v8, %v17207_v8  ;;  %v5492_v28 = vmul.f32 %v17210_v10, %v17210_v10 }
 0xb0f   :  { %v5276_v19 = vpop.f32.mrb[35].mxu1  ;;  %v5382_v38 = vpop.f32.mrb[39].mxu0  ;;  %v5425_v44 = vmul.f32 0.01, %v14163_v50  ;;  %18492 = vst [vmem:[#allocation54_spill] sm:$0xff] %v17218_v26  ;;  %vm5409_vm11 = vcmp.ge.f32.partialorder %v14163_v50, 0.0  ;;  %v5449_v2 = vadd.f32 %v17213_v25, %v17221_v45  ;;  %v5467_v58 = vadd.f32 %v17216_v49, %v17224_v56 }
 0xb10   :  { %v5427_v42 = vmul.f32 0.01, %v14171_v41  ;;  %18494 = vst [vmem:[#allocation51_spill] sm:$0xff] %v17224_v56  ;;  %v17226_v6 = vsel %vm5408_vm10, %v14170_v40, %v5424_v22  ;;  %vm5411_vm12 = vcmp.ge.f32.partialorder %v14171_v41, 0.0  ;;  %v5494_v3 = vmul.f32 %v17218_v26, %v17218_v26 }
 0xb11   :  { %18495 = vst [vmem:[#allocation55_spill] sm:$0xff] %v17226_v6  ;;  %v17238_v53 = vsel %vm5409_vm11, %v14163_v50, %v5425_v44  ;;  %v14164_v22 = vadd.f32 %v5272_v62, %v17188_v4  ;;  %v14172_v7 = vadd.f32 %v5378_v35, %v17191_v13  ;;  %v5458_v11 = vadd.f32 %v17218_v26, %v17207_v8 }
 0xb12   :  { %18496 = vst [vmem:[#allocation61_spill] sm:$0xff] %v17238_v53  ;;  %v5476_v40 = vadd.f32 %v17226_v6, %v17210_v10  ;;  %v5496_v20 = vmul.f32 %v17226_v6, %v17226_v6  ;;  %v17248_v46 = vsel %vm5411_vm12, %v14171_v41, %v5427_v42  ;;  %v5450_v50 = vadd.f32 %v5449_v2, %v17238_v53 }
 0xb13   :  { %18497 = vst [vmem:[#allocation63_spill] sm:$0xff] %v17248_v46  ;;  %vm5410_vm13 = vcmp.ge.f32.partialorder %v14164_v22, 0.0  ;;  %v5426_v61 = vmul.f32 0.01, %v14164_v22  ;;  %vm5412_vm14 = vcmp.ge.f32.partialorder %v14172_v7, 0.0  ;;  %v14165_v62 = vadd.f32 %v5274_v34, %v17185_v16 }
 0xb14   :  { %v5428_v44 = vmul.f32 0.01, %v14172_v7  ;;  %v14173_v35 = vadd.f32 %v5380_v0, %v17195_v36  ;;  %v14166_v26 = vadd.f32 %v5276_v19, %v17188_v4  ;;  %v5514_v8 = vadd.f32 %v5494_v3, %v5490_v32 }
 0xb15   :  { %v17254_v54 = vsel %vm5410_vm13, %v14164_v22, %v5426_v61  ;;  %v14174_v41 = vadd.f32 %v5382_v38, %v17191_v13  ;;  %v5532_v42 = vadd.f32 %v5496_v20, %v5492_v28  ;;  %v5468_v6 = vadd.f32 %v5467_v58, %v17248_v46 }
 0xb16   :  { %18498 = vst [vmem:[#allocation52_spill] sm:$0xff] %v17254_v54  ;;  %v17256_v10 = vsel %vm5412_vm14, %v14172_v7, %v5428_v44  ;;  %v5498_v5 = vmul.f32 %v17254_v54, %v17254_v54  ;;  %vm5413_vm15 = vcmp.ge.f32.partialorder %v14165_v62, 0.0  ;;  %v5429_v0 = vmul.f32 0.01, %v14165_v62 }
 0xb17   :  { %18499 = vst [vmem:[#allocation58_spill] sm:$0xff] %v17256_v10  ;;  %v5500_v16 = vmul.f32 %v17256_v10, %v17256_v10  ;;  %vm5415_vm1 = vcmp.ge.f32.partialorder %v14173_v35, 0.0  ;;  %v5431_v4 = vmul.f32 0.01, %v14173_v35  ;;  %v5459_v61 = vadd.f32 %v5458_v11, %v17254_v54 }
 0xb18   :  { %v5477_v19 = vadd.f32 %v5476_v40, %v17256_v10  ;;  %vm5414_vm2 = vcmp.ge.f32.partialorder %v14166_v26, 0.0  ;;  %v5430_v36 = vmul.f32 0.01, %v14166_v26  ;;  %v17266_v13 = vsel %vm5413_vm15, %v14165_v62, %v5429_v0 }
 0xb19   :  { %v17268_v38 = vsel %vm5415_vm1, %v14173_v35, %v5431_v4  ;;  %vm5416_vm3 = vcmp.ge.f32.partialorder %v14174_v41, 0.0  ;;  %v5432_v34 = vmul.f32 0.01, %v14174_v41  ;;  %v5451_v32 = vadd.f32 %v5450_v50, %v17266_v13 }
 0xb1a   :  { %v5469_v28 = vadd.f32 %v5468_v6, %v17268_v38  ;;  %v5515_v2 = vadd.f32 %v5514_v8, %v5498_v5  ;;  %v5533_v58 = vadd.f32 %v5532_v42, %v5500_v16  ;;  %v17272_v3 = vsel %vm5414_vm2, %v14166_v26, %v5430_v36 }
 0xb1b   :  { %18500 = vst [vmem:[#allocation62_spill] sm:$0xff] %v17272_v3  ;;  %v17274_v22 = vsel %vm5416_vm3, %v14174_v41, %v5432_v34  ;;  %v5452_v7 = vrot.slane %v5451_v32, 4  ;;  %v5460_v40 = vadd.f32 %v5459_v61, %v17272_v3  ;;  %v5502_v20 = vmul.f32 %v17272_v3, %v17272_v3 }
 0xb1c   :  { %18501 = vst [vmem:[#allocation64_spill] sm:$0xff] %v17274_v22  ;;  %v5470_v11 = vrot.slane %v5469_v28, 4  ;;  %v5478_v44 = vadd.f32 %v5477_v19, %v17274_v22  ;;  %v5504_v50 = vmul.f32 %v17274_v22, %v17274_v22 }
 0xb1d   :  { %v5453_v62 = vadd.f32 %v5452_v7, %v5451_v32  ;;  %v5461_v8 = vrot.slane %v5460_v40, 4  ;;  %v5516_v5 = vadd.f32 %v5515_v2, %v5502_v20  ;;  %v5493_v32 = vmul.f32 %v17213_v25, %v17213_v25 }
 0xb1e   :  { %v5471_v6 = vadd.f32 %v5470_v11, %v5469_v28  ;;  %v5479_v26 = vrot.slane %v5478_v44, 4  ;;  %v5534_v35 = vadd.f32 %v5533_v58, %v5504_v50  ;;  %v5495_v28 = vmul.f32 %v17216_v49, %v17216_v49 }
 0xb1f   :  { %v5454_v41 = vrot.slane %v5453_v62, 2  ;;  %v5462_v16 = vadd.f32 %v5461_v8, %v5460_v40  ;;  %v5517_v4 = vrot.slane %v5516_v5, 4  ;;  %v5491_v50 = vmul.f32 %v17224_v56, %v17224_v56 }
 0xb20   :  { %v5472_v42 = vrot.slane %v5471_v6, 2  ;;  %v5480_v0 = vadd.f32 %v5479_v26, %v5478_v44  ;;  %v5535_v61 = vrot.slane %v5534_v35, 4  ;;  %v5489_v44 = vmul.f32 %v17221_v45, %v17221_v45 }
 0xb21   :  { %v5455_v36 = vadd.f32 %v5454_v41, %v5453_v62  ;;  %v5463_v10 = vrot.slane %v5462_v16, 2  ;;  %v5518_v19 = vadd.f32 %v5517_v4, %v5516_v5  ;;  %v5497_v62 = vmul.f32 %v17238_v53, %v17238_v53 }
 0xb22   :  { %v5473_v34 = vadd.f32 %v5472_v42, %v5471_v6  ;;  %v5481_v3 = vrot.slane %v5480_v0, 2  ;;  %v5536_v54 = vadd.f32 %v5535_v61, %v5534_v35  ;;  %v5499_v6 = vmul.f32 %v17248_v46, %v17248_v46 }
 0xb23   :  { %v5456_v2 = vrot.slane %v5455_v36, 1  ;;  %v5464_v7 = vadd.f32 %v5463_v10, %v5462_v16  ;;  %v5519_v40 = vrot.slane %v5518_v19, 2  ;;  %v5505_v10 = vadd.f32 %v5493_v32, %v5489_v44 }
 0xb24   :  { %v5474_v58 = vrot.slane %v5473_v34, 1  ;;  %v5482_v11 = vadd.f32 %v5481_v3, %v5480_v0  ;;  %v5537_v20 = vrot.slane %v5536_v54, 2  ;;  %v5523_v3 = vadd.f32 %v5495_v28, %v5491_v50  ;;  %v18503_v50 = vld [vmem:[#allocation45_spill] sm:$0xff] }
 0xb25   :  { %v5465_v8 = vrot.slane %v5464_v7, 1  ;;  %v5520_v26 = vadd.f32 %v5519_v40, %v5518_v19  ;;  %v5457_v41 = vadd.f32 %v5456_v2, %v5455_v36  ;;  %v5506_v22 = vadd.f32 %v5505_v10, %v5497_v62  ;;  %v18502_v40 = vld [vmem:[#allocation44_spill] sm:$0xff]  ;;  %v18504_v62 = vld [vmem:[#allocation46_spill] sm:$0xff] }
 0xb26   :  { %v5483_v5 = vrot.slane %v5482_v11, 1  ;;  %v5538_v35 = vadd.f32 %v5537_v20, %v5536_v54  ;;  %v5475_v42 = vadd.f32 %v5474_v58, %v5473_v34  ;;  %v5524_v49 = vadd.f32 %v5523_v3, %v5499_v6  ;;  %v18508_v10 = vld [vmem:[#allocation68_spill] sm:$0xff]  ;;  %v18509_v3 = vld [vmem:[#allocation69_spill] sm:$0xff] }
 0xb27   :  { %v5466_v16 = vadd.f32 %v5465_v8, %v5464_v7  ;;  %v5521_v4 = vrot.slane %v5520_v26, 1  ;;  %v5501_v46 = vmul.f32 %v17266_v13, %v17266_v13  ;;  %v5503_v54 = vmul.f32 %v17268_v38, %v17268_v38 }
 0xb28   :  { %v5484_v0 = vadd.f32 %v5483_v5, %v5482_v11  ;;  %v5539_v61 = vrot.slane %v5538_v35, 1  ;;  %v5485_v19 = vmul.f32 0.03125, %v5457_v41  ;;  %v5487_v32 = vmul.f32 0.03125, %v5475_v42  ;;  %v18505_v5 = vld [vmem:[#allocation65_spill] sm:$0xff]  ;;  %v18510_v41 = vld [vmem:[#allocation70_spill] sm:$0xff] }
 0xb29   :  { %v5486_v56 = vmul.f32 0.03125, %v5466_v16  ;;  %v5522_v53 = vadd.f32 %v5521_v4, %v5520_v26  ;;  %v5507_v28 = vadd.f32 %v5506_v22, %v5501_v46  ;;  %v5525_v2 = vadd.f32 %v5524_v49, %v5503_v54  ;;  %v18506_v26 = vld [vmem:[#allocation66_spill] sm:$0xff]  ;;  %v18512_v16 = vld [vmem:[#allocation71_spill] sm:$0xff] }
 0xb2a   :  { %v5488_v25 = vmul.f32 0.03125, %v5484_v0  ;;  %v5540_v45 = vadd.f32 %v5539_v61, %v5538_v35  ;;  %v18507_v35 = vld [vmem:[#allocation67_spill] sm:$0xff]  ;;  %v18511_v42 = vmov 0.0   ;;  %v18513_v0 = vld [vmem:[#allocation72_spill] sm:$0xff] }
 0xb2b   :  { %5609 = vmatprep.mubr.f32.mxu1 %v5486_v56  ;;  %v5542_v36 = vmul.f32 0.03125, %v5522_v53 }
 0xb2c   :  { %5679 = vmatprep.mubr.f32.mxu0 %v5488_v25  ;;  %v5544_v34 = vmul.f32 0.03125, %v5540_v45  ;;  %5610 = vmatmul.mubr.f32.vlgmr.msra.gmra.mrb[52].mxu1 %v5485_v19  ;;  %v5508_v25 = vrot.slane %v5507_v28, 4  ;;  %v5526_v45 = vrot.slane %v5525_v2, 4 }
 0xb2d   :  { %5680 = vmatmul.mubr.f32.vlgmr.msra.gmra.mrb[56].mxu0 %v5487_v32  ;;  %13890 = vmatpush3.bf16.msra.mxu1 %v16494_v12 }
 0xb2e   :  { %13922 = vmatpush3.bf16.msra.mxu0 %v16499_v14  ;;  %5749 = vmatprep.mubr.f32.mxu1 %v5542_v36  ;;  %v5509_v49 = vadd.f32 %v5508_v25, %v5507_v28  ;;  %v5527_v56 = vadd.f32 %v5526_v45, %v5525_v2 }
 0xb2f   :  { %5819 = vmatprep.mubr.f32.mxu0 %v5544_v34  ;;  %13892 = vmatprep.subr.bf16.mxu1 %v16512_v18 }
 0xb30   :  { %13924 = vmatprep.subr.bf16.mxu0 %v16523_v23  ;;  %v5510_v53 = vrot.slane %v5509_v49, 2  ;;  %v5528_v46 = vrot.slane %v5527_v56, 2 }
 0xb31   :  { %13894 = vmatpush3.bf16.msra.mxu1 %v16525_v24 }
 0xb32   :  { %13926 = vmatpush3.bf16.msra.mxu0 %v16534_v27  ;;  %13896 = vmatprep.subr.bf16.mxu1 %v16548_v31  ;;  %v5511_v22 = vadd.f32 %v5510_v53, %v5509_v49  ;;  %v5529_v58 = vadd.f32 %v5528_v46, %v5527_v56 }
 0xb33   :  { %13928 = vmatprep.subr.bf16.mxu0 %v16553_v33 }
 0xb34   :  { %v5512_v7 = vrot.slane %v5511_v22, 1  ;;  %v5530_v11 = vrot.slane %v5529_v58, 1 }
 0xb35   :  { %13898 = vmatpush3.bf16.msra.mxu1 %v16566_v37 }
 0xb36   :  { %13930 = vmatpush3.bf16.msra.mxu0 %v16571_v39  ;;  %13900 = vmatprep.subr.bf16.mxu1 %v16584_v43  ;;  %v5513_v20 = vadd.f32 %v5512_v7, %v5511_v22  ;;  %v5531_v44 = vadd.f32 %v5530_v11, %v5529_v58  ;;  %v18514_v58 = vmov 0  }
 0xb37   :  { %13932 = vmatprep.subr.bf16.mxu0 %v16595_v47 }
 0xb38   :  { %v5541_v6 = vmul.f32 0.03125, %v5513_v20  ;;  %v5543_v8 = vmul.f32 0.03125, %v5531_v44 }
 0xb39   :  { %13902 = vmatpush3.bf16.msra.mxu1 %v16597_v48 }
 0xb3a   :  { %13934 = vmatpush3.bf16.msra.mxu0 %v16606_v51  ;;  %13904 = vmatprep.subr.bf16.mxu1 %v16620_v55 }
 0xb3b   :  { %13936 = vmatprep.subr.bf16.mxu0 %v16631_v59 }
 0xb3d   :  { %13906 = vmatpush3.bf16.msra.mxu1 %v16633_v60 }
 0xb3e   :  { %13938 = vmatpush3.bf16.msra.mxu0 %v16642_v63  ;;  %13908 = vmatprep.subr.bf16.mxu1 %v18473_v30 }
 0xb3f   :  { %13940 = vmatprep.subr.bf16.mxu0 %v18474_v29 }
 0xb41   :  { %13910 = vmatpush3.bf16.msra.mxu1 %v18475_v52 }
 0xb42   :  { %13942 = vmatpush3.bf16.msra.mxu0 %v18476_v15  ;;  %13912 = vmatprep.subr.bf16.mxu1 %v18477_v57 }
 0xb43   :  { %13944 = vmatprep.subr.bf16.mxu0 %v18478_v9 }
 0xb45   :  { %13914 = vmatpush3.bf16.msra.mxu1 %v18479_v1 }
 0xb46   :  { %13946 = vmatpush3.bf16.msra.mxu0 %v18480_v17  ;;  %13916 = vmatprep.subr.bf16.mxu1 %v18481_v21 }
 0xb47   :  { %13948 = vmatprep.subr.bf16.mxu0 %v18502_v40 }
 0xb49   :  { %13918 = vmatpush3.bf16.msra.mxu1 %v18503_v50 }
 0xb4a   :  { %13950 = vmatpush3.bf16.msra.mxu0 %v18504_v62  ;;  %13952 = vmatprep.subr.bf16.mxu1 %v18505_v5 }
 0xb4b   :  { %13960 = vmatprep.subr.bf16.mxu0 %v18506_v26 }
 0xb4c   :  { %5750 = vmatmul.mubr.f32.vlgmr.msra.gmra.mrb[54].mxu1 %v5541_v6 }
 0xb4d   :  { %5820 = vmatmul.mubr.f32.vlgmr.msra.gmra.mrb[58].mxu0 %v5543_v8  ;;  %13954 = vmatpush1.bf16.msra.mxu1 %v18507_v35 }
 0xb4e   :  { %13962 = vmatpush1.bf16.msra.mxu0 %v18508_v10  ;;  %13956 = vmatprep.subr.bf16.mxu1 %v18509_v3 }
 0xb4f   :  { %13964 = vmatprep.subr.bf16.mxu0 %v18510_v41  ;;  %5894 = vmatprep.mubr.f32.mxu1 %v18511_v42 }
 0xb50   :  { %5965 = vmatprep.mubr.f32.mxu0 %v18511_v42 }
 0xb51   :  { %13958 = vmatpush1.bf16.msra.mxu1 %v18512_v16 }
 0xb52   :  { %13966 = vmatpush1.bf16.msra.mxu0 %v18513_v0  ;;  %13968 = vmatprep.subr.bf16.mxu1 %v18505_v5 }
 0xb53   :  { %13976 = vmatprep.subr.bf16.mxu0 %v18506_v26  ;;  %v18530_v26 = vld [vmem:[#allocation55_spill] sm:$0xff] }
 0xbff   :  { %v13223_v4 = vpop.f32.mrb[52].mxu1 }
 0xc00   :  { %v13258_v61 = vpop.f32.mrb[56].mxu0  ;;  %v13224_v54 = vpop.f32.mrb[53].mxu1 }
 0xc01   :  { %v13259_v19 = vpop.f32.mrb[57].mxu0  ;;  %v13225_v32 = vadd.f32 %v13224_v54, %v13223_v4 }
 0xc02   :  { %v13260_v36 = vadd.f32 %v13259_v19, %v13258_v61 }
 0xc04   :  { %v5682_v34 = vadd.f32 %v13260_v36, %v13225_v32 }
 0xc06   :  { %12398 = vmatmul.mubr.msk.f32.vlgmr.msra.gmra.mrb[56].mxu1 %vm289_vm0, %v5682_v34  ;;  %12399 = vmatmul.mubr.msk.f32.vlgmr.msra.gmra.mrb[60].mxu0 %vm289_vm0, %v5682_v34  ;;  %v5825_v46 = vmul.f32 %v5682_v34, %v5682_v34  ;;  %v6185_v34 = vld [vmem:[#allocation13] sm:$0xf] }
 0xc07   :  { %13970 = vmatpush1.bf16.msra.mxu1 %v18507_v35  ;;  %13978 = vmatpush1.bf16.msra.mxu0 %v18508_v10 }
 0xc08   :  { %13972 = vmatprep.subr.bf16.mxu1 %v18509_v3  ;;  %13980 = vmatprep.subr.bf16.mxu0 %v18510_v41  ;;  %v18523_v3 = vld [vmem:[#allocation57_spill] sm:$0xff] }
 0xc09   :  { %6039 = vmatprep.mubr.f32.mxu1 %v18511_v42  ;;  %6110 = vmatprep.mubr.f32.mxu0 %v18511_v42 }
 0xc0b   :  { %13974 = vmatpush1.bf16.msra.mxu1 %v18512_v16  ;;  %13982 = vmatpush1.bf16.msra.mxu0 %v18513_v0 }
 0xc1f   :  { %v13293_v28 = vpop.f32.mrb[54].mxu1 }
 0xc20   :  { %v13328_v2 = vpop.f32.mrb[58].mxu0  ;;  %v13294_v25 = vpop.f32.mrb[55].mxu1 }
 0xc21   :  { %v13329_v45 = vpop.f32.mrb[59].mxu0  ;;  %v13295_v49 = vadd.f32 %v13294_v25, %v13293_v28  ;;  %v18515_v28 = vld [vmem:[#allocation47_spill] sm:$0xff] }
 0xc22   :  { %v13330_v56 = vadd.f32 %v13329_v45, %v13328_v2  ;;  %v6223_v25 = vld [vmem:[#allocation15] sm:$0xf] }
 0xc24   :  { %v5822_v53 = vadd.f32 %v13330_v56, %v13295_v49  ;;  %v18516_v56 = vld [vmem:[#allocation48_spill] sm:$0xff] }
 0xc26   :  { %v5826_v22 = vsub.f32 %v5822_v53, %v5825_v46  ;;  %v17362_v53 = vrot.slane %v6185_v34, %v18516_v56  ;;  %v17365_v46 = vrot.slane %v6185_v34, %v18515_v28 }
 0xc28   :  { %12400 = vmatmul.mubr.msk.f32.vlgmr.msra.gmra.mrb[58].mxu1 %vm289_vm0, %v5826_v22  ;;  %12401 = vmatmul.mubr.msk.f32.vlgmr.msra.gmra.mrb[62].mxu0 %vm289_vm0, %v5826_v22  ;;  %v18517_v22 = vld [vmem:[#allocation50_spill] sm:$0xff] }
 0xc29   :  { %6327 = vmatprep.mubr.bf16.mxu1 %v18514_v58  ;;  %6380 = vmatprep.mubr.bf16.mxu0 %v18514_v58  ;;  %v17388_v0 = vrot.slane %v6223_v25, %v18517_v22 }
 0xcd9   :  { %v5896_v7 = vpop.f32.mrb[56].mxu1  ;;  %v5967_v11 = vpop.f32.mrb[60].mxu0 }
 0xcda   :  { %v5898_v20 = vpop.f32.mrb[57].mxu1  ;;  %v5969_v44 = vpop.f32.mrb[61].mxu0  ;;  %v6124_v2 = vrot.slane %v5896_v7, %v18515_v28  ;;  %v17356_v45 = vrot.slane %v5967_v11, %v18515_v28  ;;  %v17374_v7 = vrot.slane %v6223_v25, %v18516_v56  ;;  %v18518_v11 = vld [vmem:[#allocation49_spill] sm:$0xff] }
 0xcdb   :  { %v17359_v49 = vrot.slane %v5898_v20, %v18515_v28  ;;  %v17380_v20 = vrot.slane %v6223_v25, %v18515_v28  ;;  %v18529_v56 = vld [vmem:[#allocation53_spill] sm:$0xff] }
 0xcdc   :  { %v6149_v42 = vsub.f32 %v17266_v13, %v6124_v2  ;;  %v6143_v10 = vsub.f32 %v18523_v3, %v17356_v45 }
 0xcfb   :  { %v6041_v6 = vpop.f32.mrb[58].mxu1  ;;  %v6112_v8 = vpop.f32.mrb[62].mxu0 }
 0xcfc   :  { %v6042_v4 = vadd.f32 1e-05, %v6041_v6  ;;  %v6113_v61 = vadd.f32 1e-05, %v6112_v8  ;;  %v6043_v54 = vpop.f32.mrb[59].mxu1  ;;  %v6114_v19 = vpop.f32.mrb[63].mxu0  ;;  %v17368_v6 = vrot.slane %v6185_v34, %v18517_v22  ;;  %v17371_v8 = vrot.slane %v5969_v44, %v18515_v28 }
 0xcfd   :  { %v6044_v32 = vadd.f32 1e-05, %v6043_v54  ;;  %v6115_v36 = vadd.f32 1e-05, %v6114_v19  ;;  %v18520_v19 = vld [vmem:[#allocation59_spill] sm:$0xff]  ;;  %v18521_v44 = vld [vmem:[#allocation61_spill] sm:$0xff] }
 0xcfe   :  { %15722 = vrsqrt.f32 %v6042_v4  ;;  %v17377_v4 = vrot.slane %v6185_v34, %v18518_v11  ;;  %v6145_v16 = vsub.f32 %v18521_v44, %v6124_v2  ;;  %v18522_v34 = vld [vmem:[#allocation51_spill] sm:$0xff]  ;;  %v18526_v44 = vld [vmem:[#allocation54_spill] sm:$0xff]  ;;  %v6140_v62 = vsub.f32 %v18529_v56, %v17371_v8 }
 0xcff   :  { %15724 = vrsqrt.f32 %v6113_v61  ;;  %v18519_v61 = vld [vmem:[#allocation60_spill] sm:$0xff]  ;;  %v6139_v41 = vsub.f32 %v18522_v34, %v17356_v45  ;;  %v6142_v22 = vsub.f32 %v18526_v44, %v17359_v49  ;;  %v6144_v40 = vsub.f32 %v18530_v26, %v17371_v8 }
 0xd00   :  { %15726 = vrsqrt.f32 %v6044_v32  ;;  %v6137_v54 = vsub.f32 %v18519_v61, %v6124_v2  ;;  %v6141_v32 = vsub.f32 %v18520_v19, %v6124_v2  ;;  %v18524_v61 = vld [vmem:[#allocation63_spill] sm:$0xff]  ;;  %v18527_v2 = vld [vmem:[#allocation52_spill] sm:$0xff] }
 0xd01   :  { %15728 = vrsqrt.f32 %v6115_v36  ;;  %v17385_v36 = vrot.slane %v6223_v25, %v18518_v11  ;;  %v6147_v19 = vsub.f32 %v18524_v61, %v17356_v45  ;;  %v18525_v25 = vld [vmem:[#allocation56_spill] sm:$0xff]  ;;  %v6146_v34 = vsub.f32 %v18527_v2, %v17359_v49  ;;  %v18528_v11 = vld [vmem:[#allocation62_spill] sm:$0xff] }
 0xd02   :  { %v6138_v5 = vsub.f32 %v18525_v25, %v17359_v49  ;;  %v6150_v3 = vsub.f32 %v18528_v11, %v17359_v49  ;;  %v18531_v25 = vld [vmem:[#allocation58_spill] sm:$0xff]  ;;  %v18532_v44 = vld [vmem:[#allocation64_spill] sm:$0xff] }
 0xd03   :  { %v6148_v21 = vsub.f32 %v18531_v25, %v17371_v8  ;;  %v6152_v17 = vsub.f32 %v18532_v44, %v17371_v8 }
 0xd08   :  { %v15723_v35 = vpop.eup %15722 }
 0xd09   :  { %v15725_v13 = vpop.eup %15724  ;;  %v6156_v61 = vrot.slane %v15723_v35, %v18515_v28 }
 0xd0a   :  { %v15727_v50 = vpop.eup %15726  ;;  %v6164_v2 = vrot.slane %v15725_v13, %v18515_v28 }
 0xd0b   :  { %v15729_v1 = vpop.eup %15728  ;;  %v6160_v49 = vrot.slane %v15727_v50, %v18515_v28  ;;  %v6169_v11 = vmul.f32 %v6156_v61, %v6137_v54  ;;  %v6173_v9 = vmul.f32 %v6156_v61, %v6141_v32  ;;  %v6177_v56 = vmul.f32 %v6156_v61, %v6145_v16 }
 0xd0c   :  { %v6168_v35 = vrot.slane %v15729_v1, %v18515_v28  ;;  %v6171_v57 = vmul.f32 %v6164_v2, %v6139_v41  ;;  %v6175_v15 = vmul.f32 %v6164_v2, %v6143_v10  ;;  %v6181_v52 = vmul.f32 %v6156_v61, %v6149_v42 }
 0xd0d   :  { %v6170_v26 = vmul.f32 %v6160_v49, %v6138_v5  ;;  %v6174_v29 = vmul.f32 %v6160_v49, %v6142_v22  ;;  %v6207_v25 = vmul.f32 %v17365_v46, %v6169_v11  ;;  %v6211_v30 = vmul.f32 %v17365_v46, %v6173_v9 }
 0xd0e   :  { %v6172_v8 = vmul.f32 %v6168_v35, %v6140_v62  ;;  %v6176_v44 = vmul.f32 %v6168_v35, %v6144_v40  ;;  %v6209_v13 = vmul.f32 %v17368_v6, %v6171_v57  ;;  %v6213_v50 = vmul.f32 %v17368_v6, %v6175_v15 }
 0xd0f   :  { %v6208_v54 = vmul.f32 %v17362_v53, %v6170_v26  ;;  %v6212_v16 = vmul.f32 %v17362_v53, %v6174_v29  ;;  %v6245_v1 = vadd.f32 %v17380_v20, %v6207_v25  ;;  %v6249_v10 = vadd.f32 %v17380_v20, %v6211_v30 }
 0xd10   :  { %v6210_v5 = vmul.f32 %v17377_v4, %v6172_v8  ;;  %v6214_v41 = vmul.f32 %v17377_v4, %v6176_v44  ;;  %v6247_v9 = vadd.f32 %v17388_v0, %v6209_v13  ;;  %v6251_v40 = vadd.f32 %v17388_v0, %v6213_v50 }
 0xd11   :  { %v6246_v57 = vadd.f32 %v17374_v7, %v6208_v54  ;;  %v6250_v15 = vadd.f32 %v17374_v7, %v6212_v16  ;;  %v17434_v62 = vpack.c.bf16 %v6249_v10, %v6245_v1  ;;  %v6178_v42 = vmul.f32 %v6160_v49, %v6146_v34 }
 0xd12   :  { %v6248_v29 = vadd.f32 %v17385_v36, %v6210_v5  ;;  %v6252_v22 = vadd.f32 %v17385_v36, %v6214_v41  ;;  %v17438_v30 = vpack.c.bf16 %v6251_v40, %v6247_v9  ;;  %v6182_v32 = vmul.f32 %v6160_v49, %v6150_v3  ;;  %v15050_v5 = vld [vmem:[#allocation16 + $0x24] ss:$16 sps:$4 sm:$0xff]   ;;  %v15744_v41 = vld [vmem:[#allocation2] sm:$0xff]   ;;  %v15048_v9 = vld [vmem:[#allocation16 + $0x20] ss:$16 sps:$4 sm:$0xff]  }
 0xd13   :  { %v17440_v61 = vpack.c.bf16 %v6250_v15, %v6246_v57  ;;  %v6216_v11 = vmul.f32 %v17362_v53, %v6178_v42  ;;  %v6180_v26 = vmul.f32 %v6168_v35, %v6148_v21  ;;  %v6184_v25 = vmul.f32 %v6168_v35, %v6152_v17  ;;  %v15053_v40 = vld [vmem:[#allocation16 + $0x2c] ss:$16 sps:$4 sm:$0xff]   ;;  %v15051_v57 = vld [vmem:[#allocation16 + $0x28] ss:$16 sps:$4 sm:$0xff]   ;;  %v15054_v15 = vld [vmem:[#allocation16 + $0x40] ss:$16 sps:$4 sm:$0xff]  }
 0xd14   :  { %v17443_v8 = vpack.c.bf16 %v6252_v22, %v6248_v29  ;;  %v6220_v44 = vmul.f32 %v17362_v53, %v6182_v32  ;;  %v6215_v13 = vmul.f32 %v17365_v46, %v6177_v56  ;;  %v6219_v34 = vmul.f32 %v17365_v46, %v6181_v52  ;;  %v15059_v42 = vld [vmem:[#allocation16 + $0x4c] ss:$16 sps:$4 sm:$0xff]   ;;  %v15062_v29 = vld [vmem:[#allocation16 + $0x64] ss:$16 sps:$4 sm:$0xff]   ;;  %v15057_v32 = vld [vmem:[#allocation16 + $0x48] ss:$16 sps:$4 sm:$0xff]  }
 0xd15   :  { %6295 = vmatprep.subr.bf16.mxu1 %v17440_v61  ;;  %v6254_v50 = vadd.f32 %v17374_v7, %v6216_v11  ;;  %v6218_v3 = vmul.f32 %v17377_v4, %v6180_v26  ;;  %v6222_v49 = vmul.f32 %v17377_v4, %v6184_v25  ;;  %v6179_v54 = vmul.f32 %v6164_v2, %v6147_v19  ;;  %v15745_v22 = vld [vmem:[#allocation2 + $0x8] sm:$0xff]   ;;  %v15065_v26 = vld [vmem:[#allocation16 + $0x6c] ss:$16 sps:$4 sm:$0xff]  }
 0xd16   :  { %6348 = vmatprep.subr.bf16.mxu0 %v17443_v8  ;;  %6296 = vmatpush1.bf16.msra.mxu1 %v17434_v62  ;;  %v6258_v17 = vadd.f32 %v17374_v7, %v6220_v44  ;;  %v6253_v21 = vadd.f32 %v17380_v20, %v6215_v13  ;;  %v6257_v53 = vadd.f32 %v17380_v20, %v6219_v34  ;;  %v15044_v7 = vld [vmem:[#allocation16 + $0x4] ss:$16 sps:$4 sm:$0xff]   ;;  %v15060_v11 = vld [vmem:[#allocation16 + $0x60] ss:$16 sps:$4 sm:$0xff]   ;;  %v15063_v44 = vld [vmem:[#allocation16 + $0x68] ss:$16 sps:$4 sm:$0xff]  }
 0xd17   :  { %6349 = vmatpush1.bf16.msra.mxu0 %v17438_v30  ;;  %v6256_v52 = vadd.f32 %v17385_v36, %v6218_v3  ;;  %v6260_v46 = vadd.f32 %v17385_v36, %v6222_v49  ;;  %v18533_v4 = vsub.f32 %v17268_v38, %v17356_v45  ;;  %v6217_v56 = vmul.f32 %v17368_v6, %v6179_v54  ;;  %v15042_v45 = vld [vmem:[#allocation16] ss:$16 sps:$4 sm:$0xff]   ;;  %v15047_v36 = vld [vmem:[#allocation16 + $0xc] ss:$16 sps:$4 sm:$0xff]   ;;  %v15068_v25 = vld [vmem:[#allocation16 + $0x84] ss:$16 sps:$4 sm:$0xff]  }
 0xd18   :  { %v17464_v35 = vpack.c.bf16 %v6258_v17, %v6254_v50  ;;  %v17466_v16 = vpack.c.bf16 %v6257_v53, %v6253_v21  ;;  %v15066_v13 = vld [vmem:[#allocation16 + $0x80] ss:$16 sps:$4 sm:$0xff]   ;;  %v15071_v34 = vld [vmem:[#allocation16 + $0x8c] ss:$16 sps:$4 sm:$0xff]   ;;  %v15074_v50 = vld [vmem:[#allocation16 + $0xa4] ss:$16 sps:$4 sm:$0xff]  }
 0xd19   :  { %v6183_v19 = vmul.f32 %v6164_v2, %v18533_v4  ;;  %v17468_v1 = vpack.c.bf16 %v6260_v46, %v6256_v52  ;;  %v6255_v10 = vadd.f32 %v17388_v0, %v6217_v56  ;;  %v15069_v3 = vld [vmem:[#allocation16 + $0x88] ss:$16 sps:$4 sm:$0xff]   ;;  %v15072_v49 = vld [vmem:[#allocation16 + $0xa0] ss:$16 sps:$4 sm:$0xff]   ;;  %v15077_v54 = vld [vmem:[#allocation16 + $0xac] ss:$16 sps:$4 sm:$0xff]  }
 0xd1a   :  { %6297 = vmatprep.subr.bf16.mxu1 %v17464_v35  ;;  %v15080_v17 = vld [vmem:[#allocation16 + $0xc4] ss:$16 sps:$4 sm:$0xff]   ;;  %v15075_v21 = vld [vmem:[#allocation16 + $0xa8] ss:$16 sps:$4 sm:$0xff]   ;;  %v15078_v53 = vld [vmem:[#allocation16 + $0xc0] ss:$16 sps:$4 sm:$0xff]  }
 0xd1b   :  { %v6221_v20 = vmul.f32 %v17368_v6, %v6183_v19  ;;  %6350 = vmatprep.subr.bf16.mxu0 %v17468_v1  ;;  %6298 = vmatpush1.bf16.msra.mxu1 %v17466_v16  ;;  %v15045_v6 = vld [vmem:[#allocation16 + $0x8] ss:$16 sps:$4 sm:$0xff]   ;;  %v15083_v52 = vld [vmem:[#allocation16 + $0xcc] ss:$16 sps:$4 sm:$0xff]   ;;  %v15086_v46 = vld [vmem:[#allocation16 + $0xe4] ss:$16 sps:$4 sm:$0xff]  }
 0xd1c   :  { %7177 = vmatprep.subr.bf16.mxu1 %v15044_v7  ;;  %v15081_v4 = vld [vmem:[#allocation16 + $0xc8] ss:$16 sps:$4 sm:$0xff]   ;;  %v15084_v19 = vld [vmem:[#allocation16 + $0xe0] ss:$16 sps:$4 sm:$0xff]   ;;  %v15089_v56 = vld [vmem:[#allocation16 + $0xec] ss:$16 sps:$4 sm:$0xff]  }
 0xd1d   :  { %v6259_v38 = vadd.f32 %v17388_v0, %v6221_v20  ;;  %v15056_v0 = vld [vmem:[#allocation16 + $0x44] ss:$16 sps:$4 sm:$0xff]   ;;  %v15087_v20 = vld [vmem:[#allocation16 + $0xe8] ss:$16 sps:$4 sm:$0xff]  }
 0xd1e   :  { %12402 = vmatmul.mubr.msk.bf16.vlgmr.msra.gmra.mrb[60].mxu1 %vm289_vm0, %v15744_v41  ;;  %v15092_v7 = vld [vmem:[#allocation16 + $0x104] ss:$16 sps:$4 sm:$0xff]  }
 0xd1f   :  { %v17476_v2 = vpack.c.bf16 %v6259_v38, %v6255_v10  ;;  %6337 = vmatprep.mubr.bf16.mxu1 %v18514_v58  ;;  %7178 = vmatpush1.bf16.msra.mxu1 %v15042_v45  ;;  %v15090_v10 = vld [vmem:[#allocation16 + $0x100] ss:$16 sps:$4 sm:$0xff]   ;;  %v15095_v38 = vld [vmem:[#allocation16 + $0x10c] ss:$16 sps:$4 sm:$0xff]   ;;  %v15098_v45 = vld [vmem:[#allocation16 + $0x124] ss:$16 sps:$4 sm:$0xff]  }
 0xd20   :  { %7179 = vmatprep.subr.bf16.mxu1 %v15050_v5  ;;  %v15096_v5 = vld [vmem:[#allocation16 + $0x120] ss:$16 sps:$4 sm:$0xff]  }
 0xd21   :  { %6351 = vmatpush1.bf16.msra.mxu0 %v17476_v2 }
 0xd22   :  { %7283 = vmatprep.subr.bf16.mxu0 %v15047_v36  ;;  %v15093_v36 = vld [vmem:[#allocation16 + $0x108] ss:$16 sps:$4 sm:$0xff]  }
 0xd23   :  { %7180 = vmatpush1.bf16.msra.mxu1 %v15048_v9  ;;  %v15099_v9 = vld [vmem:[#allocation16 + $0x128] ss:$16 sps:$4 sm:$0xff]  }
 0xd24   :  { %12404 = vmatmul.mubr.msk.bf16.vlgmr.msra.gmra.mrb[64].mxu0 %vm289_vm0, %v15744_v41  ;;  %7181 = vmatprep.subr.bf16.mxu1 %v15056_v0  ;;  %v15101_v41 = vld [vmem:[#allocation16 + $0x12c] ss:$16 sps:$4 sm:$0xff]  }
 0xd25   :  { %6390 = vmatprep.mubr.bf16.mxu0 %v18514_v58  ;;  %7284 = vmatpush1.bf16.msra.mxu0 %v15045_v6  ;;  %v15104_v6 = vld [vmem:[#allocation16 + $0x144] ss:$16 sps:$4 sm:$0xff]   ;;  %v15107_v0 = vld [vmem:[#allocation16 + $0x14c] ss:$16 sps:$4 sm:$0xff]  }
 0xd26   :  { %7285 = vmatprep.subr.bf16.mxu0 %v15053_v40  ;;  %12403 = vmatmul.mubr.msk.bf16.gmra.mrb[64].mxu1 %vm289_vm0, %v15745_v22  ;;  %v15102_v40 = vld [vmem:[#allocation16 + $0x140] ss:$16 sps:$4 sm:$0xff]  }
 0xd27   :  { %7182 = vmatpush1.bf16.msra.mxu1 %v15054_v15  ;;  %v15105_v15 = vld [vmem:[#allocation16 + $0x148] ss:$16 sps:$4 sm:$0xff]  }
 0xd28   :  { %7183 = vmatprep.subr.bf16.mxu1 %v15062_v29  ;;  %v15113_v29 = vld [vmem:[#allocation16 + $0x16c] ss:$16 sps:$4 sm:$0xff]  }
 0xd29   :  { %7286 = vmatpush1.bf16.msra.mxu0 %v15051_v57  ;;  %v15110_v57 = vld [vmem:[#allocation16 + $0x164] ss:$16 sps:$4 sm:$0xff]  }
 0xd2a   :  { %7287 = vmatprep.subr.bf16.mxu0 %v15059_v42  ;;  %v15108_v42 = vld [vmem:[#allocation16 + $0x160] ss:$16 sps:$4 sm:$0xff]  }
 0xd2b   :  { %7184 = vmatpush1.bf16.msra.mxu1 %v15060_v11  ;;  %v15114_v11 = vld [vmem:[#allocation16 + $0x180] ss:$16 sps:$4 sm:$0xff]  }
 0xd2c   :  { %12405 = vmatmul.mubr.msk.bf16.gmra.mrb[68].mxu0 %vm289_vm0, %v15745_v22  ;;  %7185 = vmatprep.subr.bf16.mxu1 %v15068_v25  ;;  %v15116_v22 = vld [vmem:[#allocation16 + $0x184] ss:$16 sps:$4 sm:$0xff]  }
 0xd2d   :  { %7288 = vmatpush1.bf16.msra.mxu0 %v15057_v32  ;;  %v15111_v32 = vld [vmem:[#allocation16 + $0x168] ss:$16 sps:$4 sm:$0xff]   ;;  %v15122_v25 = vld [vmem:[#allocation16 + $0x1a4] ss:$16 sps:$4 sm:$0xff]  }
 0xd2e   :  { %7289 = vmatprep.subr.bf16.mxu0 %v15065_v26  ;;  %v15119_v26 = vld [vmem:[#allocation16 + $0x18c] ss:$16 sps:$4 sm:$0xff]  }
 0xd2f   :  { %7186 = vmatpush1.bf16.msra.mxu1 %v15066_v13  ;;  %v15120_v13 = vld [vmem:[#allocation16 + $0x1a0] ss:$16 sps:$4 sm:$0xff]  }
 0xd30   :  { %7187 = vmatprep.subr.bf16.mxu1 %v15074_v50  ;;  %v15128_v50 = vld [vmem:[#allocation16 + $0x1c4] ss:$16 sps:$4 sm:$0xff]  }
 0xd31   :  { %7290 = vmatpush1.bf16.msra.mxu0 %v15063_v44  ;;  %v15117_v44 = vld [vmem:[#allocation16 + $0x188] ss:$16 sps:$4 sm:$0xff]  }
 0xd32   :  { %7291 = vmatprep.subr.bf16.mxu0 %v15071_v34  ;;  %v15125_v34 = vld [vmem:[#allocation16 + $0x1ac] ss:$16 sps:$4 sm:$0xff]  }
 0xd33   :  { %7188 = vmatpush1.bf16.msra.mxu1 %v15072_v49  ;;  %v15126_v49 = vld [vmem:[#allocation16 + $0x1c0] ss:$16 sps:$4 sm:$0xff]  }
 0xd34   :  { %7189 = vmatprep.subr.bf16.mxu1 %v15080_v17  ;;  %v15129_v17 = vld [vmem:[#allocation16 + $0x1c8] ss:$16 sps:$4 sm:$0xff]  }
 0xd35   :  { %7292 = vmatpush1.bf16.msra.mxu0 %v15069_v3  ;;  %v15123_v3 = vld [vmem:[#allocation16 + $0x1a8] ss:$16 sps:$4 sm:$0xff]  }
 0xd36   :  { %7293 = vmatprep.subr.bf16.mxu0 %v15077_v54  ;;  %v15131_v54 = vld [vmem:[#allocation16 + $0x1cc] ss:$16 sps:$4 sm:$0xff]  }
 0xd37   :  { %7190 = vmatpush1.bf16.msra.mxu1 %v15078_v53  ;;  %v15134_v53 = vld [vmem:[#allocation16 + $0x1e4] ss:$16 sps:$4 sm:$0xff]  }
 0xd38   :  { %7191 = vmatprep.subr.bf16.mxu1 %v15086_v46  ;;  %v15137_v46 = vld [vmem:[#allocation16 + $0x1ec] ss:$16 sps:$4 sm:$0xff]  }
 0xd39   :  { %7294 = vmatpush1.bf16.msra.mxu0 %v15075_v21  ;;  %v15132_v21 = vld [vmem:[#allocation16 + $0x1e0] ss:$16 sps:$4 sm:$0xff]  }
 0xd3a   :  { %7295 = vmatprep.subr.bf16.mxu0 %v15083_v52  ;;  %v15135_v52 = vld [vmem:[#allocation16 + $0x1e8] ss:$16 sps:$4 sm:$0xff]  }
 0xd3b   :  { %7192 = vmatpush1.bf16.msra.mxu1 %v15084_v19  ;;  %v15143_v19 = vld [vmem:[#allocation16 + $0x20c] ss:$16 sps:$4 sm:$0xff]  }
 0xd3c   :  { %7193 = vmatprep.subr.bf16.mxu1 %v15092_v7 }
 0xd3d   :  { %7296 = vmatpush1.bf16.msra.mxu0 %v15081_v4  ;;  %v15140_v4 = vld [vmem:[#allocation16 + $0x204] ss:$16 sps:$4 sm:$0xff]  }
 0xd3e   :  { %7297 = vmatprep.subr.bf16.mxu0 %v15089_v56 }
 0xd3f   :  { %7194 = vmatpush1.bf16.msra.mxu1 %v15090_v10 }
 0xd40   :  { %7195 = vmatprep.subr.bf16.mxu1 %v15098_v45 }
 0xd41   :  { %7298 = vmatpush1.bf16.msra.mxu0 %v15087_v20 }
 0xd42   :  { %7299 = vmatprep.subr.bf16.mxu0 %v15095_v38 }
 0xd43   :  { %7196 = vmatpush1.bf16.msra.mxu1 %v15096_v5  ;;  %v15141_v5 = vld [vmem:[#allocation16 + $0x208] ss:$16 sps:$4 sm:$0xff]  }
 0xd44   :  { %7197 = vmatprep.subr.bf16.mxu1 %v15104_v6  ;;  %v15146_v6 = vld [vmem:[#allocation16 + $0x224] ss:$16 sps:$4 sm:$0xff]  }
 0xd45   :  { %7300 = vmatpush1.bf16.msra.mxu0 %v15093_v36  ;;  %v15138_v36 = vld [vmem:[#allocation16 + $0x200] ss:$16 sps:$4 sm:$0xff]  }
 0xd46   :  { %7301 = vmatprep.subr.bf16.mxu0 %v15101_v41 }
 0xd47   :  { %7198 = vmatpush1.bf16.msra.mxu1 %v15102_v40 }
 0xd48   :  { %7199 = vmatprep.subr.bf16.mxu1 %v15110_v57 }
 0xd49   :  { %7302 = vmatpush1.bf16.msra.mxu0 %v15099_v9  ;;  %v15149_v9 = vld [vmem:[#allocation16 + $0x22c] ss:$16 sps:$4 sm:$0xff]  }
 0xd4a   :  { %7303 = vmatprep.subr.bf16.mxu0 %v15107_v0 }
 0xd4b   :  { %7200 = vmatpush1.bf16.msra.mxu1 %v15108_v42  ;;  %v15144_v42 = vld [vmem:[#allocation16 + $0x220] ss:$16 sps:$4 sm:$0xff]  }
 0xd4c   :  { %7201 = vmatprep.subr.bf16.mxu1 %v15116_v22 }
 0xd4d   :  { %7304 = vmatpush1.bf16.msra.mxu0 %v15105_v15 }
 0xd4e   :  { %7305 = vmatprep.subr.bf16.mxu0 %v15113_v29  ;;  %v15147_v29 = vld [vmem:[#allocation16 + $0x228] ss:$16 sps:$4 sm:$0xff]  }
 0xd4f   :  { %7202 = vmatpush1.bf16.msra.mxu1 %v15114_v11  ;;  %v15152_v11 = vld [vmem:[#allocation16 + $0x244] ss:$16 sps:$4 sm:$0xff]  }
 0xd50   :  { %7203 = vmatprep.subr.bf16.mxu1 %v15122_v25 }
 0xd51   :  { %7306 = vmatpush1.bf16.msra.mxu0 %v15111_v32 }
 0xd52   :  { %7307 = vmatprep.subr.bf16.mxu0 %v15119_v26  ;;  %v15155_v26 = vld [vmem:[#allocation16 + $0x24c] ss:$16 sps:$4 sm:$0xff]  }
 0xd53   :  { %7204 = vmatpush1.bf16.msra.mxu1 %v15120_v13 }
 0xd54   :  { %7205 = vmatprep.subr.bf16.mxu1 %v15128_v50  ;;  %v15150_v50 = vld [vmem:[#allocation16 + $0x240] ss:$16 sps:$4 sm:$0xff]  }
 0xd55   :  { %7308 = vmatpush1.bf16.msra.mxu0 %v15117_v44 }
 0xd56   :  { %7309 = vmatprep.subr.bf16.mxu0 %v15125_v34 }
 0xd57   :  { %7206 = vmatpush1.bf16.msra.mxu1 %v15126_v49 }
 0xd58   :  { %7207 = vmatprep.subr.bf16.mxu1 %v15134_v53 }
 0xd59   :  { %7310 = vmatpush1.bf16.msra.mxu0 %v15123_v3  ;;  %v15153_v3 = vld [vmem:[#allocation16 + $0x248] ss:$16 sps:$4 sm:$0xff]  }
 0xd5a   :  { %7311 = vmatprep.subr.bf16.mxu0 %v15131_v54 }
 0xd5b   :  { %7208 = vmatpush1.bf16.msra.mxu1 %v15132_v21  ;;  %v15161_v21 = vld [vmem:[#allocation16 + $0x26c] ss:$16 sps:$4 sm:$0xff]  }
 0xd5c   :  { %7230 = vmatprep.subr.bf16.mxu1 %v15140_v4 }
 0xd5d   :  { %7312 = vmatpush1.bf16.msra.mxu0 %v15129_v17  ;;  %v15158_v17 = vld [vmem:[#allocation16 + $0x264] ss:$16 sps:$4 sm:$0xff]  }
 0xd5e   :  { %7313 = vmatprep.subr.bf16.mxu0 %v15137_v46 }
 0xd61   :  { %7314 = vmatpush1.bf16.msra.mxu0 %v15135_v52 }
 0xd62   :  { %7336 = vmatprep.subr.bf16.mxu0 %v15143_v19  ;;  %v15156_v19 = vld [vmem:[#allocation16 + $0x260] ss:$16 sps:$4 sm:$0xff]  }
 0xdf1   :  { %v6329_v56 = vpop.f32.mrb[60].mxu1 }
 0xdf2   :  { %v6331_v7 = vpop.f32.mrb[61].mxu1 }
 0xdf3   :  { %v6333_v20 = vpop.f32.mrb[62].mxu1 }
 0xdf4   :  { %v6401_v10 = vpack.c.bf16 %v6333_v20, %v6329_v56  ;;  %v6335_v38 = vpop.f32.mrb[63].mxu1  ;;  %v15159_v56 = vld [vmem:[#allocation16 + $0x268] ss:$16 sps:$4 sm:$0xff]   ;;  %v15164_v20 = vld [vmem:[#allocation16 + $0x284] ss:$16 sps:$4 sm:$0xff]  }
 0xdf5   :  { %v6402_v45 = vpack.c.bf16 %v6335_v38, %v6331_v7  ;;  %v15162_v38 = vld [vmem:[#allocation16 + $0x280] ss:$16 sps:$4 sm:$0xff]  }
 0xdf7   :  { %v6382_v41 = vpop.f32.mrb[64].mxu0  ;;  %7209 = vmatprep.mubr.bf16.mxu1 %v6402_v45  ;;  %7315 = vmatprep.mubr.bf16.mxu0 %v6402_v45  ;;  %v15165_v45 = vld [vmem:[#allocation16 + $0x288] ss:$16 sps:$4 sm:$0xff]  }
 0xdf8   :  { %v6384_v40 = vpop.f32.mrb[65].mxu0  ;;  %7210 = vmatmul.mubr.bf16.vlgmr.msra.gmra.mrb[68].mxu1 %v6401_v10  ;;  %7316 = vmatmul.mubr.bf16.vlgmr.msra.gmra.mrb[72].mxu0 %v6401_v10  ;;  %v15167_v10 = vld [vmem:[#allocation16 + $0x28c] ss:$16 sps:$4 sm:$0xff]  }
 0xdf9   :  { %v6386_v0 = vpop.f32.mrb[66].mxu0  ;;  %7231 = vmatpush1.bf16.msra.mxu1 %v15138_v36  ;;  %7337 = vmatpush1.bf16.msra.mxu0 %v15141_v5  ;;  %v6339_v22 = vpop.f32.mrb[64].mxu1  ;;  %v15170_v36 = vld [vmem:[#allocation16 + $0x2a4] ss:$16 sps:$4 sm:$0xff]   ;;  %v15173_v5 = vld [vmem:[#allocation16 + $0x2ac] ss:$16 sps:$4 sm:$0xff]  }
 0xdfa   :  { %v17485_v57 = vpack.c.bf16 %v6386_v0, %v6382_v41  ;;  %v6388_v15 = vpop.f32.mrb[67].mxu0  ;;  %7232 = vmatprep.subr.bf16.mxu1 %v15146_v6  ;;  %7338 = vmatprep.subr.bf16.mxu0 %v15149_v9  ;;  %v6341_v25 = vpop.f32.mrb[65].mxu1  ;;  %v15168_v41 = vld [vmem:[#allocation16 + $0x2a0] ss:$16 sps:$4 sm:$0xff]   ;;  %v15171_v6 = vld [vmem:[#allocation16 + $0x2a8] ss:$16 sps:$4 sm:$0xff]  }
 0xdfb   :  { %v6404_v32 = vpack.c.bf16 %v6388_v15, %v6384_v40  ;;  %v6343_v44 = vpop.f32.mrb[66].mxu1  ;;  %v15176_v9 = vld [vmem:[#allocation16 + $0x2c4] ss:$16 sps:$4 sm:$0xff]   ;;  %v15179_v40 = vld [vmem:[#allocation16 + $0x2cc] ss:$16 sps:$4 sm:$0xff]  }
 0xdfc   :  { %v6405_v13 = vpack.c.bf16 %v6343_v44, %v6339_v22  ;;  %v6345_v34 = vpop.f32.mrb[67].mxu1  ;;  %v15174_v0 = vld [vmem:[#allocation16 + $0x2c0] ss:$16 sps:$4 sm:$0xff]   ;;  %v15177_v15 = vld [vmem:[#allocation16 + $0x2c8] ss:$16 sps:$4 sm:$0xff]  }
 0xdfd   :  { %7233 = vmatpush1.bf16.msra.mxu1 %v15144_v42  ;;  %7339 = vmatpush1.bf16.msra.mxu0 %v15147_v29  ;;  %v6406_v49 = vpack.c.bf16 %v6345_v34, %v6341_v25  ;;  %v15182_v42 = vld [vmem:[#allocation16 + $0x2e4] ss:$16 sps:$4 sm:$0xff]   ;;  %v15185_v29 = vld [vmem:[#allocation16 + $0x2ec] ss:$16 sps:$4 sm:$0xff]   ;;  %v15180_v22 = vld [vmem:[#allocation16 + $0x2e0] ss:$16 sps:$4 sm:$0xff]  }
 0xdfe   :  { %7234 = vmatprep.subr.bf16.mxu1 %v15152_v11  ;;  %7340 = vmatprep.subr.bf16.mxu0 %v15155_v26  ;;  %v15188_v11 = vld [vmem:[#allocation16 + $0x304] ss:$16 sps:$4 sm:$0xff]   ;;  %v15191_v26 = vld [vmem:[#allocation16 + $0x30c] ss:$16 sps:$4 sm:$0xff]   ;;  %v15186_v25 = vld [vmem:[#allocation16 + $0x300] ss:$16 sps:$4 sm:$0xff]  }
 0xdff   :  { %v6392_v54 = vpop.f32.mrb[68].mxu0  ;;  %7219 = vmatprep.mubr.bf16.mxu1 %v6406_v49  ;;  %7325 = vmatprep.mubr.bf16.mxu0 %v6406_v49  ;;  %v15189_v44 = vld [vmem:[#allocation16 + $0x308] ss:$16 sps:$4 sm:$0xff]   ;;  %v15197_v34 = vld [vmem:[#allocation16 + $0x32c] ss:$16 sps:$4 sm:$0xff]  }
 0xe00   :  { %v6394_v53 = vpop.f32.mrb[69].mxu0  ;;  %7220 = vmatmul.mubr.bf16.gmra.mrb[72].mxu1 %v6405_v13  ;;  %7326 = vmatmul.mubr.bf16.gmra.mrb[76].mxu0 %v6405_v13  ;;  %v15194_v13 = vld [vmem:[#allocation16 + $0x324] ss:$16 sps:$4 sm:$0xff]  }
 0xe01   :  { %v6396_v52 = vpop.f32.mrb[70].mxu0  ;;  %7235 = vmatpush1.bf16.msra.mxu1 %v15150_v50  ;;  %7341 = vmatpush1.bf16.msra.mxu0 %v15153_v3  ;;  %v15192_v50 = vld [vmem:[#allocation16 + $0x320] ss:$16 sps:$4 sm:$0xff]   ;;  %v15195_v3 = vld [vmem:[#allocation16 + $0x328] ss:$16 sps:$4 sm:$0xff]  }
 0xe02   :  { %v17487_v46 = vpack.c.bf16 %v6396_v52, %v6392_v54  ;;  %v6398_v4 = vpop.f32.mrb[71].mxu0  ;;  %7236 = vmatprep.subr.bf16.mxu1 %v15158_v17  ;;  %7342 = vmatprep.subr.bf16.mxu0 %v15161_v21  ;;  %v15200_v49 = vld [vmem:[#allocation16 + $0x344] ss:$16 sps:$4 sm:$0xff]   ;;  %v15203_v54 = vld [vmem:[#allocation16 + $0x34c] ss:$16 sps:$4 sm:$0xff]  }
 0xe03   :  { %v17489_v7 = vpack.c.bf16 %v6398_v4, %v6394_v53  ;;  %7262 = vmatprep.mubr.bf16.mxu1 %v6404_v32  ;;  %7368 = vmatprep.mubr.bf16.mxu0 %v6404_v32  ;;  %v15183_v32 = vld [vmem:[#allocation16 + $0x2e8] ss:$16 sps:$4 sm:$0xff]   ;;  %v15198_v17 = vld [vmem:[#allocation16 + $0x340] ss:$16 sps:$4 sm:$0xff]   ;;  %v15206_v53 = vld [vmem:[#allocation16 + $0x364] ss:$16 sps:$4 sm:$0xff]  }
 0xe04   :  { %v15201_v21 = vld [vmem:[#allocation16 + $0x348] ss:$16 sps:$4 sm:$0xff]   ;;  %v15209_v52 = vld [vmem:[#allocation16 + $0x36c] ss:$16 sps:$4 sm:$0xff]   ;;  %v15204_v4 = vld [vmem:[#allocation16 + $0x360] ss:$16 sps:$4 sm:$0xff]  }
 0xe05   :  { %7237 = vmatpush1.bf16.msra.mxu1 %v15156_v19  ;;  %7343 = vmatpush1.bf16.msra.mxu0 %v15159_v56  ;;  %v15207_v19 = vld [vmem:[#allocation16 + $0x368] ss:$16 sps:$4 sm:$0xff]   ;;  %v15212_v56 = vld [vmem:[#allocation16 + $0x384] ss:$16 sps:$4 sm:$0xff]  }
 0xe06   :  { %7238 = vmatprep.subr.bf16.mxu1 %v15164_v20  ;;  %7344 = vmatprep.subr.bf16.mxu0 %v15167_v10  ;;  %v15215_v20 = vld [vmem:[#allocation16 + $0x38c] ss:$16 sps:$4 sm:$0xff]   ;;  %v15210_v10 = vld [vmem:[#allocation16 + $0x380] ss:$16 sps:$4 sm:$0xff]  }
 0xe09   :  { %7239 = vmatpush1.bf16.msra.mxu1 %v15162_v38  ;;  %7345 = vmatpush1.bf16.msra.mxu0 %v15165_v45  ;;  %v15213_v38 = vld [vmem:[#allocation16 + $0x388] ss:$16 sps:$4 sm:$0xff]   ;;  %v15218_v45 = vld [vmem:[#allocation16 + $0x3a4] ss:$16 sps:$4 sm:$0xff]  }
 0xe0a   :  { %7240 = vmatprep.subr.bf16.mxu1 %v15170_v36  ;;  %7346 = vmatprep.subr.bf16.mxu0 %v15173_v5  ;;  %v15221_v36 = vld [vmem:[#allocation16 + $0x3ac] ss:$16 sps:$4 sm:$0xff]   ;;  %v15216_v5 = vld [vmem:[#allocation16 + $0x3a0] ss:$16 sps:$4 sm:$0xff]  }
 0xe0d   :  { %7241 = vmatpush1.bf16.msra.mxu1 %v15168_v41  ;;  %7347 = vmatpush1.bf16.msra.mxu0 %v15171_v6  ;;  %v15219_v41 = vld [vmem:[#allocation16 + $0x3a8] ss:$16 sps:$4 sm:$0xff]   ;;  %v15224_v6 = vld [vmem:[#allocation16 + $0x3c4] ss:$16 sps:$4 sm:$0xff]  }
 0xe0e   :  { %7242 = vmatprep.subr.bf16.mxu1 %v15176_v9  ;;  %7348 = vmatprep.subr.bf16.mxu0 %v15179_v40  ;;  %v15227_v9 = vld [vmem:[#allocation16 + $0x3cc] ss:$16 sps:$4 sm:$0xff]   ;;  %v15222_v40 = vld [vmem:[#allocation16 + $0x3c0] ss:$16 sps:$4 sm:$0xff]  }
 0xe11   :  { %7243 = vmatpush1.bf16.msra.mxu1 %v15174_v0  ;;  %7349 = vmatpush1.bf16.msra.mxu0 %v15177_v15  ;;  %v15225_v0 = vld [vmem:[#allocation16 + $0x3c8] ss:$16 sps:$4 sm:$0xff]   ;;  %v15230_v15 = vld [vmem:[#allocation16 + $0x3e4] ss:$16 sps:$4 sm:$0xff]  }
 0xe12   :  { %7244 = vmatprep.subr.bf16.mxu1 %v15182_v42  ;;  %7350 = vmatprep.subr.bf16.mxu0 %v15185_v29  ;;  %v15233_v42 = vld [vmem:[#allocation16 + $0x3ec] ss:$16 sps:$4 sm:$0xff]   ;;  %v15228_v29 = vld [vmem:[#allocation16 + $0x3e0] ss:$16 sps:$4 sm:$0xff]  }
 0xe15   :  { %7245 = vmatpush1.bf16.msra.mxu1 %v15180_v22  ;;  %7351 = vmatpush1.bf16.msra.mxu0 %v15183_v32  ;;  %v15231_v22 = vld [vmem:[#allocation16 + $0x3e8] ss:$16 sps:$4 sm:$0xff]   ;;  %v15236_v32 = vld [vmem:[#allocation16 + $0x404] ss:$16 sps:$4 sm:$0xff]  }
 0xe16   :  { %7246 = vmatprep.subr.bf16.mxu1 %v15188_v11  ;;  %7352 = vmatprep.subr.bf16.mxu0 %v15191_v26  ;;  %v15239_v11 = vld [vmem:[#allocation16 + $0x40c] ss:$16 sps:$4 sm:$0xff]   ;;  %v15237_v26 = vld [vmem:[#allocation16 + $0x408] ss:$16 sps:$4 sm:$0xff]  }
 0xe19   :  { %7247 = vmatpush1.bf16.msra.mxu1 %v15186_v25  ;;  %7353 = vmatpush1.bf16.msra.mxu0 %v15189_v44  ;;  %v15242_v25 = vld [vmem:[#allocation16 + $0x424] ss:$16 sps:$4 sm:$0xff]   ;;  %v15245_v44 = vld [vmem:[#allocation16 + $0x42c] ss:$16 sps:$4 sm:$0xff]  }
 0xe1a   :  { %7248 = vmatprep.subr.bf16.mxu1 %v15194_v13  ;;  %7354 = vmatprep.subr.bf16.mxu0 %v15197_v34  ;;  %v15746_v13 = vld [vmem:[#allocation2 + $0x10] sm:$0xff]   ;;  %v15248_v34 = vld [vmem:[#allocation16 + $0x444] ss:$16 sps:$4 sm:$0xff]  }
 0xe1d   :  { %7249 = vmatpush1.bf16.msra.mxu1 %v15192_v50  ;;  %7355 = vmatpush1.bf16.msra.mxu0 %v15195_v3  ;;  %v15251_v50 = vld [vmem:[#allocation16 + $0x44c] ss:$16 sps:$4 sm:$0xff]   ;;  %v15246_v3 = vld [vmem:[#allocation16 + $0x440] ss:$16 sps:$4 sm:$0xff]  }
 0xe1e   :  { %7250 = vmatprep.subr.bf16.mxu1 %v15200_v49  ;;  %7356 = vmatprep.subr.bf16.mxu0 %v15203_v54  ;;  %v15249_v49 = vld [vmem:[#allocation16 + $0x448] ss:$16 sps:$4 sm:$0xff]   ;;  %v15254_v54 = vld [vmem:[#allocation16 + $0x464] ss:$16 sps:$4 sm:$0xff]  }
 0xe21   :  { %7251 = vmatpush1.bf16.msra.mxu1 %v15198_v17  ;;  %7357 = vmatpush1.bf16.msra.mxu0 %v15201_v21  ;;  %v15257_v17 = vld [vmem:[#allocation16 + $0x46c] ss:$16 sps:$4 sm:$0xff]   ;;  %v15747_v21 = vld [vmem:[#allocation2 + $0x18] sm:$0xff]  }
 0xe22   :  { %7252 = vmatprep.subr.bf16.mxu1 %v15206_v53  ;;  %7358 = vmatprep.subr.bf16.mxu0 %v15209_v52  ;;  %v15252_v53 = vld [vmem:[#allocation16 + $0x460] ss:$16 sps:$4 sm:$0xff]   ;;  %v15255_v52 = vld [vmem:[#allocation16 + $0x468] ss:$16 sps:$4 sm:$0xff]  }
 0xe25   :  { %7253 = vmatpush1.bf16.msra.mxu1 %v15204_v4  ;;  %7359 = vmatpush1.bf16.msra.mxu0 %v15207_v19  ;;  %v15260_v4 = vld [vmem:[#allocation16 + $0x484] ss:$16 sps:$4 sm:$0xff]   ;;  %v15263_v19 = vld [vmem:[#allocation16 + $0x48c] ss:$16 sps:$4 sm:$0xff]  }
 0xe26   :  { %7254 = vmatprep.subr.bf16.mxu1 %v15212_v56  ;;  %7360 = vmatprep.subr.bf16.mxu0 %v15215_v20  ;;  %v15258_v56 = vld [vmem:[#allocation16 + $0x480] ss:$16 sps:$4 sm:$0xff]   ;;  %v15261_v20 = vld [vmem:[#allocation16 + $0x488] ss:$16 sps:$4 sm:$0xff]  }
 0xe29   :  { %7255 = vmatpush1.bf16.msra.mxu1 %v15210_v10  ;;  %7361 = vmatpush1.bf16.msra.mxu0 %v15213_v38  ;;  %v15266_v10 = vld [vmem:[#allocation16 + $0x4a4] ss:$16 sps:$4 sm:$0xff]   ;;  %v15269_v38 = vld [vmem:[#allocation16 + $0x4ac] ss:$16 sps:$4 sm:$0xff]  }
 0xe2a   :  { %7256 = vmatprep.subr.bf16.mxu1 %v15218_v45  ;;  %7362 = vmatprep.subr.bf16.mxu0 %v15221_v36  ;;  %v15264_v45 = vld [vmem:[#allocation16 + $0x4a0] ss:$16 sps:$4 sm:$0xff]   ;;  %v15267_v36 = vld [vmem:[#allocation16 + $0x4a8] ss:$16 sps:$4 sm:$0xff]  }
 0xe2d   :  { %7257 = vmatpush1.bf16.msra.mxu1 %v15216_v5  ;;  %7363 = vmatpush1.bf16.msra.mxu0 %v15219_v41  ;;  %v15272_v5 = vld [vmem:[#allocation16 + $0x4c4] ss:$16 sps:$4 sm:$0xff]   ;;  %v15275_v41 = vld [vmem:[#allocation16 + $0x4cc] ss:$16 sps:$4 sm:$0xff]  }
 0xe2e   :  { %7258 = vmatprep.subr.bf16.mxu1 %v15224_v6  ;;  %7364 = vmatprep.subr.bf16.mxu0 %v15227_v9  ;;  %v15270_v6 = vld [vmem:[#allocation16 + $0x4c0] ss:$16 sps:$4 sm:$0xff]   ;;  %v15273_v9 = vld [vmem:[#allocation16 + $0x4c8] ss:$16 sps:$4 sm:$0xff]  }
 0xe31   :  { %7259 = vmatpush1.bf16.msra.mxu1 %v15222_v40  ;;  %7365 = vmatpush1.bf16.msra.mxu0 %v15225_v0  ;;  %v15278_v40 = vld [vmem:[#allocation16 + $0x4e4] ss:$16 sps:$4 sm:$0xff]   ;;  %v15281_v0 = vld [vmem:[#allocation16 + $0x4ec] ss:$16 sps:$4 sm:$0xff]  }
 0xe32   :  { %7260 = vmatprep.subr.bf16.mxu1 %v15230_v15  ;;  %7366 = vmatprep.subr.bf16.mxu0 %v15233_v42  ;;  %v15276_v15 = vld [vmem:[#allocation16 + $0x4e0] ss:$16 sps:$4 sm:$0xff]   ;;  %v15279_v42 = vld [vmem:[#allocation16 + $0x4e8] ss:$16 sps:$4 sm:$0xff]  }
 0xe35   :  { %7261 = vmatpush1.bf16.msra.mxu1 %v15228_v29  ;;  %7367 = vmatpush1.bf16.msra.mxu0 %v15231_v22  ;;  %v15284_v29 = vld [vmem:[#allocation16 + $0x504] ss:$16 sps:$4 sm:$0xff]   ;;  %v15287_v22 = vld [vmem:[#allocation16 + $0x50c] ss:$16 sps:$4 sm:$0xff]  }
 0xe36   :  { %7405 = vmatprep.subr.bf16.mxu1 %v17440_v61  ;;  %7458 = vmatprep.subr.bf16.mxu0 %v17443_v8 }
 0xe38   :  { %7263 = vmatmul.mubr.bf16.vlgmr.msra.gmra.mrb[68].mxu1 %v17485_v57  ;;  %7369 = vmatmul.mubr.bf16.vlgmr.msra.gmra.mrb[72].mxu0 %v17485_v57  ;;  %v15234_v57 = vld [vmem:[#allocation16 + $0x400] ss:$16 sps:$4 sm:$0xff]  }
 0xe39   :  { %7406 = vmatpush1.bf16.msra.mxu1 %v17434_v62  ;;  %7459 = vmatpush1.bf16.msra.mxu0 %v17438_v30 }
 0xe3a   :  { %7407 = vmatprep.subr.bf16.mxu1 %v17464_v35  ;;  %7460 = vmatprep.subr.bf16.mxu0 %v17468_v1 }
 0xe3b   :  { %7272 = vmatprep.mubr.bf16.mxu1 %v17489_v7  ;;  %7378 = vmatprep.mubr.bf16.mxu0 %v17489_v7  ;;  %v15243_v7 = vld [vmem:[#allocation16 + $0x428] ss:$16 sps:$4 sm:$0xff]  }
 0xe3d   :  { %7408 = vmatpush1.bf16.msra.mxu1 %v17466_v16  ;;  %7461 = vmatpush1.bf16.msra.mxu0 %v17476_v2 }
 0xe3e   :  { %8288 = vmatprep.subr.bf16.mxu1 %v15236_v32  ;;  %8394 = vmatprep.subr.bf16.mxu0 %v15239_v11  ;;  %v15282_v32 = vld [vmem:[#allocation16 + $0x500] ss:$16 sps:$4 sm:$0xff]   ;;  %v15285_v11 = vld [vmem:[#allocation16 + $0x508] ss:$16 sps:$4 sm:$0xff]  }
 0xe40   :  { %7273 = vmatmul.mubr.bf16.gmra.mrb[72].mxu1 %v17487_v46  ;;  %7379 = vmatmul.mubr.bf16.gmra.mrb[76].mxu0 %v17487_v46  ;;  %v15240_v46 = vld [vmem:[#allocation16 + $0x420] ss:$16 sps:$4 sm:$0xff]  }
 0xe41   :  { %7437 = vmatprep.mubr.bf16.mxu1 %v18514_v58  ;;  %7490 = vmatprep.mubr.bf16.mxu0 %v18514_v58 }
 0xe48   :  { %12534 = vmatmul.mubr.msk.bf16.vlgmr.msra.gmra.mrb[76].mxu1 %vm289_vm0, %v15746_v13  ;;  %12536 = vmatmul.mubr.msk.bf16.vlgmr.msra.gmra.mrb[80].mxu0 %vm289_vm0, %v15746_v13  ;;  %v15296_v13 = vld [vmem:[#allocation16 + $0x544] ss:$16 sps:$4 sm:$0xff]  }
 0xe49   :  { %7447 = vmatprep.mubr.bf16.mxu1 %v18514_v58  ;;  %7500 = vmatprep.mubr.bf16.mxu0 %v18514_v58 }
 0xe4a   :  { %8289 = vmatpush1.bf16.msra.mxu1 %v15234_v57  ;;  %8395 = vmatpush1.bf16.msra.mxu0 %v15237_v26  ;;  %v15290_v57 = vld [vmem:[#allocation16 + $0x524] ss:$16 sps:$4 sm:$0xff]   ;;  %v15293_v26 = vld [vmem:[#allocation16 + $0x52c] ss:$16 sps:$4 sm:$0xff]  }
 0xe4b   :  { %8290 = vmatprep.subr.bf16.mxu1 %v15242_v25  ;;  %8396 = vmatprep.subr.bf16.mxu0 %v15245_v44  ;;  %v15288_v25 = vld [vmem:[#allocation16 + $0x520] ss:$16 sps:$4 sm:$0xff]   ;;  %v15291_v44 = vld [vmem:[#allocation16 + $0x528] ss:$16 sps:$4 sm:$0xff]  }
 0xe4e   :  { %8291 = vmatpush1.bf16.msra.mxu1 %v15240_v46  ;;  %8397 = vmatpush1.bf16.msra.mxu0 %v15243_v7  ;;  %v15299_v46 = vld [vmem:[#allocation16 + $0x54c] ss:$16 sps:$4 sm:$0xff]   ;;  %v15294_v7 = vld [vmem:[#allocation16 + $0x540] ss:$16 sps:$4 sm:$0xff]  }
 0xe4f   :  { %8292 = vmatprep.subr.bf16.mxu1 %v15248_v34  ;;  %8398 = vmatprep.subr.bf16.mxu0 %v15251_v50  ;;  %v15297_v34 = vld [vmem:[#allocation16 + $0x548] ss:$16 sps:$4 sm:$0xff]   ;;  %v15302_v50 = vld [vmem:[#allocation16 + $0x564] ss:$16 sps:$4 sm:$0xff]  }
 0xe50   :  { %12535 = vmatmul.mubr.msk.bf16.gmra.mrb[80].mxu1 %vm289_vm0, %v15747_v21  ;;  %12537 = vmatmul.mubr.msk.bf16.gmra.mrb[84].mxu0 %vm289_vm0, %v15747_v21  ;;  %v15311_v21 = vld [vmem:[#allocation16 + $0x58c] ss:$16 sps:$4 sm:$0xff]  }
 0xe52   :  { %8293 = vmatpush1.bf16.msra.mxu1 %v15246_v3  ;;  %8399 = vmatpush1.bf16.msra.mxu0 %v15249_v49  ;;  %v15305_v3 = vld [vmem:[#allocation16 + $0x56c] ss:$16 sps:$4 sm:$0xff]   ;;  %v15300_v49 = vld [vmem:[#allocation16 + $0x560] ss:$16 sps:$4 sm:$0xff]  }
 0xe53   :  { %8294 = vmatprep.subr.bf16.mxu1 %v15254_v54  ;;  %8400 = vmatprep.subr.bf16.mxu0 %v15257_v17  ;;  %v15303_v54 = vld [vmem:[#allocation16 + $0x568] ss:$16 sps:$4 sm:$0xff]   ;;  %v15308_v17 = vld [vmem:[#allocation16 + $0x584] ss:$16 sps:$4 sm:$0xff]  }
 0xe56   :  { %8295 = vmatpush1.bf16.msra.mxu1 %v15252_v53  ;;  %8401 = vmatpush1.bf16.msra.mxu0 %v15255_v52  ;;  %v15306_v53 = vld [vmem:[#allocation16 + $0x580] ss:$16 sps:$4 sm:$0xff]   ;;  %v15309_v52 = vld [vmem:[#allocation16 + $0x588] ss:$16 sps:$4 sm:$0xff]  }
 0xe57   :  { %8296 = vmatprep.subr.bf16.mxu1 %v15260_v4  ;;  %8402 = vmatprep.subr.bf16.mxu0 %v15263_v19  ;;  %v15314_v4 = vld [vmem:[#allocation16 + $0x5a4] ss:$16 sps:$4 sm:$0xff]   ;;  %v15317_v19 = vld [vmem:[#allocation16 + $0x5ac] ss:$16 sps:$4 sm:$0xff]  }
 0xe5a   :  { %8297 = vmatpush1.bf16.msra.mxu1 %v15258_v56  ;;  %8403 = vmatpush1.bf16.msra.mxu0 %v15261_v20  ;;  %v15312_v56 = vld [vmem:[#allocation16 + $0x5a0] ss:$16 sps:$4 sm:$0xff]   ;;  %v15315_v20 = vld [vmem:[#allocation16 + $0x5a8] ss:$16 sps:$4 sm:$0xff]  }
 0xe5b   :  { %8298 = vmatprep.subr.bf16.mxu1 %v15266_v10  ;;  %8404 = vmatprep.subr.bf16.mxu0 %v15269_v38  ;;  %v15320_v10 = vld [vmem:[#allocation16 + $0x5c4] ss:$16 sps:$4 sm:$0xff]   ;;  %v15323_v38 = vld [vmem:[#allocation16 + $0x5cc] ss:$16 sps:$4 sm:$0xff]  }
 0xe5e   :  { %8299 = vmatpush1.bf16.msra.mxu1 %v15264_v45  ;;  %8405 = vmatpush1.bf16.msra.mxu0 %v15267_v36  ;;  %v15318_v45 = vld [vmem:[#allocation16 + $0x5c0] ss:$16 sps:$4 sm:$0xff]   ;;  %v15321_v36 = vld [vmem:[#allocation16 + $0x5c8] ss:$16 sps:$4 sm:$0xff]  }
 0xe5f   :  { %8300 = vmatprep.subr.bf16.mxu1 %v15272_v5  ;;  %8406 = vmatprep.subr.bf16.mxu0 %v15275_v41  ;;  %v15324_v5 = vld [vmem:[#allocation16 + $0x5e0] ss:$16 sps:$4 sm:$0xff]   ;;  %v15326_v41 = vld [vmem:[#allocation16 + $0x5e4] ss:$16 sps:$4 sm:$0xff]  }
 0xe62   :  { %8301 = vmatpush1.bf16.msra.mxu1 %v15270_v6  ;;  %8407 = vmatpush1.bf16.msra.mxu0 %v15273_v9  ;;  %v15327_v6 = vld [vmem:[#allocation16 + $0x5e8] ss:$16 sps:$4 sm:$0xff]   ;;  %v15329_v9 = vld [vmem:[#allocation16 + $0x5ec] ss:$16 sps:$4 sm:$0xff]  }
 0xe63   :  { %8302 = vmatprep.subr.bf16.mxu1 %v15278_v40  ;;  %8408 = vmatprep.subr.bf16.mxu0 %v15281_v0  ;;  %v15332_v40 = vld [vmem:[#allocation16 + $0x604] ss:$16 sps:$4 sm:$0xff]   ;;  %v15335_v0 = vld [vmem:[#allocation16 + $0x60c] ss:$16 sps:$4 sm:$0xff]  }
 0xe66   :  { %8303 = vmatpush1.bf16.msra.mxu1 %v15276_v15  ;;  %8409 = vmatpush1.bf16.msra.mxu0 %v15279_v42 }
 0xe67   :  { %8304 = vmatprep.subr.bf16.mxu1 %v15284_v29  ;;  %8410 = vmatprep.subr.bf16.mxu0 %v15287_v22 }
 0xe6a   :  { %8305 = vmatpush1.bf16.msra.mxu1 %v15282_v32  ;;  %8411 = vmatpush1.bf16.msra.mxu0 %v15285_v11 }
 0xe6b   :  { %8306 = vmatprep.subr.bf16.mxu1 %v15290_v57  ;;  %8412 = vmatprep.subr.bf16.mxu0 %v15293_v26 }
 0xe6e   :  { %8307 = vmatpush1.bf16.msra.mxu1 %v15288_v25  ;;  %8413 = vmatpush1.bf16.msra.mxu0 %v15291_v44 }
 0xe6f   :  { %8308 = vmatprep.subr.bf16.mxu1 %v15296_v13  ;;  %8414 = vmatprep.subr.bf16.mxu0 %v15299_v46  ;;  %v15330_v46 = vld [vmem:[#allocation16 + $0x600] ss:$16 sps:$4 sm:$0xff]  }
 0xe72   :  { %8309 = vmatpush1.bf16.msra.mxu1 %v15294_v7  ;;  %8415 = vmatpush1.bf16.msra.mxu0 %v15297_v34  ;;  %v15333_v7 = vld [vmem:[#allocation16 + $0x608] ss:$16 sps:$4 sm:$0xff]  }
 0xe73   :  { %8310 = vmatprep.subr.bf16.mxu1 %v15302_v50  ;;  %8416 = vmatprep.subr.bf16.mxu0 %v15305_v3  ;;  %v15338_v50 = vld [vmem:[#allocation16 + $0x624] ss:$16 sps:$4 sm:$0xff]   ;;  %v15341_v3 = vld [vmem:[#allocation16 + $0x62c] ss:$16 sps:$4 sm:$0xff]  }
 0xe76   :  { %8311 = vmatpush1.bf16.msra.mxu1 %v15300_v49  ;;  %8417 = vmatpush1.bf16.msra.mxu0 %v15303_v54  ;;  %v15336_v49 = vld [vmem:[#allocation16 + $0x620] ss:$16 sps:$4 sm:$0xff]   ;;  %v15339_v54 = vld [vmem:[#allocation16 + $0x628] ss:$16 sps:$4 sm:$0xff]  }
 0xe77   :  { %8312 = vmatprep.subr.bf16.mxu1 %v15308_v17  ;;  %8418 = vmatprep.subr.bf16.mxu0 %v15311_v21 }
 0xe7a   :  { %8313 = vmatpush1.bf16.msra.mxu1 %v15306_v53  ;;  %8419 = vmatpush1.bf16.msra.mxu0 %v15309_v52  ;;  %v15344_v53 = vld [vmem:[#allocation16 + $0x644] ss:$16 sps:$4 sm:$0xff]   ;;  %v15347_v52 = vld [vmem:[#allocation16 + $0x64c] ss:$16 sps:$4 sm:$0xff]  }
 0xe7b   :  { %8314 = vmatprep.subr.bf16.mxu1 %v15314_v4  ;;  %8420 = vmatprep.subr.bf16.mxu0 %v15317_v19 }
 0xe7e   :  { %8315 = vmatpush1.bf16.msra.mxu1 %v15312_v56  ;;  %8421 = vmatpush1.bf16.msra.mxu0 %v15315_v20 }
 0xe7f   :  { %8316 = vmatprep.subr.bf16.mxu1 %v15320_v10  ;;  %8422 = vmatprep.subr.bf16.mxu0 %v15323_v38 }
 0xe82   :  { %8317 = vmatpush1.bf16.msra.mxu1 %v15318_v45  ;;  %8423 = vmatpush1.bf16.msra.mxu0 %v15321_v36 }
 0xe83   :  { %8318 = vmatprep.subr.bf16.mxu1 %v15326_v41  ;;  %8424 = vmatprep.subr.bf16.mxu0 %v15329_v9  ;;  %v15345_v41 = vld [vmem:[#allocation16 + $0x648] ss:$16 sps:$4 sm:$0xff]  }
 0xe86   :  { %8319 = vmatpush1.bf16.msra.mxu1 %v15324_v5  ;;  %8425 = vmatpush1.bf16.msra.mxu0 %v15327_v6  ;;  %v15342_v5 = vld [vmem:[#allocation16 + $0x640] ss:$16 sps:$4 sm:$0xff]  }
 0xe87   :  { %8341 = vmatprep.subr.bf16.mxu1 %v15332_v40  ;;  %8447 = vmatprep.subr.bf16.mxu0 %v15335_v0  ;;  %v15350_v40 = vld [vmem:[#allocation16 + $0x664] ss:$16 sps:$4 sm:$0xff]   ;;  %v15353_v0 = vld [vmem:[#allocation16 + $0x66c] ss:$16 sps:$4 sm:$0xff]  }
 0xf1b   :  { %v7439_v15 = vpop.f32.mrb[76].mxu1  ;;  %v7492_v42 = vpop.f32.mrb[80].mxu0 }
 0xf1c   :  { %v7441_v29 = vpop.f32.mrb[77].mxu1  ;;  %v7494_v22 = vpop.f32.mrb[81].mxu0 }
 0xf1d   :  { %v7443_v32 = vpop.f32.mrb[78].mxu1  ;;  %v7496_v11 = vpop.f32.mrb[82].mxu0 }
 0xf1e   :  { %v7511_v57 = vpack.c.bf16 %v7443_v32, %v7439_v15  ;;  %v7445_v26 = vpop.f32.mrb[79].mxu1  ;;  %v17513_v25 = vpack.c.bf16 %v7496_v11, %v7492_v42  ;;  %v7498_v44 = vpop.f32.mrb[83].mxu0  ;;  %v15348_v15 = vld [vmem:[#allocation16 + $0x660] ss:$16 sps:$4 sm:$0xff]   ;;  %v15351_v42 = vld [vmem:[#allocation16 + $0x668] ss:$16 sps:$4 sm:$0xff]  }
 0xf1f   :  { %v7512_v13 = vpack.c.bf16 %v7445_v26, %v7441_v29  ;;  %v7514_v34 = vpack.c.bf16 %v7498_v44, %v7494_v22  ;;  %v15356_v29 = vld [vmem:[#allocation16 + $0x684] ss:$16 sps:$4 sm:$0xff]   ;;  %v15359_v22 = vld [vmem:[#allocation16 + $0x68c] ss:$16 sps:$4 sm:$0xff]   ;;  %v15354_v32 = vld [vmem:[#allocation16 + $0x680] ss:$16 sps:$4 sm:$0xff]  }
 0xf20   :  { %v15357_v11 = vld [vmem:[#allocation16 + $0x688] ss:$16 sps:$4 sm:$0xff]   ;;  %v15365_v26 = vld [vmem:[#allocation16 + $0x6ac] ss:$16 sps:$4 sm:$0xff]   ;;  %v15360_v44 = vld [vmem:[#allocation16 + $0x6a0] ss:$16 sps:$4 sm:$0xff]  }
 0xf21   :  { %8320 = vmatprep.mubr.bf16.mxu1 %v7512_v13  ;;  %8426 = vmatprep.mubr.bf16.mxu0 %v7512_v13  ;;  %v15363_v13 = vld [vmem:[#allocation16 + $0x6a8] ss:$16 sps:$4 sm:$0xff]  }
 0xf22   :  { %8321 = vmatmul.mubr.bf16.vlgmr.msra.gmra.mrb[68].mxu1 %v7511_v57  ;;  %8427 = vmatmul.mubr.bf16.vlgmr.msra.gmra.mrb[72].mxu0 %v7511_v57  ;;  %v15362_v57 = vld [vmem:[#allocation16 + $0x6a4] ss:$16 sps:$4 sm:$0xff]  }
 0xf23   :  { %8342 = vmatpush1.bf16.msra.mxu1 %v15330_v46  ;;  %8448 = vmatpush1.bf16.msra.mxu0 %v15333_v7  ;;  %v7449_v17 = vpop.f32.mrb[80].mxu1  ;;  %v7502_v21 = vpop.f32.mrb[84].mxu0  ;;  %v15368_v46 = vld [vmem:[#allocation16 + $0x6c4] ss:$16 sps:$4 sm:$0xff]   ;;  %v15371_v7 = vld [vmem:[#allocation16 + $0x6cc] ss:$16 sps:$4 sm:$0xff]  }
 0xf24   :  { %8343 = vmatprep.subr.bf16.mxu1 %v15338_v50  ;;  %8449 = vmatprep.subr.bf16.mxu0 %v15341_v3  ;;  %v7451_v4 = vpop.f32.mrb[81].mxu1  ;;  %v7504_v19 = vpop.f32.mrb[85].mxu0  ;;  %v15366_v50 = vld [vmem:[#allocation16 + $0x6c0] ss:$16 sps:$4 sm:$0xff]   ;;  %v15374_v3 = vld [vmem:[#allocation16 + $0x6e4] ss:$16 sps:$4 sm:$0xff]  }
 0xf25   :  { %v7453_v56 = vpop.f32.mrb[82].mxu1  ;;  %v7506_v20 = vpop.f32.mrb[86].mxu0 }
 0xf26   :  { %v7515_v10 = vpack.c.bf16 %v7453_v56, %v7449_v17  ;;  %v7455_v38 = vpop.f32.mrb[83].mxu1  ;;  %v17515_v45 = vpack.c.bf16 %v7506_v20, %v7502_v21  ;;  %v7508_v36 = vpop.f32.mrb[87].mxu0  ;;  %v15375_v17 = vld [vmem:[#allocation16 + $0x6e8] ss:$16 sps:$4 sm:$0xff]   ;;  %v15380_v21 = vld [vmem:[#allocation16 + $0x704] ss:$16 sps:$4 sm:$0xff]  }
 0xf27   :  { %8344 = vmatpush1.bf16.msra.mxu1 %v15336_v49  ;;  %8450 = vmatpush1.bf16.msra.mxu0 %v15339_v54  ;;  %v7516_v6 = vpack.c.bf16 %v7455_v38, %v7451_v4  ;;  %v17517_v9 = vpack.c.bf16 %v7508_v36, %v7504_v19  ;;  %v15377_v49 = vld [vmem:[#allocation16 + $0x6ec] ss:$16 sps:$4 sm:$0xff]   ;;  %v15372_v54 = vld [vmem:[#allocation16 + $0x6e0] ss:$16 sps:$4 sm:$0xff]   ;;  %v15381_v4 = vld [vmem:[#allocation16 + $0x708] ss:$16 sps:$4 sm:$0xff]  }
 0xf28   :  { %8345 = vmatprep.subr.bf16.mxu1 %v15344_v53  ;;  %8451 = vmatprep.subr.bf16.mxu0 %v15347_v52  ;;  %v15383_v53 = vld [vmem:[#allocation16 + $0x70c] ss:$16 sps:$4 sm:$0xff]   ;;  %v15378_v52 = vld [vmem:[#allocation16 + $0x700] ss:$16 sps:$4 sm:$0xff]   ;;  %v15386_v19 = vld [vmem:[#allocation16 + $0x724] ss:$16 sps:$4 sm:$0xff]  }
 0xf29   :  { %8330 = vmatprep.mubr.bf16.mxu1 %v7516_v6  ;;  %8436 = vmatprep.mubr.bf16.mxu0 %v7516_v6  ;;  %v15389_v56 = vld [vmem:[#allocation16 + $0x72c] ss:$16 sps:$4 sm:$0xff]   ;;  %v15384_v20 = vld [vmem:[#allocation16 + $0x720] ss:$16 sps:$4 sm:$0xff]   ;;  %v15392_v38 = vld [vmem:[#allocation16 + $0x744] ss:$16 sps:$4 sm:$0xff]  }
 0xf2a   :  { %8331 = vmatmul.mubr.bf16.gmra.mrb[72].mxu1 %v7515_v10  ;;  %8437 = vmatmul.mubr.bf16.gmra.mrb[76].mxu0 %v7515_v10  ;;  %v15387_v10 = vld [vmem:[#allocation16 + $0x728] ss:$16 sps:$4 sm:$0xff]   ;;  %v15395_v36 = vld [vmem:[#allocation16 + $0x74c] ss:$16 sps:$4 sm:$0xff]   ;;  %v15398_v6 = vld [vmem:[#allocation16 + $0x764] ss:$16 sps:$4 sm:$0xff]  }
 0xf2b   :  { %8346 = vmatpush1.bf16.msra.mxu1 %v15342_v5  ;;  %8452 = vmatpush1.bf16.msra.mxu0 %v15345_v41  ;;  %v15390_v5 = vld [vmem:[#allocation16 + $0x740] ss:$16 sps:$4 sm:$0xff]   ;;  %v15393_v41 = vld [vmem:[#allocation16 + $0x748] ss:$16 sps:$4 sm:$0xff]  }
 0xf2c   :  { %8347 = vmatprep.subr.bf16.mxu1 %v15350_v40  ;;  %8453 = vmatprep.subr.bf16.mxu0 %v15353_v0  ;;  %v15401_v40 = vld [vmem:[#allocation16 + $0x76c] ss:$16 sps:$4 sm:$0xff]   ;;  %v15396_v0 = vld [vmem:[#allocation16 + $0x760] ss:$16 sps:$4 sm:$0xff]  }
 0xf2d   :  { %8373 = vmatprep.mubr.bf16.mxu1 %v7514_v34  ;;  %8479 = vmatprep.mubr.bf16.mxu0 %v7514_v34  ;;  %v15369_v34 = vld [vmem:[#allocation16 + $0x6c8] ss:$16 sps:$4 sm:$0xff]  }
 0xf2f   :  { %8348 = vmatpush1.bf16.msra.mxu1 %v15348_v15  ;;  %8454 = vmatpush1.bf16.msra.mxu0 %v15351_v42  ;;  %v15399_v15 = vld [vmem:[#allocation16 + $0x768] ss:$16 sps:$4 sm:$0xff]   ;;  %v15404_v42 = vld [vmem:[#allocation16 + $0x784] ss:$16 sps:$4 sm:$0xff]  }
 0xf30   :  { %8349 = vmatprep.subr.bf16.mxu1 %v15356_v29  ;;  %8455 = vmatprep.subr.bf16.mxu0 %v15359_v22  ;;  %v15407_v29 = vld [vmem:[#allocation16 + $0x78c] ss:$16 sps:$4 sm:$0xff]   ;;  %v15402_v22 = vld [vmem:[#allocation16 + $0x780] ss:$16 sps:$4 sm:$0xff]  }
 0xf33   :  { %8350 = vmatpush1.bf16.msra.mxu1 %v15354_v32  ;;  %8456 = vmatpush1.bf16.msra.mxu0 %v15357_v11  ;;  %v15405_v32 = vld [vmem:[#allocation16 + $0x788] ss:$16 sps:$4 sm:$0xff]   ;;  %v15410_v11 = vld [vmem:[#allocation16 + $0x7a4] ss:$16 sps:$4 sm:$0xff]  }
 0xf34   :  { %8351 = vmatprep.subr.bf16.mxu1 %v15362_v57  ;;  %8457 = vmatprep.subr.bf16.mxu0 %v15365_v26  ;;  %v15413_v57 = vld [vmem:[#allocation16 + $0x7ac] ss:$16 sps:$4 sm:$0xff]   ;;  %v15408_v26 = vld [vmem:[#allocation16 + $0x7a0] ss:$16 sps:$4 sm:$0xff]  }
 0xf37   :  { %8352 = vmatpush1.bf16.msra.mxu1 %v15360_v44  ;;  %8458 = vmatpush1.bf16.msra.mxu0 %v15363_v13  ;;  %v15411_v44 = vld [vmem:[#allocation16 + $0x7a8] ss:$16 sps:$4 sm:$0xff]   ;;  %v15416_v13 = vld [vmem:[#allocation16 + $0x7c4] ss:$16 sps:$4 sm:$0xff]  }
 0xf38   :  { %8353 = vmatprep.subr.bf16.mxu1 %v15368_v46  ;;  %8459 = vmatprep.subr.bf16.mxu0 %v15371_v7  ;;  %v15419_v46 = vld [vmem:[#allocation16 + $0x7cc] ss:$16 sps:$4 sm:$0xff]   ;;  %v15414_v7 = vld [vmem:[#allocation16 + $0x7c0] ss:$16 sps:$4 sm:$0xff]  }
 0xf3b   :  { %8354 = vmatpush1.bf16.msra.mxu1 %v15366_v50  ;;  %8460 = vmatpush1.bf16.msra.mxu0 %v15369_v34  ;;  %v15417_v50 = vld [vmem:[#allocation16 + $0x7c8] ss:$16 sps:$4 sm:$0xff]   ;;  %v15422_v34 = vld [vmem:[#allocation16 + $0x7e4] ss:$16 sps:$4 sm:$0xff]  }
 0xf3c   :  { %8355 = vmatprep.subr.bf16.mxu1 %v15374_v3  ;;  %8461 = vmatprep.subr.bf16.mxu0 %v15377_v49  ;;  %v15425_v3 = vld [vmem:[#allocation16 + $0x7ec] ss:$16 sps:$4 sm:$0xff]   ;;  %v15420_v49 = vld [vmem:[#allocation16 + $0x7e0] ss:$16 sps:$4 sm:$0xff]  }
 0xf3f   :  { %8356 = vmatpush1.bf16.msra.mxu1 %v15372_v54  ;;  %8462 = vmatpush1.bf16.msra.mxu0 %v15375_v17  ;;  %v15423_v54 = vld [vmem:[#allocation16 + $0x7e8] ss:$16 sps:$4 sm:$0xff]   ;;  %v15428_v17 = vld [vmem:[#allocation16 + $0x804] ss:$16 sps:$4 sm:$0xff]  }
 0xf40   :  { %8357 = vmatprep.subr.bf16.mxu1 %v15380_v21  ;;  %8463 = vmatprep.subr.bf16.mxu0 %v15383_v53  ;;  %v15431_v21 = vld [vmem:[#allocation16 + $0x80c] ss:$16 sps:$4 sm:$0xff]   ;;  %v15446_v53 = vld [vmem:[#allocation16 + $0x864] ss:$16 sps:$4 sm:$0xff]  }
 0xf43   :  { %8358 = vmatpush1.bf16.msra.mxu1 %v15378_v52  ;;  %8464 = vmatpush1.bf16.msra.mxu0 %v15381_v4  ;;  %v15449_v52 = vld [vmem:[#allocation16 + $0x86c] ss:$16 sps:$4 sm:$0xff]   ;;  %v15749_v4 = vld [vmem:[#allocation2 + $0x28] sm:$0xff]  }
 0xf44   :  { %8359 = vmatprep.subr.bf16.mxu1 %v15386_v19  ;;  %8465 = vmatprep.subr.bf16.mxu0 %v15389_v56  ;;  %v15444_v19 = vld [vmem:[#allocation16 + $0x860] ss:$16 sps:$4 sm:$0xff]   ;;  %v15447_v56 = vld [vmem:[#allocation16 + $0x868] ss:$16 sps:$4 sm:$0xff]  }
 0xf47   :  { %8360 = vmatpush1.bf16.msra.mxu1 %v15384_v20  ;;  %8466 = vmatpush1.bf16.msra.mxu0 %v15387_v10  ;;  %v15452_v20 = vld [vmem:[#allocation16 + $0x884] ss:$16 sps:$4 sm:$0xff]   ;;  %v15455_v10 = vld [vmem:[#allocation16 + $0x88c] ss:$16 sps:$4 sm:$0xff]  }
 0xf48   :  { %8361 = vmatprep.subr.bf16.mxu1 %v15392_v38  ;;  %8467 = vmatprep.subr.bf16.mxu0 %v15395_v36  ;;  %v15450_v38 = vld [vmem:[#allocation16 + $0x880] ss:$16 sps:$4 sm:$0xff]   ;;  %v15453_v36 = vld [vmem:[#allocation16 + $0x888] ss:$16 sps:$4 sm:$0xff]  }
 0xf4b   :  { %8362 = vmatpush1.bf16.msra.mxu1 %v15390_v5  ;;  %8468 = vmatpush1.bf16.msra.mxu0 %v15393_v41  ;;  %v15458_v5 = vld [vmem:[#allocation16 + $0x8a4] ss:$16 sps:$4 sm:$0xff]   ;;  %v15461_v41 = vld [vmem:[#allocation16 + $0x8ac] ss:$16 sps:$4 sm:$0xff]  }
 0xf4c   :  { %8363 = vmatprep.subr.bf16.mxu1 %v15398_v6  ;;  %8469 = vmatprep.subr.bf16.mxu0 %v15401_v40  ;;  %v15456_v6 = vld [vmem:[#allocation16 + $0x8a0] ss:$16 sps:$4 sm:$0xff]   ;;  %v15459_v40 = vld [vmem:[#allocation16 + $0x8a8] ss:$16 sps:$4 sm:$0xff]  }
 0xf4f   :  { %8364 = vmatpush1.bf16.msra.mxu1 %v15396_v0  ;;  %8470 = vmatpush1.bf16.msra.mxu0 %v15399_v15  ;;  %v15464_v0 = vld [vmem:[#allocation16 + $0x8c4] ss:$16 sps:$4 sm:$0xff]   ;;  %v15467_v15 = vld [vmem:[#allocation16 + $0x8cc] ss:$16 sps:$4 sm:$0xff]  }
 0xf50   :  { %8365 = vmatprep.subr.bf16.mxu1 %v15404_v42  ;;  %8471 = vmatprep.subr.bf16.mxu0 %v15407_v29  ;;  %v15462_v42 = vld [vmem:[#allocation16 + $0x8c0] ss:$16 sps:$4 sm:$0xff]   ;;  %v15465_v29 = vld [vmem:[#allocation16 + $0x8c8] ss:$16 sps:$4 sm:$0xff]  }
 0xf53   :  { %8366 = vmatpush1.bf16.msra.mxu1 %v15402_v22  ;;  %8472 = vmatpush1.bf16.msra.mxu0 %v15405_v32  ;;  %v15470_v22 = vld [vmem:[#allocation16 + $0x8e4] ss:$16 sps:$4 sm:$0xff]   ;;  %v15473_v32 = vld [vmem:[#allocation16 + $0x8ec] ss:$16 sps:$4 sm:$0xff]  }
 0xf54   :  { %8367 = vmatprep.subr.bf16.mxu1 %v15410_v11  ;;  %8473 = vmatprep.subr.bf16.mxu0 %v15413_v57  ;;  %v15468_v11 = vld [vmem:[#allocation16 + $0x8e0] ss:$16 sps:$4 sm:$0xff]   ;;  %v15471_v57 = vld [vmem:[#allocation16 + $0x8e8] ss:$16 sps:$4 sm:$0xff]  }
 0xf57   :  { %8368 = vmatpush1.bf16.msra.mxu1 %v15408_v26  ;;  %8474 = vmatpush1.bf16.msra.mxu0 %v15411_v44  ;;  %v15476_v26 = vld [vmem:[#allocation16 + $0x904] ss:$16 sps:$4 sm:$0xff]   ;;  %v15479_v44 = vld [vmem:[#allocation16 + $0x90c] ss:$16 sps:$4 sm:$0xff]  }
 0xf58   :  { %8369 = vmatprep.subr.bf16.mxu1 %v15416_v13  ;;  %8475 = vmatprep.subr.bf16.mxu0 %v15419_v46  ;;  %v15474_v13 = vld [vmem:[#allocation16 + $0x900] ss:$16 sps:$4 sm:$0xff]   ;;  %v15477_v46 = vld [vmem:[#allocation16 + $0x908] ss:$16 sps:$4 sm:$0xff]  }
 0xf5b   :  { %8370 = vmatpush1.bf16.msra.mxu1 %v15414_v7  ;;  %8476 = vmatpush1.bf16.msra.mxu0 %v15417_v50  ;;  %v15482_v7 = vld [vmem:[#allocation16 + $0x924] ss:$16 sps:$4 sm:$0xff]   ;;  %v15485_v50 = vld [vmem:[#allocation16 + $0x92c] ss:$16 sps:$4 sm:$0xff]  }
 0xf5c   :  { %8371 = vmatprep.subr.bf16.mxu1 %v15422_v34  ;;  %8477 = vmatprep.subr.bf16.mxu0 %v15425_v3  ;;  %v15480_v34 = vld [vmem:[#allocation16 + $0x920] ss:$16 sps:$4 sm:$0xff]   ;;  %v15483_v3 = vld [vmem:[#allocation16 + $0x928] ss:$16 sps:$4 sm:$0xff]  }
 0xf5f   :  { %8372 = vmatpush1.bf16.msra.mxu1 %v15420_v49  ;;  %8478 = vmatpush1.bf16.msra.mxu0 %v15423_v54  ;;  %v15488_v49 = vld [vmem:[#allocation16 + $0x944] ss:$16 sps:$4 sm:$0xff]   ;;  %v15491_v54 = vld [vmem:[#allocation16 + $0x94c] ss:$16 sps:$4 sm:$0xff]  }
 0xf60   :  { %8516 = vmatprep.subr.bf16.mxu1 %v17440_v61  ;;  %8569 = vmatprep.subr.bf16.mxu0 %v17443_v8  ;;  %v15434_v61 = vld [vmem:[#allocation16 + $0x824] ss:$16 sps:$4 sm:$0xff]   ;;  %v15437_v8 = vld [vmem:[#allocation16 + $0x82c] ss:$16 sps:$4 sm:$0xff]  }
 0xf62   :  { %8374 = vmatmul.mubr.bf16.vlgmr.msra.gmra.mrb[68].mxu1 %v17513_v25  ;;  %8480 = vmatmul.mubr.bf16.vlgmr.msra.gmra.mrb[72].mxu0 %v17513_v25  ;;  %v15443_v25 = vld [vmem:[#allocation16 + $0x84c] ss:$16 sps:$4 sm:$0xff]  }
 0xf63   :  { %8517 = vmatpush1.bf16.msra.mxu1 %v17434_v62  ;;  %8570 = vmatpush1.bf16.msra.mxu0 %v17438_v30  ;;  %v15426_v62 = vld [vmem:[#allocation16 + $0x800] ss:$16 sps:$4 sm:$0xff]   ;;  %v15429_v30 = vld [vmem:[#allocation16 + $0x808] ss:$16 sps:$4 sm:$0xff]  }
 0xf64   :  { %8518 = vmatprep.subr.bf16.mxu1 %v17464_v35  ;;  %8571 = vmatprep.subr.bf16.mxu0 %v17468_v1  ;;  %v15748_v35 = vld [vmem:[#allocation2 + $0x20] sm:$0xff]  }
 0xf65   :  { %8383 = vmatprep.mubr.bf16.mxu1 %v17517_v9  ;;  %8489 = vmatprep.mubr.bf16.mxu0 %v17517_v9  ;;  %v15435_v1 = vld [vmem:[#allocation16 + $0x828] ss:$16 sps:$4 sm:$0xff]  }
 0xf66   :  { %v15441_v9 = vld [vmem:[#allocation16 + $0x848] ss:$16 sps:$4 sm:$0xff]  }
 0xf67   :  { %8519 = vmatpush1.bf16.msra.mxu1 %v17466_v16  ;;  %8572 = vmatpush1.bf16.msra.mxu0 %v17476_v2  ;;  %v15432_v16 = vld [vmem:[#allocation16 + $0x820] ss:$16 sps:$4 sm:$0xff]   ;;  %v15440_v2 = vld [vmem:[#allocation16 + $0x844] ss:$16 sps:$4 sm:$0xff]  }
 0xf68   :  { %9399 = vmatprep.subr.bf16.mxu1 %v15428_v17  ;;  %9505 = vmatprep.subr.bf16.mxu0 %v15431_v21  ;;  %v15486_v17 = vld [vmem:[#allocation16 + $0x940] ss:$16 sps:$4 sm:$0xff]   ;;  %v15489_v21 = vld [vmem:[#allocation16 + $0x948] ss:$16 sps:$4 sm:$0xff]  }
 0xf6a   :  { %8384 = vmatmul.mubr.bf16.gmra.mrb[72].mxu1 %v17515_v45  ;;  %8490 = vmatmul.mubr.bf16.gmra.mrb[76].mxu0 %v17515_v45  ;;  %v15438_v45 = vld [vmem:[#allocation16 + $0x840] ss:$16 sps:$4 sm:$0xff]  }
 0xf6b   :  { %8548 = vmatprep.mubr.bf16.mxu1 %v18514_v58  ;;  %8601 = vmatprep.mubr.bf16.mxu0 %v18514_v58 }
 0xf72   :  { %12666 = vmatmul.mubr.msk.bf16.vlgmr.msra.gmra.mrb[84].mxu1 %vm289_vm0, %v15748_v35  ;;  %12668 = vmatmul.mubr.msk.bf16.vlgmr.msra.gmra.mrb[88].mxu0 %vm289_vm0, %v15748_v35  ;;  %v15500_v35 = vld [vmem:[#allocation16 + $0x984] ss:$16 sps:$4 sm:$0xff]  }
 0xf73   :  { %8558 = vmatprep.mubr.bf16.mxu1 %v18514_v58  ;;  %8611 = vmatprep.mubr.bf16.mxu0 %v18514_v58 }
 0xf74   :  { %9400 = vmatpush1.bf16.msra.mxu1 %v15426_v62  ;;  %9506 = vmatpush1.bf16.msra.mxu0 %v15429_v30  ;;  %v15494_v62 = vld [vmem:[#allocation16 + $0x964] ss:$16 sps:$4 sm:$0xff]   ;;  %v15497_v30 = vld [vmem:[#allocation16 + $0x96c] ss:$16 sps:$4 sm:$0xff]  }
 0xf75   :  { %9401 = vmatprep.subr.bf16.mxu1 %v15434_v61  ;;  %9507 = vmatprep.subr.bf16.mxu0 %v15437_v8  ;;  %v15492_v61 = vld [vmem:[#allocation16 + $0x960] ss:$16 sps:$4 sm:$0xff]   ;;  %v15495_v8 = vld [vmem:[#allocation16 + $0x968] ss:$16 sps:$4 sm:$0xff]  }
 0xf78   :  { %9402 = vmatpush1.bf16.msra.mxu1 %v15432_v16  ;;  %9508 = vmatpush1.bf16.msra.mxu0 %v15435_v1  ;;  %v15503_v16 = vld [vmem:[#allocation16 + $0x98c] ss:$16 sps:$4 sm:$0xff]   ;;  %v15498_v1 = vld [vmem:[#allocation16 + $0x980] ss:$16 sps:$4 sm:$0xff]  }
 0xf79   :  { %9403 = vmatprep.subr.bf16.mxu1 %v15440_v2  ;;  %9509 = vmatprep.subr.bf16.mxu0 %v15443_v25  ;;  %v15501_v2 = vld [vmem:[#allocation16 + $0x988] ss:$16 sps:$4 sm:$0xff]   ;;  %v15506_v25 = vld [vmem:[#allocation16 + $0x9a4] ss:$16 sps:$4 sm:$0xff]  }
 0xf7a   :  { %12667 = vmatmul.mubr.msk.bf16.gmra.mrb[88].mxu1 %vm289_vm0, %v15749_v4  ;;  %12669 = vmatmul.mubr.msk.bf16.gmra.mrb[92].mxu0 %vm289_vm0, %v15749_v4  ;;  %v15515_v4 = vld [vmem:[#allocation16 + $0x9cc] ss:$16 sps:$4 sm:$0xff]  }
 0xf7c   :  { %9404 = vmatpush1.bf16.msra.mxu1 %v15438_v45  ;;  %9510 = vmatpush1.bf16.msra.mxu0 %v15441_v9  ;;  %v15509_v45 = vld [vmem:[#allocation16 + $0x9ac] ss:$16 sps:$4 sm:$0xff]   ;;  %v15504_v9 = vld [vmem:[#allocation16 + $0x9a0] ss:$16 sps:$4 sm:$0xff]  }
 0xf7d   :  { %9405 = vmatprep.subr.bf16.mxu1 %v15446_v53  ;;  %9511 = vmatprep.subr.bf16.mxu0 %v15449_v52  ;;  %v15507_v53 = vld [vmem:[#allocation16 + $0x9a8] ss:$16 sps:$4 sm:$0xff]   ;;  %v15512_v52 = vld [vmem:[#allocation16 + $0x9c4] ss:$16 sps:$4 sm:$0xff]  }
 0xf80   :  { %9406 = vmatpush1.bf16.msra.mxu1 %v15444_v19  ;;  %9512 = vmatpush1.bf16.msra.mxu0 %v15447_v56  ;;  %v15510_v19 = vld [vmem:[#allocation16 + $0x9c0] ss:$16 sps:$4 sm:$0xff]   ;;  %v15513_v56 = vld [vmem:[#allocation16 + $0x9c8] ss:$16 sps:$4 sm:$0xff]  }
 0xf81   :  { %9407 = vmatprep.subr.bf16.mxu1 %v15452_v20  ;;  %9513 = vmatprep.subr.bf16.mxu0 %v15455_v10  ;;  %v15516_v20 = vld [vmem:[#allocation16 + $0x9e0] ss:$16 sps:$4 sm:$0xff]   ;;  %v15518_v10 = vld [vmem:[#allocation16 + $0x9e4] ss:$16 sps:$4 sm:$0xff]  }
 0xf84   :  { %9408 = vmatpush1.bf16.msra.mxu1 %v15450_v38  ;;  %9514 = vmatpush1.bf16.msra.mxu0 %v15453_v36  ;;  %v15519_v38 = vld [vmem:[#allocation16 + $0x9e8] ss:$16 sps:$4 sm:$0xff]   ;;  %v15521_v36 = vld [vmem:[#allocation16 + $0x9ec] ss:$16 sps:$4 sm:$0xff]  }
 0xf85   :  { %9409 = vmatprep.subr.bf16.mxu1 %v15458_v5  ;;  %9515 = vmatprep.subr.bf16.mxu0 %v15461_v41  ;;  %v15524_v5 = vld [vmem:[#allocation16 + $0xa04] ss:$16 sps:$4 sm:$0xff]   ;;  %v15527_v41 = vld [vmem:[#allocation16 + $0xa0c] ss:$16 sps:$4 sm:$0xff]  }
 0xf88   :  { %9410 = vmatpush1.bf16.msra.mxu1 %v15456_v6  ;;  %9516 = vmatpush1.bf16.msra.mxu0 %v15459_v40 }
 0xf89   :  { %9411 = vmatprep.subr.bf16.mxu1 %v15464_v0  ;;  %9517 = vmatprep.subr.bf16.mxu0 %v15467_v15 }
 0xf8c   :  { %9412 = vmatpush1.bf16.msra.mxu1 %v15462_v42  ;;  %9518 = vmatpush1.bf16.msra.mxu0 %v15465_v29 }
 0xf8d   :  { %9413 = vmatprep.subr.bf16.mxu1 %v15470_v22  ;;  %9519 = vmatprep.subr.bf16.mxu0 %v15473_v32 }
 0xf90   :  { %9414 = vmatpush1.bf16.msra.mxu1 %v15468_v11  ;;  %9520 = vmatpush1.bf16.msra.mxu0 %v15471_v57 }
 0xf91   :  { %9415 = vmatprep.subr.bf16.mxu1 %v15476_v26  ;;  %9521 = vmatprep.subr.bf16.mxu0 %v15479_v44  ;;  %v15522_v44 = vld [vmem:[#allocation16 + $0xa00] ss:$16 sps:$4 sm:$0xff]  }
 0xf94   :  { %9416 = vmatpush1.bf16.msra.mxu1 %v15474_v13  ;;  %9522 = vmatpush1.bf16.msra.mxu0 %v15477_v46  ;;  %v15525_v13 = vld [vmem:[#allocation16 + $0xa08] ss:$16 sps:$4 sm:$0xff]  }
 0xf95   :  { %9417 = vmatprep.subr.bf16.mxu1 %v15482_v7  ;;  %9523 = vmatprep.subr.bf16.mxu0 %v15485_v50  ;;  %v15530_v7 = vld [vmem:[#allocation16 + $0xa24] ss:$16 sps:$4 sm:$0xff]   ;;  %v15533_v50 = vld [vmem:[#allocation16 + $0xa2c] ss:$16 sps:$4 sm:$0xff]  }
 0xf98   :  { %9418 = vmatpush1.bf16.msra.mxu1 %v15480_v34  ;;  %9524 = vmatpush1.bf16.msra.mxu0 %v15483_v3  ;;  %v15528_v34 = vld [vmem:[#allocation16 + $0xa20] ss:$16 sps:$4 sm:$0xff]   ;;  %v15531_v3 = vld [vmem:[#allocation16 + $0xa28] ss:$16 sps:$4 sm:$0xff]  }
 0xf99   :  { %9419 = vmatprep.subr.bf16.mxu1 %v15488_v49  ;;  %9525 = vmatprep.subr.bf16.mxu0 %v15491_v54 }
 0xf9c   :  { %9420 = vmatpush1.bf16.msra.mxu1 %v15486_v17  ;;  %9526 = vmatpush1.bf16.msra.mxu0 %v15489_v21  ;;  %v15536_v17 = vld [vmem:[#allocation16 + $0xa44] ss:$16 sps:$4 sm:$0xff]   ;;  %v15539_v21 = vld [vmem:[#allocation16 + $0xa4c] ss:$16 sps:$4 sm:$0xff]  }
 0xf9d   :  { %9421 = vmatprep.subr.bf16.mxu1 %v15494_v62  ;;  %9527 = vmatprep.subr.bf16.mxu0 %v15497_v30 }
 0xfa0   :  { %9422 = vmatpush1.bf16.msra.mxu1 %v15492_v61  ;;  %9528 = vmatpush1.bf16.msra.mxu0 %v15495_v8 }
 0xfa1   :  { %9423 = vmatprep.subr.bf16.mxu1 %v15500_v35  ;;  %9529 = vmatprep.subr.bf16.mxu0 %v15503_v16 }
 0xfa4   :  { %9424 = vmatpush1.bf16.msra.mxu1 %v15498_v1  ;;  %9530 = vmatpush1.bf16.msra.mxu0 %v15501_v2 }
 0xfa5   :  { %9425 = vmatprep.subr.bf16.mxu1 %v15506_v25  ;;  %9531 = vmatprep.subr.bf16.mxu0 %v15509_v45  ;;  %v15534_v25 = vld [vmem:[#allocation16 + $0xa40] ss:$16 sps:$4 sm:$0xff]   ;;  %v15537_v45 = vld [vmem:[#allocation16 + $0xa48] ss:$16 sps:$4 sm:$0xff]  }
 0xfa8   :  { %9426 = vmatpush1.bf16.msra.mxu1 %v15504_v9  ;;  %9532 = vmatpush1.bf16.msra.mxu0 %v15507_v53 }
 0xfa9   :  { %9427 = vmatprep.subr.bf16.mxu1 %v15512_v52  ;;  %9533 = vmatprep.subr.bf16.mxu0 %v15515_v4  ;;  %v15542_v52 = vld [vmem:[#allocation16 + $0xa64] ss:$16 sps:$4 sm:$0xff]   ;;  %v15545_v4 = vld [vmem:[#allocation16 + $0xa6c] ss:$16 sps:$4 sm:$0xff]  }
 0xfac   :  { %9428 = vmatpush1.bf16.msra.mxu1 %v15510_v19  ;;  %9534 = vmatpush1.bf16.msra.mxu0 %v15513_v56  ;;  %v15540_v19 = vld [vmem:[#allocation16 + $0xa60] ss:$16 sps:$4 sm:$0xff]   ;;  %v15543_v56 = vld [vmem:[#allocation16 + $0xa68] ss:$16 sps:$4 sm:$0xff]  }
 0xfad   :  { %9429 = vmatprep.subr.bf16.mxu1 %v15518_v10  ;;  %9535 = vmatprep.subr.bf16.mxu0 %v15521_v36  ;;  %v15551_v10 = vld [vmem:[#allocation16 + $0xa8c] ss:$16 sps:$4 sm:$0xff]   ;;  %v15549_v36 = vld [vmem:[#allocation16 + $0xa88] ss:$16 sps:$4 sm:$0xff]  }
 0xfb0   :  { %9430 = vmatpush1.bf16.msra.mxu1 %v15516_v20  ;;  %9536 = vmatpush1.bf16.msra.mxu0 %v15519_v38  ;;  %v15548_v20 = vld [vmem:[#allocation16 + $0xa84] ss:$16 sps:$4 sm:$0xff]   ;;  %v15546_v38 = vld [vmem:[#allocation16 + $0xa80] ss:$16 sps:$4 sm:$0xff]  }
 0xfb1   :  { %9452 = vmatprep.subr.bf16.mxu1 %v15524_v5  ;;  %9558 = vmatprep.subr.bf16.mxu0 %v15527_v41  ;;  %v15554_v5 = vld [vmem:[#allocation16 + $0xaa4] ss:$16 sps:$4 sm:$0xff]   ;;  %v15557_v41 = vld [vmem:[#allocation16 + $0xaac] ss:$16 sps:$4 sm:$0xff]  }
0x1045   :  { %v8550_v6 = vpop.f32.mrb[84].mxu1  ;;  %v8603_v40 = vpop.f32.mrb[88].mxu0 }
0x1046   :  { %v8552_v0 = vpop.f32.mrb[85].mxu1  ;;  %v8605_v15 = vpop.f32.mrb[89].mxu0 }
0x1047   :  { %v8554_v42 = vpop.f32.mrb[86].mxu1  ;;  %v8607_v29 = vpop.f32.mrb[90].mxu0 }
0x1048   :  { %v8622_v22 = vpack.c.bf16 %v8554_v42, %v8550_v6  ;;  %v8556_v32 = vpop.f32.mrb[87].mxu1  ;;  %v17541_v11 = vpack.c.bf16 %v8607_v29, %v8603_v40  ;;  %v8609_v57 = vpop.f32.mrb[91].mxu0  ;;  %v15552_v6 = vld [vmem:[#allocation16 + $0xaa0] ss:$16 sps:$4 sm:$0xff]   ;;  %v15555_v40 = vld [vmem:[#allocation16 + $0xaa8] ss:$16 sps:$4 sm:$0xff]  }
0x1049   :  { %v8623_v26 = vpack.c.bf16 %v8556_v32, %v8552_v0  ;;  %v8625_v46 = vpack.c.bf16 %v8609_v57, %v8605_v15  ;;  %v15560_v0 = vld [vmem:[#allocation16 + $0xac4] ss:$16 sps:$4 sm:$0xff]   ;;  %v15563_v15 = vld [vmem:[#allocation16 + $0xacc] ss:$16 sps:$4 sm:$0xff]   ;;  %v15558_v42 = vld [vmem:[#allocation16 + $0xac0] ss:$16 sps:$4 sm:$0xff]  }
0x104a   :  { %v15561_v29 = vld [vmem:[#allocation16 + $0xac8] ss:$16 sps:$4 sm:$0xff]   ;;  %v15569_v32 = vld [vmem:[#allocation16 + $0xaec] ss:$16 sps:$4 sm:$0xff]   ;;  %v15564_v57 = vld [vmem:[#allocation16 + $0xae0] ss:$16 sps:$4 sm:$0xff]  }
0x104b   :  { %9431 = vmatprep.mubr.bf16.mxu1 %v8623_v26  ;;  %9537 = vmatprep.mubr.bf16.mxu0 %v8623_v26  ;;  %v15567_v26 = vld [vmem:[#allocation16 + $0xae8] ss:$16 sps:$4 sm:$0xff]  }
0x104c   :  { %9432 = vmatmul.mubr.bf16.vlgmr.msra.gmra.mrb[68].mxu1 %v8622_v22  ;;  %9538 = vmatmul.mubr.bf16.vlgmr.msra.gmra.mrb[72].mxu0 %v8622_v22  ;;  %v15566_v22 = vld [vmem:[#allocation16 + $0xae4] ss:$16 sps:$4 sm:$0xff]  }
0x104d   :  { %9453 = vmatpush1.bf16.msra.mxu1 %v15522_v44  ;;  %9559 = vmatpush1.bf16.msra.mxu0 %v15525_v13  ;;  %v8560_v49 = vpop.f32.mrb[88].mxu1  ;;  %v8613_v54 = vpop.f32.mrb[92].mxu0  ;;  %v15572_v44 = vld [vmem:[#allocation16 + $0xb04] ss:$16 sps:$4 sm:$0xff]   ;;  %v15575_v13 = vld [vmem:[#allocation16 + $0xb0c] ss:$16 sps:$4 sm:$0xff]  }
0x104e   :  { %9454 = vmatprep.subr.bf16.mxu1 %v15530_v7  ;;  %9560 = vmatprep.subr.bf16.mxu0 %v15533_v50  ;;  %v8562_v62 = vpop.f32.mrb[89].mxu1  ;;  %v8615_v30 = vpop.f32.mrb[93].mxu0  ;;  %v15573_v7 = vld [vmem:[#allocation16 + $0xb08] ss:$16 sps:$4 sm:$0xff]   ;;  %v15578_v50 = vld [vmem:[#allocation16 + $0xb24] ss:$16 sps:$4 sm:$0xff]  }
0x104f   :  { %v8564_v61 = vpop.f32.mrb[90].mxu1  ;;  %v8617_v8 = vpop.f32.mrb[94].mxu0 }
0x1050   :  { %v8626_v35 = vpack.c.bf16 %v8564_v61, %v8560_v49  ;;  %v8566_v16 = vpop.f32.mrb[91].mxu1  ;;  %v17543_v1 = vpack.c.bf16 %v8617_v8, %v8613_v54  ;;  %v8619_v2 = vpop.f32.mrb[95].mxu0  ;;  %v15579_v49 = vld [vmem:[#allocation16 + $0xb28] ss:$16 sps:$4 sm:$0xff]   ;;  %v15584_v54 = vld [vmem:[#allocation16 + $0xb44] ss:$16 sps:$4 sm:$0xff]  }
0x1051   :  { %9455 = vmatpush1.bf16.msra.mxu1 %v15528_v34  ;;  %9561 = vmatpush1.bf16.msra.mxu0 %v15531_v3  ;;  %v8627_v9 = vpack.c.bf16 %v8566_v16, %v8562_v62  ;;  %v17545_v53 = vpack.c.bf16 %v8619_v2, %v8615_v30  ;;  %v15581_v34 = vld [vmem:[#allocation16 + $0xb2c] ss:$16 sps:$4 sm:$0xff]   ;;  %v15576_v3 = vld [vmem:[#allocation16 + $0xb20] ss:$16 sps:$4 sm:$0xff]   ;;  %v15585_v62 = vld [vmem:[#allocation16 + $0xb48] ss:$16 sps:$4 sm:$0xff]  }
0x1052   :  { %9456 = vmatprep.subr.bf16.mxu1 %v15536_v17  ;;  %9562 = vmatprep.subr.bf16.mxu0 %v15539_v21  ;;  %v15587_v17 = vld [vmem:[#allocation16 + $0xb4c] ss:$16 sps:$4 sm:$0xff]   ;;  %v15582_v21 = vld [vmem:[#allocation16 + $0xb40] ss:$16 sps:$4 sm:$0xff]   ;;  %v15590_v30 = vld [vmem:[#allocation16 + $0xb64] ss:$16 sps:$4 sm:$0xff]  }
0x1053   :  { %9441 = vmatprep.mubr.bf16.mxu1 %v8627_v9  ;;  %9547 = vmatprep.mubr.bf16.mxu0 %v8627_v9  ;;  %v15593_v61 = vld [vmem:[#allocation16 + $0xb6c] ss:$16 sps:$4 sm:$0xff]   ;;  %v15588_v8 = vld [vmem:[#allocation16 + $0xb60] ss:$16 sps:$4 sm:$0xff]   ;;  %v15596_v16 = vld [vmem:[#allocation16 + $0xb84] ss:$16 sps:$4 sm:$0xff]  }
0x1054   :  { %9442 = vmatmul.mubr.bf16.gmra.mrb[72].mxu1 %v8626_v35  ;;  %9548 = vmatmul.mubr.bf16.gmra.mrb[76].mxu0 %v8626_v35  ;;  %v15591_v35 = vld [vmem:[#allocation16 + $0xb68] ss:$16 sps:$4 sm:$0xff]   ;;  %v15599_v2 = vld [vmem:[#allocation16 + $0xb8c] ss:$16 sps:$4 sm:$0xff]   ;;  %v15602_v9 = vld [vmem:[#allocation16 + $0xba4] ss:$16 sps:$4 sm:$0xff]  }
0x1055   :  { %9457 = vmatpush1.bf16.msra.mxu1 %v15534_v25  ;;  %9563 = vmatpush1.bf16.msra.mxu0 %v15537_v45  ;;  %v15594_v25 = vld [vmem:[#allocation16 + $0xb80] ss:$16 sps:$4 sm:$0xff]   ;;  %v15597_v45 = vld [vmem:[#allocation16 + $0xb88] ss:$16 sps:$4 sm:$0xff]  }
0x1056   :  { %9458 = vmatprep.subr.bf16.mxu1 %v15542_v52  ;;  %9564 = vmatprep.subr.bf16.mxu0 %v15545_v4  ;;  %v15605_v52 = vld [vmem:[#allocation16 + $0xbac] ss:$16 sps:$4 sm:$0xff]   ;;  %v15600_v4 = vld [vmem:[#allocation16 + $0xba0] ss:$16 sps:$4 sm:$0xff]  }
0x1057   :  { %9484 = vmatprep.mubr.bf16.mxu1 %v8625_v46  ;;  %9590 = vmatprep.mubr.bf16.mxu0 %v8625_v46  ;;  %v15570_v46 = vld [vmem:[#allocation16 + $0xb00] ss:$16 sps:$4 sm:$0xff]  }
0x1059   :  { %9459 = vmatpush1.bf16.msra.mxu1 %v15540_v19  ;;  %9565 = vmatpush1.bf16.msra.mxu0 %v15543_v56  ;;  %v15603_v19 = vld [vmem:[#allocation16 + $0xba8] ss:$16 sps:$4 sm:$0xff]   ;;  %v15608_v56 = vld [vmem:[#allocation16 + $0xbc4] ss:$16 sps:$4 sm:$0xff]  }
0x105a   :  { %9460 = vmatprep.subr.bf16.mxu1 %v15548_v20  ;;  %9566 = vmatprep.subr.bf16.mxu0 %v15551_v10  ;;  %v15611_v20 = vld [vmem:[#allocation16 + $0xbcc] ss:$16 sps:$4 sm:$0xff]   ;;  %v15606_v10 = vld [vmem:[#allocation16 + $0xbc0] ss:$16 sps:$4 sm:$0xff]  }
0x105d   :  { %9461 = vmatpush1.bf16.msra.mxu1 %v15546_v38  ;;  %9567 = vmatpush1.bf16.msra.mxu0 %v15549_v36  ;;  %v15609_v38 = vld [vmem:[#allocation16 + $0xbc8] ss:$16 sps:$4 sm:$0xff]   ;;  %v15614_v36 = vld [vmem:[#allocation16 + $0xbe4] ss:$16 sps:$4 sm:$0xff]  }
0x105e   :  { %9462 = vmatprep.subr.bf16.mxu1 %v15554_v5  ;;  %9568 = vmatprep.subr.bf16.mxu0 %v15557_v41  ;;  %v15617_v5 = vld [vmem:[#allocation16 + $0xbec] ss:$16 sps:$4 sm:$0xff]   ;;  %v15612_v41 = vld [vmem:[#allocation16 + $0xbe0] ss:$16 sps:$4 sm:$0xff]  }
0x1061   :  { %9463 = vmatpush1.bf16.msra.mxu1 %v15552_v6  ;;  %9569 = vmatpush1.bf16.msra.mxu0 %v15555_v40  ;;  %v15615_v6 = vld [vmem:[#allocation16 + $0xbe8] ss:$16 sps:$4 sm:$0xff]   ;;  %v18534_v40 = vld [vmem:[#allocation33_spill] sm:$0xff] }
0x1062   :  { %9464 = vmatprep.subr.bf16.mxu1 %v15560_v0  ;;  %9570 = vmatprep.subr.bf16.mxu0 %v15563_v15  ;;  %v18535_v0 = vld [vmem:[#allocation34_spill] sm:$0xff] }
0x1063   :  { %v18539_v15 = vld [vmem:[#allocation38_spill] sm:$0xff] }
0x1065   :  { %9465 = vmatpush1.bf16.msra.mxu1 %v15558_v42  ;;  %9571 = vmatpush1.bf16.msra.mxu0 %v15561_v29  ;;  %v18540_v42 = vld [vmem:[#allocation39_spill] sm:$0xff]  ;;  %v18541_v29 = vld [vmem:[#allocation40_spill] sm:$0xff] }
0x1066   :  { %9466 = vmatprep.subr.bf16.mxu1 %v15566_v22  ;;  %9572 = vmatprep.subr.bf16.mxu0 %v15569_v32  ;;  %v18542_v22 = vld [vmem:[#allocation41_spill] sm:$0xff]  ;;  %v18543_v32 = vld [vmem:[#allocation42_spill] sm:$0xff] }
0x1069   :  { %9467 = vmatpush1.bf16.msra.mxu1 %v15564_v57  ;;  %9573 = vmatpush1.bf16.msra.mxu0 %v15567_v26  ;;  %v18544_v57 = vld [vmem:[#allocation43_spill] sm:$0xff]  ;;  %v18545_v26 = vld [vmem:[#allocation44_spill] sm:$0xff] }
0x106a   :  { %9468 = vmatprep.subr.bf16.mxu1 %v15572_v44  ;;  %9574 = vmatprep.subr.bf16.mxu0 %v15575_v13  ;;  %v18546_v44 = vld [vmem:[#allocation45_spill] sm:$0xff]  ;;  %v18547_v13 = vld [vmem:[#allocation46_spill] sm:$0xff] }
0x106d   :  { %9469 = vmatpush1.bf16.msra.mxu1 %v15570_v46  ;;  %9575 = vmatpush1.bf16.msra.mxu0 %v15573_v7  ;;  %v6269_v46 = vld [vmem:[#allocation18] sm:$0xf] }
0x106e   :  { %9470 = vmatprep.subr.bf16.mxu1 %v15578_v50  ;;  %9576 = vmatprep.subr.bf16.mxu0 %v15581_v34  ;;  %v17588_v7 = vrot.slane %v6269_v46, %v18515_v28  ;;  %v18548_v50 = vld [vmem:[#allocation48_spill] sm:$0xff] }
0x106f   :  { %v17591_v34 = vrot.slane %v6269_v46, %v18548_v50 }
0x1071   :  { %9471 = vmatpush1.bf16.msra.mxu1 %v15576_v3  ;;  %9577 = vmatpush1.bf16.msra.mxu0 %v15579_v49  ;;  %v18549_v3 = vld [vmem:[#allocation49_spill] sm:$0xff] }
0x1072   :  { %9472 = vmatprep.subr.bf16.mxu1 %v15584_v54  ;;  %9578 = vmatprep.subr.bf16.mxu0 %v15587_v17  ;;  %v17594_v49 = vrot.slane %v6269_v46, %v18549_v3 }
0x1075   :  { %9473 = vmatpush1.bf16.msra.mxu1 %v15582_v21  ;;  %9579 = vmatpush1.bf16.msra.mxu0 %v15585_v62 }
0x1076   :  { %9474 = vmatprep.subr.bf16.mxu1 %v15590_v30  ;;  %9580 = vmatprep.subr.bf16.mxu0 %v15593_v61  ;;  %v18550_v61 = vld [vmem:[#allocation50_spill] sm:$0xff] }
0x1079   :  { %9475 = vmatpush1.bf16.msra.mxu1 %v15588_v8  ;;  %9581 = vmatpush1.bf16.msra.mxu0 %v15591_v35  ;;  %v17598_v8 = vrot.slane %v6269_v46, %v18550_v61 }
0x107a   :  { %9476 = vmatprep.subr.bf16.mxu1 %v15596_v16  ;;  %9582 = vmatprep.subr.bf16.mxu0 %v15599_v2 }
0x107d   :  { %9477 = vmatpush1.bf16.msra.mxu1 %v15594_v25  ;;  %9583 = vmatpush1.bf16.msra.mxu0 %v15597_v45 }
0x107e   :  { %9478 = vmatprep.subr.bf16.mxu1 %v15602_v9  ;;  %9584 = vmatprep.subr.bf16.mxu0 %v15605_v52 }
0x1081   :  { %9479 = vmatpush1.bf16.msra.mxu1 %v15600_v4  ;;  %9585 = vmatpush1.bf16.msra.mxu0 %v15603_v19 }
0x1082   :  { %9480 = vmatprep.subr.bf16.mxu1 %v15608_v56  ;;  %9586 = vmatprep.subr.bf16.mxu0 %v15611_v20 }
0x1085   :  { %9481 = vmatpush1.bf16.msra.mxu1 %v15606_v10  ;;  %9587 = vmatpush1.bf16.msra.mxu0 %v15609_v38 }
0x1086   :  { %9482 = vmatprep.subr.bf16.mxu1 %v15614_v36  ;;  %9588 = vmatprep.subr.bf16.mxu0 %v15617_v5 }
0x1089   :  { %9483 = vmatpush1.bf16.msra.mxu1 %v15612_v41  ;;  %9589 = vmatpush1.bf16.msra.mxu0 %v15615_v6 }
0x108a   :  { %13984 = vmatprep.subr.bf16.mxu1 %v18534_v40  ;;  %14016 = vmatprep.subr.bf16.mxu0 %v18535_v0 }
0x108c   :  { %9485 = vmatmul.mubr.bf16.vlgmr.msra.gmra.mrb[68].mxu1 %v17541_v11  ;;  %9591 = vmatmul.mubr.bf16.vlgmr.msra.gmra.mrb[72].mxu0 %v17541_v11  ;;  %v18536_v11 = vld [vmem:[#allocation35_spill] sm:$0xff] }
0x108d   :  { %9494 = vmatprep.mubr.bf16.mxu1 %v17545_v53  ;;  %9600 = vmatprep.mubr.bf16.mxu0 %v17545_v53  ;;  %v18538_v53 = vld [vmem:[#allocation37_spill] sm:$0xff] }
0x108e   :  { %13986 = vmatpush3.bf16.msra.mxu1 %v16494_v12  ;;  %14018 = vmatpush3.bf16.msra.mxu0 %v16499_v14 }
0x108f   :  { %13988 = vmatprep.subr.bf16.mxu1 %v16512_v18  ;;  %14020 = vmatprep.subr.bf16.mxu0 %v16523_v23 }
0x1092   :  { %13990 = vmatpush3.bf16.msra.mxu1 %v16525_v24  ;;  %14022 = vmatpush3.bf16.msra.mxu0 %v16534_v27 }
0x1093   :  { %13992 = vmatprep.subr.bf16.mxu1 %v16548_v31  ;;  %14024 = vmatprep.subr.bf16.mxu0 %v16553_v33 }
0x1094   :  { %9495 = vmatmul.mubr.bf16.gmra.mrb[72].mxu1 %v17543_v1  ;;  %9601 = vmatmul.mubr.bf16.gmra.mrb[76].mxu0 %v17543_v1  ;;  %v18537_v1 = vld [vmem:[#allocation36_spill] sm:$0xff] }
0x1096   :  { %13994 = vmatpush3.bf16.msra.mxu1 %v16566_v37  ;;  %14026 = vmatpush3.bf16.msra.mxu0 %v16571_v39 }
0x1097   :  { %13996 = vmatprep.subr.bf16.mxu1 %v16584_v43  ;;  %14028 = vmatprep.subr.bf16.mxu0 %v16595_v47 }
0x109a   :  { %13998 = vmatpush3.bf16.msra.mxu1 %v16597_v48  ;;  %14030 = vmatpush3.bf16.msra.mxu0 %v16606_v51 }
0x109b   :  { %14000 = vmatprep.subr.bf16.mxu1 %v16620_v55  ;;  %14032 = vmatprep.subr.bf16.mxu0 %v16631_v59 }
0x109e   :  { %14002 = vmatpush3.bf16.msra.mxu1 %v16633_v60  ;;  %14034 = vmatpush3.bf16.msra.mxu0 %v16642_v63 }
0x109f   :  { %14004 = vmatprep.subr.bf16.mxu1 %v18536_v11  ;;  %14036 = vmatprep.subr.bf16.mxu0 %v18537_v1 }
0x10a2   :  { %14006 = vmatpush3.bf16.msra.mxu1 %v18538_v53  ;;  %14038 = vmatpush3.bf16.msra.mxu0 %v18539_v15 }
0x10a3   :  { %14008 = vmatprep.subr.bf16.mxu1 %v18540_v42  ;;  %14040 = vmatprep.subr.bf16.mxu0 %v18541_v29 }
0x10a6   :  { %14010 = vmatpush3.bf16.msra.mxu1 %v18542_v22  ;;  %14042 = vmatpush3.bf16.msra.mxu0 %v18543_v32 }
0x10a7   :  { %14012 = vmatprep.subr.bf16.mxu1 %v18544_v57  ;;  %14044 = vmatprep.subr.bf16.mxu0 %v18545_v26 }
0x10aa   :  { %14014 = vmatpush3.bf16.msra.mxu1 %v18546_v44  ;;  %14046 = vmatpush3.bf16.msra.mxu0 %v18547_v13 }
0x10ab   :  { %14048 = vmatprep.subr.bf16.mxu1 %v18534_v40  ;;  %14080 = vmatprep.subr.bf16.mxu0 %v18535_v0 }
0x115f   :  { %v9486_v54 = vpop.f32.mrb[68].mxu1  ;;  %v9592_v17 = vpop.f32.mrb[72].mxu0 }
0x1160   :  { %v9488_v21 = vpop.f32.mrb[69].mxu1  ;;  %v9594_v62 = vpop.f32.mrb[73].mxu0  ;;  %v14175_v30 = vadd.f32 %v9486_v54, %v17588_v7  ;;  %v14183_v56 = vadd.f32 %v9592_v17, %v17598_v8 }
0x1161   :  { %v9490_v35 = vpop.f32.mrb[70].mxu1  ;;  %v9596_v16 = vpop.f32.mrb[74].mxu0  ;;  %v14176_v2 = vadd.f32 %v9488_v21, %v17591_v34  ;;  %v14184_v25 = vadd.f32 %v9594_v62, %v17594_v49 }
0x1162   :  { %v14177_v45 = vadd.f32 %v9490_v35, %v17588_v7  ;;  %v14185_v9 = vadd.f32 %v9596_v16, %v17598_v8  ;;  %v9492_v52 = vpop.f32.mrb[71].mxu1  ;;  %v9598_v4 = vpop.f32.mrb[75].mxu0  ;;  %vm9627_vm4 = vcmp.ge.f32.partialorder %v14175_v30, 0.0  ;;  %v9643_v19 = vmul.f32 0.01, %v14175_v30 }
0x1163   :  { %vm9628_vm5 = vcmp.ge.f32.partialorder %v14176_v2, 0.0  ;;  %v9644_v20 = vmul.f32 0.01, %v14176_v2  ;;  %vm9630_vm6 = vcmp.ge.f32.partialorder %v14184_v25, 0.0  ;;  %v9646_v10 = vmul.f32 0.01, %v14184_v25 }
0x1164   :  { %v9647_v38 = vmul.f32 0.01, %v14177_v45  ;;  %v9649_v36 = vmul.f32 0.01, %v14185_v9  ;;  %v14178_v5 = vadd.f32 %v9492_v52, %v17591_v34  ;;  %v14186_v41 = vadd.f32 %v9598_v4, %v17594_v49 }
0x1165   :  { %vm9631_vm7 = vcmp.ge.f32.partialorder %v14177_v45, 0.0  ;;  %vm9633_vm8 = vcmp.ge.f32.partialorder %v14185_v9, 0.0  ;;  %vm9629_vm9 = vcmp.ge.f32.partialorder %v14183_v56, 0.0  ;;  %v9645_v21 = vmul.f32 0.01, %v14183_v56 }
0x1166   :  { %vm9632_vm10 = vcmp.ge.f32.partialorder %v14178_v5, 0.0  ;;  %v17610_v16 = vsel %vm9628_vm5, %v14176_v2, %v9644_v20  ;;  %v17613_v52 = vsel %vm9630_vm6, %v14184_v25, %v9646_v10  ;;  %v9648_v4 = vmul.f32 0.01, %v14178_v5 }
0x1167   :  { %v9496_v6 = vpop.f32.mrb[72].mxu1  ;;  %v9602_v40 = vpop.f32.mrb[76].mxu0  ;;  %18551 = vst [vmem:[#allocation60_spill] sm:$0xff] %v17610_v16  ;;  %18552 = vst [vmem:[#allocation59_spill] sm:$0xff] %v17613_v52  ;;  %vm9634_vm11 = vcmp.ge.f32.partialorder %v14186_v41, 0.0  ;;  %v17624_v20 = vsel %vm9627_vm4, %v14175_v30, %v9643_v19  ;;  %v17627_v25 = vsel %vm9629_vm9, %v14183_v56, %v9645_v21 }
0x1168   :  { %v14179_v0 = vadd.f32 %v9496_v6, %v17588_v7  ;;  %v14187_v46 = vadd.f32 %v9602_v40, %v17598_v8  ;;  %v9498_v54 = vpop.f32.mrb[73].mxu1  ;;  %v9604_v17 = vpop.f32.mrb[77].mxu0  ;;  %v17616_v6 = vsel %vm9631_vm7, %v14177_v45, %v9647_v38  ;;  %v17619_v40 = vsel %vm9633_vm8, %v14185_v9, %v9649_v36  ;;  %18556 = vst [vmem:[#allocation63_spill] sm:$0xff] %v17624_v20 }
0x1169   :  { %v9500_v62 = vpop.f32.mrb[74].mxu1  ;;  %v9606_v35 = vpop.f32.mrb[78].mxu0  ;;  %18553 = vst [vmem:[#allocation61_spill] sm:$0xff] %v17616_v6  ;;  %18554 = vst [vmem:[#allocation51_spill] sm:$0xff] %v17619_v40  ;;  %v9650_v50 = vmul.f32 0.01, %v14186_v41  ;;  %v17621_v58 = vsel %vm9632_vm10, %v14178_v5, %v9648_v4  ;;  %v9716_v45 = vmul.f32 %v17610_v16, %v17610_v16  ;;  %v9718_v9 = vmul.f32 %v17613_v52, %v17613_v52 }
0x116a   :  { %v9502_v3 = vpop.f32.mrb[75].mxu1  ;;  %v9608_v61 = vpop.f32.mrb[79].mxu0  ;;  %v9651_v28 = vmul.f32 0.01, %v14179_v0  ;;  %18555 = vst [vmem:[#allocation57_spill] sm:$0xff] %v17621_v58  ;;  %vm9635_vm12 = vcmp.ge.f32.partialorder %v14179_v0, 0.0  ;;  %v9675_v38 = vadd.f32 %v17616_v6, %v17624_v20  ;;  %v9693_v36 = vadd.f32 %v17619_v40, %v17627_v25 }
0x116b   :  { %v9653_v2 = vmul.f32 0.01, %v14187_v46  ;;  %18557 = vst [vmem:[#allocation56_spill] sm:$0xff] %v17627_v25  ;;  %v17629_v10 = vsel %vm9634_vm11, %v14186_v41, %v9650_v50  ;;  %vm9637_vm13 = vcmp.ge.f32.partialorder %v14187_v46, 0.0  ;;  %v9720_v30 = vmul.f32 %v17621_v58, %v17621_v58 }
0x116c   :  { %18558 = vst [vmem:[#allocation54_spill] sm:$0xff] %v17629_v10  ;;  %v17641_v19 = vsel %vm9635_vm12, %v14179_v0, %v9651_v28  ;;  %v14180_v50 = vadd.f32 %v9498_v54, %v17591_v34  ;;  %v14188_v56 = vadd.f32 %v9604_v17, %v17594_v49  ;;  %v9684_v5 = vadd.f32 %v17621_v58, %v17610_v16 }
0x116d   :  { %18559 = vst [vmem:[#allocation52_spill] sm:$0xff] %v17641_v19  ;;  %v9702_v41 = vadd.f32 %v17629_v10, %v17613_v52  ;;  %v9722_v21 = vmul.f32 %v17629_v10, %v17629_v10  ;;  %v17651_v4 = vsel %vm9637_vm13, %v14187_v46, %v9653_v2  ;;  %v9676_v0 = vadd.f32 %v9675_v38, %v17641_v19 }
0x116e   :  { %18560 = vst [vmem:[#allocation62_spill] sm:$0xff] %v17651_v4  ;;  %vm9636_vm14 = vcmp.ge.f32.partialorder %v14180_v50, 0.0  ;;  %v9652_v13 = vmul.f32 0.01, %v14180_v50  ;;  %vm9638_vm15 = vcmp.ge.f32.partialorder %v14188_v56, 0.0  ;;  %v14181_v54 = vadd.f32 %v9500_v62, %v17588_v7 }
0x116f   :  { %v9654_v28 = vmul.f32 0.01, %v14188_v56  ;;  %v14189_v17 = vadd.f32 %v9606_v35, %v17598_v8  ;;  %v14182_v58 = vadd.f32 %v9502_v3, %v17591_v34  ;;  %v9740_v16 = vadd.f32 %v9720_v30, %v9716_v45 }
0x1170   :  { %v17657_v44 = vsel %vm9636_vm14, %v14180_v50, %v9652_v13  ;;  %v14190_v46 = vadd.f32 %v9608_v61, %v17594_v49  ;;  %v9758_v2 = vadd.f32 %v9722_v21, %v9718_v9  ;;  %v9694_v10 = vadd.f32 %v9693_v36, %v17651_v4 }
0x1171   :  { %18561 = vst [vmem:[#allocation53_spill] sm:$0xff] %v17657_v44  ;;  %v17659_v52 = vsel %vm9638_vm15, %v14188_v56, %v9654_v28  ;;  %v9724_v26 = vmul.f32 %v17657_v44, %v17657_v44  ;;  %vm9639_vm1 = vcmp.ge.f32.partialorder %v14181_v54, 0.0  ;;  %v9655_v8 = vmul.f32 0.01, %v14181_v54 }
0x1172   :  { %18562 = vst [vmem:[#allocation55_spill] sm:$0xff] %v17659_v52  ;;  %v9726_v7 = vmul.f32 %v17659_v52, %v17659_v52  ;;  %vm9641_vm2 = vcmp.ge.f32.partialorder %v14189_v17, 0.0  ;;  %v9657_v34 = vmul.f32 0.01, %v14189_v17  ;;  %v9685_v13 = vadd.f32 %v9684_v5, %v17657_v44 }
0x1173   :  { %v9703_v3 = vadd.f32 %v9702_v41, %v17659_v52  ;;  %vm9640_vm3 = vcmp.ge.f32.partialorder %v14182_v58, 0.0  ;;  %v9656_v62 = vmul.f32 0.01, %v14182_v58  ;;  %v17669_v49 = vsel %vm9639_vm1, %v14181_v54, %v9655_v8 }
0x1174   :  { %v17671_v61 = vsel %vm9641_vm2, %v14189_v17, %v9657_v34  ;;  %vm9642_vm4 = vcmp.ge.f32.partialorder %v14190_v46, 0.0  ;;  %v9658_v35 = vmul.f32 0.01, %v14190_v46  ;;  %v9677_v45 = vadd.f32 %v9676_v0, %v17669_v49 }
0x1175   :  { %v9695_v9 = vadd.f32 %v9694_v10, %v17671_v61  ;;  %v9741_v38 = vadd.f32 %v9740_v16, %v9724_v26  ;;  %v9759_v36 = vadd.f32 %v9758_v2, %v9726_v7  ;;  %v17675_v30 = vsel %vm9640_vm3, %v14182_v58, %v9656_v62 }
0x1176   :  { %18563 = vst [vmem:[#allocation58_spill] sm:$0xff] %v17675_v30  ;;  %v17677_v50 = vsel %vm9642_vm4, %v14190_v46, %v9658_v35  ;;  %v9678_v56 = vrot.slane %v9677_v45, 4  ;;  %v9686_v41 = vadd.f32 %v9685_v13, %v17675_v30  ;;  %v9728_v21 = vmul.f32 %v17675_v30, %v17675_v30 }
0x1177   :  { %18564 = vst [vmem:[#allocation64_spill] sm:$0xff] %v17677_v50  ;;  %v9696_v5 = vrot.slane %v9695_v9, 4  ;;  %v9704_v28 = vadd.f32 %v9703_v3, %v17677_v50  ;;  %v9730_v0 = vmul.f32 %v17677_v50, %v17677_v50 }
0x1178   :  { %v9679_v54 = vadd.f32 %v9678_v56, %v9677_v45  ;;  %v9687_v26 = vrot.slane %v9686_v41, 4  ;;  %v9742_v16 = vadd.f32 %v9741_v38, %v9728_v21  ;;  %v9719_v45 = vmul.f32 %v17616_v6, %v17616_v6 }
0x1179   :  { %v9697_v10 = vadd.f32 %v9696_v5, %v9695_v9  ;;  %v9705_v58 = vrot.slane %v9704_v28, 4  ;;  %v9760_v17 = vadd.f32 %v9759_v36, %v9730_v0  ;;  %v9721_v9 = vmul.f32 %v17619_v40, %v17619_v40 }
0x117a   :  { %v9680_v46 = vrot.slane %v9679_v54, 2  ;;  %v9688_v7 = vadd.f32 %v9687_v26, %v9686_v41  ;;  %v9743_v34 = vrot.slane %v9742_v16, 4  ;;  %v9717_v0 = vmul.f32 %v17627_v25, %v17627_v25 }
0x117b   :  { %v9698_v2 = vrot.slane %v9697_v10, 2  ;;  %v9706_v8 = vadd.f32 %v9705_v58, %v9704_v28  ;;  %v9761_v13 = vrot.slane %v9760_v17, 4  ;;  %v9715_v28 = vmul.f32 %v17624_v20, %v17624_v20 }
0x117c   :  { %v9681_v62 = vadd.f32 %v9680_v46, %v9679_v54  ;;  %v9689_v52 = vrot.slane %v9688_v7, 2  ;;  %v9744_v3 = vadd.f32 %v9743_v34, %v9742_v16  ;;  %v9723_v54 = vmul.f32 %v17641_v19, %v17641_v19 }
0x117d   :  { %v9699_v35 = vadd.f32 %v9698_v2, %v9697_v10  ;;  %v9707_v30 = vrot.slane %v9706_v8, 2  ;;  %v9762_v44 = vadd.f32 %v9761_v13, %v9760_v17  ;;  %v9725_v10 = vmul.f32 %v17651_v4, %v17651_v4 }
0x117e   :  { %v9682_v38 = vrot.slane %v9681_v62, 1  ;;  %v9690_v56 = vadd.f32 %v9689_v52, %v9688_v7  ;;  %v9745_v41 = vrot.slane %v9744_v3, 2  ;;  %v9731_v52 = vadd.f32 %v9719_v45, %v9715_v28 }
0x117f   :  { %v9700_v36 = vrot.slane %v9699_v35, 1  ;;  %v9708_v5 = vadd.f32 %v9707_v30, %v9706_v8  ;;  %v9763_v21 = vrot.slane %v9762_v44, 2  ;;  %v9749_v30 = vadd.f32 %v9721_v9, %v9717_v0 }
0x1180   :  { %v9691_v26 = vrot.slane %v9690_v56, 1  ;;  %v9746_v58 = vadd.f32 %v9745_v41, %v9744_v3  ;;  %v9683_v46 = vadd.f32 %v9682_v38, %v9681_v62  ;;  %v9732_v50 = vadd.f32 %v9731_v52, %v9723_v54 }
0x1181   :  { %v9709_v16 = vrot.slane %v9708_v5, 1  ;;  %v9764_v17 = vadd.f32 %v9763_v21, %v9762_v44  ;;  %v9701_v2 = vadd.f32 %v9700_v36, %v9699_v35  ;;  %v9750_v40 = vadd.f32 %v9749_v30, %v9725_v10 }
0x1182   :  { %v9692_v7 = vadd.f32 %v9691_v26, %v9690_v56  ;;  %v9747_v34 = vrot.slane %v9746_v58, 1  ;;  %v9727_v4 = vmul.f32 %v17669_v49, %v17669_v49  ;;  %v9729_v44 = vmul.f32 %v17671_v61, %v17671_v61 }
0x1183   :  { %v9710_v8 = vadd.f32 %v9709_v16, %v9708_v5  ;;  %v9765_v13 = vrot.slane %v9764_v17, 1  ;;  %v9711_v3 = vmul.f32 0.03125, %v9683_v46  ;;  %v9713_v45 = vmul.f32 0.03125, %v9701_v2 }
0x1184   :  { %v9712_v25 = vmul.f32 0.03125, %v9692_v7  ;;  %v9748_v19 = vadd.f32 %v9747_v34, %v9746_v58  ;;  %v9733_v9 = vadd.f32 %v9732_v50, %v9727_v4  ;;  %v9751_v38 = vadd.f32 %v9750_v40, %v9729_v44  ;;  %v10411_v44 = vld [vmem:[#allocation19] sm:$0xf] }
0x1185   :  { %v9714_v6 = vmul.f32 0.03125, %v9710_v8  ;;  %v9766_v20 = vadd.f32 %v9765_v13, %v9764_v17  ;;  %v18577_v10 = vmov 0  }
0x1186   :  { %9835 = vmatprep.mubr.f32.mxu1 %v9712_v25  ;;  %v9768_v62 = vmul.f32 0.03125, %v9748_v19 }
0x1187   :  { %9905 = vmatprep.mubr.f32.mxu0 %v9714_v6  ;;  %v9770_v35 = vmul.f32 0.03125, %v9766_v20  ;;  %9836 = vmatmul.mubr.f32.vlgmr.msra.gmra.mrb[92].mxu1 %v9711_v3  ;;  %v9734_v6 = vrot.slane %v9733_v9, 4  ;;  %v9752_v20 = vrot.slane %v9751_v38, 4  ;;  %v18578_v3 = vld [vmem:[#allocation47_spill] sm:$0xff] }
0x1188   :  { %9906 = vmatmul.mubr.f32.vlgmr.msra.gmra.mrb[96].mxu0 %v9713_v45  ;;  %14050 = vmatpush3.bf16.msra.mxu1 %v16494_v12 }
0x1189   :  { %14082 = vmatpush3.bf16.msra.mxu0 %v16499_v14  ;;  %9975 = vmatprep.mubr.f32.mxu1 %v9768_v62  ;;  %v9735_v12 = vadd.f32 %v9734_v6, %v9733_v9  ;;  %v9753_v14 = vadd.f32 %v9752_v20, %v9751_v38  ;;  %v10449_v62 = vld [vmem:[#allocation21] sm:$0xf]  ;;  %v17768_v20 = vrot.slane %v10411_v44, %v18578_v3 }
0x118a   :  { %10045 = vmatprep.mubr.f32.mxu0 %v9770_v35  ;;  %14052 = vmatprep.subr.bf16.mxu1 %v16512_v18  ;;  %v18579_v38 = vld [vmem:[#allocation48_spill] sm:$0xff] }
0x118b   :  { %14084 = vmatprep.subr.bf16.mxu0 %v16523_v23  ;;  %v9736_v18 = vrot.slane %v9735_v12, 2  ;;  %v9754_v23 = vrot.slane %v9753_v14, 2  ;;  %v17765_v6 = vrot.slane %v10411_v44, %v18579_v38 }
0x118c   :  { %14054 = vmatpush3.bf16.msra.mxu1 %v16525_v24 }
0x118d   :  { %14086 = vmatpush3.bf16.msra.mxu0 %v16534_v27  ;;  %14056 = vmatprep.subr.bf16.mxu1 %v16548_v31  ;;  %v9737_v24 = vadd.f32 %v9736_v18, %v9735_v12  ;;  %v9755_v27 = vadd.f32 %v9754_v23, %v9753_v14  ;;  %v18580_v12 = vld [vmem:[#allocation50_spill] sm:$0xff]  ;;  %v17777_v23 = vrot.slane %v10449_v62, %v18579_v38 }
0x118e   :  { %14088 = vmatprep.subr.bf16.mxu0 %v16553_v33  ;;  %v17771_v14 = vrot.slane %v10411_v44, %v18580_v12 }
0x118f   :  { %v9738_v31 = vrot.slane %v9737_v24, 1  ;;  %v9756_v33 = vrot.slane %v9755_v27, 1 }
0x1190   :  { %14058 = vmatpush3.bf16.msra.mxu1 %v16566_v37  ;;  %v18565_v37 = vld [vmem:[#allocation44_spill] sm:$0xff] }
0x1191   :  { %14090 = vmatpush3.bf16.msra.mxu0 %v16571_v39  ;;  %14060 = vmatprep.subr.bf16.mxu1 %v16584_v43  ;;  %v9739_v39 = vadd.f32 %v9738_v31, %v9737_v24  ;;  %v9757_v43 = vadd.f32 %v9756_v33, %v9755_v27  ;;  %v18581_v24 = vld [vmem:[#allocation49_spill] sm:$0xff]  ;;  %v17783_v31 = vrot.slane %v10449_v62, %v18578_v3  ;;  %v18582_v33 = vld [vmem:[#allocation63_spill] sm:$0xff] }
0x1192   :  { %14092 = vmatprep.subr.bf16.mxu0 %v16595_v47  ;;  %v18566_v47 = vld [vmem:[#allocation45_spill] sm:$0xff]  ;;  %v17780_v27 = vrot.slane %v10411_v44, %v18581_v24 }
0x1194   :  { %14062 = vmatpush3.bf16.msra.mxu1 %v16597_v48  ;;  %v18567_v48 = vld [vmem:[#allocation46_spill] sm:$0xff] }
0x1195   :  { %14094 = vmatpush3.bf16.msra.mxu0 %v16606_v51  ;;  %14064 = vmatprep.subr.bf16.mxu1 %v16620_v55  ;;  %v9767_v51 = vmul.f32 0.03125, %v9739_v39  ;;  %v9769_v55 = vmul.f32 0.03125, %v9757_v43  ;;  %v18583_v39 = vld [vmem:[#allocation61_spill] sm:$0xff] }
0x1196   :  { %14096 = vmatprep.subr.bf16.mxu0 %v16631_v59  ;;  %v18568_v59 = vld [vmem:[#allocation65_spill] sm:$0xff] }
0x1198   :  { %14066 = vmatpush3.bf16.msra.mxu1 %v16633_v60  ;;  %v18569_v60 = vld [vmem:[#allocation66_spill] sm:$0xff] }
0x1199   :  { %14098 = vmatpush3.bf16.msra.mxu0 %v16642_v63  ;;  %14068 = vmatprep.subr.bf16.mxu1 %v18536_v11  ;;  %v18570_v63 = vld [vmem:[#allocation67_spill] sm:$0xff]  ;;  %v18571_v11 = vld [vmem:[#allocation68_spill] sm:$0xff] }
0x119a   :  { %14100 = vmatprep.subr.bf16.mxu0 %v18537_v1  ;;  %v18572_v1 = vld [vmem:[#allocation69_spill] sm:$0xff] }
0x119c   :  { %14070 = vmatpush3.bf16.msra.mxu1 %v18538_v53  ;;  %v18573_v53 = vld [vmem:[#allocation70_spill] sm:$0xff] }
0x119d   :  { %14102 = vmatpush3.bf16.msra.mxu0 %v18539_v15  ;;  %14072 = vmatprep.subr.bf16.mxu1 %v18540_v42  ;;  %v18574_v15 = vmov 0.0   ;;  %v18575_v42 = vld [vmem:[#allocation71_spill] sm:$0xff] }
0x119e   :  { %14104 = vmatprep.subr.bf16.mxu0 %v18541_v29  ;;  %v18576_v29 = vld [vmem:[#allocation72_spill] sm:$0xff] }
0x11a0   :  { %14074 = vmatpush3.bf16.msra.mxu1 %v18542_v22 }
0x11a1   :  { %14106 = vmatpush3.bf16.msra.mxu0 %v18543_v32  ;;  %14076 = vmatprep.subr.bf16.mxu1 %v18544_v57 }
0x11a2   :  { %14108 = vmatprep.subr.bf16.mxu0 %v18565_v37 }
0x11a4   :  { %14078 = vmatpush3.bf16.msra.mxu1 %v18566_v47  ;;  %v17788_v47 = vrot.slane %v10449_v62, %v18581_v24 }
0x11a5   :  { %14110 = vmatpush3.bf16.msra.mxu0 %v18567_v48  ;;  %14112 = vmatprep.subr.bf16.mxu1 %v18568_v59  ;;  %v17791_v48 = vrot.slane %v10449_v62, %v18580_v12 }
0x11a6   :  { %14120 = vmatprep.subr.bf16.mxu0 %v18569_v60 }
0x11a7   :  { %9976 = vmatmul.mubr.f32.vlgmr.msra.gmra.mrb[94].mxu1 %v9767_v51  ;;  %v18584_v51 = vld [vmem:[#allocation52_spill] sm:$0xff] }
0x11a8   :  { %10046 = vmatmul.mubr.f32.vlgmr.msra.gmra.mrb[98].mxu0 %v9769_v55  ;;  %14114 = vmatpush1.bf16.msra.mxu1 %v18570_v63 }
0x11a9   :  { %14122 = vmatpush1.bf16.msra.mxu0 %v18571_v11  ;;  %14116 = vmatprep.subr.bf16.mxu1 %v18572_v1 }
0x11aa   :  { %14124 = vmatprep.subr.bf16.mxu0 %v18573_v53  ;;  %10120 = vmatprep.mubr.f32.mxu1 %v18574_v15 }
0x11ab   :  { %10191 = vmatprep.mubr.f32.mxu0 %v18574_v15 }
0x11ac   :  { %14118 = vmatpush1.bf16.msra.mxu1 %v18575_v42 }
0x11ad   :  { %14126 = vmatpush1.bf16.msra.mxu0 %v18576_v29  ;;  %14128 = vmatprep.subr.bf16.mxu1 %v18568_v59 }
0x11ae   :  { %14136 = vmatprep.subr.bf16.mxu0 %v18569_v60  ;;  %v18585_v60 = vld [vmem:[#allocation56_spill] sm:$0xff] }
0x125a   :  { %v13363_v22 = vpop.f32.mrb[92].mxu1 }
0x125b   :  { %v13398_v32 = vpop.f32.mrb[96].mxu0  ;;  %v13364_v57 = vpop.f32.mrb[93].mxu1 }
0x125c   :  { %v13399_v40 = vpop.f32.mrb[97].mxu0  ;;  %v13365_v25 = vadd.f32 %v13364_v57, %v13363_v22  ;;  %v18588_v22 = vld [vmem:[#allocation60_spill] sm:$0xff]  ;;  %v18589_v57 = vld [vmem:[#allocation57_spill] sm:$0xff] }
0x125d   :  { %v13400_v19 = vadd.f32 %v13399_v40, %v13398_v32 }
0x125f   :  { %v9908_v4 = vadd.f32 %v13400_v19, %v13365_v25  ;;  %v18590_v25 = vld [vmem:[#allocation53_spill] sm:$0xff] }
0x1261   :  { %12798 = vmatmul.mubr.msk.f32.vlgmr.msra.gmra.mrb[96].mxu1 %vm289_vm0, %v9908_v4  ;;  %12799 = vmatmul.mubr.msk.f32.vlgmr.msra.gmra.mrb[100].mxu0 %vm289_vm0, %v9908_v4  ;;  %v10051_v0 = vmul.f32 %v9908_v4, %v9908_v4  ;;  %v18591_v4 = vld [vmem:[#allocation58_spill] sm:$0xff] }
0x1262   :  { %14130 = vmatpush1.bf16.msra.mxu1 %v18570_v63  ;;  %14138 = vmatpush1.bf16.msra.mxu0 %v18571_v11  ;;  %v18586_v11 = vld [vmem:[#allocation51_spill] sm:$0xff] }
0x1263   :  { %14132 = vmatprep.subr.bf16.mxu1 %v18572_v1  ;;  %14140 = vmatprep.subr.bf16.mxu0 %v18573_v53 }
0x1264   :  { %10265 = vmatprep.mubr.f32.mxu1 %v18574_v15  ;;  %10336 = vmatprep.mubr.f32.mxu0 %v18574_v15  ;;  %v18587_v15 = vld [vmem:[#allocation62_spill] sm:$0xff] }
0x1266   :  { %14134 = vmatpush1.bf16.msra.mxu1 %v18575_v42  ;;  %14142 = vmatpush1.bf16.msra.mxu0 %v18576_v29 }
0x127a   :  { %v13433_v50 = vpop.f32.mrb[94].mxu1 }
0x127b   :  { %v13468_v36 = vpop.f32.mrb[98].mxu0  ;;  %v13434_v56 = vpop.f32.mrb[95].mxu1 }
0x127c   :  { %v13469_v5 = vpop.f32.mrb[99].mxu0  ;;  %v13435_v41 = vadd.f32 %v13434_v56, %v13433_v50 }
0x127d   :  { %v13470_v21 = vadd.f32 %v13469_v5, %v13468_v36  ;;  %v18592_v36 = vld [vmem:[#allocation59_spill] sm:$0xff] }
0x127f   :  { %v10048_v28 = vadd.f32 %v13470_v21, %v13435_v41  ;;  %v18593_v21 = vld [vmem:[#allocation54_spill] sm:$0xff] }
0x1281   :  { %v10052_v54 = vsub.f32 %v10048_v28, %v10051_v0  ;;  %v18594_v0 = vld [vmem:[#allocation55_spill] sm:$0xff] }
0x1283   :  { %12800 = vmatmul.mubr.msk.f32.vlgmr.msra.gmra.mrb[98].mxu1 %vm289_vm0, %v10052_v54  ;;  %12801 = vmatmul.mubr.msk.f32.vlgmr.msra.gmra.mrb[102].mxu0 %vm289_vm0, %v10052_v54 }
0x1284   :  { %10535 = vmatprep.mubr.bf16.mxu1 %v18577_v10  ;;  %10588 = vmatprep.mubr.bf16.mxu0 %v18577_v10 }
0x1334   :  { %v10122_v26 = vpop.f32.mrb[96].mxu1  ;;  %v10193_v16 = vpop.f32.mrb[100].mxu0 }
0x1335   :  { %v10124_v58 = vpop.f32.mrb[97].mxu1  ;;  %v10195_v17 = vpop.f32.mrb[101].mxu0  ;;  %v10350_v45 = vrot.slane %v10122_v26, %v18578_v3  ;;  %v17759_v35 = vrot.slane %v10193_v16, %v18578_v3  ;;  %v18595_v26 = vld [vmem:[#allocation64_spill] sm:$0xff] }
0x1336   :  { %v17762_v9 = vrot.slane %v10124_v58, %v18578_v3  ;;  %v17774_v18 = vrot.slane %v10195_v17, %v18578_v3 }
0x1337   :  { %v10363_v37 = vsub.f32 %v18582_v33, %v10350_v45  ;;  %v10367_v43 = vsub.f32 %v18583_v39, %v10350_v45  ;;  %v10371_v55 = vsub.f32 %v18584_v51, %v10350_v45  ;;  %v10375_v59 = vsub.f32 %v17669_v49, %v10350_v45 }
0x1338   :  { %v10365_v63 = vsub.f32 %v18585_v60, %v17759_v35  ;;  %v10369_v1 = vsub.f32 %v18586_v11, %v17759_v35  ;;  %v10373_v42 = vsub.f32 %v18587_v15, %v17759_v35  ;;  %v10377_v29 = vsub.f32 %v17671_v61, %v17759_v35  ;;  %v15620_v35 = vld [vmem:[%s18596_s7] sm:$0xff]  }
0x1339   :  { %v10364_v32 = vsub.f32 %v18588_v22, %v17762_v9  ;;  %v10368_v40 = vsub.f32 %v18589_v57, %v17762_v9  ;;  %v10372_v19 = vsub.f32 %v18590_v25, %v17762_v9  ;;  %v10376_v50 = vsub.f32 %v18591_v4, %v17762_v9 }
0x133a   :  { %v10366_v56 = vsub.f32 %v18592_v36, %v17774_v18  ;;  %v10370_v28 = vsub.f32 %v18593_v21, %v17774_v18  ;;  %v10374_v54 = vsub.f32 %v18594_v0, %v17774_v18  ;;  %v10378_v16 = vsub.f32 %v18595_v26, %v17774_v18 }
0x1356   :  { %v10267_v52 = vpop.f32.mrb[98].mxu1  ;;  %v10338_v30 = vpop.f32.mrb[102].mxu0 }
0x1357   :  { %v10268_v46 = vadd.f32 1e-05, %v10267_v52  ;;  %v10339_v2 = vadd.f32 1e-05, %v10338_v30  ;;  %v10269_v7 = vpop.f32.mrb[99].mxu1  ;;  %v10340_v8 = vpop.f32.mrb[103].mxu0 }
0x1358   :  { %v10270_v34 = vadd.f32 1e-05, %v10269_v7  ;;  %v10341_v13 = vadd.f32 1e-05, %v10340_v8 }
0x1359   :  { %15730 = vrsqrt.f32 %v10268_v46 }
0x135a   :  { %15732 = vrsqrt.f32 %v10339_v2 }
0x135b   :  { %15734 = vrsqrt.f32 %v10270_v34 }
0x135c   :  { %15736 = vrsqrt.f32 %v10341_v13 }
0x1363   :  { %v15731_v53 = vpop.eup %15730 }
0x1364   :  { %v15733_v49 = vpop.eup %15732  ;;  %v10382_v5 = vrot.slane %v15731_v53, %v18578_v3 }
0x1365   :  { %v15735_v41 = vpop.eup %15734  ;;  %v10390_v58 = vrot.slane %v15733_v49, %v18578_v3 }
0x1366   :  { %v15737_v17 = vpop.eup %15736  ;;  %v10386_v52 = vrot.slane %v15735_v41, %v18578_v3  ;;  %v10395_v30 = vmul.f32 %v10382_v5, %v10363_v37  ;;  %v10399_v46 = vmul.f32 %v10382_v5, %v10367_v43  ;;  %v10403_v2 = vmul.f32 %v10382_v5, %v10371_v55 }
0x1367   :  { %v10394_v7 = vrot.slane %v15737_v17, %v18578_v3  ;;  %v10397_v8 = vmul.f32 %v10390_v58, %v10365_v63  ;;  %v10401_v34 = vmul.f32 %v10390_v58, %v10369_v1  ;;  %v10407_v13 = vmul.f32 %v10382_v5, %v10375_v59 }
0x1368   :  { %v10396_v44 = vmul.f32 %v10386_v52, %v10364_v32  ;;  %v10400_v45 = vmul.f32 %v10386_v52, %v10368_v40  ;;  %v10433_v62 = vmul.f32 %v17768_v20, %v10395_v30  ;;  %v10437_v9 = vmul.f32 %v17768_v20, %v10399_v46  ;;  %v15624_v30 = vld [vmem:[%s18596_s7 + $0x8] sm:$0xff]  }
0x1369   :  { %v10398_v38 = vmul.f32 %v10394_v7, %v10366_v56  ;;  %v10402_v12 = vmul.f32 %v10394_v7, %v10370_v28  ;;  %v10435_v18 = vmul.f32 %v17771_v14, %v10397_v8  ;;  %v10439_v24 = vmul.f32 %v17771_v14, %v10401_v34  ;;  %v15623_v46 = vld [vmem:[%s18596_s7 + $0xc8] sm:$0xff]   ;;  %v15628_v8 = vld [vmem:[%s18596_s7 + $0x10] sm:$0xff]  }
0x136a   :  { %v10434_v33 = vmul.f32 %v17765_v6, %v10396_v44  ;;  %v10438_v37 = vmul.f32 %v17765_v6, %v10400_v45  ;;  %v10471_v3 = vadd.f32 %v17783_v31, %v10433_v62  ;;  %v10475_v39 = vadd.f32 %v17783_v31, %v10437_v9  ;;  %v15627_v34 = vld [vmem:[%s18596_s7 + $0xd0] sm:$0xff]   ;;  %v15751_v44 = vld [vmem:[#allocation2 + $0x8] sm:$0xff]   ;;  %v15632_v62 = vld [vmem:[%s18596_s7 + $0x18] sm:$0xff]  }
0x136b   :  { %v10436_v43 = vmul.f32 %v17780_v27, %v10398_v38  ;;  %v10440_v51 = vmul.f32 %v17780_v27, %v10402_v12  ;;  %v10473_v55 = vadd.f32 %v17791_v48, %v10435_v18  ;;  %v10477_v59 = vadd.f32 %v17791_v48, %v10439_v24  ;;  %v15629_v45 = vld [vmem:[%s18596_s7 + $0x90] sm:$0xff]   ;;  %v15631_v9 = vld [vmem:[%s18596_s7 + $0xd8] sm:$0xff]   ;;  %v15634_v38 = vld [vmem:[%s18596_s7 + $0x60] sm:$0xff]  }
0x136c   :  { %v10472_v60 = vadd.f32 %v17777_v23, %v10434_v33  ;;  %v10476_v63 = vadd.f32 %v17777_v23, %v10438_v37  ;;  %v17837_v11 = vpack.c.bf16 %v10475_v39, %v10471_v3  ;;  %v10404_v1 = vmul.f32 %v10386_v52, %v10372_v19  ;;  %v15633_v12 = vld [vmem:[%s18596_s7 + $0x98] sm:$0xff]   ;;  %v15636_v18 = vld [vmem:[%s18596_s7 + $0x20] sm:$0xff]   ;;  %v15638_v33 = vld [vmem:[%s18596_s7 + $0x68] sm:$0xff]  }
0x136d   :  { %v10474_v53 = vadd.f32 %v17788_v47, %v10436_v43  ;;  %v10478_v15 = vadd.f32 %v17788_v47, %v10440_v51  ;;  %v17841_v22 = vpack.c.bf16 %v10477_v59, %v10473_v55  ;;  %v10408_v32 = vmul.f32 %v10386_v52, %v10376_v50  ;;  %v15750_v52 = vld [vmem:[#allocation2] sm:$0xff]   ;;  %v15640_v3 = vld [vmem:[%s18596_s7 + $0x28] sm:$0xff]   ;;  %v15642_v43 = vld [vmem:[%s18596_s7 + $0x70] sm:$0xff]  }
0x136e   :  { %v17843_v57 = vpack.c.bf16 %v10476_v63, %v10472_v60  ;;  %v10442_v40 = vmul.f32 %v17765_v6, %v10404_v1  ;;  %v10406_v49 = vmul.f32 %v10394_v7, %v10374_v54  ;;  %v10410_v25 = vmul.f32 %v10394_v7, %v10378_v16  ;;  %v15625_v7 = vld [vmem:[%s18596_s7 + $0x88] sm:$0xff]   ;;  %v15635_v24 = vld [vmem:[%s18596_s7 + $0xe0] sm:$0xff]   ;;  %v15644_v55 = vld [vmem:[%s18596_s7 + $0x30] sm:$0xff]  }
0x136f   :  { %v17846_v4 = vpack.c.bf16 %v10478_v15, %v10474_v53  ;;  %v10446_v36 = vmul.f32 %v17765_v6, %v10408_v32  ;;  %v10441_v56 = vmul.f32 %v17768_v20, %v10403_v2  ;;  %v10445_v19 = vmul.f32 %v17768_v20, %v10407_v13  ;;  %v15626_v2 = vld [vmem:[%s18596_s7 + $0x50] sm:$0xff]   ;;  %v15630_v13 = vld [vmem:[%s18596_s7 + $0x58] sm:$0xff]   ;;  %v15637_v37 = vld [vmem:[%s18596_s7 + $0xa0] sm:$0xff]  }
0x1370   :  { %10503 = vmatprep.subr.bf16.mxu1 %v17843_v57  ;;  %v10480_v5 = vadd.f32 %v17777_v23, %v10442_v40  ;;  %v10444_v50 = vmul.f32 %v17780_v27, %v10406_v49  ;;  %v10448_v41 = vmul.f32 %v17780_v27, %v10410_v25  ;;  %v10405_v21 = vmul.f32 %v10390_v58, %v10373_v42  ;;  %v15639_v39 = vld [vmem:[%s18596_s7 + $0xe8] sm:$0xff]   ;;  %v15643_v59 = vld [vmem:[%s18596_s7 + $0xf0] sm:$0xff]   ;;  %v15646_v60 = vld [vmem:[%s18596_s7 + $0x78] sm:$0xff]  }
0x1371   :  { %10556 = vmatprep.subr.bf16.mxu0 %v17846_v4  ;;  %10504 = vmatpush1.bf16.msra.mxu1 %v17837_v11  ;;  %v10484_v28 = vadd.f32 %v17777_v23, %v10446_v36  ;;  %v10479_v6 = vadd.f32 %v17783_v31, %v10441_v56  ;;  %v10483_v0 = vadd.f32 %v17783_v31, %v10445_v19  ;;  %v15618_v23 = vld [vmem:[%s18596_s7 + $0x40] sm:$0xff]   ;;  %v15641_v51 = vld [vmem:[%s18596_s7 + $0xa8] sm:$0xff]   ;;  %v15645_v63 = vld [vmem:[%s18596_s7 + $0xb0] sm:$0xff]  }
0x1372   :  { %10557 = vmatpush1.bf16.msra.mxu0 %v17841_v22  ;;  %v10482_v20 = vadd.f32 %v17788_v47, %v10444_v50  ;;  %v10486_v54 = vadd.f32 %v17788_v47, %v10448_v41  ;;  %v10409_v27 = vmul.f32 %v10390_v58, %v10377_v29  ;;  %v10443_v42 = vmul.f32 %v17771_v14, %v10405_v21  ;;  %v15619_v29 = vld [vmem:[%s18596_s7 + $0xc0] sm:$0xff]   ;;  %v15648_v1 = vld [vmem:[%s18596_s7 + $0x38] sm:$0xff]  }
0x1373   :  { %v17867_v26 = vpack.c.bf16 %v10484_v28, %v10480_v5  ;;  %v17869_v16 = vpack.c.bf16 %v10483_v0, %v10479_v6  ;;  %v15647_v53 = vld [vmem:[%s18596_s7 + $0xf8] sm:$0xff]  }
0x1374   :  { %v17874_v31 = vpack.c.bf16 %v10486_v54, %v10482_v20  ;;  %v10447_v17 = vmul.f32 %v17771_v14, %v10409_v27  ;;  %v10481_v47 = vadd.f32 %v17791_v48, %v10443_v42  ;;  %v15622_v14 = vld [vmem:[%s18596_s7 + $0x48] sm:$0xff]   ;;  %v15649_v15 = vld [vmem:[%s18596_s7 + $0xb8] sm:$0xff]   ;;  %v15650_v20 = vld [vmem:[%s18596_s7 + $0x140] sm:$0xff]  }
0x1375   :  { %10505 = vmatprep.subr.bf16.mxu1 %v17867_v26 }
0x1376   :  { %10558 = vmatprep.subr.bf16.mxu0 %v17874_v31  ;;  %10506 = vmatpush1.bf16.msra.mxu1 %v17869_v16  ;;  %v10485_v61 = vadd.f32 %v17791_v48, %v10447_v17  ;;  %v15621_v48 = vld [vmem:[%s18596_s7 + $0x80] sm:$0xff]  }
0x1377   :  { %13471 = vmatprep.subr.bf16.mxu1 %v15618_v23 }
0x1378   :  { %v17891_v58 = vpack.c.bf16 %v10485_v61, %v10481_v47  ;;  %v15651_v61 = vld [vmem:[%s18596_s7 + $0x1c0] sm:$0xff]  }
0x1379   :  { %12803 = vmatmul.mubr.msk.bf16.vlgmr.msra.gmra.mrb[100].mxu1 %vm289_vm0, %v15750_v52 }
0x137a   :  { %10559 = vmatpush1.bf16.msra.mxu0 %v17891_v58  ;;  %13472 = vmatpush3.bf16.msra.mxu1 %v15620_v35 }
0x137b   :  { %13499 = vmatprep.subr.bf16.mxu0 %v15619_v29  ;;  %13473 = vmatprep.subr.bf16.mxu1 %v15622_v14 }
0x137c   :  { %10545 = vmatprep.mubr.bf16.mxu1 %v18577_v10 }
0x137d   :  { %12805 = vmatmul.mubr.msk.bf16.vlgmr.msra.gmra.mrb[104].mxu0 %vm289_vm0, %v15750_v52 }
0x137e   :  { %13500 = vmatpush3.bf16.msra.mxu0 %v15621_v48  ;;  %13474 = vmatpush3.bf16.msra.mxu1 %v15624_v30  ;;  %v15652_v48 = vld [vmem:[%s18596_s7 + $0x100] sm:$0xff]   ;;  %v15654_v30 = vld [vmem:[%s18596_s7 + $0x148] sm:$0xff]  }
0x137f   :  { %13501 = vmatprep.subr.bf16.mxu0 %v15623_v46  ;;  %10598 = vmatprep.mubr.bf16.mxu0 %v18577_v10  ;;  %v15752_v46 = vld [vmem:[#allocation2 + $0x10] sm:$0xff]  }
0x1380   :  { %13475 = vmatprep.subr.bf16.mxu1 %v15626_v2  ;;  %v15653_v2 = vld [vmem:[%s18596_s7 + $0x180] sm:$0xff]  }
0x1381   :  { %12804 = vmatmul.mubr.msk.bf16.gmra.mrb[104].mxu1 %vm289_vm0, %v15751_v44 }
0x1382   :  { %13502 = vmatpush3.bf16.msra.mxu0 %v15625_v7  ;;  %13476 = vmatpush3.bf16.msra.mxu1 %v15628_v8  ;;  %v15656_v7 = vld [vmem:[%s18596_s7 + $0x108] sm:$0xff]  }
0x1383   :  { %13503 = vmatprep.subr.bf16.mxu0 %v15627_v34  ;;  %13477 = vmatprep.subr.bf16.mxu1 %v15630_v13  ;;  %v15655_v8 = vld [vmem:[%s18596_s7 + $0x1c8] sm:$0xff]   ;;  %v15658_v34 = vld [vmem:[%s18596_s7 + $0x150] sm:$0xff]  }
0x1384   :  { %v15657_v13 = vld [vmem:[%s18596_s7 + $0x188] sm:$0xff]  }
0x1385   :  { %12806 = vmatmul.mubr.msk.bf16.gmra.mrb[108].mxu0 %vm289_vm0, %v15751_v44  ;;  %v15660_v44 = vld [vmem:[%s18596_s7 + $0x110] sm:$0xff]  }
0x1386   :  { %13504 = vmatpush3.bf16.msra.mxu0 %v15629_v45  ;;  %13478 = vmatpush3.bf16.msra.mxu1 %v15632_v62  ;;  %v15659_v45 = vld [vmem:[%s18596_s7 + $0x1d0] sm:$0xff]   ;;  %v15662_v62 = vld [vmem:[%s18596_s7 + $0x158] sm:$0xff]  }
0x1387   :  { %13505 = vmatprep.subr.bf16.mxu0 %v15631_v9  ;;  %13479 = vmatprep.subr.bf16.mxu1 %v15634_v38  ;;  %v15753_v9 = vld [vmem:[#allocation2 + $0x18] sm:$0xff]   ;;  %v15661_v38 = vld [vmem:[%s18596_s7 + $0x190] sm:$0xff]  }
0x138a   :  { %13506 = vmatpush3.bf16.msra.mxu0 %v15633_v12  ;;  %13480 = vmatpush3.bf16.msra.mxu1 %v15636_v18  ;;  %v15664_v12 = vld [vmem:[%s18596_s7 + $0x118] sm:$0xff]  }
0x138b   :  { %13507 = vmatprep.subr.bf16.mxu0 %v15635_v24  ;;  %13481 = vmatprep.subr.bf16.mxu1 %v15638_v33  ;;  %v15663_v18 = vld [vmem:[%s18596_s7 + $0x1d8] sm:$0xff]   ;;  %v15666_v24 = vld [vmem:[%s18596_s7 + $0x160] sm:$0xff]  }
0x138c   :  { %v15665_v33 = vld [vmem:[%s18596_s7 + $0x198] sm:$0xff]  }
0x138e   :  { %13508 = vmatpush3.bf16.msra.mxu0 %v15637_v37  ;;  %13482 = vmatpush3.bf16.msra.mxu1 %v15640_v3  ;;  %v15668_v37 = vld [vmem:[%s18596_s7 + $0x120] sm:$0xff]  }
0x138f   :  { %13509 = vmatprep.subr.bf16.mxu0 %v15639_v39  ;;  %13483 = vmatprep.subr.bf16.mxu1 %v15642_v43  ;;  %v15667_v3 = vld [vmem:[%s18596_s7 + $0x1e0] sm:$0xff]   ;;  %v15670_v39 = vld [vmem:[%s18596_s7 + $0x168] sm:$0xff]  }
0x1390   :  { %v15669_v43 = vld [vmem:[%s18596_s7 + $0x1a0] sm:$0xff]  }
0x1392   :  { %13510 = vmatpush3.bf16.msra.mxu0 %v15641_v51  ;;  %13484 = vmatpush3.bf16.msra.mxu1 %v15644_v55  ;;  %v15672_v51 = vld [vmem:[%s18596_s7 + $0x128] sm:$0xff]  }
0x1393   :  { %13511 = vmatprep.subr.bf16.mxu0 %v15643_v59  ;;  %13485 = vmatprep.subr.bf16.mxu1 %v15646_v60  ;;  %v15671_v55 = vld [vmem:[%s18596_s7 + $0x1e8] sm:$0xff]   ;;  %v15674_v59 = vld [vmem:[%s18596_s7 + $0x170] sm:$0xff]  }
0x1394   :  { %v15673_v60 = vld [vmem:[%s18596_s7 + $0x1a8] sm:$0xff]  }
0x1396   :  { %13512 = vmatpush3.bf16.msra.mxu0 %v15645_v63  ;;  %13486 = vmatpush3.bf16.msra.mxu1 %v15648_v1  ;;  %v15676_v63 = vld [vmem:[%s18596_s7 + $0x130] sm:$0xff]  }
0x1397   :  { %13513 = vmatprep.subr.bf16.mxu0 %v15647_v53  ;;  %10975 = vmatprep.subr.bf16.mxu1 %v17843_v57  ;;  %v15675_v1 = vld [vmem:[%s18596_s7 + $0x1f0] sm:$0xff]   ;;  %v15678_v53 = vld [vmem:[%s18596_s7 + $0x178] sm:$0xff]  }
0x139a   :  { %13514 = vmatpush3.bf16.msra.mxu0 %v15649_v15  ;;  %v15677_v15 = vld [vmem:[%s18596_s7 + $0x1b0] sm:$0xff]  }
0x139b   :  { %11028 = vmatprep.subr.bf16.mxu0 %v17846_v4 }
0x144c   :  { %v10537_v32 = vpop.f32.mrb[100].mxu1 }
0x144d   :  { %v10539_v40 = vpop.f32.mrb[101].mxu1 }
0x144e   :  { %v10541_v49 = vpop.f32.mrb[102].mxu1 }
0x144f   :  { %v10609_v25 = vpack.c.bf16 %v10541_v49, %v10537_v32  ;;  %v10543_v36 = vpop.f32.mrb[103].mxu1  ;;  %v15680_v32 = vld [vmem:[%s18596_s7 + $0x138] sm:$0xff]  }
0x1450   :  { %v10590_v56 = vpop.f32.mrb[104].mxu0  ;;  %v10610_v19 = vpack.c.bf16 %v10543_v36, %v10539_v40  ;;  %v15679_v40 = vld [vmem:[%s18596_s7 + $0x1f8] sm:$0xff]  }
0x1451   :  { %v10592_v5 = vpop.f32.mrb[105].mxu0  ;;  %v15681_v49 = vld [vmem:[%s18596_s7 + $0x1b8] sm:$0xff]  }
0x1452   :  { %v10594_v50 = vpop.f32.mrb[106].mxu0  ;;  %10905 = vmatprep.mubr.bf16.mxu1 %v10610_v19 }
0x1453   :  { %v10611_v41 = vpack.c.bf16 %v10594_v50, %v10590_v56  ;;  %v10596_v21 = vpop.f32.mrb[107].mxu0  ;;  %10906 = vmatmul.mubr.bf16.vlgmr.msra.gmra.mrb[108].mxu1 %v10609_v25 }
0x1454   :  { %v10612_v28 = vpack.c.bf16 %v10596_v21, %v10592_v5  ;;  %10976 = vmatpush1.bf16.msra.mxu1 %v17837_v11  ;;  %v10547_v6 = vpop.f32.mrb[104].mxu1 }
0x1455   :  { %10977 = vmatprep.subr.bf16.mxu1 %v17867_v26  ;;  %v10549_v0 = vpop.f32.mrb[105].mxu1 }
0x1456   :  { %10954 = vmatprep.mubr.bf16.mxu0 %v10612_v28  ;;  %v10551_v54 = vpop.f32.mrb[106].mxu1 }
0x1457   :  { %10955 = vmatmul.mubr.bf16.vlgmr.msra.gmra.mrb[112].mxu0 %v10611_v41  ;;  %v10613_v27 = vpack.c.bf16 %v10551_v54, %v10547_v6  ;;  %v10553_v42 = vpop.f32.mrb[107].mxu1 }
0x1458   :  { %11029 = vmatpush1.bf16.msra.mxu0 %v17841_v22  ;;  %v10600_v23 = vpop.f32.mrb[108].mxu0  ;;  %v10614_v17 = vpack.c.bf16 %v10553_v42, %v10549_v0  ;;  %10978 = vmatpush1.bf16.msra.mxu1 %v17869_v16 }
0x1459   :  { %11030 = vmatprep.subr.bf16.mxu0 %v17874_v31  ;;  %v10602_v47 = vpop.f32.mrb[109].mxu0  ;;  %13527 = vmatprep.subr.bf16.mxu1 %v15650_v20 }
0x145a   :  { %v10604_v35 = vpop.f32.mrb[110].mxu0  ;;  %10913 = vmatprep.mubr.bf16.mxu1 %v10614_v17 }
0x145b   :  { %v10615_v29 = vpack.c.bf16 %v10604_v35, %v10600_v23  ;;  %v10606_v14 = vpop.f32.mrb[111].mxu0  ;;  %10914 = vmatmul.mubr.bf16.gmra.mrb[112].mxu1 %v10613_v27 }
0x145c   :  { %v10616_v52 = vpack.c.bf16 %v10606_v14, %v10602_v47  ;;  %11031 = vmatpush1.bf16.msra.mxu0 %v17891_v58  ;;  %11007 = vmatprep.mubr.bf16.mxu1 %v18577_v10 }
0x145d   :  { %13555 = vmatprep.subr.bf16.mxu0 %v15651_v61 }
0x145e   :  { %10962 = vmatprep.mubr.bf16.mxu0 %v10616_v52 }
0x145f   :  { %10963 = vmatmul.mubr.bf16.gmra.mrb[116].mxu0 %v10615_v29 }
0x1460   :  { %11060 = vmatprep.mubr.bf16.mxu0 %v18577_v10 }
0x1463   :  { %12839 = vmatmul.mubr.msk.bf16.vlgmr.msra.gmra.mrb[116].mxu1 %vm289_vm0, %v15752_v46 }
0x1464   :  { %13528 = vmatpush3.bf16.msra.mxu1 %v15652_v48  ;;  %11017 = vmatprep.mubr.bf16.mxu1 %v18577_v10 }
0x1465   :  { %13529 = vmatprep.subr.bf16.mxu1 %v15654_v30 }
0x1467   :  { %12841 = vmatmul.mubr.msk.bf16.vlgmr.msra.gmra.mrb[120].mxu0 %vm289_vm0, %v15752_v46 }
0x1468   :  { %13556 = vmatpush3.bf16.msra.mxu0 %v15653_v2  ;;  %13530 = vmatpush3.bf16.msra.mxu1 %v15656_v7 }
0x1469   :  { %13557 = vmatprep.subr.bf16.mxu0 %v15655_v8  ;;  %11070 = vmatprep.mubr.bf16.mxu0 %v18577_v10 }
0x146a   :  { %13531 = vmatprep.subr.bf16.mxu1 %v15658_v34 }
0x146b   :  { %12840 = vmatmul.mubr.msk.bf16.gmra.mrb[120].mxu1 %vm289_vm0, %v15753_v9 }
0x146c   :  { %13558 = vmatpush3.bf16.msra.mxu0 %v15657_v13  ;;  %13532 = vmatpush3.bf16.msra.mxu1 %v15660_v44 }
0x146d   :  { %13559 = vmatprep.subr.bf16.mxu0 %v15659_v45  ;;  %13533 = vmatprep.subr.bf16.mxu1 %v15662_v62 }
0x146f   :  { %12842 = vmatmul.mubr.msk.bf16.gmra.mrb[124].mxu0 %vm289_vm0, %v15753_v9 }
0x1470   :  { %13560 = vmatpush3.bf16.msra.mxu0 %v15661_v38  ;;  %13534 = vmatpush3.bf16.msra.mxu1 %v15664_v12 }
0x1471   :  { %13561 = vmatprep.subr.bf16.mxu0 %v15663_v18  ;;  %13535 = vmatprep.subr.bf16.mxu1 %v15666_v24 }
0x1474   :  { %13562 = vmatpush3.bf16.msra.mxu0 %v15665_v33  ;;  %13536 = vmatpush3.bf16.msra.mxu1 %v15668_v37  ;;  %v15682_v37 = vld [vmem:[%s18596_s7 + $0x240] sm:$0xff]  }
0x1475   :  { %13563 = vmatprep.subr.bf16.mxu0 %v15667_v3  ;;  %13537 = vmatprep.subr.bf16.mxu1 %v15670_v39 }
0x1478   :  { %13564 = vmatpush3.bf16.msra.mxu0 %v15669_v43  ;;  %13538 = vmatpush3.bf16.msra.mxu1 %v15672_v51 }
0x1479   :  { %13565 = vmatprep.subr.bf16.mxu0 %v15671_v55  ;;  %13539 = vmatprep.subr.bf16.mxu1 %v15674_v59 }
0x147c   :  { %13566 = vmatpush3.bf16.msra.mxu0 %v15673_v60  ;;  %13540 = vmatpush3.bf16.msra.mxu1 %v15676_v63 }
0x147d   :  { %13567 = vmatprep.subr.bf16.mxu0 %v15675_v1  ;;  %13541 = vmatprep.subr.bf16.mxu1 %v15678_v53  ;;  %v15687_v53 = vld [vmem:[%s18596_s7 + $0x2c8] sm:$0xff]  }
0x1480   :  { %13568 = vmatpush3.bf16.msra.mxu0 %v15677_v15  ;;  %13542 = vmatpush3.bf16.msra.mxu1 %v15680_v32  ;;  %v15688_v15 = vld [vmem:[%s18596_s7 + $0x208] sm:$0xff]   ;;  %v15690_v32 = vld [vmem:[%s18596_s7 + $0x250] sm:$0xff]  }
0x1481   :  { %13569 = vmatprep.subr.bf16.mxu0 %v15679_v40  ;;  %11448 = vmatprep.subr.bf16.mxu1 %v17843_v57  ;;  %v15689_v40 = vld [vmem:[%s18596_s7 + $0x288] sm:$0xff]  }
0x1484   :  { %13570 = vmatpush3.bf16.msra.mxu0 %v15681_v49  ;;  %v15691_v49 = vld [vmem:[%s18596_s7 + $0x2d0] sm:$0xff]  }
0x1485   :  { %11501 = vmatprep.subr.bf16.mxu0 %v17846_v4 }
0x1526   :  { %v13487_v25 = vpop.f32.mrb[108].mxu1 }
0x1527   :  { %v13488_v36 = vpop.f32.mrb[109].mxu1 }
0x1528   :  { %v13489_v56 = vadd.f32 %v13488_v36, %v13487_v25  ;;  %v13490_v19 = vpop.f32.mrb[110].mxu1  ;;  %v15755_v25 = vld [vmem:[#allocation2 + $0x28] sm:$0xff]   ;;  %v15693_v36 = vld [vmem:[%s18596_s7 + $0x290] sm:$0xff]  }
0x1529   :  { %v13491_v5 = vpop.f32.mrb[111].mxu1 }
0x152a   :  { %v13515_v50 = vpop.f32.mrb[112].mxu0  ;;  %v13492_v41 = vadd.f32 %v13491_v5, %v13490_v19  ;;  %v15695_v19 = vld [vmem:[%s18596_s7 + $0x2d8] sm:$0xff]  }
0x152b   :  { %v13516_v21 = vpop.f32.mrb[113].mxu0  ;;  %v15696_v5 = vld [vmem:[%s18596_s7 + $0x218] sm:$0xff]  }
0x152c   :  { %v13517_v28 = vadd.f32 %v13516_v21, %v13515_v50  ;;  %v13518_v6 = vpop.f32.mrb[114].mxu0  ;;  %v15697_v50 = vld [vmem:[%s18596_s7 + $0x298] sm:$0xff]   ;;  %v15699_v21 = vld [vmem:[%s18596_s7 + $0x2e0] sm:$0xff]  }
0x152d   :  { %v13519_v0 = vpop.f32.mrb[115].mxu0 }
0x152e   :  { %v18098_v20 = vadd.f32 %v13517_v28, %v13489_v56  ;;  %v13520_v54 = vadd.f32 %v13519_v0, %v13518_v6  ;;  %v13493_v27 = vpop.f32.mrb[112].mxu1  ;;  %v15694_v56 = vld [vmem:[%s18596_s7 + $0x258] sm:$0xff]   ;;  %v15700_v28 = vld [vmem:[%s18596_s7 + $0x220] sm:$0xff]   ;;  %v15702_v0 = vld [vmem:[%s18596_s7 + $0x268] sm:$0xff]  }
0x152f   :  { %v13494_v42 = vpop.f32.mrb[113].mxu1  ;;  %v15701_v6 = vld [vmem:[%s18596_s7 + $0x2a0] sm:$0xff]  }
0x1530   :  { %v18100_v57 = vadd.f32 %v13520_v54, %v13492_v41  ;;  %v13495_v23 = vadd.f32 %v13494_v42, %v13493_v27  ;;  %v13496_v4 = vpop.f32.mrb[114].mxu1  ;;  %v15698_v41 = vld [vmem:[%s18596_s7 + $0x260] sm:$0xff]   ;;  %v15703_v54 = vld [vmem:[%s18596_s7 + $0x2e8] sm:$0xff]  }
0x1531   :  { %v13497_v17 = vpop.f32.mrb[115].mxu1  ;;  %v15704_v27 = vld [vmem:[%s18596_s7 + $0x228] sm:$0xff]  }
0x1532   :  { %v13521_v47 = vpop.f32.mrb[116].mxu0  ;;  %v13498_v61 = vadd.f32 %v13497_v17, %v13496_v4  ;;  %v15705_v42 = vld [vmem:[%s18596_s7 + $0x2a8] sm:$0xff]   ;;  %v15707_v4 = vld [vmem:[%s18596_s7 + $0x2f0] sm:$0xff]  }
0x1533   :  { %v13522_v35 = vpop.f32.mrb[117].mxu0  ;;  %v15708_v17 = vld [vmem:[%s18596_s7 + $0x230] sm:$0xff]  }
0x1534   :  { %v13523_v29 = vadd.f32 %v13522_v35, %v13521_v47  ;;  %v13524_v14 = vpop.f32.mrb[118].mxu0  ;;  %v15709_v47 = vld [vmem:[%s18596_s7 + $0x2b0] sm:$0xff]   ;;  %v15711_v35 = vld [vmem:[%s18596_s7 + $0x2f8] sm:$0xff]  }
0x1535   :  { %v13525_v52 = vpop.f32.mrb[119].mxu0 }
0x1536   :  { %v18102_v48 = vadd.f32 %v13523_v29, %v13495_v23  ;;  %v13526_v30 = vadd.f32 %v13525_v52, %v13524_v14  ;;  %v11009_v46 = vpop.f32.mrb[116].mxu1  ;;  %v15706_v23 = vld [vmem:[%s18596_s7 + $0x270] sm:$0xff]   ;;  %v15712_v29 = vld [vmem:[%s18596_s7 + $0x238] sm:$0xff]  }
0x1537   :  { %v11011_v2 = vpop.f32.mrb[117].mxu1  ;;  %v15713_v14 = vld [vmem:[%s18596_s7 + $0x2b8] sm:$0xff]  }
0x1538   :  { %v18104_v7 = vadd.f32 %v13526_v30, %v13498_v61  ;;  %v11013_v8 = vpop.f32.mrb[118].mxu1  ;;  %v15710_v61 = vld [vmem:[%s18596_s7 + $0x278] sm:$0xff]  }
0x1539   :  { %v11081_v34 = vpack.c.bf16 %v11013_v8, %v11009_v46  ;;  %v11015_v13 = vpop.f32.mrb[119].mxu1 }
0x153a   :  { %v11062_v44 = vpop.f32.mrb[120].mxu0  ;;  %v11082_v45 = vpack.c.bf16 %v11015_v13, %v11011_v2 }
0x153b   :  { %v11064_v62 = vpop.f32.mrb[121].mxu0 }
0x153c   :  { %v11066_v9 = vpop.f32.mrb[122].mxu0  ;;  %11378 = vmatprep.mubr.bf16.mxu1 %v11082_v45 }
0x153d   :  { %v11083_v38 = vpack.c.bf16 %v11066_v9, %v11062_v44  ;;  %v11068_v12 = vpop.f32.mrb[123].mxu0  ;;  %11379 = vmatmul.mubr.bf16.vlgmr.msra.gmra.mrb[124].mxu1 %v11081_v34  ;;  %v12802_v44 = vld [vmem:[#allocation22] ss:$0 sm:$0xff] }
0x153e   :  { %v11084_v18 = vpack.c.bf16 %v11068_v12, %v11064_v62  ;;  %11449 = vmatpush1.bf16.msra.mxu1 %v17837_v11  ;;  %v11019_v24 = vpop.f32.mrb[120].mxu1  ;;  %v10971_v12 = vadd.f32 %v12802_v44, %v18098_v20 }
0x153f   :  { %11450 = vmatprep.subr.bf16.mxu1 %v17867_v26  ;;  %v11021_v33 = vpop.f32.mrb[121].mxu1  ;;  %v15683_v26 = vld [vmem:[%s18596_s7 + $0x2c0] sm:$0xff]  }
0x1540   :  { %11427 = vmatprep.mubr.bf16.mxu0 %v11084_v18  ;;  %v11023_v3 = vpop.f32.mrb[122].mxu1 }
0x1541   :  { %11428 = vmatmul.mubr.bf16.vlgmr.msra.gmra.mrb[128].mxu0 %v11083_v38  ;;  %v11085_v39 = vpack.c.bf16 %v11023_v3, %v11019_v24  ;;  %v11025_v43 = vpop.f32.mrb[123].mxu1  ;;  %v10972_v3 = vadd.f32 %v12802_v44, %v18100_v57 }
0x1542   :  { %11502 = vmatpush1.bf16.msra.mxu0 %v17841_v22  ;;  %v11072_v51 = vpop.f32.mrb[124].mxu0  ;;  %v11086_v55 = vpack.c.bf16 %v11025_v43, %v11021_v33  ;;  %11451 = vmatpush1.bf16.msra.mxu1 %v17869_v16  ;;  %v15684_v22 = vld [vmem:[%s18596_s7 + $0x200] sm:$0xff]   ;;  %v15686_v16 = vld [vmem:[%s18596_s7 + $0x248] sm:$0xff]  }
0x1543   :  { %11503 = vmatprep.subr.bf16.mxu0 %v17874_v31  ;;  %v11074_v11 = vpop.f32.mrb[125].mxu0  ;;  %13583 = vmatprep.subr.bf16.mxu1 %v15682_v37  ;;  %v15754_v31 = vld [vmem:[#allocation2 + $0x20] sm:$0xff]  }
0x1544   :  { %v11076_v59 = vpop.f32.mrb[126].mxu0  ;;  %11386 = vmatprep.mubr.bf16.mxu1 %v11086_v55 }
0x1545   :  { %v11087_v60 = vpack.c.bf16 %v11076_v59, %v11072_v51  ;;  %v11078_v63 = vpop.f32.mrb[127].mxu0  ;;  %11387 = vmatmul.mubr.bf16.gmra.mrb[128].mxu1 %v11085_v39 }
0x1546   :  { %v11088_v1 = vpack.c.bf16 %v11078_v63, %v11074_v11  ;;  %11504 = vmatpush1.bf16.msra.mxu0 %v17891_v58  ;;  %11480 = vmatprep.mubr.bf16.mxu1 %v18577_v10  ;;  %v15685_v58 = vld [vmem:[%s18596_s7 + $0x280] sm:$0xff]  }
0x1547   :  { %13611 = vmatprep.subr.bf16.mxu0 %v15683_v26 }
0x1548   :  { %11435 = vmatprep.mubr.bf16.mxu0 %v11088_v1 }
0x1549   :  { %11436 = vmatmul.mubr.bf16.gmra.mrb[132].mxu0 %v11087_v60 }
0x154a   :  { %11533 = vmatprep.mubr.bf16.mxu0 %v18577_v10 }
0x154d   :  { %12939 = vmatmul.mubr.msk.bf16.vlgmr.msra.gmra.mrb[132].mxu1 %vm289_vm0, %v15754_v31 }
0x154e   :  { %11490 = vmatprep.mubr.bf16.mxu1 %v18577_v10  ;;  %13584 = vmatpush3.bf16.msra.mxu1 %v15684_v22 }
0x154f   :  { %13585 = vmatprep.subr.bf16.mxu1 %v15686_v16  ;;  %v10973_v16 = vadd.f32 %v12802_v44, %v18102_v48 }
0x1551   :  { %12941 = vmatmul.mubr.msk.bf16.vlgmr.msra.gmra.mrb[136].mxu0 %vm289_vm0, %v15754_v31 }
0x1552   :  { %11543 = vmatprep.mubr.bf16.mxu0 %v18577_v10  ;;  %13612 = vmatpush3.bf16.msra.mxu0 %v15685_v58  ;;  %v15692_v10 = vld [vmem:[%s18596_s7 + $0x210] sm:$0xff]  }
0x1553   :  { %13613 = vmatprep.subr.bf16.mxu0 %v15687_v53  ;;  %13586 = vmatpush3.bf16.msra.mxu1 %v15688_v15  ;;  %v10974_v15 = vadd.f32 %v12802_v44, %v18104_v7 }
0x1554   :  { %13587 = vmatprep.subr.bf16.mxu1 %v15690_v32 }
0x1555   :  { %12940 = vmatmul.mubr.msk.bf16.gmra.mrb[136].mxu1 %vm289_vm0, %v15755_v25 }
0x1556   :  { %13614 = vmatpush3.bf16.msra.mxu0 %v15689_v40 }
0x1557   :  { %13615 = vmatprep.subr.bf16.mxu0 %v15691_v49  ;;  %13588 = vmatpush3.bf16.msra.mxu1 %v15692_v10 }
0x1558   :  { %13589 = vmatprep.subr.bf16.mxu1 %v15694_v56 }
0x1559   :  { %12942 = vmatmul.mubr.msk.bf16.gmra.mrb[140].mxu0 %vm289_vm0, %v15755_v25  ;;  %vm11921_vm0 = vcmask 523264  }
0x155a   :  { %13616 = vmatpush3.bf16.msra.mxu0 %v15693_v36 }
0x155b   :  { %13617 = vmatprep.subr.bf16.mxu0 %v15695_v19  ;;  %13590 = vmatpush3.bf16.msra.mxu1 %v15696_v5 }
0x155c   :  { %13591 = vmatprep.subr.bf16.mxu1 %v15698_v41 }
0x155e   :  { %13618 = vmatpush3.bf16.msra.mxu0 %v15697_v50 }
0x155f   :  { %13619 = vmatprep.subr.bf16.mxu0 %v15699_v21  ;;  %13592 = vmatpush3.bf16.msra.mxu1 %v15700_v28 }
0x1560   :  { %13593 = vmatprep.subr.bf16.mxu1 %v15702_v0 }
0x1562   :  { %13620 = vmatpush3.bf16.msra.mxu0 %v15701_v6 }
0x1563   :  { %13621 = vmatprep.subr.bf16.mxu0 %v15703_v54  ;;  %13594 = vmatpush3.bf16.msra.mxu1 %v15704_v27 }
0x1564   :  { %13595 = vmatprep.subr.bf16.mxu1 %v15706_v23 }
0x1566   :  { %13622 = vmatpush3.bf16.msra.mxu0 %v15705_v42 }
0x1567   :  { %13623 = vmatprep.subr.bf16.mxu0 %v15707_v4  ;;  %13596 = vmatpush3.bf16.msra.mxu1 %v15708_v17 }
0x1568   :  { %13597 = vmatprep.subr.bf16.mxu1 %v15710_v61 }
0x156a   :  { %13624 = vmatpush3.bf16.msra.mxu0 %v15709_v47 }
0x156b   :  { %13625 = vmatprep.subr.bf16.mxu0 %v15711_v35  ;;  %13598 = vmatpush3.bf16.msra.mxu1 %v15712_v29 }
0x156e   :  { %13626 = vmatpush3.bf16.msra.mxu0 %v15713_v14 }
0x1610   :  { %v13543_v52 = vpop.f32.mrb[124].mxu1 }
0x1611   :  { %v13544_v30 = vpop.f32.mrb[125].mxu1 }
0x1612   :  { %v13545_v46 = vadd.f32 %v13544_v30, %v13543_v52  ;;  %v13546_v2 = vpop.f32.mrb[126].mxu1 }
0x1613   :  { %v13547_v8 = vpop.f32.mrb[127].mxu1 }
0x1614   :  { %v13571_v34 = vpop.f32.mrb[128].mxu0  ;;  %v13548_v13 = vadd.f32 %v13547_v8, %v13546_v2 }
0x1615   :  { %v13572_v45 = vpop.f32.mrb[129].mxu0 }
0x1616   :  { %v13573_v62 = vadd.f32 %v13572_v45, %v13571_v34  ;;  %v13574_v9 = vpop.f32.mrb[130].mxu0 }
0x1617   :  { %v13575_v38 = vpop.f32.mrb[131].mxu0 }
0x1618   :  { %v11430_v18 = vadd.f32 %v13573_v62, %v13545_v46  ;;  %v13576_v24 = vadd.f32 %v13575_v38, %v13574_v9  ;;  %v13549_v33 = vpop.f32.mrb[128].mxu1 }
0x1619   :  { %v13550_v37 = vpop.f32.mrb[129].mxu1 }
0x161a   :  { %v18218_v39 = vadd.f32 %v11430_v18, %v10971_v12  ;;  %v11433_v43 = vadd.f32 %v13576_v24, %v13548_v13  ;;  %v13551_v51 = vadd.f32 %v13550_v37, %v13549_v33  ;;  %v13552_v55 = vpop.f32.mrb[130].mxu1 }
0x161b   :  { %v13553_v11 = vpop.f32.mrb[131].mxu1 }
0x161c   :  { %v18220_v26 = vadd.f32 %v11433_v43, %v10972_v3  ;;  %v13577_v59 = vpop.f32.mrb[132].mxu0  ;;  %v13554_v60 = vadd.f32 %v13553_v11, %v13552_v55 }
0x161d   :  { %v13578_v63 = vpop.f32.mrb[133].mxu0 }
0x161e   :  { %v13579_v1 = vadd.f32 %v13578_v63, %v13577_v59  ;;  %v13580_v22 = vpop.f32.mrb[134].mxu0 }
0x161f   :  { %v13581_v20 = vpop.f32.mrb[135].mxu0 }
0x1620   :  { %v11438_v31 = vadd.f32 %v13579_v1, %v13551_v51  ;;  %v13582_v58 = vadd.f32 %v13581_v20, %v13580_v22  ;;  %v11482_v53 = vpop.f32.mrb[132].mxu1 }
0x1621   :  { %v11484_v57 = vpop.f32.mrb[133].mxu1 }
0x1622   :  { %v18224_v32 = vadd.f32 %v11438_v31, %v10973_v16  ;;  %v11441_v40 = vadd.f32 %v13582_v58, %v13554_v60  ;;  %v11486_v49 = vpop.f32.mrb[134].mxu1 }
0x1623   :  { %v11554_v25 = vpack.c.bf16 %v11486_v49, %v11482_v53  ;;  %v11488_v10 = vpop.f32.mrb[135].mxu1 }
0x1624   :  { %v18226_v36 = vadd.f32 %v11441_v40, %v10974_v15  ;;  %v11535_v56 = vpop.f32.mrb[136].mxu0  ;;  %v11555_v19 = vpack.c.bf16 %v11488_v10, %v11484_v57 }
0x1625   :  { %v11537_v5 = vpop.f32.mrb[137].mxu0 }
0x1626   :  { %v11539_v50 = vpop.f32.mrb[138].mxu0  ;;  %11851 = vmatprep.mubr.bf16.mxu1 %v11555_v19 }
0x1627   :  { %v11556_v48 = vpack.c.bf16 %v11539_v50, %v11535_v56  ;;  %v11541_v41 = vpop.f32.mrb[139].mxu0  ;;  %11852 = vmatmul.mubr.bf16.vlgmr.msra.gmra.mrb[140].mxu1 %v11554_v25 }
0x1628   :  { %v11557_v21 = vpack.c.bf16 %v11541_v41, %v11537_v5  ;;  %v11492_v28 = vpop.f32.mrb[136].mxu1 }
0x1629   :  { %v11494_v6 = vpop.f32.mrb[137].mxu1 }
0x162a   :  { %11900 = vmatprep.mubr.bf16.mxu0 %v11557_v21  ;;  %v11496_v7 = vpop.f32.mrb[138].mxu1 }
0x162b   :  { %11901 = vmatmul.mubr.bf16.vlgmr.msra.gmra.mrb[144].mxu0 %v11556_v48  ;;  %v11558_v0 = vpack.c.bf16 %v11496_v7, %v11492_v28  ;;  %v11498_v54 = vpop.f32.mrb[139].mxu1 }
0x162c   :  { %v11545_v27 = vpop.f32.mrb[140].mxu0  ;;  %v11559_v42 = vpack.c.bf16 %v11498_v54, %v11494_v6 }
0x162d   :  { %v11547_v23 = vpop.f32.mrb[141].mxu0 }
0x162e   :  { %v11549_v4 = vpop.f32.mrb[142].mxu0  ;;  %11859 = vmatprep.mubr.bf16.mxu1 %v11559_v42 }
0x162f   :  { %v11560_v17 = vpack.c.bf16 %v11549_v4, %v11545_v27  ;;  %v11551_v47 = vpop.f32.mrb[143].mxu0  ;;  %11860 = vmatmul.mubr.bf16.gmra.mrb[144].mxu1 %v11558_v0 }
0x1630   :  { %v11561_v61 = vpack.c.bf16 %v11551_v47, %v11547_v23 }
0x1632   :  { %11908 = vmatprep.mubr.bf16.mxu0 %v11561_v61 }
0x1633   :  { %11909 = vmatmul.mubr.bf16.gmra.mrb[148].mxu0 %v11560_v17 }
0x16fa   :  { %v13599_v35 = vpop.f32.mrb[140].mxu1 }
0x16fb   :  { %v13600_v29 = vpop.f32.mrb[141].mxu1 }
0x16fc   :  { %v13601_v14 = vadd.f32 %v13600_v29, %v13599_v35  ;;  %v13602_v52 = vpop.f32.mrb[142].mxu1 }
0x16fd   :  { %v13603_v30 = vpop.f32.mrb[143].mxu1 }
0x16fe   :  { %v13627_v46 = vpop.f32.mrb[144].mxu0  ;;  %v13604_v2 = vadd.f32 %v13603_v30, %v13602_v52 }
0x16ff   :  { %v13628_v8 = vpop.f32.mrb[145].mxu0 }
0x1700   :  { %v13629_v34 = vadd.f32 %v13628_v8, %v13627_v46  ;;  %v13630_v13 = vpop.f32.mrb[146].mxu0 }
0x1701   :  { %v13631_v44 = vpop.f32.mrb[147].mxu0 }
0x1702   :  { %v11903_v45 = vadd.f32 %v13629_v34, %v13601_v14  ;;  %v13632_v62 = vadd.f32 %v13631_v44, %v13630_v13  ;;  %v13605_v9 = vpop.f32.mrb[144].mxu1 }
0x1703   :  { %v13606_v38 = vpop.f32.mrb[145].mxu1 }
0x1704   :  { %v11917_v12 = vadd.f32 %v11903_v45, %v18218_v39  ;;  %v11906_v18 = vadd.f32 %v13632_v62, %v13604_v2  ;;  %v13607_v24 = vadd.f32 %v13606_v38, %v13605_v9  ;;  %v13608_v33 = vpop.f32.mrb[146].mxu1 }
0x1705   :  { %v13609_v37 = vpop.f32.mrb[147].mxu1 }
0x1706   :  { %11922 = vst.msk [vmem:[%s18597_s20] sm:$0xff] %vm11921_vm0, %v11917_v12  ;;  %v11918_v3 = vadd.f32 %v11906_v18, %v18220_v26  ;;  %v13633_v43 = vpop.f32.mrb[148].mxu0  ;;  %v13610_v51 = vadd.f32 %v13609_v37, %v13608_v33 }
0x1707   :  { %v13634_v55 = vpop.f32.mrb[149].mxu0 }
0x1708   :  { %11923 = vst.msk [vmem:[%s18597_s20 + $0x8] sm:$0xff] %vm11921_vm0, %v11918_v3  ;;  %v13635_v39 = vadd.f32 %v13634_v55, %v13633_v43  ;;  %v13636_v11 = vpop.f32.mrb[150].mxu0 }
0x1709   :  { %v13637_v59 = vpop.f32.mrb[151].mxu0 }
0x170a   :  { %v11911_v60 = vadd.f32 %v13635_v39, %v13607_v24  ;;  %v13638_v63 = vadd.f32 %v13637_v59, %v13636_v11 }
0x170c   :  { %v11919_v1 = vadd.f32 %v11911_v60, %v18224_v32  ;;  %v11914_v22 = vadd.f32 %v13638_v63, %v13610_v51 }
0x170e   :  { %11924 = vst.msk [vmem:[%s18597_s20 + $0x10] sm:$0xff] %vm11921_vm0, %v11919_v1  ;;  %v11920_v26 = vadd.f32 %v11914_v22, %v18226_v36 }
0x1710   :  { %11925 = vst.msk [vmem:[%s18597_s20 + $0x18] sm:$0xff] %vm11921_vm0, %v11920_v26 }
0x1711   :  { %11930 = vsyncpa [#allocation3], 1 }
0x1712   :  { %11931 = vsyncpa [#allocation5], 1 }
0x1713   :  { %11932 = vsyncpa [#allocation8], 1 }
0x1714   :  { %11933 = vsyncpa [#allocation11], 1 }
0x1715   :  { %11934 = vsyncpa [#allocation14], 1 }
0x1716   :  { %11935 = vsyncpa [#allocation17], 1 }
0x1717   :  { %11936 = vsyncpa [#allocation20], 1 }
0x1718   :  { %11937 = vsyncpa [#allocation23], 1 }

</bundles_post_ra>
